<compile_context>
chip_gen: v5e
topology: v5e:2x2
jax: 0.10.0
libtpu: 0.0.40
codegen_flags: <defaults>
</compile_context>

<pallas_src>
import functools
import numpy as np
import jax
import jax.numpy as jnp
from jax.experimental import pallas as pl
from jax.experimental.pallas import tpu as pltpu


def _round_up(x, m):
    return (x + m - 1) // m * m


def _pick_tile(dim_padded, pref, mult=128):
    """Largest multiple of `mult` <= `pref` that evenly divides `dim_padded`
    (dim_padded is already a multiple of `mult`); falls back to `mult`."""
    if dim_padded <= pref:
        return dim_padded
    best = mult
    t = 2 * mult
    while t <= pref:
        if dim_padded % t == 0:
            best = t
        t += mult
    return best


# ----------------------------- Pallas matmul kernels ------------------------------

def _mm_kernel(a_ref, b_ref, bias_ref, o_ref, acc_ref, *, relu):
    k = pl.program_id(2)

    @pl.when(k == 0)
    def _():
        acc_ref[...] = jnp.zeros_like(acc_ref)

    acc_ref[...] += jnp.dot(a_ref[...], b_ref[...], preferred_element_type=jnp.float32)

    @pl.when(k == pl.num_programs(2) - 1)
    def _():
        out = acc_ref[...] + bias_ref[...]
        if relu:
            out = jnp.maximum(out, 0.0)
        o_ref[...] = out.astype(o_ref.dtype)


def _mm_res_kernel(a_ref, b_ref, bias_ref, res_ref, o_ref, acc_ref, *, relu):
    k = pl.program_id(2)

    @pl.when(k == 0)
    def _():
        acc_ref[...] = jnp.zeros_like(acc_ref)

    acc_ref[...] += jnp.dot(a_ref[...], b_ref[...], preferred_element_type=jnp.float32)

    @pl.when(k == pl.num_programs(2) - 1)
    def _():
        # epilogue math kept in f32 vregs (v5e has no bf16 VPU path)
        out = acc_ref[...] + bias_ref[...] + res_ref[...].astype(jnp.float32)
        if relu:
            out = jnp.maximum(out, 0.0)
        o_ref[...] = out.astype(o_ref.dtype)


def pallas_matmul_bias(a, b, bias, residual=None, relu=False, out_dtype=jnp.bfloat16,
                       tm_pref=256, tn_pref=256, tk_pref=768):
    """A(M,K) @ B(K,N) + bias (+ residual) (+ ReLU) with bf16 MXU operands and f32
    accumulation across a tiled K grid axis.

    Returns (M, Np) with Np = round_up(N, 128); padded output channels are exactly
    zero (zero weight columns + zero bias [+ zero residual] -> relu(0) == 0), so the
    channel-padded layout can be carried straight into the next layer.
    """
    M, K = a.shape
    Kb, N = b.shape
    assert K == Kb, (K, Kb)

    Kp = _round_up(K, 128)
    Np = _round_up(N, 128)
    tm = min(tm_pref, _round_up(M, 16))
    Mp = _round_up(M, tm)
    tk = _pick_tile(Kp, tk_pref, 128)
    tn = _pick_tile(Np, tn_pref, 128)

    a = jnp.pad(a.astype(jnp.bfloat16), ((0, Mp - M), (0, Kp - K)))
    b = jnp.pad(b.astype(jnp.bfloat16), ((0, Kp - K), (0, Np - N)))
    bias2 = jnp.pad(bias.astype(jnp.float32).reshape(1, N), ((0, 0), (0, Np - N)))

    grid = (Mp // tm, Np // tn, Kp // tk)

    in_specs = [
        pl.BlockSpec((tm, tk), lambda i, j, k: (i, k)),
        pl.BlockSpec((tk, tn), lambda i, j, k: (k, j)),
        pl.BlockSpec((1, tn), lambda i, j, k: (0, j)),
    ]
    args = [a, b, bias2]
    if residual is None:
        kern = functools.partial(_mm_kernel, relu=relu)
    else:
        res = jnp.pad(residual.astype(jnp.bfloat16),
                      ((0, Mp - residual.shape[0]), (0, Np - residual.shape[1])))
        in_specs.append(pl.BlockSpec((tm, tn), lambda i, j, k: (i, j)))
        args.append(res)
        kern = functools.partial(_mm_res_kernel, relu=relu)

    out = pl.pallas_call(
        kern,
        out_shape=jax.ShapeDtypeStruct((Mp, Np), out_dtype),
        grid_spec=pltpu.PrefetchScalarGridSpec(
            num_scalar_prefetch=0,
            grid=grid,
            in_specs=in_specs,
            out_specs=pl.BlockSpec((tm, tn), lambda i, j, k: (i, j)),
            scratch_shapes=[pltpu.VMEM((tm, tn), jnp.float32)],
        ),
        compiler_params=pltpu.CompilerParams(
            dimension_semantics=("parallel", "parallel", "arbitrary"),
            vmem_limit_bytes=48 * 1024 * 1024,
        ),
    )(*args)
    return out[:M]  # keep the (exactly-zero) padded output channels


# ----------------------------- Pallas global average pool -------------------------

def _mean_kernel(x_ref, o_ref, *, inv_p):
    o_ref[...] = jnp.sum(x_ref[...].astype(jnp.float32), axis=1) * inv_p


def pallas_global_avgpool(x):
    """(N, H, W, C) -> (N, C) f32 spatial mean (== AdaptiveAvgPool2d((1,1))), tiled
    over lane-dense channel blocks."""
    N, H, W, C = x.shape
    assert C % 128 == 0, C
    P = H * W
    y = x.reshape(N, P, C)
    tc = 256 if C % 256 == 0 else 128
    return pl.pallas_call(
        functools.partial(_mean_kernel, inv_p=1.0 / P),
        out_shape=jax.ShapeDtypeStruct((N, C), jnp.float32),
        grid=(C // tc,),
        in_specs=[pl.BlockSpec((N, P, tc), lambda c: (0, 0, c))],
        out_specs=pl.BlockSpec((N, tc), lambda c: (0, c)),
        compiler_params=pltpu.CompilerParams(
            dimension_semantics=("parallel",),
        ),
    )(y)


# ----------------------------- plain-JAX glue -------------------------------------

def maxpool3x3_s2_p1(x):
    """3x3 max pool, stride 2, pad 1, NHWC.  Fused plain-JAX pairwise max over the
    nine strided window slices (one read of x, one write of the output); a Pallas
    boundary here would only add an HBM materialization of the gathered windows."""
    N, H, W, C = x.shape
    Ho = (H + 2 - 3) // 2 + 1
    Wo = (W + 2 - 3) // 2 + 1
    xp = jnp.pad(x, ((0, 0), (1, 1), (1, 1), (0, 0)), constant_values=float("-inf"))
    out = None
    for i in range(3):
        for j in range(3):
            s = xp[:, i:i + 2 * Ho:2, j:j + 2 * Wo:2, :]
            out = s if out is None else jnp.maximum(out, s)
    return out


def _im2col(x, kh, kw, stride, pad):
    # TODO(synk): the kh*kw patches tensor is still materialized at the JAX level;
    # folding the taps into the matmul kernel's K grid axis (direct conv) is future work.
    N, H, W, C = x.shape
    if pad:
        x = jnp.pad(x, ((0, 0), (pad, pad), (pad, pad), (0, 0)))
    Hp, Wp = H + 2 * pad, W + 2 * pad
    Ho = (Hp - kh) // stride + 1
    Wo = (Wp - kw) // stride + 1
    cols = []
    for i in range(kh):
        for j in range(kw):
            cols.append(x[:, i:i + stride * Ho:stride, j:j + stride * Wo:stride, :])
    patches = jnp.stack(cols, axis=3)  # (N, Ho, Wo, kh*kw, C)
    return patches.reshape(N * Ho * Wo, kh * kw * C), Ho, Wo


def _fold_bn(w, bn, eps=1e-5):
    # eval-mode BatchNorm folded into the preceding conv (exact for inference); f32.
    scale = bn["gamma"] / jnp.sqrt(bn["var"] + eps)
    return w * scale[:, None, None, None], bn["beta"] - bn["mean"] * scale


def conv_bn(x, w, bias, stride, pad, relu, residual=None, out_dtype=jnp.bfloat16):
    """x: NHWC bf16 whose channel dim may carry zero padding beyond w's cin."""
    cout, cin, kh, kw = w.shape
    Cp = x.shape[-1]
    if Cp > cin:  # extend weights with zero input channels to match padded activation
        w = jnp.pad(w, ((0, 0), (0, Cp - cin), (0, 0), (0, 0)))
    a, Ho, Wo = _im2col(x, kh, kw, stride, pad)
    bmat = jnp.transpose(w, (2, 3, 1, 0)).reshape(kh * kw * Cp, cout)
    res = None if residual is None else residual.reshape(-1, residual.shape[-1])
    y = pallas_matmul_bias(a, bmat, bias, residual=res, relu=relu, out_dtype=out_dtype)
    return y.reshape(x.shape[0], Ho, Wo, y.shape[-1])


def bottleneck(x, blk, stride, has_down):
    w1, b1 = _fold_bn(blk["w1"], blk["bn1"])
    w2, b2 = _fold_bn(blk["w2"], blk["bn2"])
    w3, b3 = _fold_bn(blk["w3"], blk["bn3"])
    identity = x
    if has_down:
        wd, bd = _fold_bn(blk["wd"], blk["bnd"])
        identity = conv_bn(x, wd, bd, stride, 0, relu=False)
    out = conv_bn(x, w1, b1, 1, 0, relu=True)
    out = conv_bn(out, w2, b2, stride, 1, relu=True)
    # conv3 + BN + residual-add + ReLU fused in one tiled Pallas matmul kernel
    out = conv_bn(out, w3, b3, 1, 0, relu=True, residual=identity)
    return out


# resnet50 stages up to layer3 (timm features_only, out_indices=[3] -> stride 16, 1024 ch)
LAYER_CFG = [  # (c_in, c_mid, c_out, stride, n_blocks)
    (64, 64, 256, 1, 3),
    (256, 128, 512, 2, 4),
    (512, 256, 1024, 2, 6),
]


def resnet50_forward(params, x_nchw, class_num=2):
    x = jnp.transpose(x_nchw, (0, 2, 3, 1)).astype(jnp.bfloat16)  # NCHW -> NHWC bf16
    # stem: conv7x7/2 + BN + ReLU, then maxpool3x3/2
    ws, bs = _fold_bn(params["stem_w"], params["stem_bn"])
    x = conv_bn(x, ws, bs, stride=2, pad=3, relu=True)
    x = maxpool3x3_s2_p1(x)
    # layer1..layer3
    for li, (cin, mid, cout, stride, nblocks) in enumerate(LAYER_CFG):
        for bi in range(nblocks):
            s = stride if bi == 0 else 1
            x = bottleneck(x, params["layers"][li][bi], s, has_down=(bi == 0))
    # classifier: pool first (linear, identical to conv->pool), then a tiny matmul.
    pooled = pallas_global_avgpool(x)                      # (batch, 1024) f32
    wc = params["cls_w"].reshape(class_num, -1).T          # (1024, class_num)
    logits = pallas_matmul_bias(pooled, wc, params["cls_b"],
                                relu=False, out_dtype=jnp.float32)
    return logits[:, :class_num]                           # == out.view(-1, class_num)


def init_params(key, class_num=2):
    keys = list(jax.random.split(key, 64))
    kidx = [0]

    def next_key():
        k = keys[kidx[0]]
        kidx[0] += 1
        return k

    def conv_w(cout, cin, kh, kw):
        std = float(np.sqrt(2.0 / (cin * kh * kw)))  # He init
        return jax.random.normal(next_key(), (cout, cin, kh, kw), jnp.float32) * std

    def bn(c):
        return dict(
            gamma=jnp.ones((c,), jnp.float32),
            beta=jnp.zeros((c,), jnp.float32),
            mean=jnp.zeros((c,), jnp.float32),
            var=jnp.ones((c,), jnp.float32),
        )

    params = {"stem_w": conv_w(64, 3, 7, 7), "stem_bn": bn(64), "layers": []}
    for cin, mid, cout, stride, nblocks in LAYER_CFG:
        blocks = []
        for bi in range(nblocks):
            b_in = cin if bi == 0 else cout
            blk = {
                "w1": conv_w(mid, b_in, 1, 1), "bn1": bn(mid),
                "w2": conv_w(mid, mid, 3, 3), "bn2": bn(mid),
                "w3": conv_w(cout, mid, 1, 1), "bn3": bn(cout),
            }
            if bi == 0:  # downsample branch (1x1 conv + BN)
                blk["wd"] = conv_w(cout, b_in, 1, 1)
                blk["bnd"] = bn(cout)
            blocks.append(blk)
        params["layers"].append(blocks)
    params["cls_w"] = (
        jax.random.normal(next_key(), (class_num, 1024, 1, 1), jnp.float32) * 0.01
    )
    params["cls_b"] = jnp.zeros((class_num,), jnp.float32)
    return params


if __name__ == "__main__":
    class_num = 2
    params = init_params(jax.random.PRNGKey(42), class_num=class_num)
    x = jax.random.normal(jax.random.PRNGKey(0), (2, 3, 32, 32), jnp.float32)
    fwd = jax.jit(lambda p, inp: resnet50_forward(p, inp, class_num=class_num))
    out = jax.block_until_ready(fwd(params, x))
    assert out.shape == (2, class_num), out.shape
    assert bool(jnp.all(jnp.isfinite(out)))
    print("KERNEL_OK")
</pallas_src>

<mosaic_0001>
module attributes {stable_mosaic.version = 11 : i64} {
  func.func @_mm_kernel(%arg0: i32, %arg1: i32, %arg2: i32, %arg3: memref<256x256xbf16, #tpu.memory_space<vmem>>, %arg4: memref<256x128xbf16, #tpu.memory_space<vmem>>, %arg5: memref<1x128xf32, #tpu.memory_space<vmem>>, %arg6: memref<256x128xbf16, #tpu.memory_space<vmem>>, %arg7: memref<256x128xf32, #tpu.memory_space<vmem>>) attributes {dimension_semantics = [#tpu.dimension_semantics<parallel>, #tpu.dimension_semantics<parallel>, #tpu.dimension_semantics<arbitrary>], iteration_bounds = array<i64: 2, 1, 1>, scalar_prefetch = 0 : i64, scratch_operands = 1 : i64, tpu.core_type = #tpu.core_type<tc>, window_params = [{transform_indices = @transform_0, window_bounds = array<i64: 256, 256>}, {transform_indices = @transform_1, window_bounds = array<i64: 256, 128>}, {transform_indices = @transform_2, window_bounds = array<i64: 1, 128>}, {transform_indices = @transform_3, window_bounds = array<i64: 256, 128>}]} {
    %c0_i32 = arith.constant 0 : i32
    %0 = arith.cmpi eq, %arg2, %c0_i32 : i32
    %1 = arith.extui %0 : i1 to i32
    %c0_i32_0 = arith.constant 0 : i32
    %2 = arith.cmpi ne, %1, %c0_i32_0 : i32
    scf.if %2 {
      %cst_10 = arith.constant 0.000000e+00 : f32
      %12 = vector.broadcast %cst_10 : f32 to vector<256x128xf32>
      %c0_11 = arith.constant 0 : index
      %c0_12 = arith.constant 0 : index
      %13 = vector.load %arg7[%c0_11, %c0_12] : memref<256x128xf32, #tpu.memory_space<vmem>>, vector<256x128xf32>
      tpu.vector_store %arg7[%c0_11, %c0_12], %12 {strides = array<i32>} : memref<256x128xf32, #tpu.memory_space<vmem>>, vector<256x128xf32>,
    } else {
    }
    %c0 = arith.constant 0 : index
    %c0_1 = arith.constant 0 : index
    %3 = vector.load %arg7[%c0, %c0_1] : memref<256x128xf32, #tpu.memory_space<vmem>>, vector<256x128xf32>
    %c0_2 = arith.constant 0 : index
    %c0_3 = arith.constant 0 : index
    %4 = vector.load %arg3[%c0_2, %c0_3] : memref<256x256xbf16, #tpu.memory_space<vmem>>, vector<256x256xbf16>
    %c0_4 = arith.constant 0 : index
    %c0_5 = arith.constant 0 : index
    %5 = vector.load %arg4[%c0_4, %c0_5] : memref<256x128xbf16, #tpu.memory_space<vmem>>, vector<256x128xbf16>
    %cst = arith.constant dense<0.000000e+00> : vector<256x128xf32>
    %6 = tpu.matmul %4, %5, %cst {dimension_numbers = #tpu.dot_dimension_numbers<[1], [0], [0], [1], [0, 0, 1, 1], [], []>} : vector<256x256xbf16>, vector<256x128xbf16>, vector<256x128xf32> -> vector<256x128xf32>
    %7 = arith.addf %3, %6 : vector<256x128xf32>
    %c0_6 = arith.constant 0 : index
    %c0_7 = arith.constant 0 : index
    %8 = vector.load %arg7[%c0_6, %c0_7] : memref<256x128xf32, #tpu.memory_space<vmem>>, vector<256x128xf32>
    tpu.vector_store %arg7[%c0_6, %c0_7], %7 {strides = array<i32>} : memref<256x128xf32, #tpu.memory_space<vmem>>, vector<256x128xf32>,
    %c0_i32_8 = arith.constant 0 : i32
    %9 = arith.cmpi eq, %arg2, %c0_i32_8 : i32
    %10 = arith.extui %9 : i1 to i32
    %c0_i32_9 = arith.constant 0 : i32
    %11 = arith.cmpi ne, %10, %c0_i32_9 : i32
    scf.if %11 {
      %c0_10 = arith.constant 0 : index
      %c0_11 = arith.constant 0 : index
      %12 = vector.load %arg7[%c0_10, %c0_11] : memref<256x128xf32, #tpu.memory_space<vmem>>, vector<256x128xf32>
      %c0_12 = arith.constant 0 : index
      %c0_13 = arith.constant 0 : index
      %13 = vector.load %arg5[%c0_12, %c0_13] : memref<1x128xf32, #tpu.memory_space<vmem>>, vector<1x128xf32>
      %14 = vector.broadcast %13 : vector<1x128xf32> to vector<256x128xf32>
      %15 = arith.addf %12, %14 : vector<256x128xf32>
      %cst_14 = arith.constant 0.000000e+00 : f32
      %16 = vector.broadcast %cst_14 : f32 to vector<256x128xf32>
      %17 = arith.maximumf %15, %16 : vector<256x128xf32>
      %18 = arith.truncf %17 : vector<256x128xf32> to vector<256x128xbf16>
      %c0_15 = arith.constant 0 : index
      %c0_16 = arith.constant 0 : index
      %19 = vector.load %arg6[%c0_15, %c0_16] : memref<256x128xbf16, #tpu.memory_space<vmem>>, vector<256x128xbf16>
      tpu.vector_store %arg6[%c0_15, %c0_16], %18 {strides = array<i32>} : memref<256x128xbf16, #tpu.memory_space<vmem>>, vector<256x128xbf16>,
    } else {
    }
    return
  }
  func.func @transform_0(%arg0: i32, %arg1: i32, %arg2: i32) -> (i32, i32) {
    %c0_i32 = arith.constant 0 : i32
    return %arg0, %arg2 : i32, i32
  }
  func.func @transform_1(%arg0: i32, %arg1: i32, %arg2: i32) -> (i32, i32) {
    %c0_i32 = arith.constant 0 : i32
    return %arg2, %arg1 : i32, i32
  }
  func.func @transform_2(%arg0: i32, %arg1: i32, %arg2: i32) -> (i32, i32) {
    %c0_i32 = arith.constant 0 : i32
    %c0_i32_0 = arith.constant 0 : i32
    return %c0_i32, %arg1 : i32, i32
  }
  func.func @transform_3(%arg0: i32, %arg1: i32, %arg2: i32) -> (i32, i32) {
    %c0_i32 = arith.constant 0 : i32
    return %arg0, %arg1 : i32, i32
  }
}

module attributes {stable_mosaic.version = 11 : i64} {
  func.func @_mm_kernel(%arg0: i32, %arg1: i32, %arg2: i32, %arg3: memref<128x128xbf16, #tpu.memory_space<vmem>>, %arg4: memref<128x128xbf16, #tpu.memory_space<vmem>>, %arg5: memref<1x128xf32, #tpu.memory_space<vmem>>, %arg6: memref<128x128xbf16, #tpu.memory_space<vmem>>, %arg7: memref<128x128xf32, #tpu.memory_space<vmem>>) attributes {dimension_semantics = [#tpu.dimension_semantics<parallel>, #tpu.dimension_semantics<parallel>, #tpu.dimension_semantics<arbitrary>], iteration_bounds = array<i64: 1, 1, 1>, scalar_prefetch = 0 : i64, scratch_operands = 1 : i64, tpu.core_type = #tpu.core_type<tc>, window_params = [{transform_indices = @transform_0, window_bounds = array<i64: 128, 128>}, {transform_indices = @transform_1, window_bounds = array<i64: 128, 128>}, {transform_indices = @transform_2, window_bounds = array<i64: 1, 128>}, {transform_indices = @transform_3, window_bounds = array<i64: 128, 128>}]} {
    %c0_i32 = arith.constant 0 : i32
    %0 = arith.cmpi eq, %arg2, %c0_i32 : i32
    %1 = arith.extui %0 : i1 to i32
    %c0_i32_0 = arith.constant 0 : i32
    %2 = arith.cmpi ne, %1, %c0_i32_0 : i32
    scf.if %2 {
      %cst_10 = arith.constant 0.000000e+00 : f32
      %12 = vector.broadcast %cst_10 : f32 to vector<128x128xf32>
      %c0_11 = arith.constant 0 : index
      %c0_12 = arith.constant 0 : index
      %13 = vector.load %arg7[%c0_11, %c0_12] : memref<128x128xf32, #tpu.memory_space<vmem>>, vector<128x128xf32>
      tpu.vector_store %arg7[%c0_11, %c0_12], %12 {strides = array<i32>} : memref<128x128xf32, #tpu.memory_space<vmem>>, vector<128x128xf32>,
    } else {
    }
    %c0 = arith.constant 0 : index
    %c0_1 = arith.constant 0 : index
    %3 = vector.load %arg7[%c0, %c0_1] : memref<128x128xf32, #tpu.memory_space<vmem>>, vector<128x128xf32>
    %c0_2 = arith.constant 0 : index
    %c0_3 = arith.constant 0 : index
    %4 = vector.load %arg3[%c0_2, %c0_3] : memref<128x128xbf16, #tpu.memory_space<vmem>>, vector<128x128xbf16>
    %c0_4 = arith.constant 0 : index
    %c0_5 = arith.constant 0 : index
    %5 = vector.load %arg4[%c0_4, %c0_5] : memref<128x128xbf16, #tpu.memory_space<vmem>>, vector<128x128xbf16>
    %cst = arith.constant dense<0.000000e+00> : vector<128x128xf32>
    %6 = tpu.matmul %4, %5, %cst {dimension_numbers = #tpu.dot_dimension_numbers<[1], [0], [0], [1], [0, 0, 1, 1], [], []>} : vector<128x128xbf16>, vector<128x128xbf16>, vector<128x128xf32> -> vector<128x128xf32>
    %7 = arith.addf %3, %6 : vector<128x128xf32>
    %c0_6 = arith.constant 0 : index
    %c0_7 = arith.constant 0 : index
    %8 = vector.load %arg7[%c0_6, %c0_7] : memref<128x128xf32, #tpu.memory_space<vmem>>, vector<128x128xf32>
    tpu.vector_store %arg7[%c0_6, %c0_7], %7 {strides = array<i32>} : memref<128x128xf32, #tpu.memory_space<vmem>>, vector<128x128xf32>,
    %c0_i32_8 = arith.constant 0 : i32
    %9 = arith.cmpi eq, %arg2, %c0_i32_8 : i32
    %10 = arith.extui %9 : i1 to i32
    %c0_i32_9 = arith.constant 0 : i32
    %11 = arith.cmpi ne, %10, %c0_i32_9 : i32
    scf.if %11 {
      %c0_10 = arith.constant 0 : index
      %c0_11 = arith.constant 0 : index
      %12 = vector.load %arg7[%c0_10, %c0_11] : memref<128x128xf32, #tpu.memory_space<vmem>>, vector<128x128xf32>
      %c0_12 = arith.constant 0 : index
      %c0_13 = arith.constant 0 : index
      %13 = vector.load %arg5[%c0_12, %c0_13] : memref<1x128xf32, #tpu.memory_space<vmem>>, vector<1x128xf32>
      %14 = vector.broadcast %13 : vector<1x128xf32> to vector<128x128xf32>
      %15 = arith.addf %12, %14 : vector<128x128xf32>
      %cst_14 = arith.constant 0.000000e+00 : f32
      %16 = vector.broadcast %cst_14 : f32 to vector<128x128xf32>
      %17 = arith.maximumf %15, %16 : vector<128x128xf32>
      %18 = arith.truncf %17 : vector<128x128xf32> to vector<128x128xbf16>
      %c0_15 = arith.constant 0 : index
      %c0_16 = arith.constant 0 : index
      %19 = vector.load %arg6[%c0_15, %c0_16] : memref<128x128xbf16, #tpu.memory_space<vmem>>, vector<128x128xbf16>
      tpu.vector_store %arg6[%c0_15, %c0_16], %18 {strides = array<i32>} : memref<128x128xbf16, #tpu.memory_space<vmem>>, vector<128x128xbf16>,
    } else {
    }
    return
  }
  func.func @transform_0(%arg0: i32, %arg1: i32, %arg2: i32) -> (i32, i32) {
    %c0_i32 = arith.constant 0 : i32
    return %arg0, %arg2 : i32, i32
  }
  func.func @transform_1(%arg0: i32, %arg1: i32, %arg2: i32) -> (i32, i32) {
    %c0_i32 = arith.constant 0 : i32
    return %arg2, %arg1 : i32, i32
  }
  func.func @transform_2(%arg0: i32, %arg1: i32, %arg2: i32) -> (i32, i32) {
    %c0_i32 = arith.constant 0 : i32
    %c0_i32_0 = arith.constant 0 : i32
    return %c0_i32, %arg1 : i32, i32
  }
  func.func @transform_3(%arg0: i32, %arg1: i32, %arg2: i32) -> (i32, i32) {
    %c0_i32 = arith.constant 0 : i32
    return %arg0, %arg1 : i32, i32
  }
}

module attributes {stable_mosaic.version = 11 : i64} {
  func.func @_mm_kernel(%arg0: i32, %arg1: i32, %arg2: i32, %arg3: memref<128x384xbf16, #tpu.memory_space<vmem>>, %arg4: memref<384x128xbf16, #tpu.memory_space<vmem>>, %arg5: memref<1x128xf32, #tpu.memory_space<vmem>>, %arg6: memref<128x128xbf16, #tpu.memory_space<vmem>>, %arg7: memref<128x128xf32, #tpu.memory_space<vmem>>) attributes {dimension_semantics = [#tpu.dimension_semantics<parallel>, #tpu.dimension_semantics<parallel>, #tpu.dimension_semantics<arbitrary>], iteration_bounds = array<i64: 1, 1, 3>, scalar_prefetch = 0 : i64, scratch_operands = 1 : i64, tpu.core_type = #tpu.core_type<tc>, window_params = [{transform_indices = @transform_0, window_bounds = array<i64: 128, 384>}, {transform_indices = @transform_1, window_bounds = array<i64: 384, 128>}, {transform_indices = @transform_2, window_bounds = array<i64: 1, 128>}, {transform_indices = @transform_3, window_bounds = array<i64: 128, 128>}]} {
    %c0_i32 = arith.constant 0 : i32
    %0 = arith.cmpi eq, %arg2, %c0_i32 : i32
    %1 = arith.extui %0 : i1 to i32
    %c0_i32_0 = arith.constant 0 : i32
    %2 = arith.cmpi ne, %1, %c0_i32_0 : i32
    scf.if %2 {
      %cst_9 = arith.constant 0.000000e+00 : f32
      %12 = vector.broadcast %cst_9 : f32 to vector<128x128xf32>
      %c0_10 = arith.constant 0 : index
      %c0_11 = arith.constant 0 : index
      %13 = vector.load %arg7[%c0_10, %c0_11] : memref<128x128xf32, #tpu.memory_space<vmem>>, vector<128x128xf32>
      tpu.vector_store %arg7[%c0_10, %c0_11], %12 {strides = array<i32>} : memref<128x128xf32, #tpu.memory_space<vmem>>, vector<128x128xf32>,
    } else {
    }
    %c0 = arith.constant 0 : index
    %c0_1 = arith.constant 0 : index
    %3 = vector.load %arg7[%c0, %c0_1] : memref<128x128xf32, #tpu.memory_space<vmem>>, vector<128x128xf32>
    %c0_2 = arith.constant 0 : index
    %c0_3 = arith.constant 0 : index
    %4 = vector.load %arg3[%c0_2, %c0_3] : memref<128x384xbf16, #tpu.memory_space<vmem>>, vector<128x384xbf16>
    %c0_4 = arith.constant 0 : index
    %c0_5 = arith.constant 0 : index
    %5 = vector.load %arg4[%c0_4, %c0_5] : memref<384x128xbf16, #tpu.memory_space<vmem>>, vector<384x128xbf16>
    %cst = arith.constant dense<0.000000e+00> : vector<128x128xf32>
    %6 = tpu.matmul %4, %5, %cst {dimension_numbers = #tpu.dot_dimension_numbers<[1], [0], [0], [1], [0, 0, 1, 1], [], []>} : vector<128x384xbf16>, vector<384x128xbf16>, vector<128x128xf32> -> vector<128x128xf32>
    %7 = arith.addf %3, %6 : vector<128x128xf32>
    %c0_6 = arith.constant 0 : index
    %c0_7 = arith.constant 0 : index
    %8 = vector.load %arg7[%c0_6, %c0_7] : memref<128x128xf32, #tpu.memory_space<vmem>>, vector<128x128xf32>
    tpu.vector_store %arg7[%c0_6, %c0_7], %7 {strides = array<i32>} : memref<128x128xf32, #tpu.memory_space<vmem>>, vector<128x128xf32>,
    %c2_i32 = arith.constant 2 : i32
    %9 = arith.cmpi eq, %arg2, %c2_i32 : i32
    %10 = arith.extui %9 : i1 to i32
    %c0_i32_8 = arith.constant 0 : i32
    %11 = arith.cmpi ne, %10, %c0_i32_8 : i32
    scf.if %11 {
      %c0_9 = arith.constant 0 : index
      %c0_10 = arith.constant 0 : index
      %12 = vector.load %arg7[%c0_9, %c0_10] : memref<128x128xf32, #tpu.memory_space<vmem>>, vector<128x128xf32>
      %c0_11 = arith.constant 0 : index
      %c0_12 = arith.constant 0 : index
      %13 = vector.load %arg5[%c0_11, %c0_12] : memref<1x128xf32, #tpu.memory_space<vmem>>, vector<1x128xf32>
      %14 = vector.broadcast %13 : vector<1x128xf32> to vector<128x128xf32>
      %15 = arith.addf %12, %14 : vector<128x128xf32>
      %cst_13 = arith.constant 0.000000e+00 : f32
      %16 = vector.broadcast %cst_13 : f32 to vector<128x128xf32>
      %17 = arith.maximumf %15, %16 : vector<128x128xf32>
      %18 = arith.truncf %17 : vector<128x128xf32> to vector<128x128xbf16>
      %c0_14 = arith.constant 0 : index
      %c0_15 = arith.constant 0 : index
      %19 = vector.load %arg6[%c0_14, %c0_15] : memref<128x128xbf16, #tpu.memory_space<vmem>>, vector<128x128xbf16>
      tpu.vector_store %arg6[%c0_14, %c0_15], %18 {strides = array<i32>} : memref<128x128xbf16, #tpu.memory_space<vmem>>, vector<128x128xbf16>,
    } else {
    }
    return
  }
  func.func @transform_0(%arg0: i32, %arg1: i32, %arg2: i32) -> (i32, i32) {
    %c0_i32 = arith.constant 0 : i32
    return %arg0, %arg2 : i32, i32
  }
  func.func @transform_1(%arg0: i32, %arg1: i32, %arg2: i32) -> (i32, i32) {
    %c0_i32 = arith.constant 0 : i32
    return %arg2, %arg1 : i32, i32
  }
  func.func @transform_2(%arg0: i32, %arg1: i32, %arg2: i32) -> (i32, i32) {
    %c0_i32 = arith.constant 0 : i32
    %c0_i32_0 = arith.constant 0 : i32
    return %c0_i32, %arg1 : i32, i32
  }
  func.func @transform_3(%arg0: i32, %arg1: i32, %arg2: i32) -> (i32, i32) {
    %c0_i32 = arith.constant 0 : i32
    return %arg0, %arg1 : i32, i32
  }
}

module attributes {stable_mosaic.version = 11 : i64} {
  func.func @_mm_kernel(%arg0: i32, %arg1: i32, %arg2: i32, %arg3: memref<128x128xbf16, #tpu.memory_space<vmem>>, %arg4: memref<128x256xbf16, #tpu.memory_space<vmem>>, %arg5: memref<1x256xf32, #tpu.memory_space<vmem>>, %arg6: memref<128x256xbf16, #tpu.memory_space<vmem>>, %arg7: memref<128x256xf32, #tpu.memory_space<vmem>>) attributes {dimension_semantics = [#tpu.dimension_semantics<parallel>, #tpu.dimension_semantics<parallel>, #tpu.dimension_semantics<arbitrary>], iteration_bounds = array<i64: 1, 1, 1>, scalar_prefetch = 0 : i64, scratch_operands = 1 : i64, tpu.core_type = #tpu.core_type<tc>, window_params = [{transform_indices = @transform_0, window_bounds = array<i64: 128, 128>}, {transform_indices = @transform_1, window_bounds = array<i64: 128, 256>}, {transform_indices = @transform_2, window_bounds = array<i64: 1, 256>}, {transform_indices = @transform_3, window_bounds = array<i64: 128, 256>}]} {
    %c0_i32 = arith.constant 0 : i32
    %0 = arith.cmpi eq, %arg2, %c0_i32 : i32
    %1 = arith.extui %0 : i1 to i32
    %c0_i32_0 = arith.constant 0 : i32
    %2 = arith.cmpi ne, %1, %c0_i32_0 : i32
    scf.if %2 {
      %cst_10 = arith.constant 0.000000e+00 : f32
      %12 = vector.broadcast %cst_10 : f32 to vector<128x256xf32>
      %c0_11 = arith.constant 0 : index
      %c0_12 = arith.constant 0 : index
      %13 = vector.load %arg7[%c0_11, %c0_12] : memref<128x256xf32, #tpu.memory_space<vmem>>, vector<128x256xf32>
      tpu.vector_store %arg7[%c0_11, %c0_12], %12 {strides = array<i32>} : memref<128x256xf32, #tpu.memory_space<vmem>>, vector<128x256xf32>,
    } else {
    }
    %c0 = arith.constant 0 : index
    %c0_1 = arith.constant 0 : index
    %3 = vector.load %arg7[%c0, %c0_1] : memref<128x256xf32, #tpu.memory_space<vmem>>, vector<128x256xf32>
    %c0_2 = arith.constant 0 : index
    %c0_3 = arith.constant 0 : index
    %4 = vector.load %arg3[%c0_2, %c0_3] : memref<128x128xbf16, #tpu.memory_space<vmem>>, vector<128x128xbf16>
    %c0_4 = arith.constant 0 : index
    %c0_5 = arith.constant 0 : index
    %5 = vector.load %arg4[%c0_4, %c0_5] : memref<128x256xbf16, #tpu.memory_space<vmem>>, vector<128x256xbf16>
    %cst = arith.constant dense<0.000000e+00> : vector<128x256xf32>
    %6 = tpu.matmul %4, %5, %cst {dimension_numbers = #tpu.dot_dimension_numbers<[1], [0], [0], [1], [0, 0, 1, 1], [], []>} : vector<128x128xbf16>, vector<128x256xbf16>, vector<128x256xf32> -> vector<128x256xf32>
    %7 = arith.addf %3, %6 : vector<128x256xf32>
    %c0_6 = arith.constant 0 : index
    %c0_7 = arith.constant 0 : index
    %8 = vector.load %arg7[%c0_6, %c0_7] : memref<128x256xf32, #tpu.memory_space<vmem>>, vector<128x256xf32>
    tpu.vector_store %arg7[%c0_6, %c0_7], %7 {strides = array<i32>} : memref<128x256xf32, #tpu.memory_space<vmem>>, vector<128x256xf32>,
    %c0_i32_8 = arith.constant 0 : i32
    %9 = arith.cmpi eq, %arg2, %c0_i32_8 : i32
    %10 = arith.extui %9 : i1 to i32
    %c0_i32_9 = arith.constant 0 : i32
    %11 = arith.cmpi ne, %10, %c0_i32_9 : i32
    scf.if %11 {
      %c0_10 = arith.constant 0 : index
      %c0_11 = arith.constant 0 : index
      %12 = vector.load %arg7[%c0_10, %c0_11] : memref<128x256xf32, #tpu.memory_space<vmem>>, vector<128x256xf32>
      %c0_12 = arith.constant 0 : index
      %c0_13 = arith.constant 0 : index
      %13 = vector.load %arg5[%c0_12, %c0_13] : memref<1x256xf32, #tpu.memory_space<vmem>>, vector<1x256xf32>
      %14 = vector.broadcast %13 : vector<1x256xf32> to vector<128x256xf32>
      %15 = arith.addf %12, %14 : vector<128x256xf32>
      %16 = arith.truncf %15 : vector<128x256xf32> to vector<128x256xbf16>
      %c0_14 = arith.constant 0 : index
      %c0_15 = arith.constant 0 : index
      %17 = vector.load %arg6[%c0_14, %c0_15] : memref<128x256xbf16, #tpu.memory_space<vmem>>, vector<128x256xbf16>
      tpu.vector_store %arg6[%c0_14, %c0_15], %16 {strides = array<i32>} : memref<128x256xbf16, #tpu.memory_space<vmem>>, vector<128x256xbf16>,
    } else {
    }
    return
  }
  func.func @transform_0(%arg0: i32, %arg1: i32, %arg2: i32) -> (i32, i32) {
    %c0_i32 = arith.constant 0 : i32
    return %arg0, %arg2 : i32, i32
  }
  func.func @transform_1(%arg0: i32, %arg1: i32, %arg2: i32) -> (i32, i32) {
    %c0_i32 = arith.constant 0 : i32
    return %arg2, %arg1 : i32, i32
  }
  func.func @transform_2(%arg0: i32, %arg1: i32, %arg2: i32) -> (i32, i32) {
    %c0_i32 = arith.constant 0 : i32
    %c0_i32_0 = arith.constant 0 : i32
    return %c0_i32, %arg1 : i32, i32
  }
  func.func @transform_3(%arg0: i32, %arg1: i32, %arg2: i32) -> (i32, i32) {
    %c0_i32 = arith.constant 0 : i32
    return %arg0, %arg1 : i32, i32
  }
}

module attributes {stable_mosaic.version = 11 : i64} {
  func.func @_mm_res_kernel(%arg0: i32, %arg1: i32, %arg2: i32, %arg3: memref<128x128xbf16, #tpu.memory_space<vmem>>, %arg4: memref<128x256xbf16, #tpu.memory_space<vmem>>, %arg5: memref<1x256xf32, #tpu.memory_space<vmem>>, %arg6: memref<128x256xbf16, #tpu.memory_space<vmem>>, %arg7: memref<128x256xbf16, #tpu.memory_space<vmem>>, %arg8: memref<128x256xf32, #tpu.memory_space<vmem>>) attributes {dimension_semantics = [#tpu.dimension_semantics<parallel>, #tpu.dimension_semantics<parallel>, #tpu.dimension_semantics<arbitrary>], iteration_bounds = array<i64: 1, 1, 1>, scalar_prefetch = 0 : i64, scratch_operands = 1 : i64, tpu.core_type = #tpu.core_type<tc>, window_params = [{transform_indices = @transform_0, window_bounds = array<i64: 128, 128>}, {transform_indices = @transform_1, window_bounds = array<i64: 128, 256>}, {transform_indices = @transform_2, window_bounds = array<i64: 1, 256>}, {transform_indices = @transform_3, window_bounds = array<i64: 128, 256>}, {transform_indices = @transform_4, window_bounds = array<i64: 128, 256>}]} {
    %c0_i32 = arith.constant 0 : i32
    %0 = arith.cmpi eq, %arg2, %c0_i32 : i32
    %1 = arith.extui %0 : i1 to i32
    %c0_i32_0 = arith.constant 0 : i32
    %2 = arith.cmpi ne, %1, %c0_i32_0 : i32
    scf.if %2 {
      %cst_10 = arith.constant 0.000000e+00 : f32
      %12 = vector.broadcast %cst_10 : f32 to vector<128x256xf32>
      %c0_11 = arith.constant 0 : index
      %c0_12 = arith.constant 0 : index
      %13 = vector.load %arg8[%c0_11, %c0_12] : memref<128x256xf32, #tpu.memory_space<vmem>>, vector<128x256xf32>
      tpu.vector_store %arg8[%c0_11, %c0_12], %12 {strides = array<i32>} : memref<128x256xf32, #tpu.memory_space<vmem>>, vector<128x256xf32>,
    } else {
    }
    %c0 = arith.constant 0 : index
    %c0_1 = arith.constant 0 : index
    %3 = vector.load %arg8[%c0, %c0_1] : memref<128x256xf32, #tpu.memory_space<vmem>>, vector<128x256xf32>
    %c0_2 = arith.constant 0 : index
    %c0_3 = arith.constant 0 : index
    %4 = vector.load %arg3[%c0_2, %c0_3] : memref<128x128xbf16, #tpu.memory_space<vmem>>, vector<128x128xbf16>
    %c0_4 = arith.constant 0 : index
    %c0_5 = arith.constant 0 : index
    %5 = vector.load %arg4[%c0_4, %c0_5] : memref<128x256xbf16, #tpu.memory_space<vmem>>, vector<128x256xbf16>
    %cst = arith.constant dense<0.000000e+00> : vector<128x256xf32>
    %6 = tpu.matmul %4, %5, %cst {dimension_numbers = #tpu.dot_dimension_numbers<[1], [0], [0], [1], [0, 0, 1, 1], [], []>} : vector<128x128xbf16>, vector<128x256xbf16>, vector<128x256xf32> -> vector<128x256xf32>
    %7 = arith.addf %3, %6 : vector<128x256xf32>
    %c0_6 = arith.constant 0 : index
    %c0_7 = arith.constant 0 : index
    %8 = vector.load %arg8[%c0_6, %c0_7] : memref<128x256xf32, #tpu.memory_space<vmem>>, vector<128x256xf32>
    tpu.vector_store %arg8[%c0_6, %c0_7], %7 {strides = array<i32>} : memref<128x256xf32, #tpu.memory_space<vmem>>, vector<128x256xf32>,
    %c0_i32_8 = arith.constant 0 : i32
    %9 = arith.cmpi eq, %arg2, %c0_i32_8 : i32
    %10 = arith.extui %9 : i1 to i32
    %c0_i32_9 = arith.constant 0 : i32
    %11 = arith.cmpi ne, %10, %c0_i32_9 : i32
    scf.if %11 {
      %c0_10 = arith.constant 0 : index
      %c0_11 = arith.constant 0 : index
      %12 = vector.load %arg8[%c0_10, %c0_11] : memref<128x256xf32, #tpu.memory_space<vmem>>, vector<128x256xf32>
      %c0_12 = arith.constant 0 : index
      %c0_13 = arith.constant 0 : index
      %13 = vector.load %arg5[%c0_12, %c0_13] : memref<1x256xf32, #tpu.memory_space<vmem>>, vector<1x256xf32>
      %14 = vector.broadcast %13 : vector<1x256xf32> to vector<128x256xf32>
      %15 = arith.addf %12, %14 : vector<128x256xf32>
      %c0_14 = arith.constant 0 : index
      %c0_15 = arith.constant 0 : index
      %16 = vector.load %arg6[%c0_14, %c0_15] : memref<128x256xbf16, #tpu.memory_space<vmem>>, vector<128x256xbf16>
      %17 = arith.extf %16 : vector<128x256xbf16> to vector<128x256xf32>
      %18 = arith.addf %15, %17 : vector<128x256xf32>
      %cst_16 = arith.constant 0.000000e+00 : f32
      %19 = vector.broadcast %cst_16 : f32 to vector<128x256xf32>
      %20 = arith.maximumf %18, %19 : vector<128x256xf32>
      %21 = arith.truncf %20 : vector<128x256xf32> to vector<128x256xbf16>
      %c0_17 = arith.constant 0 : index
      %c0_18 = arith.constant 0 : index
      %22 = vector.load %arg7[%c0_17, %c0_18] : memref<128x256xbf16, #tpu.memory_space<vmem>>, vector<128x256xbf16>
      tpu.vector_store %arg7[%c0_17, %c0_18], %21 {strides = array<i32>} : memref<128x256xbf16, #tpu.memory_space<vmem>>, vector<128x256xbf16>,
    } else {
    }
    return
  }
  func.func @transform_0(%arg0: i32, %arg1: i32, %arg2: i32) -> (i32, i32) {
    %c0_i32 = arith.constant 0 : i32
    return %arg0, %arg2 : i32, i32
  }
  func.func @transform_1(%arg0: i32, %arg1: i32, %arg2: i32) -> (i32, i32) {
    %c0_i32 = arith.constant 0 : i32
    return %arg2, %arg1 : i32, i32
  }
  func.func @transform_2(%arg0: i32, %arg1: i32, %arg2: i32) -> (i32, i32) {
    %c0_i32 = arith.constant 0 : i32
    %c0_i32_0 = arith.constant 0 : i32
    return %c0_i32, %arg1 : i32, i32
  }
  func.func @transform_3(%arg0: i32, %arg1: i32, %arg2: i32) -> (i32, i32) {
    %c0_i32 = arith.constant 0 : i32
    return %arg0, %arg1 : i32, i32
  }
  func.func @transform_4(%arg0: i32, %arg1: i32, %arg2: i32) -> (i32, i32) {
    %c0_i32 = arith.constant 0 : i32
    return %arg0, %arg1 : i32, i32
  }
}

module attributes {stable_mosaic.version = 11 : i64} {
  func.func @_mm_kernel(%arg0: i32, %arg1: i32, %arg2: i32, %arg3: memref<128x256xbf16, #tpu.memory_space<vmem>>, %arg4: memref<256x128xbf16, #tpu.memory_space<vmem>>, %arg5: memref<1x128xf32, #tpu.memory_space<vmem>>, %arg6: memref<128x128xbf16, #tpu.memory_space<vmem>>, %arg7: memref<128x128xf32, #tpu.memory_space<vmem>>) attributes {dimension_semantics = [#tpu.dimension_semantics<parallel>, #tpu.dimension_semantics<parallel>, #tpu.dimension_semantics<arbitrary>], iteration_bounds = array<i64: 1, 1, 1>, scalar_prefetch = 0 : i64, scratch_operands = 1 : i64, tpu.core_type = #tpu.core_type<tc>, window_params = [{transform_indices = @transform_0, window_bounds = array<i64: 128, 256>}, {transform_indices = @transform_1, window_bounds = array<i64: 256, 128>}, {transform_indices = @transform_2, window_bounds = array<i64: 1, 128>}, {transform_indices = @transform_3, window_bounds = array<i64: 128, 128>}]} {
    %c0_i32 = arith.constant 0 : i32
    %0 = arith.cmpi eq, %arg2, %c0_i32 : i32
    %1 = arith.extui %0 : i1 to i32
    %c0_i32_0 = arith.constant 0 : i32
    %2 = arith.cmpi ne, %1, %c0_i32_0 : i32
    scf.if %2 {
      %cst_10 = arith.constant 0.000000e+00 : f32
      %12 = vector.broadcast %cst_10 : f32 to vector<128x128xf32>
      %c0_11 = arith.constant 0 : index
      %c0_12 = arith.constant 0 : index
      %13 = vector.load %arg7[%c0_11, %c0_12] : memref<128x128xf32, #tpu.memory_space<vmem>>, vector<128x128xf32>
      tpu.vector_store %arg7[%c0_11, %c0_12], %12 {strides = array<i32>} : memref<128x128xf32, #tpu.memory_space<vmem>>, vector<128x128xf32>,
    } else {
    }
    %c0 = arith.constant 0 : index
    %c0_1 = arith.constant 0 : index
    %3 = vector.load %arg7[%c0, %c0_1] : memref<128x128xf32, #tpu.memory_space<vmem>>, vector<128x128xf32>
    %c0_2 = arith.constant 0 : index
    %c0_3 = arith.constant 0 : index
    %4 = vector.load %arg3[%c0_2, %c0_3] : memref<128x256xbf16, #tpu.memory_space<vmem>>, vector<128x256xbf16>
    %c0_4 = arith.constant 0 : index
    %c0_5 = arith.constant 0 : index
    %5 = vector.load %arg4[%c0_4, %c0_5] : memref<256x128xbf16, #tpu.memory_space<vmem>>, vector<256x128xbf16>
    %cst = arith.constant dense<0.000000e+00> : vector<128x128xf32>
    %6 = tpu.matmul %4, %5, %cst {dimension_numbers = #tpu.dot_dimension_numbers<[1], [0], [0], [1], [0, 0, 1, 1], [], []>} : vector<128x256xbf16>, vector<256x128xbf16>, vector<128x128xf32> -> vector<128x128xf32>
    %7 = arith.addf %3, %6 : vector<128x128xf32>
    %c0_6 = arith.constant 0 : index
    %c0_7 = arith.constant 0 : index
    %8 = vector.load %arg7[%c0_6, %c0_7] : memref<128x128xf32, #tpu.memory_space<vmem>>, vector<128x128xf32>
    tpu.vector_store %arg7[%c0_6, %c0_7], %7 {strides = array<i32>} : memref<128x128xf32, #tpu.memory_space<vmem>>, vector<128x128xf32>,
    %c0_i32_8 = arith.constant 0 : i32
    %9 = arith.cmpi eq, %arg2, %c0_i32_8 : i32
    %10 = arith.extui %9 : i1 to i32
    %c0_i32_9 = arith.constant 0 : i32
    %11 = arith.cmpi ne, %10, %c0_i32_9 : i32
    scf.if %11 {
      %c0_10 = arith.constant 0 : index
      %c0_11 = arith.constant 0 : index
      %12 = vector.load %arg7[%c0_10, %c0_11] : memref<128x128xf32, #tpu.memory_space<vmem>>, vector<128x128xf32>
      %c0_12 = arith.constant 0 : index
      %c0_13 = arith.constant 0 : index
      %13 = vector.load %arg5[%c0_12, %c0_13] : memref<1x128xf32, #tpu.memory_space<vmem>>, vector<1x128xf32>
      %14 = vector.broadcast %13 : vector<1x128xf32> to vector<128x128xf32>
      %15 = arith.addf %12, %14 : vector<128x128xf32>
      %cst_14 = arith.constant 0.000000e+00 : f32
      %16 = vector.broadcast %cst_14 : f32 to vector<128x128xf32>
      %17 = arith.maximumf %15, %16 : vector<128x128xf32>
      %18 = arith.truncf %17 : vector<128x128xf32> to vector<128x128xbf16>
      %c0_15 = arith.constant 0 : index
      %c0_16 = arith.constant 0 : index
      %19 = vector.load %arg6[%c0_15, %c0_16] : memref<128x128xbf16, #tpu.memory_space<vmem>>, vector<128x128xbf16>
      tpu.vector_store %arg6[%c0_15, %c0_16], %18 {strides = array<i32>} : memref<128x128xbf16, #tpu.memory_space<vmem>>, vector<128x128xbf16>,
    } else {
    }
    return
  }
  func.func @transform_0(%arg0: i32, %arg1: i32, %arg2: i32) -> (i32, i32) {
    %c0_i32 = arith.constant 0 : i32
    return %arg0, %arg2 : i32, i32
  }
  func.func @transform_1(%arg0: i32, %arg1: i32, %arg2: i32) -> (i32, i32) {
    %c0_i32 = arith.constant 0 : i32
    return %arg2, %arg1 : i32, i32
  }
  func.func @transform_2(%arg0: i32, %arg1: i32, %arg2: i32) -> (i32, i32) {
    %c0_i32 = arith.constant 0 : i32
    %c0_i32_0 = arith.constant 0 : i32
    return %c0_i32, %arg1 : i32, i32
  }
  func.func @transform_3(%arg0: i32, %arg1: i32, %arg2: i32) -> (i32, i32) {
    %c0_i32 = arith.constant 0 : i32
    return %arg0, %arg1 : i32, i32
  }
}

module attributes {stable_mosaic.version = 11 : i64} {
  func.func @_mm_kernel(%arg0: i32, %arg1: i32, %arg2: i32, %arg3: memref<32x384xbf16, #tpu.memory_space<vmem>>, %arg4: memref<384x128xbf16, #tpu.memory_space<vmem>>, %arg5: memref<1x128xf32, #tpu.memory_space<vmem>>, %arg6: memref<32x128xbf16, #tpu.memory_space<vmem>>, %arg7: memref<32x128xf32, #tpu.memory_space<vmem>>) attributes {dimension_semantics = [#tpu.dimension_semantics<parallel>, #tpu.dimension_semantics<parallel>, #tpu.dimension_semantics<arbitrary>], iteration_bounds = array<i64: 1, 1, 3>, scalar_prefetch = 0 : i64, scratch_operands = 1 : i64, tpu.core_type = #tpu.core_type<tc>, window_params = [{transform_indices = @transform_0, window_bounds = array<i64: 32, 384>}, {transform_indices = @transform_1, window_bounds = array<i64: 384, 128>}, {transform_indices = @transform_2, window_bounds = array<i64: 1, 128>}, {transform_indices = @transform_3, window_bounds = array<i64: 32, 128>}]} {
    %c0_i32 = arith.constant 0 : i32
    %0 = arith.cmpi eq, %arg2, %c0_i32 : i32
    %1 = arith.extui %0 : i1 to i32
    %c0_i32_0 = arith.constant 0 : i32
    %2 = arith.cmpi ne, %1, %c0_i32_0 : i32
    scf.if %2 {
      %cst_9 = arith.constant 0.000000e+00 : f32
      %12 = vector.broadcast %cst_9 : f32 to vector<32x128xf32>
      %c0_10 = arith.constant 0 : index
      %c0_11 = arith.constant 0 : index
      %13 = vector.load %arg7[%c0_10, %c0_11] : memref<32x128xf32, #tpu.memory_space<vmem>>, vector<32x128xf32>
      tpu.vector_store %arg7[%c0_10, %c0_11], %12 {strides = array<i32>} : memref<32x128xf32, #tpu.memory_space<vmem>>, vector<32x128xf32>,
    } else {
    }
    %c0 = arith.constant 0 : index
    %c0_1 = arith.constant 0 : index
    %3 = vector.load %arg7[%c0, %c0_1] : memref<32x128xf32, #tpu.memory_space<vmem>>, vector<32x128xf32>
    %c0_2 = arith.constant 0 : index
    %c0_3 = arith.constant 0 : index
    %4 = vector.load %arg3[%c0_2, %c0_3] : memref<32x384xbf16, #tpu.memory_space<vmem>>, vector<32x384xbf16>
    %c0_4 = arith.constant 0 : index
    %c0_5 = arith.constant 0 : index
    %5 = vector.load %arg4[%c0_4, %c0_5] : memref<384x128xbf16, #tpu.memory_space<vmem>>, vector<384x128xbf16>
    %cst = arith.constant dense<0.000000e+00> : vector<32x128xf32>
    %6 = tpu.matmul %4, %5, %cst {dimension_numbers = #tpu.dot_dimension_numbers<[1], [0], [0], [1], [0, 0, 1, 1], [], []>} : vector<32x384xbf16>, vector<384x128xbf16>, vector<32x128xf32> -> vector<32x128xf32>
    %7 = arith.addf %3, %6 : vector<32x128xf32>
    %c0_6 = arith.constant 0 : index
    %c0_7 = arith.constant 0 : index
    %8 = vector.load %arg7[%c0_6, %c0_7] : memref<32x128xf32, #tpu.memory_space<vmem>>, vector<32x128xf32>
    tpu.vector_store %arg7[%c0_6, %c0_7], %7 {strides = array<i32>} : memref<32x128xf32, #tpu.memory_space<vmem>>, vector<32x128xf32>,
    %c2_i32 = arith.constant 2 : i32
    %9 = arith.cmpi eq, %arg2, %c2_i32 : i32
    %10 = arith.extui %9 : i1 to i32
    %c0_i32_8 = arith.constant 0 : i32
    %11 = arith.cmpi ne, %10, %c0_i32_8 : i32
    scf.if %11 {
      %c0_9 = arith.constant 0 : index
      %c0_10 = arith.constant 0 : index
      %12 = vector.load %arg7[%c0_9, %c0_10] : memref<32x128xf32, #tpu.memory_space<vmem>>, vector<32x128xf32>
      %c0_11 = arith.constant 0 : index
      %c0_12 = arith.constant 0 : index
      %13 = vector.load %arg5[%c0_11, %c0_12] : memref<1x128xf32, #tpu.memory_space<vmem>>, vector<1x128xf32>
      %14 = vector.broadcast %13 : vector<1x128xf32> to vector<32x128xf32>
      %15 = arith.addf %12, %14 : vector<32x128xf32>
      %cst_13 = arith.constant 0.000000e+00 : f32
      %16 = vector.broadcast %cst_13 : f32 to vector<32x128xf32>
      %17 = arith.maximumf %15, %16 : vector<32x128xf32>
      %18 = arith.truncf %17 : vector<32x128xf32> to vector<32x128xbf16>
      %c0_14 = arith.constant 0 : index
      %c0_15 = arith.constant 0 : index
      %19 = vector.load %arg6[%c0_14, %c0_15] : memref<32x128xbf16, #tpu.memory_space<vmem>>, vector<32x128xbf16>
      tpu.vector_store %arg6[%c0_14, %c0_15], %18 {strides = array<i32>} : memref<32x128xbf16, #tpu.memory_space<vmem>>, vector<32x128xbf16>,
    } else {
    }
    return
  }
  func.func @transform_0(%arg0: i32, %arg1: i32, %arg2: i32) -> (i32, i32) {
    %c0_i32 = arith.constant 0 : i32
    return %arg0, %arg2 : i32, i32
  }
  func.func @transform_1(%arg0: i32, %arg1: i32, %arg2: i32) -> (i32, i32) {
    %c0_i32 = arith.constant 0 : i32
    return %arg2, %arg1 : i32, i32
  }
  func.func @transform_2(%arg0: i32, %arg1: i32, %arg2: i32) -> (i32, i32) {
    %c0_i32 = arith.constant 0 : i32
    %c0_i32_0 = arith.constant 0 : i32
    return %c0_i32, %arg1 : i32, i32
  }
  func.func @transform_3(%arg0: i32, %arg1: i32, %arg2: i32) -> (i32, i32) {
    %c0_i32 = arith.constant 0 : i32
    return %arg0, %arg1 : i32, i32
  }
}

module attributes {stable_mosaic.version = 11 : i64} {
  func.func @_mm_kernel(%arg0: i32, %arg1: i32, %arg2: i32, %arg3: memref<32x256xbf16, #tpu.memory_space<vmem>>, %arg4: memref<256x256xbf16, #tpu.memory_space<vmem>>, %arg5: memref<1x256xf32, #tpu.memory_space<vmem>>, %arg6: memref<32x256xbf16, #tpu.memory_space<vmem>>, %arg7: memref<32x256xf32, #tpu.memory_space<vmem>>) attributes {dimension_semantics = [#tpu.dimension_semantics<parallel>, #tpu.dimension_semantics<parallel>, #tpu.dimension_semantics<arbitrary>], iteration_bounds = array<i64: 1, 2, 1>, scalar_prefetch = 0 : i64, scratch_operands = 1 : i64, tpu.core_type = #tpu.core_type<tc>, window_params = [{transform_indices = @transform_0, window_bounds = array<i64: 32, 256>}, {transform_indices = @transform_1, window_bounds = array<i64: 256, 256>}, {transform_indices = @transform_2, window_bounds = array<i64: 1, 256>}, {transform_indices = @transform_3, window_bounds = array<i64: 32, 256>}]} {
    %c0_i32 = arith.constant 0 : i32
    %0 = arith.cmpi eq, %arg2, %c0_i32 : i32
    %1 = arith.extui %0 : i1 to i32
    %c0_i32_0 = arith.constant 0 : i32
    %2 = arith.cmpi ne, %1, %c0_i32_0 : i32
    scf.if %2 {
      %cst_10 = arith.constant 0.000000e+00 : f32
      %12 = vector.broadcast %cst_10 : f32 to vector<32x256xf32>
      %c0_11 = arith.constant 0 : index
      %c0_12 = arith.constant 0 : index
      %13 = vector.load %arg7[%c0_11, %c0_12] : memref<32x256xf32, #tpu.memory_space<vmem>>, vector<32x256xf32>
      tpu.vector_store %arg7[%c0_11, %c0_12], %12 {strides = array<i32>} : memref<32x256xf32, #tpu.memory_space<vmem>>, vector<32x256xf32>,
    } else {
    }
    %c0 = arith.constant 0 : index
    %c0_1 = arith.constant 0 : index
    %3 = vector.load %arg7[%c0, %c0_1] : memref<32x256xf32, #tpu.memory_space<vmem>>, vector<32x256xf32>
    %c0_2 = arith.constant 0 : index
    %c0_3 = arith.constant 0 : index
    %4 = vector.load %arg3[%c0_2, %c0_3] : memref<32x256xbf16, #tpu.memory_space<vmem>>, vector<32x256xbf16>
    %c0_4 = arith.constant 0 : index
    %c0_5 = arith.constant 0 : index
    %5 = vector.load %arg4[%c0_4, %c0_5] : memref<256x256xbf16, #tpu.memory_space<vmem>>, vector<256x256xbf16>
    %cst = arith.constant dense<0.000000e+00> : vector<32x256xf32>
    %6 = tpu.matmul %4, %5, %cst {dimension_numbers = #tpu.dot_dimension_numbers<[1], [0], [0], [1], [0, 0, 1, 1], [], []>} : vector<32x256xbf16>, vector<256x256xbf16>, vector<32x256xf32> -> vector<32x256xf32>
    %7 = arith.addf %3, %6 : vector<32x256xf32>
    %c0_6 = arith.constant 0 : index
    %c0_7 = arith.constant 0 : index
    %8 = vector.load %arg7[%c0_6, %c0_7] : memref<32x256xf32, #tpu.memory_space<vmem>>, vector<32x256xf32>
    tpu.vector_store %arg7[%c0_6, %c0_7], %7 {strides = array<i32>} : memref<32x256xf32, #tpu.memory_space<vmem>>, vector<32x256xf32>,
    %c0_i32_8 = arith.constant 0 : i32
    %9 = arith.cmpi eq, %arg2, %c0_i32_8 : i32
    %10 = arith.extui %9 : i1 to i32
    %c0_i32_9 = arith.constant 0 : i32
    %11 = arith.cmpi ne, %10, %c0_i32_9 : i32
    scf.if %11 {
      %c0_10 = arith.constant 0 : index
      %c0_11 = arith.constant 0 : index
      %12 = vector.load %arg7[%c0_10, %c0_11] : memref<32x256xf32, #tpu.memory_space<vmem>>, vector<32x256xf32>
      %c0_12 = arith.constant 0 : index
      %c0_13 = arith.constant 0 : index
      %13 = vector.load %arg5[%c0_12, %c0_13] : memref<1x256xf32, #tpu.memory_space<vmem>>, vector<1x256xf32>
      %14 = vector.broadcast %13 : vector<1x256xf32> to vector<32x256xf32>
      %15 = arith.addf %12, %14 : vector<32x256xf32>
      %16 = arith.truncf %15 : vector<32x256xf32> to vector<32x256xbf16>
      %c0_14 = arith.constant 0 : index
      %c0_15 = arith.constant 0 : index
      %17 = vector.load %arg6[%c0_14, %c0_15] : memref<32x256xbf16, #tpu.memory_space<vmem>>, vector<32x256xbf16>
      tpu.vector_store %arg6[%c0_14, %c0_15], %16 {strides = array<i32>} : memref<32x256xbf16, #tpu.memory_space<vmem>>, vector<32x256xbf16>,
    } else {
    }
    return
  }
  func.func @transform_0(%arg0: i32, %arg1: i32, %arg2: i32) -> (i32, i32) {
    %c0_i32 = arith.constant 0 : i32
    return %arg0, %arg2 : i32, i32
  }
  func.func @transform_1(%arg0: i32, %arg1: i32, %arg2: i32) -> (i32, i32) {
    %c0_i32 = arith.constant 0 : i32
    return %arg2, %arg1 : i32, i32
  }
  func.func @transform_2(%arg0: i32, %arg1: i32, %arg2: i32) -> (i32, i32) {
    %c0_i32 = arith.constant 0 : i32
    %c0_i32_0 = arith.constant 0 : i32
    return %c0_i32, %arg1 : i32, i32
  }
  func.func @transform_3(%arg0: i32, %arg1: i32, %arg2: i32) -> (i32, i32) {
    %c0_i32 = arith.constant 0 : i32
    return %arg0, %arg1 : i32, i32
  }
}

module attributes {stable_mosaic.version = 11 : i64} {
  func.func @_mm_res_kernel(%arg0: i32, %arg1: i32, %arg2: i32, %arg3: memref<32x128xbf16, #tpu.memory_space<vmem>>, %arg4: memref<128x256xbf16, #tpu.memory_space<vmem>>, %arg5: memref<1x256xf32, #tpu.memory_space<vmem>>, %arg6: memref<32x256xbf16, #tpu.memory_space<vmem>>, %arg7: memref<32x256xbf16, #tpu.memory_space<vmem>>, %arg8: memref<32x256xf32, #tpu.memory_space<vmem>>) attributes {dimension_semantics = [#tpu.dimension_semantics<parallel>, #tpu.dimension_semantics<parallel>, #tpu.dimension_semantics<arbitrary>], iteration_bounds = array<i64: 1, 2, 1>, scalar_prefetch = 0 : i64, scratch_operands = 1 : i64, tpu.core_type = #tpu.core_type<tc>, window_params = [{transform_indices = @transform_0, window_bounds = array<i64: 32, 128>}, {transform_indices = @transform_1, window_bounds = array<i64: 128, 256>}, {transform_indices = @transform_2, window_bounds = array<i64: 1, 256>}, {transform_indices = @transform_3, window_bounds = array<i64: 32, 256>}, {transform_indices = @transform_4, window_bounds = array<i64: 32, 256>}]} {
    %c0_i32 = arith.constant 0 : i32
    %0 = arith.cmpi eq, %arg2, %c0_i32 : i32
    %1 = arith.extui %0 : i1 to i32
    %c0_i32_0 = arith.constant 0 : i32
    %2 = arith.cmpi ne, %1, %c0_i32_0 : i32
    scf.if %2 {
      %cst_10 = arith.constant 0.000000e+00 : f32
      %12 = vector.broadcast %cst_10 : f32 to vector<32x256xf32>
      %c0_11 = arith.constant 0 : index
      %c0_12 = arith.constant 0 : index
      %13 = vector.load %arg8[%c0_11, %c0_12] : memref<32x256xf32, #tpu.memory_space<vmem>>, vector<32x256xf32>
      tpu.vector_store %arg8[%c0_11, %c0_12], %12 {strides = array<i32>} : memref<32x256xf32, #tpu.memory_space<vmem>>, vector<32x256xf32>,
    } else {
    }
    %c0 = arith.constant 0 : index
    %c0_1 = arith.constant 0 : index
    %3 = vector.load %arg8[%c0, %c0_1] : memref<32x256xf32, #tpu.memory_space<vmem>>, vector<32x256xf32>
    %c0_2 = arith.constant 0 : index
    %c0_3 = arith.constant 0 : index
    %4 = vector.load %arg3[%c0_2, %c0_3] : memref<32x128xbf16, #tpu.memory_space<vmem>>, vector<32x128xbf16>
    %c0_4 = arith.constant 0 : index
    %c0_5 = arith.constant 0 : index
    %5 = vector.load %arg4[%c0_4, %c0_5] : memref<128x256xbf16, #tpu.memory_space<vmem>>, vector<128x256xbf16>
    %cst = arith.constant dense<0.000000e+00> : vector<32x256xf32>
    %6 = tpu.matmul %4, %5, %cst {dimension_numbers = #tpu.dot_dimension_numbers<[1], [0], [0], [1], [0, 0, 1, 1], [], []>} : vector<32x128xbf16>, vector<128x256xbf16>, vector<32x256xf32> -> vector<32x256xf32>
    %7 = arith.addf %3, %6 : vector<32x256xf32>
    %c0_6 = arith.constant 0 : index
    %c0_7 = arith.constant 0 : index
    %8 = vector.load %arg8[%c0_6, %c0_7] : memref<32x256xf32, #tpu.memory_space<vmem>>, vector<32x256xf32>
    tpu.vector_store %arg8[%c0_6, %c0_7], %7 {strides = array<i32>} : memref<32x256xf32, #tpu.memory_space<vmem>>, vector<32x256xf32>,
    %c0_i32_8 = arith.constant 0 : i32
    %9 = arith.cmpi eq, %arg2, %c0_i32_8 : i32
    %10 = arith.extui %9 : i1 to i32
    %c0_i32_9 = arith.constant 0 : i32
    %11 = arith.cmpi ne, %10, %c0_i32_9 : i32
    scf.if %11 {
      %c0_10 = arith.constant 0 : index
      %c0_11 = arith.constant 0 : index
      %12 = vector.load %arg8[%c0_10, %c0_11] : memref<32x256xf32, #tpu.memory_space<vmem>>, vector<32x256xf32>
      %c0_12 = arith.constant 0 : index
      %c0_13 = arith.constant 0 : index
      %13 = vector.load %arg5[%c0_12, %c0_13] : memref<1x256xf32, #tpu.memory_space<vmem>>, vector<1x256xf32>
      %14 = vector.broadcast %13 : vector<1x256xf32> to vector<32x256xf32>
      %15 = arith.addf %12, %14 : vector<32x256xf32>
      %c0_14 = arith.constant 0 : index
      %c0_15 = arith.constant 0 : index
      %16 = vector.load %arg6[%c0_14, %c0_15] : memref<32x256xbf16, #tpu.memory_space<vmem>>, vector<32x256xbf16>
      %17 = arith.extf %16 : vector<32x256xbf16> to vector<32x256xf32>
      %18 = arith.addf %15, %17 : vector<32x256xf32>
      %cst_16 = arith.constant 0.000000e+00 : f32
      %19 = vector.broadcast %cst_16 : f32 to vector<32x256xf32>
      %20 = arith.maximumf %18, %19 : vector<32x256xf32>
      %21 = arith.truncf %20 : vector<32x256xf32> to vector<32x256xbf16>
      %c0_17 = arith.constant 0 : index
      %c0_18 = arith.constant 0 : index
      %22 = vector.load %arg7[%c0_17, %c0_18] : memref<32x256xbf16, #tpu.memory_space<vmem>>, vector<32x256xbf16>
      tpu.vector_store %arg7[%c0_17, %c0_18], %21 {strides = array<i32>} : memref<32x256xbf16, #tpu.memory_space<vmem>>, vector<32x256xbf16>,
    } else {
    }
    return
  }
  func.func @transform_0(%arg0: i32, %arg1: i32, %arg2: i32) -> (i32, i32) {
    %c0_i32 = arith.constant 0 : i32
    return %arg0, %arg2 : i32, i32
  }
  func.func @transform_1(%arg0: i32, %arg1: i32, %arg2: i32) -> (i32, i32) {
    %c0_i32 = arith.constant 0 : i32
    return %arg2, %arg1 : i32, i32
  }
  func.func @transform_2(%arg0: i32, %arg1: i32, %arg2: i32) -> (i32, i32) {
    %c0_i32 = arith.constant 0 : i32
    %c0_i32_0 = arith.constant 0 : i32
    return %c0_i32, %arg1 : i32, i32
  }
  func.func @transform_3(%arg0: i32, %arg1: i32, %arg2: i32) -> (i32, i32) {
    %c0_i32 = arith.constant 0 : i32
    return %arg0, %arg1 : i32, i32
  }
  func.func @transform_4(%arg0: i32, %arg1: i32, %arg2: i32) -> (i32, i32) {
    %c0_i32 = arith.constant 0 : i32
    return %arg0, %arg1 : i32, i32
  }
}

module attributes {stable_mosaic.version = 11 : i64} {
  func.func @_mm_kernel(%arg0: i32, %arg1: i32, %arg2: i32, %arg3: memref<32x512xbf16, #tpu.memory_space<vmem>>, %arg4: memref<512x128xbf16, #tpu.memory_space<vmem>>, %arg5: memref<1x128xf32, #tpu.memory_space<vmem>>, %arg6: memref<32x128xbf16, #tpu.memory_space<vmem>>, %arg7: memref<32x128xf32, #tpu.memory_space<vmem>>) attributes {dimension_semantics = [#tpu.dimension_semantics<parallel>, #tpu.dimension_semantics<parallel>, #tpu.dimension_semantics<arbitrary>], iteration_bounds = array<i64: 1, 1, 1>, scalar_prefetch = 0 : i64, scratch_operands = 1 : i64, tpu.core_type = #tpu.core_type<tc>, window_params = [{transform_indices = @transform_0, window_bounds = array<i64: 32, 512>}, {transform_indices = @transform_1, window_bounds = array<i64: 512, 128>}, {transform_indices = @transform_2, window_bounds = array<i64: 1, 128>}, {transform_indices = @transform_3, window_bounds = array<i64: 32, 128>}]} {
    %c0_i32 = arith.constant 0 : i32
    %0 = arith.cmpi eq, %arg2, %c0_i32 : i32
    %1 = arith.extui %0 : i1 to i32
    %c0_i32_0 = arith.constant 0 : i32
    %2 = arith.cmpi ne, %1, %c0_i32_0 : i32
    scf.if %2 {
      %cst_10 = arith.constant 0.000000e+00 : f32
      %12 = vector.broadcast %cst_10 : f32 to vector<32x128xf32>
      %c0_11 = arith.constant 0 : index
      %c0_12 = arith.constant 0 : index
      %13 = vector.load %arg7[%c0_11, %c0_12] : memref<32x128xf32, #tpu.memory_space<vmem>>, vector<32x128xf32>
      tpu.vector_store %arg7[%c0_11, %c0_12], %12 {strides = array<i32>} : memref<32x128xf32, #tpu.memory_space<vmem>>, vector<32x128xf32>,
    } else {
    }
    %c0 = arith.constant 0 : index
    %c0_1 = arith.constant 0 : index
    %3 = vector.load %arg7[%c0, %c0_1] : memref<32x128xf32, #tpu.memory_space<vmem>>, vector<32x128xf32>
    %c0_2 = arith.constant 0 : index
    %c0_3 = arith.constant 0 : index
    %4 = vector.load %arg3[%c0_2, %c0_3] : memref<32x512xbf16, #tpu.memory_space<vmem>>, vector<32x512xbf16>
    %c0_4 = arith.constant 0 : index
    %c0_5 = arith.constant 0 : index
    %5 = vector.load %arg4[%c0_4, %c0_5] : memref<512x128xbf16, #tpu.memory_space<vmem>>, vector<512x128xbf16>
    %cst = arith.constant dense<0.000000e+00> : vector<32x128xf32>
    %6 = tpu.matmul %4, %5, %cst {dimension_numbers = #tpu.dot_dimension_numbers<[1], [0], [0], [1], [0, 0, 1, 1], [], []>} : vector<32x512xbf16>, vector<512x128xbf16>, vector<32x128xf32> -> vector<32x128xf32>
    %7 = arith.addf %3, %6 : vector<32x128xf32>
    %c0_6 = arith.constant 0 : index
    %c0_7 = arith.constant 0 : index
    %8 = vector.load %arg7[%c0_6, %c0_7] : memref<32x128xf32, #tpu.memory_space<vmem>>, vector<32x128xf32>
    tpu.vector_store %arg7[%c0_6, %c0_7], %7 {strides = array<i32>} : memref<32x128xf32, #tpu.memory_space<vmem>>, vector<32x128xf32>,
    %c0_i32_8 = arith.constant 0 : i32
    %9 = arith.cmpi eq, %arg2, %c0_i32_8 : i32
    %10 = arith.extui %9 : i1 to i32
    %c0_i32_9 = arith.constant 0 : i32
    %11 = arith.cmpi ne, %10, %c0_i32_9 : i32
    scf.if %11 {
      %c0_10 = arith.constant 0 : index
      %c0_11 = arith.constant 0 : index
      %12 = vector.load %arg7[%c0_10, %c0_11] : memref<32x128xf32, #tpu.memory_space<vmem>>, vector<32x128xf32>
      %c0_12 = arith.constant 0 : index
      %c0_13 = arith.constant 0 : index
      %13 = vector.load %arg5[%c0_12, %c0_13] : memref<1x128xf32, #tpu.memory_space<vmem>>, vector<1x128xf32>
      %14 = vector.broadcast %13 : vector<1x128xf32> to vector<32x128xf32>
      %15 = arith.addf %12, %14 : vector<32x128xf32>
      %cst_14 = arith.constant 0.000000e+00 : f32
      %16 = vector.broadcast %cst_14 : f32 to vector<32x128xf32>
      %17 = arith.maximumf %15, %16 : vector<32x128xf32>
      %18 = arith.truncf %17 : vector<32x128xf32> to vector<32x128xbf16>
      %c0_15 = arith.constant 0 : index
      %c0_16 = arith.constant 0 : index
      %19 = vector.load %arg6[%c0_15, %c0_16] : memref<32x128xbf16, #tpu.memory_space<vmem>>, vector<32x128xbf16>
      tpu.vector_store %arg6[%c0_15, %c0_16], %18 {strides = array<i32>} : memref<32x128xbf16, #tpu.memory_space<vmem>>, vector<32x128xbf16>,
    } else {
    }
    return
  }
  func.func @transform_0(%arg0: i32, %arg1: i32, %arg2: i32) -> (i32, i32) {
    %c0_i32 = arith.constant 0 : i32
    return %arg0, %arg2 : i32, i32
  }
  func.func @transform_1(%arg0: i32, %arg1: i32, %arg2: i32) -> (i32, i32) {
    %c0_i32 = arith.constant 0 : i32
    return %arg2, %arg1 : i32, i32
  }
  func.func @transform_2(%arg0: i32, %arg1: i32, %arg2: i32) -> (i32, i32) {
    %c0_i32 = arith.constant 0 : i32
    %c0_i32_0 = arith.constant 0 : i32
    return %c0_i32, %arg1 : i32, i32
  }
  func.func @transform_3(%arg0: i32, %arg1: i32, %arg2: i32) -> (i32, i32) {
    %c0_i32 = arith.constant 0 : i32
    return %arg0, %arg1 : i32, i32
  }
}

module attributes {stable_mosaic.version = 11 : i64} {
  func.func @_mm_kernel(%arg0: i32, %arg1: i32, %arg2: i32, %arg3: memref<32x512xbf16, #tpu.memory_space<vmem>>, %arg4: memref<512x256xbf16, #tpu.memory_space<vmem>>, %arg5: memref<1x256xf32, #tpu.memory_space<vmem>>, %arg6: memref<32x256xbf16, #tpu.memory_space<vmem>>, %arg7: memref<32x256xf32, #tpu.memory_space<vmem>>) attributes {dimension_semantics = [#tpu.dimension_semantics<parallel>, #tpu.dimension_semantics<parallel>, #tpu.dimension_semantics<arbitrary>], iteration_bounds = array<i64: 1, 1, 1>, scalar_prefetch = 0 : i64, scratch_operands = 1 : i64, tpu.core_type = #tpu.core_type<tc>, window_params = [{transform_indices = @transform_0, window_bounds = array<i64: 32, 512>}, {transform_indices = @transform_1, window_bounds = array<i64: 512, 256>}, {transform_indices = @transform_2, window_bounds = array<i64: 1, 256>}, {transform_indices = @transform_3, window_bounds = array<i64: 32, 256>}]} {
    %c0_i32 = arith.constant 0 : i32
    %0 = arith.cmpi eq, %arg2, %c0_i32 : i32
    %1 = arith.extui %0 : i1 to i32
    %c0_i32_0 = arith.constant 0 : i32
    %2 = arith.cmpi ne, %1, %c0_i32_0 : i32
    scf.if %2 {
      %cst_10 = arith.constant 0.000000e+00 : f32
      %12 = vector.broadcast %cst_10 : f32 to vector<32x256xf32>
      %c0_11 = arith.constant 0 : index
      %c0_12 = arith.constant 0 : index
      %13 = vector.load %arg7[%c0_11, %c0_12] : memref<32x256xf32, #tpu.memory_space<vmem>>, vector<32x256xf32>
      tpu.vector_store %arg7[%c0_11, %c0_12], %12 {strides = array<i32>} : memref<32x256xf32, #tpu.memory_space<vmem>>, vector<32x256xf32>,
    } else {
    }
    %c0 = arith.constant 0 : index
    %c0_1 = arith.constant 0 : index
    %3 = vector.load %arg7[%c0, %c0_1] : memref<32x256xf32, #tpu.memory_space<vmem>>, vector<32x256xf32>
    %c0_2 = arith.constant 0 : index
    %c0_3 = arith.constant 0 : index
    %4 = vector.load %arg3[%c0_2, %c0_3] : memref<32x512xbf16, #tpu.memory_space<vmem>>, vector<32x512xbf16>
    %c0_4 = arith.constant 0 : index
    %c0_5 = arith.constant 0 : index
    %5 = vector.load %arg4[%c0_4, %c0_5] : memref<512x256xbf16, #tpu.memory_space<vmem>>, vector<512x256xbf16>
    %cst = arith.constant dense<0.000000e+00> : vector<32x256xf32>
    %6 = tpu.matmul %4, %5, %cst {dimension_numbers = #tpu.dot_dimension_numbers<[1], [0], [0], [1], [0, 0, 1, 1], [], []>} : vector<32x512xbf16>, vector<512x256xbf16>, vector<32x256xf32> -> vector<32x256xf32>
    %7 = arith.addf %3, %6 : vector<32x256xf32>
    %c0_6 = arith.constant 0 : index
    %c0_7 = arith.constant 0 : index
    %8 = vector.load %arg7[%c0_6, %c0_7] : memref<32x256xf32, #tpu.memory_space<vmem>>, vector<32x256xf32>
    tpu.vector_store %arg7[%c0_6, %c0_7], %7 {strides = array<i32>} : memref<32x256xf32, #tpu.memory_space<vmem>>, vector<32x256xf32>,
    %c0_i32_8 = arith.constant 0 : i32
    %9 = arith.cmpi eq, %arg2, %c0_i32_8 : i32
    %10 = arith.extui %9 : i1 to i32
    %c0_i32_9 = arith.constant 0 : i32
    %11 = arith.cmpi ne, %10, %c0_i32_9 : i32
    scf.if %11 {
      %c0_10 = arith.constant 0 : index
      %c0_11 = arith.constant 0 : index
      %12 = vector.load %arg7[%c0_10, %c0_11] : memref<32x256xf32, #tpu.memory_space<vmem>>, vector<32x256xf32>
      %c0_12 = arith.constant 0 : index
      %c0_13 = arith.constant 0 : index
      %13 = vector.load %arg5[%c0_12, %c0_13] : memref<1x256xf32, #tpu.memory_space<vmem>>, vector<1x256xf32>
      %14 = vector.broadcast %13 : vector<1x256xf32> to vector<32x256xf32>
      %15 = arith.addf %12, %14 : vector<32x256xf32>
      %cst_14 = arith.constant 0.000000e+00 : f32
      %16 = vector.broadcast %cst_14 : f32 to vector<32x256xf32>
      %17 = arith.maximumf %15, %16 : vector<32x256xf32>
      %18 = arith.truncf %17 : vector<32x256xf32> to vector<32x256xbf16>
      %c0_15 = arith.constant 0 : index
      %c0_16 = arith.constant 0 : index
      %19 = vector.load %arg6[%c0_15, %c0_16] : memref<32x256xbf16, #tpu.memory_space<vmem>>, vector<32x256xbf16>
      tpu.vector_store %arg6[%c0_15, %c0_16], %18 {strides = array<i32>} : memref<32x256xbf16, #tpu.memory_space<vmem>>, vector<32x256xbf16>,
    } else {
    }
    return
  }
  func.func @transform_0(%arg0: i32, %arg1: i32, %arg2: i32) -> (i32, i32) {
    %c0_i32 = arith.constant 0 : i32
    return %arg0, %arg2 : i32, i32
  }
  func.func @transform_1(%arg0: i32, %arg1: i32, %arg2: i32) -> (i32, i32) {
    %c0_i32 = arith.constant 0 : i32
    return %arg2, %arg1 : i32, i32
  }
  func.func @transform_2(%arg0: i32, %arg1: i32, %arg2: i32) -> (i32, i32) {
    %c0_i32 = arith.constant 0 : i32
    %c0_i32_0 = arith.constant 0 : i32
    return %c0_i32, %arg1 : i32, i32
  }
  func.func @transform_3(%arg0: i32, %arg1: i32, %arg2: i32) -> (i32, i32) {
    %c0_i32 = arith.constant 0 : i32
    return %arg0, %arg1 : i32, i32
  }
}

module attributes {stable_mosaic.version = 11 : i64} {
  func.func @_mm_kernel(%arg0: i32, %arg1: i32, %arg2: i32, %arg3: memref<16x768xbf16, #tpu.memory_space<vmem>>, %arg4: memref<768x256xbf16, #tpu.memory_space<vmem>>, %arg5: memref<1x256xf32, #tpu.memory_space<vmem>>, %arg6: memref<16x256xbf16, #tpu.memory_space<vmem>>, %arg7: memref<16x256xf32, #tpu.memory_space<vmem>>) attributes {dimension_semantics = [#tpu.dimension_semantics<parallel>, #tpu.dimension_semantics<parallel>, #tpu.dimension_semantics<arbitrary>], iteration_bounds = array<i64: 1, 1, 3>, scalar_prefetch = 0 : i64, scratch_operands = 1 : i64, tpu.core_type = #tpu.core_type<tc>, window_params = [{transform_indices = @transform_0, window_bounds = array<i64: 16, 768>}, {transform_indices = @transform_1, window_bounds = array<i64: 768, 256>}, {transform_indices = @transform_2, window_bounds = array<i64: 1, 256>}, {transform_indices = @transform_3, window_bounds = array<i64: 16, 256>}]} {
    %c0_i32 = arith.constant 0 : i32
    %0 = arith.cmpi eq, %arg2, %c0_i32 : i32
    %1 = arith.extui %0 : i1 to i32
    %c0_i32_0 = arith.constant 0 : i32
    %2 = arith.cmpi ne, %1, %c0_i32_0 : i32
    scf.if %2 {
      %cst_9 = arith.constant 0.000000e+00 : f32
      %12 = vector.broadcast %cst_9 : f32 to vector<16x256xf32>
      %c0_10 = arith.constant 0 : index
      %c0_11 = arith.constant 0 : index
      %13 = vector.load %arg7[%c0_10, %c0_11] : memref<16x256xf32, #tpu.memory_space<vmem>>, vector<16x256xf32>
      tpu.vector_store %arg7[%c0_10, %c0_11], %12 {strides = array<i32>} : memref<16x256xf32, #tpu.memory_space<vmem>>, vector<16x256xf32>,
    } else {
    }
    %c0 = arith.constant 0 : index
    %c0_1 = arith.constant 0 : index
    %3 = vector.load %arg7[%c0, %c0_1] : memref<16x256xf32, #tpu.memory_space<vmem>>, vector<16x256xf32>
    %c0_2 = arith.constant 0 : index
    %c0_3 = arith.constant 0 : index
    %4 = vector.load %arg3[%c0_2, %c0_3] : memref<16x768xbf16, #tpu.memory_space<vmem>>, vector<16x768xbf16>
    %c0_4 = arith.constant 0 : index
    %c0_5 = arith.constant 0 : index
    %5 = vector.load %arg4[%c0_4, %c0_5] : memref<768x256xbf16, #tpu.memory_space<vmem>>, vector<768x256xbf16>
    %cst = arith.constant dense<0.000000e+00> : vector<16x256xf32>
    %6 = tpu.matmul %4, %5, %cst {dimension_numbers = #tpu.dot_dimension_numbers<[1], [0], [0], [1], [0, 0, 1, 1], [], []>} : vector<16x768xbf16>, vector<768x256xbf16>, vector<16x256xf32> -> vector<16x256xf32>
    %7 = arith.addf %3, %6 : vector<16x256xf32>
    %c0_6 = arith.constant 0 : index
    %c0_7 = arith.constant 0 : index
    %8 = vector.load %arg7[%c0_6, %c0_7] : memref<16x256xf32, #tpu.memory_space<vmem>>, vector<16x256xf32>
    tpu.vector_store %arg7[%c0_6, %c0_7], %7 {strides = array<i32>} : memref<16x256xf32, #tpu.memory_space<vmem>>, vector<16x256xf32>,
    %c2_i32 = arith.constant 2 : i32
    %9 = arith.cmpi eq, %arg2, %c2_i32 : i32
    %10 = arith.extui %9 : i1 to i32
    %c0_i32_8 = arith.constant 0 : i32
    %11 = arith.cmpi ne, %10, %c0_i32_8 : i32
    scf.if %11 {
      %c0_9 = arith.constant 0 : index
      %c0_10 = arith.constant 0 : index
      %12 = vector.load %arg7[%c0_9, %c0_10] : memref<16x256xf32, #tpu.memory_space<vmem>>, vector<16x256xf32>
      %c0_11 = arith.constant 0 : index
      %c0_12 = arith.constant 0 : index
      %13 = vector.load %arg5[%c0_11, %c0_12] : memref<1x256xf32, #tpu.memory_space<vmem>>, vector<1x256xf32>
      %14 = vector.broadcast %13 : vector<1x256xf32> to vector<16x256xf32>
      %15 = arith.addf %12, %14 : vector<16x256xf32>
      %cst_13 = arith.constant 0.000000e+00 : f32
      %16 = vector.broadcast %cst_13 : f32 to vector<16x256xf32>
      %17 = arith.maximumf %15, %16 : vector<16x256xf32>
      %18 = arith.truncf %17 : vector<16x256xf32> to vector<16x256xbf16>
      %c0_14 = arith.constant 0 : index
      %c0_15 = arith.constant 0 : index
      %19 = vector.load %arg6[%c0_14, %c0_15] : memref<16x256xbf16, #tpu.memory_space<vmem>>, vector<16x256xbf16>
      tpu.vector_store %arg6[%c0_14, %c0_15], %18 {strides = array<i32>} : memref<16x256xbf16, #tpu.memory_space<vmem>>, vector<16x256xbf16>,
    } else {
    }
    return
  }
  func.func @transform_0(%arg0: i32, %arg1: i32, %arg2: i32) -> (i32, i32) {
    %c0_i32 = arith.constant 0 : i32
    return %arg0, %arg2 : i32, i32
  }
  func.func @transform_1(%arg0: i32, %arg1: i32, %arg2: i32) -> (i32, i32) {
    %c0_i32 = arith.constant 0 : i32
    return %arg2, %arg1 : i32, i32
  }
  func.func @transform_2(%arg0: i32, %arg1: i32, %arg2: i32) -> (i32, i32) {
    %c0_i32 = arith.constant 0 : i32
    %c0_i32_0 = arith.constant 0 : i32
    return %c0_i32, %arg1 : i32, i32
  }
  func.func @transform_3(%arg0: i32, %arg1: i32, %arg2: i32) -> (i32, i32) {
    %c0_i32 = arith.constant 0 : i32
    return %arg0, %arg1 : i32, i32
  }
}

module attributes {stable_mosaic.version = 11 : i64} {
  func.func @_mm_kernel(%arg0: i32, %arg1: i32, %arg2: i32, %arg3: memref<16x512xbf16, #tpu.memory_space<vmem>>, %arg4: memref<512x256xbf16, #tpu.memory_space<vmem>>, %arg5: memref<1x256xf32, #tpu.memory_space<vmem>>, %arg6: memref<16x256xbf16, #tpu.memory_space<vmem>>, %arg7: memref<16x256xf32, #tpu.memory_space<vmem>>) attributes {dimension_semantics = [#tpu.dimension_semantics<parallel>, #tpu.dimension_semantics<parallel>, #tpu.dimension_semantics<arbitrary>], iteration_bounds = array<i64: 1, 4, 1>, scalar_prefetch = 0 : i64, scratch_operands = 1 : i64, tpu.core_type = #tpu.core_type<tc>, window_params = [{transform_indices = @transform_0, window_bounds = array<i64: 16, 512>}, {transform_indices = @transform_1, window_bounds = array<i64: 512, 256>}, {transform_indices = @transform_2, window_bounds = array<i64: 1, 256>}, {transform_indices = @transform_3, window_bounds = array<i64: 16, 256>}]} {
    %c0_i32 = arith.constant 0 : i32
    %0 = arith.cmpi eq, %arg2, %c0_i32 : i32
    %1 = arith.extui %0 : i1 to i32
    %c0_i32_0 = arith.constant 0 : i32
    %2 = arith.cmpi ne, %1, %c0_i32_0 : i32
    scf.if %2 {
      %cst_10 = arith.constant 0.000000e+00 : f32
      %12 = vector.broadcast %cst_10 : f32 to vector<16x256xf32>
      %c0_11 = arith.constant 0 : index
      %c0_12 = arith.constant 0 : index
      %13 = vector.load %arg7[%c0_11, %c0_12] : memref<16x256xf32, #tpu.memory_space<vmem>>, vector<16x256xf32>
      tpu.vector_store %arg7[%c0_11, %c0_12], %12 {strides = array<i32>} : memref<16x256xf32, #tpu.memory_space<vmem>>, vector<16x256xf32>,
    } else {
    }
    %c0 = arith.constant 0 : index
    %c0_1 = arith.constant 0 : index
    %3 = vector.load %arg7[%c0, %c0_1] : memref<16x256xf32, #tpu.memory_space<vmem>>, vector<16x256xf32>
    %c0_2 = arith.constant 0 : index
    %c0_3 = arith.constant 0 : index
    %4 = vector.load %arg3[%c0_2, %c0_3] : memref<16x512xbf16, #tpu.memory_space<vmem>>, vector<16x512xbf16>
    %c0_4 = arith.constant 0 : index
    %c0_5 = arith.constant 0 : index
    %5 = vector.load %arg4[%c0_4, %c0_5] : memref<512x256xbf16, #tpu.memory_space<vmem>>, vector<512x256xbf16>
    %cst = arith.constant dense<0.000000e+00> : vector<16x256xf32>
    %6 = tpu.matmul %4, %5, %cst {dimension_numbers = #tpu.dot_dimension_numbers<[1], [0], [0], [1], [0, 0, 1, 1], [], []>} : vector<16x512xbf16>, vector<512x256xbf16>, vector<16x256xf32> -> vector<16x256xf32>
    %7 = arith.addf %3, %6 : vector<16x256xf32>
    %c0_6 = arith.constant 0 : index
    %c0_7 = arith.constant 0 : index
    %8 = vector.load %arg7[%c0_6, %c0_7] : memref<16x256xf32, #tpu.memory_space<vmem>>, vector<16x256xf32>
    tpu.vector_store %arg7[%c0_6, %c0_7], %7 {strides = array<i32>} : memref<16x256xf32, #tpu.memory_space<vmem>>, vector<16x256xf32>,
    %c0_i32_8 = arith.constant 0 : i32
    %9 = arith.cmpi eq, %arg2, %c0_i32_8 : i32
    %10 = arith.extui %9 : i1 to i32
    %c0_i32_9 = arith.constant 0 : i32
    %11 = arith.cmpi ne, %10, %c0_i32_9 : i32
    scf.if %11 {
      %c0_10 = arith.constant 0 : index
      %c0_11 = arith.constant 0 : index
      %12 = vector.load %arg7[%c0_10, %c0_11] : memref<16x256xf32, #tpu.memory_space<vmem>>, vector<16x256xf32>
      %c0_12 = arith.constant 0 : index
      %c0_13 = arith.constant 0 : index
      %13 = vector.load %arg5[%c0_12, %c0_13] : memref<1x256xf32, #tpu.memory_space<vmem>>, vector<1x256xf32>
      %14 = vector.broadcast %13 : vector<1x256xf32> to vector<16x256xf32>
      %15 = arith.addf %12, %14 : vector<16x256xf32>
      %16 = arith.truncf %15 : vector<16x256xf32> to vector<16x256xbf16>
      %c0_14 = arith.constant 0 : index
      %c0_15 = arith.constant 0 : index
      %17 = vector.load %arg6[%c0_14, %c0_15] : memref<16x256xbf16, #tpu.memory_space<vmem>>, vector<16x256xbf16>
      tpu.vector_store %arg6[%c0_14, %c0_15], %16 {strides = array<i32>} : memref<16x256xbf16, #tpu.memory_space<vmem>>, vector<16x256xbf16>,
    } else {
    }
    return
  }
  func.func @transform_0(%arg0: i32, %arg1: i32, %arg2: i32) -> (i32, i32) {
    %c0_i32 = arith.constant 0 : i32
    return %arg0, %arg2 : i32, i32
  }
  func.func @transform_1(%arg0: i32, %arg1: i32, %arg2: i32) -> (i32, i32) {
    %c0_i32 = arith.constant 0 : i32
    return %arg2, %arg1 : i32, i32
  }
  func.func @transform_2(%arg0: i32, %arg1: i32, %arg2: i32) -> (i32, i32) {
    %c0_i32 = arith.constant 0 : i32
    %c0_i32_0 = arith.constant 0 : i32
    return %c0_i32, %arg1 : i32, i32
  }
  func.func @transform_3(%arg0: i32, %arg1: i32, %arg2: i32) -> (i32, i32) {
    %c0_i32 = arith.constant 0 : i32
    return %arg0, %arg1 : i32, i32
  }
}

module attributes {stable_mosaic.version = 11 : i64} {
  func.func @_mm_res_kernel(%arg0: i32, %arg1: i32, %arg2: i32, %arg3: memref<16x256xbf16, #tpu.memory_space<vmem>>, %arg4: memref<256x256xbf16, #tpu.memory_space<vmem>>, %arg5: memref<1x256xf32, #tpu.memory_space<vmem>>, %arg6: memref<16x256xbf16, #tpu.memory_space<vmem>>, %arg7: memref<16x256xbf16, #tpu.memory_space<vmem>>, %arg8: memref<16x256xf32, #tpu.memory_space<vmem>>) attributes {dimension_semantics = [#tpu.dimension_semantics<parallel>, #tpu.dimension_semantics<parallel>, #tpu.dimension_semantics<arbitrary>], iteration_bounds = array<i64: 1, 4, 1>, scalar_prefetch = 0 : i64, scratch_operands = 1 : i64, tpu.core_type = #tpu.core_type<tc>, window_params = [{transform_indices = @transform_0, window_bounds = array<i64: 16, 256>}, {transform_indices = @transform_1, window_bounds = array<i64: 256, 256>}, {transform_indices = @transform_2, window_bounds = array<i64: 1, 256>}, {transform_indices = @transform_3, window_bounds = array<i64: 16, 256>}, {transform_indices = @transform_4, window_bounds = array<i64: 16, 256>}]} {
    %c0_i32 = arith.constant 0 : i32
    %0 = arith.cmpi eq, %arg2, %c0_i32 : i32
    %1 = arith.extui %0 : i1 to i32
    %c0_i32_0 = arith.constant 0 : i32
    %2 = arith.cmpi ne, %1, %c0_i32_0 : i32
    scf.if %2 {
      %cst_10 = arith.constant 0.000000e+00 : f32
      %12 = vector.broadcast %cst_10 : f32 to vector<16x256xf32>
      %c0_11 = arith.constant 0 : index
      %c0_12 = arith.constant 0 : index
      %13 = vector.load %arg8[%c0_11, %c0_12] : memref<16x256xf32, #tpu.memory_space<vmem>>, vector<16x256xf32>
      tpu.vector_store %arg8[%c0_11, %c0_12], %12 {strides = array<i32>} : memref<16x256xf32, #tpu.memory_space<vmem>>, vector<16x256xf32>,
    } else {
    }
    %c0 = arith.constant 0 : index
    %c0_1 = arith.constant 0 : index
    %3 = vector.load %arg8[%c0, %c0_1] : memref<16x256xf32, #tpu.memory_space<vmem>>, vector<16x256xf32>
    %c0_2 = arith.constant 0 : index
    %c0_3 = arith.constant 0 : index
    %4 = vector.load %arg3[%c0_2, %c0_3] : memref<16x256xbf16, #tpu.memory_space<vmem>>, vector<16x256xbf16>
    %c0_4 = arith.constant 0 : index
    %c0_5 = arith.constant 0 : index
    %5 = vector.load %arg4[%c0_4, %c0_5] : memref<256x256xbf16, #tpu.memory_space<vmem>>, vector<256x256xbf16>
    %cst = arith.constant dense<0.000000e+00> : vector<16x256xf32>
    %6 = tpu.matmul %4, %5, %cst {dimension_numbers = #tpu.dot_dimension_numbers<[1], [0], [0], [1], [0, 0, 1, 1], [], []>} : vector<16x256xbf16>, vector<256x256xbf16>, vector<16x256xf32> -> vector<16x256xf32>
    %7 = arith.addf %3, %6 : vector<16x256xf32>
    %c0_6 = arith.constant 0 : index
    %c0_7 = arith.constant 0 : index
    %8 = vector.load %arg8[%c0_6, %c0_7] : memref<16x256xf32, #tpu.memory_space<vmem>>, vector<16x256xf32>
    tpu.vector_store %arg8[%c0_6, %c0_7], %7 {strides = array<i32>} : memref<16x256xf32, #tpu.memory_space<vmem>>, vector<16x256xf32>,
    %c0_i32_8 = arith.constant 0 : i32
    %9 = arith.cmpi eq, %arg2, %c0_i32_8 : i32
    %10 = arith.extui %9 : i1 to i32
    %c0_i32_9 = arith.constant 0 : i32
    %11 = arith.cmpi ne, %10, %c0_i32_9 : i32
    scf.if %11 {
      %c0_10 = arith.constant 0 : index
      %c0_11 = arith.constant 0 : index
      %12 = vector.load %arg8[%c0_10, %c0_11] : memref<16x256xf32, #tpu.memory_space<vmem>>, vector<16x256xf32>
      %c0_12 = arith.constant 0 : index
      %c0_13 = arith.constant 0 : index
      %13 = vector.load %arg5[%c0_12, %c0_13] : memref<1x256xf32, #tpu.memory_space<vmem>>, vector<1x256xf32>
      %14 = vector.broadcast %13 : vector<1x256xf32> to vector<16x256xf32>
      %15 = arith.addf %12, %14 : vector<16x256xf32>
      %c0_14 = arith.constant 0 : index
      %c0_15 = arith.constant 0 : index
      %16 = vector.load %arg6[%c0_14, %c0_15] : memref<16x256xbf16, #tpu.memory_space<vmem>>, vector<16x256xbf16>
      %17 = arith.extf %16 : vector<16x256xbf16> to vector<16x256xf32>
      %18 = arith.addf %15, %17 : vector<16x256xf32>
      %cst_16 = arith.constant 0.000000e+00 : f32
      %19 = vector.broadcast %cst_16 : f32 to vector<16x256xf32>
      %20 = arith.maximumf %18, %19 : vector<16x256xf32>
      %21 = arith.truncf %20 : vector<16x256xf32> to vector<16x256xbf16>
      %c0_17 = arith.constant 0 : index
      %c0_18 = arith.constant 0 : index
      %22 = vector.load %arg7[%c0_17, %c0_18] : memref<16x256xbf16, #tpu.memory_space<vmem>>, vector<16x256xbf16>
      tpu.vector_store %arg7[%c0_17, %c0_18], %21 {strides = array<i32>} : memref<16x256xbf16, #tpu.memory_space<vmem>>, vector<16x256xbf16>,
    } else {
    }
    return
  }
  func.func @transform_0(%arg0: i32, %arg1: i32, %arg2: i32) -> (i32, i32) {
    %c0_i32 = arith.constant 0 : i32
    return %arg0, %arg2 : i32, i32
  }
  func.func @transform_1(%arg0: i32, %arg1: i32, %arg2: i32) -> (i32, i32) {
    %c0_i32 = arith.constant 0 : i32
    return %arg2, %arg1 : i32, i32
  }
  func.func @transform_2(%arg0: i32, %arg1: i32, %arg2: i32) -> (i32, i32) {
    %c0_i32 = arith.constant 0 : i32
    %c0_i32_0 = arith.constant 0 : i32
    return %c0_i32, %arg1 : i32, i32
  }
  func.func @transform_3(%arg0: i32, %arg1: i32, %arg2: i32) -> (i32, i32) {
    %c0_i32 = arith.constant 0 : i32
    return %arg0, %arg1 : i32, i32
  }
  func.func @transform_4(%arg0: i32, %arg1: i32, %arg2: i32) -> (i32, i32) {
    %c0_i32 = arith.constant 0 : i32
    return %arg0, %arg1 : i32, i32
  }
}

module attributes {stable_mosaic.version = 11 : i64} {
  func.func @_mm_kernel(%arg0: i32, %arg1: i32, %arg2: i32, %arg3: memref<16x512xbf16, #tpu.memory_space<vmem>>, %arg4: memref<512x256xbf16, #tpu.memory_space<vmem>>, %arg5: memref<1x256xf32, #tpu.memory_space<vmem>>, %arg6: memref<16x256xbf16, #tpu.memory_space<vmem>>, %arg7: memref<16x256xf32, #tpu.memory_space<vmem>>) attributes {dimension_semantics = [#tpu.dimension_semantics<parallel>, #tpu.dimension_semantics<parallel>, #tpu.dimension_semantics<arbitrary>], iteration_bounds = array<i64: 1, 1, 2>, scalar_prefetch = 0 : i64, scratch_operands = 1 : i64, tpu.core_type = #tpu.core_type<tc>, window_params = [{transform_indices = @transform_0, window_bounds = array<i64: 16, 512>}, {transform_indices = @transform_1, window_bounds = array<i64: 512, 256>}, {transform_indices = @transform_2, window_bounds = array<i64: 1, 256>}, {transform_indices = @transform_3, window_bounds = array<i64: 16, 256>}]} {
    %c0_i32 = arith.constant 0 : i32
    %0 = arith.cmpi eq, %arg2, %c0_i32 : i32
    %1 = arith.extui %0 : i1 to i32
    %c0_i32_0 = arith.constant 0 : i32
    %2 = arith.cmpi ne, %1, %c0_i32_0 : i32
    scf.if %2 {
      %cst_9 = arith.constant 0.000000e+00 : f32
      %12 = vector.broadcast %cst_9 : f32 to vector<16x256xf32>
      %c0_10 = arith.constant 0 : index
      %c0_11 = arith.constant 0 : index
      %13 = vector.load %arg7[%c0_10, %c0_11] : memref<16x256xf32, #tpu.memory_space<vmem>>, vector<16x256xf32>
      tpu.vector_store %arg7[%c0_10, %c0_11], %12 {strides = array<i32>} : memref<16x256xf32, #tpu.memory_space<vmem>>, vector<16x256xf32>,
    } else {
    }
    %c0 = arith.constant 0 : index
    %c0_1 = arith.constant 0 : index
    %3 = vector.load %arg7[%c0, %c0_1] : memref<16x256xf32, #tpu.memory_space<vmem>>, vector<16x256xf32>
    %c0_2 = arith.constant 0 : index
    %c0_3 = arith.constant 0 : index
    %4 = vector.load %arg3[%c0_2, %c0_3] : memref<16x512xbf16, #tpu.memory_space<vmem>>, vector<16x512xbf16>
    %c0_4 = arith.constant 0 : index
    %c0_5 = arith.constant 0 : index
    %5 = vector.load %arg4[%c0_4, %c0_5] : memref<512x256xbf16, #tpu.memory_space<vmem>>, vector<512x256xbf16>
    %cst = arith.constant dense<0.000000e+00> : vector<16x256xf32>
    %6 = tpu.matmul %4, %5, %cst {dimension_numbers = #tpu.dot_dimension_numbers<[1], [0], [0], [1], [0, 0, 1, 1], [], []>} : vector<16x512xbf16>, vector<512x256xbf16>, vector<16x256xf32> -> vector<16x256xf32>
    %7 = arith.addf %3, %6 : vector<16x256xf32>
    %c0_6 = arith.constant 0 : index
    %c0_7 = arith.constant 0 : index
    %8 = vector.load %arg7[%c0_6, %c0_7] : memref<16x256xf32, #tpu.memory_space<vmem>>, vector<16x256xf32>
    tpu.vector_store %arg7[%c0_6, %c0_7], %7 {strides = array<i32>} : memref<16x256xf32, #tpu.memory_space<vmem>>, vector<16x256xf32>,
    %c1_i32 = arith.constant 1 : i32
    %9 = arith.cmpi eq, %arg2, %c1_i32 : i32
    %10 = arith.extui %9 : i1 to i32
    %c0_i32_8 = arith.constant 0 : i32
    %11 = arith.cmpi ne, %10, %c0_i32_8 : i32
    scf.if %11 {
      %c0_9 = arith.constant 0 : index
      %c0_10 = arith.constant 0 : index
      %12 = vector.load %arg7[%c0_9, %c0_10] : memref<16x256xf32, #tpu.memory_space<vmem>>, vector<16x256xf32>
      %c0_11 = arith.constant 0 : index
      %c0_12 = arith.constant 0 : index
      %13 = vector.load %arg5[%c0_11, %c0_12] : memref<1x256xf32, #tpu.memory_space<vmem>>, vector<1x256xf32>
      %14 = vector.broadcast %13 : vector<1x256xf32> to vector<16x256xf32>
      %15 = arith.addf %12, %14 : vector<16x256xf32>
      %cst_13 = arith.constant 0.000000e+00 : f32
      %16 = vector.broadcast %cst_13 : f32 to vector<16x256xf32>
      %17 = arith.maximumf %15, %16 : vector<16x256xf32>
      %18 = arith.truncf %17 : vector<16x256xf32> to vector<16x256xbf16>
      %c0_14 = arith.constant 0 : index
      %c0_15 = arith.constant 0 : index
      %19 = vector.load %arg6[%c0_14, %c0_15] : memref<16x256xbf16, #tpu.memory_space<vmem>>, vector<16x256xbf16>
      tpu.vector_store %arg6[%c0_14, %c0_15], %18 {strides = array<i32>} : memref<16x256xbf16, #tpu.memory_space<vmem>>, vector<16x256xbf16>,
    } else {
    }
    return
  }
  func.func @transform_0(%arg0: i32, %arg1: i32, %arg2: i32) -> (i32, i32) {
    %c0_i32 = arith.constant 0 : i32
    return %arg0, %arg2 : i32, i32
  }
  func.func @transform_1(%arg0: i32, %arg1: i32, %arg2: i32) -> (i32, i32) {
    %c0_i32 = arith.constant 0 : i32
    return %arg2, %arg1 : i32, i32
  }
  func.func @transform_2(%arg0: i32, %arg1: i32, %arg2: i32) -> (i32, i32) {
    %c0_i32 = arith.constant 0 : i32
    %c0_i32_0 = arith.constant 0 : i32
    return %c0_i32, %arg1 : i32, i32
  }
  func.func @transform_3(%arg0: i32, %arg1: i32, %arg2: i32) -> (i32, i32) {
    %c0_i32 = arith.constant 0 : i32
    return %arg0, %arg1 : i32, i32
  }
}

module attributes {stable_mosaic.version = 11 : i64} {
  func.func @_mean_kernel(%arg0: i32, %arg1: memref<2x4x256xbf16, #tpu.memory_space<vmem>>, %arg2: memref<2x256xf32, #tpu.memory_space<vmem>>) attributes {dimension_semantics = [#tpu.dimension_semantics<parallel>], iteration_bounds = array<i64: 4>, scalar_prefetch = 0 : i64, scratch_operands = 0 : i64, tpu.core_type = #tpu.core_type<tc>, window_params = [{transform_indices = @transform_0, window_bounds = array<i64: 2, 4, 256>}, {transform_indices = @transform_1, window_bounds = array<i64: 2, 256>}]} {
    %c0 = arith.constant 0 : index
    %c0_0 = arith.constant 0 : index
    %c0_1 = arith.constant 0 : index
    %0 = vector.load %arg1[%c0, %c0_0, %c0_1] : memref<2x4x256xbf16, #tpu.memory_space<vmem>>, vector<2x4x256xbf16>
    %1 = arith.extf %0 : vector<2x4x256xbf16> to vector<2x4x256xf32>
    %cst = arith.constant dense<0.000000e+00> : vector<2x256xf32>
    %2 = vector.multi_reduction <add>, %1, %cst [1] : vector<2x4x256xf32> to vector<2x256xf32>
    %cst_2 = arith.constant 2.500000e-01 : f32
    %3 = vector.broadcast %cst_2 : f32 to vector<2x256xf32>
    %4 = arith.mulf %2, %3 : vector<2x256xf32>
    %c0_3 = arith.constant 0 : index
    %c0_4 = arith.constant 0 : index
    %5 = vector.load %arg2[%c0_3, %c0_4] : memref<2x256xf32, #tpu.memory_space<vmem>>, vector<2x256xf32>
    tpu.vector_store %arg2[%c0_3, %c0_4], %4 {strides = array<i32>} : memref<2x256xf32, #tpu.memory_space<vmem>>, vector<2x256xf32>,
    return
  }
  func.func @transform_0(%arg0: i32) -> (i32, i32, i32) {
    %c0_i32 = arith.constant 0 : i32
    %c0_i32_0 = arith.constant 0 : i32
    %c0_i32_1 = arith.constant 0 : i32
    return %c0_i32, %c0_i32_0, %arg0 : i32, i32, i32
  }
  func.func @transform_1(%arg0: i32) -> (i32, i32) {
    %c0_i32 = arith.constant 0 : i32
    %c0_i32_0 = arith.constant 0 : i32
    return %c0_i32, %arg0 : i32, i32
  }
}

module attributes {stable_mosaic.version = 11 : i64} {
  func.func @_mm_kernel(%arg0: i32, %arg1: i32, %arg2: i32, %arg3: memref<16x512xbf16, #tpu.memory_space<vmem>>, %arg4: memref<512x128xbf16, #tpu.memory_space<vmem>>, %arg5: memref<1x128xf32, #tpu.memory_space<vmem>>, %arg6: memref<16x128xf32, #tpu.memory_space<vmem>>, %arg7: memref<16x128xf32, #tpu.memory_space<vmem>>) attributes {dimension_semantics = [#tpu.dimension_semantics<parallel>, #tpu.dimension_semantics<parallel>, #tpu.dimension_semantics<arbitrary>], iteration_bounds = array<i64: 1, 1, 2>, scalar_prefetch = 0 : i64, scratch_operands = 1 : i64, tpu.core_type = #tpu.core_type<tc>, window_params = [{transform_indices = @transform_0, window_bounds = array<i64: 16, 512>}, {transform_indices = @transform_1, window_bounds = array<i64: 512, 128>}, {transform_indices = @transform_2, window_bounds = array<i64: 1, 128>}, {transform_indices = @transform_3, window_bounds = array<i64: 16, 128>}]} {
    %c0_i32 = arith.constant 0 : i32
    %0 = arith.cmpi eq, %arg2, %c0_i32 : i32
    %1 = arith.extui %0 : i1 to i32
    %c0_i32_0 = arith.constant 0 : i32
    %2 = arith.cmpi ne, %1, %c0_i32_0 : i32
    scf.if %2 {
      %cst_9 = arith.constant 0.000000e+00 : f32
      %12 = vector.broadcast %cst_9 : f32 to vector<16x128xf32>
      %c0_10 = arith.constant 0 : index
      %c0_11 = arith.constant 0 : index
      %13 = vector.load %arg7[%c0_10, %c0_11] : memref<16x128xf32, #tpu.memory_space<vmem>>, vector<16x128xf32>
      tpu.vector_store %arg7[%c0_10, %c0_11], %12 {strides = array<i32>} : memref<16x128xf32, #tpu.memory_space<vmem>>, vector<16x128xf32>,
    } else {
    }
    %c0 = arith.constant 0 : index
    %c0_1 = arith.constant 0 : index
    %3 = vector.load %arg7[%c0, %c0_1] : memref<16x128xf32, #tpu.memory_space<vmem>>, vector<16x128xf32>
    %c0_2 = arith.constant 0 : index
    %c0_3 = arith.constant 0 : index
    %4 = vector.load %arg3[%c0_2, %c0_3] : memref<16x512xbf16, #tpu.memory_space<vmem>>, vector<16x512xbf16>
    %c0_4 = arith.constant 0 : index
    %c0_5 = arith.constant 0 : index
    %5 = vector.load %arg4[%c0_4, %c0_5] : memref<512x128xbf16, #tpu.memory_space<vmem>>, vector<512x128xbf16>
    %cst = arith.constant dense<0.000000e+00> : vector<16x128xf32>
    %6 = tpu.matmul %4, %5, %cst {dimension_numbers = #tpu.dot_dimension_numbers<[1], [0], [0], [1], [0, 0, 1, 1], [], []>} : vector<16x512xbf16>, vector<512x128xbf16>, vector<16x128xf32> -> vector<16x128xf32>
    %7 = arith.addf %3, %6 : vector<16x128xf32>
    %c0_6 = arith.constant 0 : index
    %c0_7 = arith.constant 0 : index
    %8 = vector.load %arg7[%c0_6, %c0_7] : memref<16x128xf32, #tpu.memory_space<vmem>>, vector<16x128xf32>
    tpu.vector_store %arg7[%c0_6, %c0_7], %7 {strides = array<i32>} : memref<16x128xf32, #tpu.memory_space<vmem>>, vector<16x128xf32>,
    %c1_i32 = arith.constant 1 : i32
    %9 = arith.cmpi eq, %arg2, %c1_i32 : i32
    %10 = arith.extui %9 : i1 to i32
    %c0_i32_8 = arith.constant 0 : i32
    %11 = arith.cmpi ne, %10, %c0_i32_8 : i32
    scf.if %11 {
      %c0_9 = arith.constant 0 : index
      %c0_10 = arith.constant 0 : index
      %12 = vector.load %arg7[%c0_9, %c0_10] : memref<16x128xf32, #tpu.memory_space<vmem>>, vector<16x128xf32>
      %c0_11 = arith.constant 0 : index
      %c0_12 = arith.constant 0 : index
      %13 = vector.load %arg5[%c0_11, %c0_12] : memref<1x128xf32, #tpu.memory_space<vmem>>, vector<1x128xf32>
      %14 = vector.broadcast %13 : vector<1x128xf32> to vector<16x128xf32>
      %15 = arith.addf %12, %14 : vector<16x128xf32>
      %c0_13 = arith.constant 0 : index
      %c0_14 = arith.constant 0 : index
      %16 = vector.load %arg6[%c0_13, %c0_14] : memref<16x128xf32, #tpu.memory_space<vmem>>, vector<16x128xf32>
      tpu.vector_store %arg6[%c0_13, %c0_14], %15 {strides = array<i32>} : memref<16x128xf32, #tpu.memory_space<vmem>>, vector<16x128xf32>,
    } else {
    }
    return
  }
  func.func @transform_0(%arg0: i32, %arg1: i32, %arg2: i32) -> (i32, i32) {
    %c0_i32 = arith.constant 0 : i32
    return %arg0, %arg2 : i32, i32
  }
  func.func @transform_1(%arg0: i32, %arg1: i32, %arg2: i32) -> (i32, i32) {
    %c0_i32 = arith.constant 0 : i32
    return %arg2, %arg1 : i32, i32
  }
  func.func @transform_2(%arg0: i32, %arg1: i32, %arg2: i32) -> (i32, i32) {
    %c0_i32 = arith.constant 0 : i32
    %c0_i32_0 = arith.constant 0 : i32
    return %c0_i32, %arg1 : i32, i32
  }
  func.func @transform_3(%arg0: i32, %arg1: i32, %arg2: i32) -> (i32, i32) {
    %c0_i32 = arith.constant 0 : i32
    return %arg0, %arg1 : i32, i32
  }
}

</mosaic_0001>

<bundles_post_ra>
// kernel: _lambda_.45
= control target key start
LH: loop header
LB: loop body
LE: loop exit
PB: predicated region body
PF: predicated region fallthrough
CT: control target
= control target key end

     0   :  { %s1613_s12 = smov 0   ;;  %s1615_s13 = smov 0   ;;  %s1822_s0 = inlined_call_operand.vmem [shape: bf16[512,256], index: 0, kind: input, shape index: {}]   ;;  %s1823_s1 = inlined_call_operand.vmem [shape: bf16[256,128], index: 1, kind: input, shape index: {}]   ;;  %s1824_s2 = inlined_call_operand.vmem [shape: f32[1,128], index: 2, kind: input, shape index: {}]   ;;  %s1825_s3 = inlined_call_operand.vmem [shape: bf16[512,128], index: 3, kind: output, shape index: {}]  }
   0x1   :  { %s1617_s14 = smov 0  }
   0x2 LB: > { %s32_s15 = sadd.s32 1, %s1587_s13  ;;  %p1184_p0 = scmp.ge.s32.totalorder %s1591_s14, 1  ;;  %s1591_s14 = sphi %s1617_s14, %s13_s14   ;;  %s1587_s13 = sphi %s1615_s13, %s1827_s13   ;;  %s1583_s12 = sphi %s1613_s12, %s1826_s12  }
   0x3   : > { %p34_p1 = scmp.ge.s32.totalorder %s32_s15, 2  ;;  %p191_p2 = scmp.lt.s32.totalorder %s1591_s14, 3 }
   0x5   : > { %s1829_s15 = smov (%p34_p1, %s32_s15), 0  ;;  %p192_p3 = pnand %p1184_p0, %p191_p2 }
   0x6   : > { %s1185_s28 = sshll.u32 (!%p192_p3), %s1583_s12, 5 }
   0x7   : > { %195 = sbr.rel (%p192_p3) target bundleno = 306 (0x132), region = 32  ;;  %p236_p4 = scmp.lt.s32.totalorder (!%p192_p3), %s1185_s28, 63 }
   0xc   : > { %v1424_v0 = vld [vmem:[%s1823_s1 + $0x38] sm:$0xff]  ;;  %v1423_v2 = vld [vmem:[%s1823_s1 + $0x30] sm:$0xff]  ;;  %v1422_v4 = vld [vmem:[%s1823_s1 + $0x28] sm:$0xff]  ;;  %s1831_s28 = smov (!%p236_p4, %s1185_s28), 63 }
   0xd   : > { %v1432_v1 = vld [vmem:[%s1823_s1 + $0x78] sm:$0xff]  ;;  %655 = vmatpush.bf16.msra.mxu0 %v1424_v0  ;;  %1528 = vmatpush.bf16.msra.mxu2 %v1424_v0  ;;  %v1431_v3 = vld [vmem:[%s1823_s1 + $0x70] sm:$0xff]  ;;  %v1430_v5 = vld [vmem:[%s1823_s1 + $0x68] sm:$0xff]  ;;  %s1384_s17 = sshll.u32 %s1831_s28, 3  ;;  %s1189_s5 = sshll.u32 %s1831_s28, 2 }
   0xe   : > { %744 = vmatpush.bf16.msra.mxu1 %v1432_v1  ;;  %1536 = vmatpush.bf16.msra.mxu3 %v1432_v1  ;;  %v1421_v6 = vld [vmem:[%s1823_s1 + $0x20] sm:$0xff]  ;;  %v1420_v8 = vld [vmem:[%s1823_s1 + $0x18] sm:$0xff]  ;;  %v1419_v10 = vld [vmem:[%s1823_s1 + $0x10] sm:$0xff]  ;;  %s1679_s22 = scalar_lea.vmem %s1822_s0, %s1384_s17  ;;  %s1765_s8 = scalar_lea.vmem %s1825_s3, %s1189_s5 }
   0xf   : > { %v1429_v7 = vld [vmem:[%s1823_s1 + $0x60] sm:$0xff]  ;;  %v1428_v9 = vld [vmem:[%s1823_s1 + $0x58] sm:$0xff]  ;;  %v1427_v11 = vld [vmem:[%s1823_s1 + $0x50] sm:$0xff] }
  0x10   : > { %v1418_v12 = vld [vmem:[%s1823_s1 + $0x8] sm:$0xff]  ;;  %v1417_v14 = vld [vmem:[%s1823_s1] sm:$0xff]  ;;  %v1200_v28 = vld [vmem:[%s1679_s22 + $0x10] sm:$0xf] }
  0x11   : > { %656 = vmatpush.bf16.msra.mxu0 %v1423_v2  ;;  %1529 = vmatpush.bf16.msra.mxu2 %v1423_v2  ;;  %v1426_v13 = vld [vmem:[%s1823_s1 + $0x48] sm:$0xff]  ;;  %v1425_v15 = vld [vmem:[%s1823_s1 + $0x40] sm:$0xff]  ;;  %v1388_v29 = vld [vmem:[%s1679_s22 + $0x14] sm:$0xf0] }
  0x12   : > { %745 = vmatpush.bf16.msra.mxu1 %v1431_v3  ;;  %1537 = vmatpush.bf16.msra.mxu3 %v1431_v3  ;;  %v1192_v16 = vld [vmem:[%s1679_s22] sm:$0xf]  ;;  %v1386_v17 = vld [vmem:[%s1679_s22 + $0x4] sm:$0xf0]  ;;  %v1385_v20 = vld [vmem:[%s1679_s22 + $0x4] sm:$0xf]  ;;  %v1201_v36 = vor.u32 %v1388_v29, %v1200_v28 }
  0x13   : > { %v1256_v18 = vld [vmem:[%s1679_s22 + $0x80] sm:$0xf]  ;;  %v1402_v19 = vld [vmem:[%s1679_s22 + $0x84] sm:$0xf0]  ;;  %v1194_v21 = vld [vmem:[%s1679_s22 + $0x8] sm:$0xf0]  ;;  %v1193_v24 = vor.u32 %v1386_v17, %v1192_v16 }
  0x14   : > { %v1401_v22 = vld [vmem:[%s1679_s22 + $0x84] sm:$0xf]  ;;  %v1258_v23 = vld [vmem:[%s1679_s22 + $0x88] sm:$0xf0]  ;;  %v1257_v25 = vor.u32 %v1402_v19, %v1256_v18  ;;  %v1197_v26 = vor.u32 %v1385_v20, %v1194_v21  ;;  %v1264_v30 = vld [vmem:[%s1679_s22 + $0x90] sm:$0xf] }
  0x15   : > { %657 = vmatpush.bf16.msra.mxu0 %v1422_v4  ;;  %1530 = vmatpush.bf16.msra.mxu2 %v1422_v4  ;;  %v1261_v27 = vor.u32 %v1401_v22, %v1258_v23  ;;  %v1404_v31 = vld [vmem:[%s1679_s22 + $0x94] sm:$0xf0]  ;;  %v1387_v32 = vld [vmem:[%s1679_s22 + $0x14] sm:$0xf]  ;;  %v1202_v33 = vld [vmem:[%s1679_s22 + $0x18] sm:$0xf0] }
  0x16   : > { %746 = vmatpush.bf16.msra.mxu1 %v1430_v5  ;;  %1538 = vmatpush.bf16.msra.mxu3 %v1430_v5  ;;  %v1403_v34 = vld [vmem:[%s1679_s22 + $0x94] sm:$0xf]  ;;  %v1266_v35 = vld [vmem:[%s1679_s22 + $0x98] sm:$0xf0]  ;;  %v1265_v37 = vor.u32 %v1404_v31, %v1264_v30  ;;  %v1205_v38 = vor.u32 %v1387_v32, %v1202_v33  ;;  %v1208_v40 = vld [vmem:[%s1679_s22 + $0x20] sm:$0xf] }
  0x17   : > { %v1269_v39 = vor.u32 %v1403_v34, %v1266_v35  ;;  %v1390_v41 = vld [vmem:[%s1679_s22 + $0x24] sm:$0xf0]  ;;  %v1272_v42 = vld [vmem:[%s1679_s22 + $0xa0] sm:$0xf]  ;;  %v1389_v44 = vld [vmem:[%s1679_s22 + $0x24] sm:$0xf] }
  0x18   : > { %v1406_v43 = vld [vmem:[%s1679_s22 + $0xa4] sm:$0xf0]  ;;  %v1210_v45 = vld [vmem:[%s1679_s22 + $0x28] sm:$0xf0]  ;;  %v1405_v46 = vld [vmem:[%s1679_s22 + $0xa4] sm:$0xf]  ;;  %v1209_v48 = vor.u32 %v1390_v41, %v1208_v40 }
  0x19   : > { %658 = vmatpush.bf16.msra.mxu0 %v1421_v6  ;;  %1531 = vmatpush.bf16.msra.mxu2 %v1421_v6  ;;  %v1274_v47 = vld [vmem:[%s1679_s22 + $0xa8] sm:$0xf0]  ;;  %v1273_v49 = vor.u32 %v1406_v43, %v1272_v42  ;;  %v1213_v50 = vor.u32 %v1389_v44, %v1210_v45  ;;  %v1216_v52 = vld [vmem:[%s1679_s22 + $0x30] sm:$0xf]  ;;  %v1392_v53 = vld [vmem:[%s1679_s22 + $0x34] sm:$0xf0] }
  0x1a   : > { %747 = vmatpush.bf16.msra.mxu1 %v1429_v7  ;;  %1539 = vmatpush.bf16.msra.mxu3 %v1429_v7  ;;  %v1277_v51 = vor.u32 %v1405_v46, %v1274_v47  ;;  %v1280_v54 = vld [vmem:[%s1679_s22 + $0xb0] sm:$0xf]  ;;  %v1408_v55 = vld [vmem:[%s1679_s22 + $0xb4] sm:$0xf0]  ;;  %v1391_v56 = vld [vmem:[%s1679_s22 + $0x34] sm:$0xf]  ;;  %v1217_v60 = vor.u32 %v1392_v53, %v1216_v52 }
  0x1b   : > { %v1218_v57 = vld [vmem:[%s1679_s22 + $0x38] sm:$0xf0]  ;;  %v1407_v58 = vld [vmem:[%s1679_s22 + $0xb4] sm:$0xf]  ;;  %v1281_v61 = vor.u32 %v1408_v55, %v1280_v54  ;;  %v1224_v0 = vld [vmem:[%s1679_s22 + $0x40] sm:$0xf] }
  0x1c   : > { %v1282_v59 = vld [vmem:[%s1679_s22 + $0xb8] sm:$0xf0]  ;;  %v1221_v62 = vor.u32 %v1391_v56, %v1218_v57  ;;  %v1394_v1 = vld [vmem:[%s1679_s22 + $0x44] sm:$0xf0]  ;;  %v1288_v2 = vld [vmem:[%s1679_s22 + $0xc0] sm:$0xf] }
  0x1d   : > { %659 = vmatpush.bf16.msra.mxu0 %v1420_v8  ;;  %1532 = vmatpush.bf16.msra.mxu2 %v1420_v8  ;;  %v1285_v63 = vor.u32 %v1407_v58, %v1282_v59  ;;  %v1410_v3 = vld [vmem:[%s1679_s22 + $0xc4] sm:$0xf0]  ;;  %v1393_v4 = vld [vmem:[%s1679_s22 + $0x44] sm:$0xf]  ;;  %v1226_v5 = vld [vmem:[%s1679_s22 + $0x48] sm:$0xf0]  ;;  %v1225_v8 = vor.u32 %v1394_v1, %v1224_v0 }
  0x1e   : > { %748 = vmatpush.bf16.msra.mxu1 %v1428_v9  ;;  %1540 = vmatpush.bf16.msra.mxu3 %v1428_v9  ;;  %v1409_v6 = vld [vmem:[%s1679_s22 + $0xc4] sm:$0xf]  ;;  %v1290_v7 = vld [vmem:[%s1679_s22 + $0xc8] sm:$0xf0]  ;;  %v1289_v9 = vor.u32 %v1410_v3, %v1288_v2  ;;  %v1395_v16 = vld [vmem:[%s1679_s22 + $0x54] sm:$0xf] }
  0x1f   : > { %v1234_v17 = vld [vmem:[%s1679_s22 + $0x58] sm:$0xf0]  ;;  %v1411_v18 = vld [vmem:[%s1679_s22 + $0xd4] sm:$0xf]  ;;  %v1397_v28 = vld [vmem:[%s1679_s22 + $0x64] sm:$0xf] }
  0x20   : > { %v1298_v19 = vld [vmem:[%s1679_s22 + $0xd8] sm:$0xf0]  ;;  %v1237_v22 = vor.u32 %v1395_v16, %v1234_v17  ;;  %v1242_v29 = vld [vmem:[%s1679_s22 + $0x68] sm:$0xf0]  ;;  %v1413_v30 = vld [vmem:[%s1679_s22 + $0xe4] sm:$0xf] }
  0x21   : > { %660 = vmatpush.bf16.msra.mxu0 %v1419_v10  ;;  %1533 = vmatpush.bf16.msra.mxu2 %v1419_v10  ;;  %v1229_v10 = vor.u32 %v1393_v4, %v1226_v5  ;;  %v1301_v23 = vor.u32 %v1411_v18, %v1298_v19  ;;  %v1306_v31 = vld [vmem:[%s1679_s22 + $0xe8] sm:$0xf0]  ;;  %v1245_v34 = vor.u32 %v1397_v28, %v1242_v29  ;;  %v1399_v40 = vld [vmem:[%s1679_s22 + $0x74] sm:$0xf]  ;;  %v1250_v41 = vld [vmem:[%s1679_s22 + $0x78] sm:$0xf0] }
  0x22   : > { %749 = vmatpush.bf16.msra.mxu1 %v1427_v11  ;;  %1541 = vmatpush.bf16.msra.mxu3 %v1427_v11  ;;  %v1293_v11 = vor.u32 %v1409_v6, %v1290_v7  ;;  %v1309_v35 = vor.u32 %v1413_v30, %v1306_v31  ;;  %v1415_v42 = vld [vmem:[%s1679_s22 + $0xf4] sm:$0xf]  ;;  %v1314_v43 = vld [vmem:[%s1679_s22 + $0xf8] sm:$0xf0]  ;;  %v1253_v46 = vor.u32 %v1399_v40, %v1250_v41 }
  0x23   : > { %v1317_v47 = vor.u32 %v1415_v42, %v1314_v43 }
  0x25   : > { %661 = vmatpush.bf16.msra.mxu0 %v1418_v12  ;;  %1534 = vmatpush.bf16.msra.mxu2 %v1418_v12  ;;  %v1232_v12 = vld [vmem:[%s1679_s22 + $0x50] sm:$0xf] }
  0x26   : > { %750 = vmatpush.bf16.msra.mxu1 %v1426_v13  ;;  %1542 = vmatpush.bf16.msra.mxu3 %v1426_v13  ;;  %v1396_v13 = vld [vmem:[%s1679_s22 + $0x54] sm:$0xf0] }
  0x27   : > { %v1233_v20 = vor.u32 %v1396_v13, %v1232_v12 }
  0x29   : > { %662 = vmatpush.bf16.msra.mxu0 %v1417_v14  ;;  %1535 = vmatpush.bf16.msra.mxu2 %v1417_v14  ;;  %v1296_v14 = vld [vmem:[%s1679_s22 + $0xd0] sm:$0xf] }
  0x2a   : > { %751 = vmatpush.bf16.msra.mxu1 %v1425_v15  ;;  %1543 = vmatpush.bf16.msra.mxu3 %v1425_v15  ;;  %v1412_v15 = vld [vmem:[%s1679_s22 + $0xd4] sm:$0xf0] }
  0x2b   : > { %v1297_v21 = vor.u32 %v1412_v15, %v1296_v14 }
  0x2c   : > { %663 = vmatmul.bf16.vlgmr.msra.gmra.mxu0 %v1193_v24  ;;  %703 = vmatmul.bf16.vlgmr.msra.gmra.mxu2 %v1257_v25  ;;  %v1240_v24 = vld [vmem:[%s1679_s22 + $0x60] sm:$0xf]  ;;  %v1398_v25 = vld [vmem:[%s1679_s22 + $0x64] sm:$0xf0] }
  0x2d   : > { %752 = vmatmul.bf16.vlgmr.msra.gmra.mxu1 %v1197_v26  ;;  %792 = vmatmul.bf16.vlgmr.msra.gmra.mxu3 %v1261_v27  ;;  %v1304_v26 = vld [vmem:[%s1679_s22 + $0xe0] sm:$0xf]  ;;  %v1414_v27 = vld [vmem:[%s1679_s22 + $0xe4] sm:$0xf0]  ;;  %v1241_v32 = vor.u32 %v1398_v25, %v1240_v24 }
  0x2e   : > { %v1305_v33 = vor.u32 %v1414_v27, %v1304_v26 }
  0x3c   : > { %668 = vmatmul.bf16.gmra.mxu0 %v1201_v36  ;;  %708 = vmatmul.bf16.gmra.mxu2 %v1265_v37  ;;  %v1248_v36 = vld [vmem:[%s1679_s22 + $0x70] sm:$0xf]  ;;  %v1400_v37 = vld [vmem:[%s1679_s22 + $0x74] sm:$0xf0] }
  0x3d   : > { %757 = vmatmul.bf16.gmra.mxu1 %v1205_v38  ;;  %797 = vmatmul.bf16.gmra.mxu3 %v1269_v39  ;;  %v1312_v38 = vld [vmem:[%s1679_s22 + $0xf0] sm:$0xf]  ;;  %v1416_v39 = vld [vmem:[%s1679_s22 + $0xf4] sm:$0xf0]  ;;  %v1249_v44 = vor.u32 %v1400_v37, %v1248_v36 }
  0x3e   : > { %v1313_v45 = vor.u32 %v1416_v39, %v1312_v38 }
  0x4c   : > { %673 = vmatmul.bf16.gmra.mxu0 %v1209_v48  ;;  %713 = vmatmul.bf16.gmra.mxu2 %v1273_v49 }
  0x4d   : > { %762 = vmatmul.bf16.gmra.mxu1 %v1213_v50  ;;  %802 = vmatmul.bf16.gmra.mxu3 %v1277_v51  ;;  %v1757_v51 = vld [vmem:[%s1824_s2] ss:$0 sm:$0xff] }
  0x5c   : > { %678 = vmatmul.bf16.gmra.mxu0 %v1217_v60  ;;  %718 = vmatmul.bf16.gmra.mxu2 %v1281_v61 }
  0x5d   : > { %767 = vmatmul.bf16.gmra.mxu1 %v1221_v62  ;;  %807 = vmatmul.bf16.gmra.mxu3 %v1285_v63 }
  0x6c   : > { %683 = vmatmul.bf16.gmra.mxu0 %v1225_v8  ;;  %723 = vmatmul.bf16.gmra.mxu2 %v1289_v9 }
  0x6d   : > { %772 = vmatmul.bf16.gmra.mxu1 %v1229_v10  ;;  %812 = vmatmul.bf16.gmra.mxu3 %v1293_v11 }
  0x7c   : > { %688 = vmatmul.bf16.gmra.mxu0 %v1233_v20  ;;  %728 = vmatmul.bf16.gmra.mxu2 %v1297_v21 }
  0x7d   : > { %777 = vmatmul.bf16.gmra.mxu1 %v1237_v22  ;;  %817 = vmatmul.bf16.gmra.mxu3 %v1301_v23 }
  0x8c   : > { %693 = vmatmul.bf16.gmra.mxu0 %v1241_v32  ;;  %733 = vmatmul.bf16.gmra.mxu2 %v1305_v33 }
  0x8d   : > { %782 = vmatmul.bf16.gmra.mxu1 %v1245_v34  ;;  %822 = vmatmul.bf16.gmra.mxu3 %v1309_v35 }
  0x9c   : > { %698 = vmatmul.bf16.gmra.mxu0 %v1249_v44  ;;  %738 = vmatmul.bf16.gmra.mxu2 %v1313_v45 }
  0x9d   : > { %787 = vmatmul.bf16.gmra.mxu1 %v1253_v46  ;;  %827 = vmatmul.bf16.gmra.mxu3 %v1317_v47 }
  0xa9   : > { %v664_v48 = vpop.f32.mrf.mxu0 }
  0xaa   : > { %v753_v49 = vpop.f32.mrf.mxu1 }
  0xab   : > { %v754_v50 = vadd.f32 %v753_v49, %v664_v48 }
  0xad   : > { %v936_v56 = vadd.f32 %v1757_v51, %v754_v50 }
  0xaf   : > { %v704_v52 = vpop.f32.mrf.mxu2  ;;  %v968_v60 = vmax.f32 %v936_v56, 0.0 }
  0xb0   : > { %v793_v53 = vpop.f32.mrf.mxu3 }
  0xb1   : > { %v666_v54 = vpop.f32.mrf.mxu0  ;;  %v794_v58 = vadd.f32 %v793_v53, %v704_v52 }
  0xb2   : > { %v755_v55 = vpop.f32.mrf.mxu1 }
  0xb3   : > { %v756_v57 = vadd.f32 %v755_v55, %v666_v54  ;;  %v952_v0 = vadd.f32 %v1757_v51, %v794_v58 }
  0xb5   : > { %v937_v59 = vadd.f32 %v1757_v51, %v756_v57  ;;  %v984_v6 = vmax.f32 %v952_v0, 0.0 }
  0xb7   : > { %v969_v61 = vmax.f32 %v937_v59, 0.0  ;;  %v706_v62 = vpop.f32.mrf.mxu2 }
  0xb8   : > { %v795_v63 = vpop.f32.mrf.mxu3 }
  0xb9   : > { %v1436_v1 = vpack.c.bf16 %v969_v61, %v968_v60  ;;  %v796_v2 = vadd.f32 %v795_v63, %v706_v62  ;;  %v669_v3 = vpop.f32.mrf.mxu0 }
  0xba   : > { %v758_v4 = vpop.f32.mrf.mxu1 }
  0xbb   : > { %1437 = vst [vmem:[%s1765_s8] sm:$0xff] %v1436_v1   ;;  %v953_v5 = vadd.f32 %v1757_v51, %v796_v2  ;;  %v759_v9 = vadd.f32 %v758_v4, %v669_v3 }
  0xbd   : > { %v985_v7 = vmax.f32 %v953_v5, 0.0  ;;  %v938_v14 = vadd.f32 %v1757_v51, %v759_v9 }
  0xbf   : > { %v1476_v8 = vpack.c.bf16 %v985_v7, %v984_v6  ;;  %v709_v10 = vpop.f32.mrf.mxu2  ;;  %v970_v18 = vmax.f32 %v938_v14, 0.0 }
  0xc0   : > { %v798_v11 = vpop.f32.mrf.mxu3 }
  0xc1   : > { %1520 = vst [vmem:[%s1765_s8 + $0x40] sm:$0xff] %v1476_v8   ;;  %v671_v12 = vpop.f32.mrf.mxu0  ;;  %v799_v16 = vadd.f32 %v798_v11, %v709_v10 }
  0xc2   : > { %v760_v13 = vpop.f32.mrf.mxu1 }
  0xc3   : > { %v761_v15 = vadd.f32 %v760_v13, %v671_v12  ;;  %v954_v22 = vadd.f32 %v1757_v51, %v799_v16 }
  0xc5   : > { %v939_v17 = vadd.f32 %v1757_v51, %v761_v15  ;;  %v986_v28 = vmax.f32 %v954_v22, 0.0 }
  0xc7   : > { %v971_v19 = vmax.f32 %v939_v17, 0.0  ;;  %v711_v20 = vpop.f32.mrf.mxu2 }
  0xc8   : > { %v800_v21 = vpop.f32.mrf.mxu3 }
  0xc9   : > { %v1441_v23 = vpack.c.bf16 %v971_v19, %v970_v18  ;;  %v801_v24 = vadd.f32 %v800_v21, %v711_v20  ;;  %v674_v25 = vpop.f32.mrf.mxu0 }
  0xca   : > { %v763_v26 = vpop.f32.mrf.mxu1 }
  0xcb   : > { %1513 = vst [vmem:[%s1765_s8 + $0x8] sm:$0xff] %v1441_v23   ;;  %v955_v27 = vadd.f32 %v1757_v51, %v801_v24  ;;  %v764_v31 = vadd.f32 %v763_v26, %v674_v25 }
  0xcd   : > { %v987_v29 = vmax.f32 %v955_v27, 0.0  ;;  %v940_v36 = vadd.f32 %v1757_v51, %v764_v31 }
  0xcf   : > { %v1481_v30 = vpack.c.bf16 %v987_v29, %v986_v28  ;;  %v714_v32 = vpop.f32.mrf.mxu2  ;;  %v972_v40 = vmax.f32 %v940_v36, 0.0 }
  0xd0   : > { %v803_v33 = vpop.f32.mrf.mxu3 }
  0xd1   : > { %1521 = vst [vmem:[%s1765_s8 + $0x48] sm:$0xff] %v1481_v30   ;;  %v676_v34 = vpop.f32.mrf.mxu0  ;;  %v804_v38 = vadd.f32 %v803_v33, %v714_v32 }
  0xd2   : > { %v765_v35 = vpop.f32.mrf.mxu1 }
  0xd3   : > { %v766_v37 = vadd.f32 %v765_v35, %v676_v34  ;;  %v956_v44 = vadd.f32 %v1757_v51, %v804_v38 }
  0xd5   : > { %v941_v39 = vadd.f32 %v1757_v51, %v766_v37  ;;  %v988_v50 = vmax.f32 %v956_v44, 0.0 }
  0xd7   : > { %v973_v41 = vmax.f32 %v941_v39, 0.0  ;;  %v716_v42 = vpop.f32.mrf.mxu2 }
  0xd8   : > { %v805_v43 = vpop.f32.mrf.mxu3 }
  0xd9   : > { %v1446_v45 = vpack.c.bf16 %v973_v41, %v972_v40  ;;  %v806_v46 = vadd.f32 %v805_v43, %v716_v42  ;;  %v679_v47 = vpop.f32.mrf.mxu0 }
  0xda   : > { %v768_v48 = vpop.f32.mrf.mxu1 }
  0xdb   : > { %1514 = vst [vmem:[%s1765_s8 + $0x10] sm:$0xff] %v1446_v45   ;;  %v957_v49 = vadd.f32 %v1757_v51, %v806_v46  ;;  %v769_v54 = vadd.f32 %v768_v48, %v679_v47 }
  0xdd   : > { %v989_v52 = vmax.f32 %v957_v49, 0.0  ;;  %v942_v59 = vadd.f32 %v1757_v51, %v769_v54 }
  0xdf   : > { %v1486_v53 = vpack.c.bf16 %v989_v52, %v988_v50  ;;  %v719_v55 = vpop.f32.mrf.mxu2  ;;  %v974_v63 = vmax.f32 %v942_v59, 0.0 }
  0xe0   : > { %v808_v56 = vpop.f32.mrf.mxu3 }
  0xe1   : > { %1522 = vst [vmem:[%s1765_s8 + $0x50] sm:$0xff] %v1486_v53   ;;  %v681_v57 = vpop.f32.mrf.mxu0  ;;  %v809_v61 = vadd.f32 %v808_v56, %v719_v55 }
  0xe2   : > { %v770_v58 = vpop.f32.mrf.mxu1 }
  0xe3   : > { %v771_v60 = vadd.f32 %v770_v58, %v681_v57  ;;  %v958_v3 = vadd.f32 %v1757_v51, %v809_v61 }
  0xe5   : > { %v943_v62 = vadd.f32 %v1757_v51, %v771_v60  ;;  %v990_v9 = vmax.f32 %v958_v3, 0.0 }
  0xe7   : > { %v975_v0 = vmax.f32 %v943_v62, 0.0  ;;  %v721_v1 = vpop.f32.mrf.mxu2 }
  0xe8   : > { %v810_v2 = vpop.f32.mrf.mxu3 }
  0xe9   : > { %v1451_v4 = vpack.c.bf16 %v975_v0, %v974_v63  ;;  %v811_v5 = vadd.f32 %v810_v2, %v721_v1  ;;  %v684_v6 = vpop.f32.mrf.mxu0 }
  0xea   : > { %v773_v7 = vpop.f32.mrf.mxu1 }
  0xeb   : > { %1515 = vst [vmem:[%s1765_s8 + $0x18] sm:$0xff] %v1451_v4   ;;  %v959_v8 = vadd.f32 %v1757_v51, %v811_v5  ;;  %v774_v12 = vadd.f32 %v773_v7, %v684_v6 }
  0xed   : > { %v991_v10 = vmax.f32 %v959_v8, 0.0  ;;  %v944_v17 = vadd.f32 %v1757_v51, %v774_v12 }
  0xef   : > { %v1491_v11 = vpack.c.bf16 %v991_v10, %v990_v9  ;;  %v724_v13 = vpop.f32.mrf.mxu2  ;;  %v976_v21 = vmax.f32 %v944_v17, 0.0 }
  0xf0   : > { %v813_v14 = vpop.f32.mrf.mxu3 }
  0xf1   : > { %1523 = vst [vmem:[%s1765_s8 + $0x58] sm:$0xff] %v1491_v11   ;;  %v686_v15 = vpop.f32.mrf.mxu0  ;;  %v814_v19 = vadd.f32 %v813_v14, %v724_v13 }
  0xf2   : > { %v775_v16 = vpop.f32.mrf.mxu1 }
  0xf3   : > { %v776_v18 = vadd.f32 %v775_v16, %v686_v15  ;;  %v960_v25 = vadd.f32 %v1757_v51, %v814_v19 }
  0xf5   : > { %v945_v20 = vadd.f32 %v1757_v51, %v776_v18  ;;  %v992_v31 = vmax.f32 %v960_v25, 0.0 }
  0xf7   : > { %v977_v22 = vmax.f32 %v945_v20, 0.0  ;;  %v726_v23 = vpop.f32.mrf.mxu2 }
  0xf8   : > { %v815_v24 = vpop.f32.mrf.mxu3 }
  0xf9   : > { %v1456_v26 = vpack.c.bf16 %v977_v22, %v976_v21  ;;  %v816_v27 = vadd.f32 %v815_v24, %v726_v23  ;;  %v689_v28 = vpop.f32.mrf.mxu0 }
  0xfa   : > { %v778_v29 = vpop.f32.mrf.mxu1 }
  0xfb   : > { %1516 = vst [vmem:[%s1765_s8 + $0x20] sm:$0xff] %v1456_v26   ;;  %v961_v30 = vadd.f32 %v1757_v51, %v816_v27  ;;  %v779_v34 = vadd.f32 %v778_v29, %v689_v28 }
  0xfd   : > { %v993_v32 = vmax.f32 %v961_v30, 0.0  ;;  %v946_v39 = vadd.f32 %v1757_v51, %v779_v34 }
  0xff   : > { %v1496_v33 = vpack.c.bf16 %v993_v32, %v992_v31  ;;  %v729_v35 = vpop.f32.mrf.mxu2  ;;  %v978_v43 = vmax.f32 %v946_v39, 0.0 }
 0x100   : > { %v818_v36 = vpop.f32.mrf.mxu3 }
 0x101   : > { %1524 = vst [vmem:[%s1765_s8 + $0x60] sm:$0xff] %v1496_v33   ;;  %v691_v37 = vpop.f32.mrf.mxu0  ;;  %v819_v41 = vadd.f32 %v818_v36, %v729_v35 }
 0x102   : > { %v780_v38 = vpop.f32.mrf.mxu1 }
 0x103   : > { %v781_v40 = vadd.f32 %v780_v38, %v691_v37  ;;  %v962_v47 = vadd.f32 %v1757_v51, %v819_v41 }
 0x105   : > { %v947_v42 = vadd.f32 %v1757_v51, %v781_v40  ;;  %v994_v54 = vmax.f32 %v962_v47, 0.0 }
 0x107   : > { %v979_v44 = vmax.f32 %v947_v42, 0.0  ;;  %v731_v45 = vpop.f32.mrf.mxu2 }
 0x108   : > { %v820_v46 = vpop.f32.mrf.mxu3 }
 0x109   : > { %v1461_v48 = vpack.c.bf16 %v979_v44, %v978_v43  ;;  %v821_v49 = vadd.f32 %v820_v46, %v731_v45  ;;  %v694_v50 = vpop.f32.mrf.mxu0 }
 0x10a   : > { %v783_v52 = vpop.f32.mrf.mxu1 }
 0x10b   : > { %1517 = vst [vmem:[%s1765_s8 + $0x28] sm:$0xff] %v1461_v48   ;;  %v963_v53 = vadd.f32 %v1757_v51, %v821_v49  ;;  %v784_v57 = vadd.f32 %v783_v52, %v694_v50 }
 0x10d   : > { %v995_v55 = vmax.f32 %v963_v53, 0.0  ;;  %v948_v62 = vadd.f32 %v1757_v51, %v784_v57 }
 0x10f   : > { %v1501_v56 = vpack.c.bf16 %v995_v55, %v994_v54  ;;  %v734_v58 = vpop.f32.mrf.mxu2  ;;  %v980_v2 = vmax.f32 %v948_v62, 0.0 }
 0x110   : > { %v823_v59 = vpop.f32.mrf.mxu3 }
 0x111   : > { %1525 = vst [vmem:[%s1765_s8 + $0x68] sm:$0xff] %v1501_v56   ;;  %v696_v60 = vpop.f32.mrf.mxu0  ;;  %v824_v0 = vadd.f32 %v823_v59, %v734_v58 }
 0x112   : > { %v785_v61 = vpop.f32.mrf.mxu1 }
 0x113   : > { %v786_v63 = vadd.f32 %v785_v61, %v696_v60  ;;  %v964_v6 = vadd.f32 %v1757_v51, %v824_v0 }
 0x115   : > { %v949_v1 = vadd.f32 %v1757_v51, %v786_v63  ;;  %v996_v12 = vmax.f32 %v964_v6, 0.0 }
 0x117   : > { %v981_v3 = vmax.f32 %v949_v1, 0.0  ;;  %v736_v4 = vpop.f32.mrf.mxu2 }
 0x118   : > { %v825_v5 = vpop.f32.mrf.mxu3 }
 0x119   : > { %v1466_v7 = vpack.c.bf16 %v981_v3, %v980_v2  ;;  %v826_v8 = vadd.f32 %v825_v5, %v736_v4  ;;  %v699_v9 = vpop.f32.mrf.mxu0 }
 0x11a   : > { %v788_v10 = vpop.f32.mrf.mxu1 }
 0x11b   : > { %1518 = vst [vmem:[%s1765_s8 + $0x30] sm:$0xff] %v1466_v7   ;;  %v965_v11 = vadd.f32 %v1757_v51, %v826_v8  ;;  %v789_v15 = vadd.f32 %v788_v10, %v699_v9 }
 0x11d   : > { %v997_v13 = vmax.f32 %v965_v11, 0.0  ;;  %v950_v20 = vadd.f32 %v1757_v51, %v789_v15 }
 0x11f   : > { %v1506_v14 = vpack.c.bf16 %v997_v13, %v996_v12  ;;  %v739_v16 = vpop.f32.mrf.mxu2  ;;  %v982_v24 = vmax.f32 %v950_v20, 0.0 }
 0x120   : > { %v828_v17 = vpop.f32.mrf.mxu3 }
 0x121   : > { %1526 = vst [vmem:[%s1765_s8 + $0x70] sm:$0xff] %v1506_v14   ;;  %v701_v18 = vpop.f32.mrf.mxu0  ;;  %v829_v22 = vadd.f32 %v828_v17, %v739_v16 }
 0x122   : > { %v790_v19 = vpop.f32.mrf.mxu1 }
 0x123   : > { %v791_v21 = vadd.f32 %v790_v19, %v701_v18  ;;  %v966_v28 = vadd.f32 %v1757_v51, %v829_v22 }
 0x125   : > { %v951_v23 = vadd.f32 %v1757_v51, %v791_v21  ;;  %v998_v32 = vmax.f32 %v966_v28, 0.0 }
 0x127   : > { %v983_v25 = vmax.f32 %v951_v23, 0.0  ;;  %v741_v26 = vpop.f32.mrf.mxu2 }
 0x128   : > { %v830_v27 = vpop.f32.mrf.mxu3 }
 0x129   : > { %v1471_v29 = vpack.c.bf16 %v983_v25, %v982_v24  ;;  %v831_v30 = vadd.f32 %v830_v27, %v741_v26 }
 0x12b   : > { %1519 = vst [vmem:[%s1765_s8 + $0x38] sm:$0xff] %v1471_v29   ;;  %v967_v31 = vadd.f32 %v1757_v51, %v831_v30 }
 0x12d   : > { %v999_v33 = vmax.f32 %v967_v31, 0.0 }
 0x12f   : > { %v1511_v34 = vpack.c.bf16 %v999_v33, %v998_v32 }
 0x131   : > { %1527 = vst [vmem:[%s1765_s8 + $0x78] sm:$0xff] %v1511_v34  }
 0x132 PF: > { %s13_s14 = sadd.s32 1, %s1591_s14   ;;  %s1826_s12 = smov %s1587_s13 }
 0x133   : > { %p10_p5 = scmp.ge.s32.totalorder %s13_s14, 4   ;;  %s1827_s13 = smov %s1829_s15 }
 0x135   :  { %12 = sbr.rel (!%p10_p5) target bundleno = 2 (0x2), region = 76 }

// kernel: _lambda_.47
= control target key start
LH: loop header
LB: loop body
LE: loop exit
PB: predicated region body
PF: predicated region fallthrough
CT: control target
= control target key end

     0   :  { %s597_s1 = inlined_call_operand.vmem [shape: bf16[128,128], index: 1, kind: input, shape index: {}]   ;;  %s598_s2 = inlined_call_operand.vmem [shape: f32[1,128], index: 2, kind: input, shape index: {}]   ;;  %s599_s0 = inlined_call_operand.vmem [shape: bf16[128,128], index: 0, kind: input, shape index: {}]   ;;  %s600_s3 = inlined_call_operand.vmem [shape: bf16[128,128], index: 3, kind: output, shape index: {}]  }
   0x1   :  { %v429_v0 = vld [vmem:[%s597_s1 + $0x38] sm:$0xff]  ;;  %v428_v1 = vld [vmem:[%s597_s1 + $0x30] sm:$0xff]  ;;  %v427_v2 = vld [vmem:[%s597_s1 + $0x28] sm:$0xff] }
   0x2   :  { %178 = vmatpush.bf16.msra.mxu0 %v429_v0  ;;  %477 = vmatpush.bf16.msra.mxu1 %v429_v0  ;;  %v426_v3 = vld [vmem:[%s597_s1 + $0x20] sm:$0xff]  ;;  %v425_v4 = vld [vmem:[%s597_s1 + $0x18] sm:$0xff]  ;;  %v424_v5 = vld [vmem:[%s597_s1 + $0x10] sm:$0xff] }
   0x3   :  { %478 = vmatpush.bf16.msra.mxu2 %v429_v0  ;;  %479 = vmatpush.bf16.msra.mxu3 %v429_v0  ;;  %v423_v6 = vld [vmem:[%s597_s1 + $0x8] sm:$0xff]  ;;  %v422_v7 = vld [vmem:[%s597_s1] sm:$0xff]  ;;  %v416_v9 = vld [vmem:[%s599_s0 + $0x10] sm:$0xff] }
   0x4   :  { %v414_v8 = vld [vmem:[%s599_s0] sm:$0xff]  ;;  %v420_v11 = vld [vmem:[%s599_s0 + $0x30] sm:$0xff]  ;;  %v415_v12 = vld [vmem:[%s599_s0 + $0x8] sm:$0xff] }
   0x5   :  { %v418_v10 = vld [vmem:[%s599_s0 + $0x20] sm:$0xff]  ;;  %v417_v13 = vld [vmem:[%s599_s0 + $0x18] sm:$0xff]  ;;  %v419_v14 = vld [vmem:[%s599_s0 + $0x28] sm:$0xff] }
   0x6   :  { %179 = vmatpush.bf16.msra.mxu0 %v428_v1  ;;  %480 = vmatpush.bf16.msra.mxu1 %v428_v1  ;;  %v421_v15 = vld [vmem:[%s599_s0 + $0x38] sm:$0xff]  ;;  %v501_v18 = vld [vmem:[%s598_s2] ss:$0 sm:$0xff] }
   0x7   :  { %481 = vmatpush.bf16.msra.mxu2 %v428_v1  ;;  %482 = vmatpush.bf16.msra.mxu3 %v428_v1 }
   0xa   :  { %180 = vmatpush.bf16.msra.mxu0 %v427_v2  ;;  %483 = vmatpush.bf16.msra.mxu1 %v427_v2 }
   0xb   :  { %484 = vmatpush.bf16.msra.mxu2 %v427_v2  ;;  %485 = vmatpush.bf16.msra.mxu3 %v427_v2 }
   0xe   :  { %181 = vmatpush.bf16.msra.mxu0 %v426_v3  ;;  %486 = vmatpush.bf16.msra.mxu1 %v426_v3 }
   0xf   :  { %487 = vmatpush.bf16.msra.mxu2 %v426_v3  ;;  %488 = vmatpush.bf16.msra.mxu3 %v426_v3 }
  0x12   :  { %182 = vmatpush.bf16.msra.mxu0 %v425_v4  ;;  %489 = vmatpush.bf16.msra.mxu1 %v425_v4 }
  0x13   :  { %490 = vmatpush.bf16.msra.mxu2 %v425_v4  ;;  %491 = vmatpush.bf16.msra.mxu3 %v425_v4 }
  0x16   :  { %183 = vmatpush.bf16.msra.mxu0 %v424_v5  ;;  %492 = vmatpush.bf16.msra.mxu1 %v424_v5 }
  0x17   :  { %493 = vmatpush.bf16.msra.mxu2 %v424_v5  ;;  %494 = vmatpush.bf16.msra.mxu3 %v424_v5 }
  0x1a   :  { %184 = vmatpush.bf16.msra.mxu0 %v423_v6  ;;  %495 = vmatpush.bf16.msra.mxu1 %v423_v6 }
  0x1b   :  { %496 = vmatpush.bf16.msra.mxu2 %v423_v6  ;;  %497 = vmatpush.bf16.msra.mxu3 %v423_v6 }
  0x1e   :  { %185 = vmatpush.bf16.msra.mxu0 %v422_v7  ;;  %498 = vmatpush.bf16.msra.mxu1 %v422_v7 }
  0x1f   :  { %499 = vmatpush.bf16.msra.mxu2 %v422_v7  ;;  %500 = vmatpush.bf16.msra.mxu3 %v422_v7 }
  0x21   :  { %186 = vmatmul.bf16.vlgmr.msra.gmra.mxu0 %v414_v8  ;;  %196 = vmatmul.bf16.vlgmr.msra.gmra.mxu1 %v416_v9 }
  0x22   :  { %206 = vmatmul.bf16.vlgmr.msra.gmra.mxu2 %v418_v10  ;;  %216 = vmatmul.bf16.vlgmr.msra.gmra.mxu3 %v420_v11 }
  0x31   :  { %191 = vmatmul.bf16.gmra.mxu0 %v415_v12  ;;  %201 = vmatmul.bf16.gmra.mxu1 %v417_v13 }
  0x32   :  { %211 = vmatmul.bf16.gmra.mxu2 %v419_v14  ;;  %221 = vmatmul.bf16.gmra.mxu3 %v421_v15 }
  0x9e   :  { %v187_v16 = vpop.f32.mrf.mxu0  ;;  %v197_v17 = vpop.f32.mrf.mxu1 }
  0x9f   :  { %v282_v19 = vadd.f32 %v501_v18, %v187_v16  ;;  %v286_v20 = vadd.f32 %v501_v18, %v197_v17 }
  0xa1   :  { %v298_v27 = vmax.f32 %v282_v19, 0.0  ;;  %v302_v28 = vmax.f32 %v286_v20, 0.0 }
  0xa5   :  { %v207_v21 = vpop.f32.mrf.mxu2  ;;  %v217_v22 = vpop.f32.mrf.mxu3 }
  0xa6   :  { %v189_v23 = vpop.f32.mrf.mxu0  ;;  %v199_v24 = vpop.f32.mrf.mxu1  ;;  %v290_v33 = vadd.f32 %v501_v18, %v207_v21  ;;  %v294_v34 = vadd.f32 %v501_v18, %v217_v22 }
  0xa7   :  { %v283_v25 = vadd.f32 %v501_v18, %v189_v23  ;;  %v287_v26 = vadd.f32 %v501_v18, %v199_v24 }
  0xa8   :  { %v306_v41 = vmax.f32 %v290_v33, 0.0  ;;  %v310_v42 = vmax.f32 %v294_v34, 0.0 }
  0xa9   :  { %v299_v29 = vmax.f32 %v283_v25, 0.0  ;;  %v303_v30 = vmax.f32 %v287_v26, 0.0 }
  0xab   :  { %v433_v31 = vpack.c.bf16 %v299_v29, %v298_v27  ;;  %v443_v32 = vpack.c.bf16 %v303_v30, %v302_v28 }
  0xad   :  { %434 = vst [vmem:[%s600_s3] sm:$0xff] %v433_v31   ;;  %v209_v35 = vpop.f32.mrf.mxu2  ;;  %v219_v36 = vpop.f32.mrf.mxu3 }
  0xae   :  { %471 = vst [vmem:[%s600_s3 + $0x10] sm:$0xff] %v443_v32   ;;  %v291_v37 = vadd.f32 %v501_v18, %v209_v35  ;;  %v295_v38 = vadd.f32 %v501_v18, %v219_v36  ;;  %v192_v39 = vpop.f32.mrf.mxu0  ;;  %v202_v40 = vpop.f32.mrf.mxu1 }
  0xaf   :  { %v284_v47 = vadd.f32 %v501_v18, %v192_v39  ;;  %v288_v48 = vadd.f32 %v501_v18, %v202_v40 }
  0xb0   :  { %v307_v43 = vmax.f32 %v291_v37, 0.0  ;;  %v311_v44 = vmax.f32 %v295_v38, 0.0 }
  0xb1   :  { %v300_v55 = vmax.f32 %v284_v47, 0.0  ;;  %v304_v56 = vmax.f32 %v288_v48, 0.0 }
  0xb2   :  { %v453_v45 = vpack.c.bf16 %v307_v43, %v306_v41  ;;  %v463_v46 = vpack.c.bf16 %v311_v44, %v310_v42 }
  0xb4   :  { %473 = vst [vmem:[%s600_s3 + $0x20] sm:$0xff] %v453_v45  }
  0xb5   :  { %475 = vst [vmem:[%s600_s3 + $0x30] sm:$0xff] %v463_v46   ;;  %v212_v49 = vpop.f32.mrf.mxu2  ;;  %v222_v50 = vpop.f32.mrf.mxu3 }
  0xb6   :  { %v194_v51 = vpop.f32.mrf.mxu0  ;;  %v204_v52 = vpop.f32.mrf.mxu1  ;;  %v292_v61 = vadd.f32 %v501_v18, %v212_v49  ;;  %v296_v62 = vadd.f32 %v501_v18, %v222_v50 }
  0xb7   :  { %v285_v53 = vadd.f32 %v501_v18, %v194_v51  ;;  %v289_v54 = vadd.f32 %v501_v18, %v204_v52 }
  0xb8   :  { %v308_v3 = vmax.f32 %v292_v61, 0.0  ;;  %v312_v4 = vmax.f32 %v296_v62, 0.0 }
  0xb9   :  { %v301_v57 = vmax.f32 %v285_v53, 0.0  ;;  %v305_v58 = vmax.f32 %v289_v54, 0.0 }
  0xbb   :  { %v438_v59 = vpack.c.bf16 %v301_v57, %v300_v55  ;;  %v448_v60 = vpack.c.bf16 %v305_v58, %v304_v56 }
  0xbd   :  { %470 = vst [vmem:[%s600_s3 + $0x8] sm:$0xff] %v438_v59   ;;  %v214_v63 = vpop.f32.mrf.mxu2  ;;  %v224_v0 = vpop.f32.mrf.mxu3 }
  0xbe   :  { %472 = vst [vmem:[%s600_s3 + $0x18] sm:$0xff] %v448_v60   ;;  %v293_v1 = vadd.f32 %v501_v18, %v214_v63  ;;  %v297_v2 = vadd.f32 %v501_v18, %v224_v0 }
  0xc0   :  { %v309_v5 = vmax.f32 %v293_v1, 0.0  ;;  %v313_v6 = vmax.f32 %v297_v2, 0.0 }
  0xc2   :  { %v458_v7 = vpack.c.bf16 %v309_v5, %v308_v3  ;;  %v468_v8 = vpack.c.bf16 %v313_v6, %v312_v4 }
  0xc4   :  { %474 = vst [vmem:[%s600_s3 + $0x28] sm:$0xff] %v458_v7  }
  0xc5   :  { %476 = vst [vmem:[%s600_s3 + $0x38] sm:$0xff] %v468_v8  }

// kernel: _lambda_.48
= control target key start
LH: loop header
LB: loop body
LE: loop exit
PB: predicated region body
PF: predicated region fallthrough
CT: control target
= control target key end

     0   :  { %s1577_s12 = smov 0   ;;  %s1579_s13 = smov 0   ;;  %s1867_s0 = inlined_call_operand.vmem [shape: bf16[128,1152], index: 0, kind: input, shape index: {}]   ;;  %s1868_s1 = inlined_call_operand.vmem [shape: bf16[1152,128], index: 1, kind: input, shape index: {}]   ;;  %s1869_s2 = inlined_call_operand.vmem [shape: f32[1,128], index: 2, kind: input, shape index: {}]   ;;  %s1870_s3 = inlined_call_operand.vmem [shape: bf16[128,128], index: 3, kind: output, shape index: {}]  }
   0x1   :  { %s1581_s14 = smov 0   ;;  %s1583_s15 = smov 0  }
   0x2   :  { %s1585_s16 = smov 0  }
   0x3 LB: > { %s25_s17 = sadd.s32 1, %s1550_s15  ;;  %p48_p1 = scmp.ne.s32.totalorder %s1542_s13, %s1538_s12  ;;  %s1554_s16 = sphi %s1585_s16, %s13_s16   ;;  %s1550_s15 = sphi %s1583_s15, %s1874_s15   ;;  %s1546_s14 = sphi %s1581_s14, %s1873_s14   ;;  %s1542_s13 = sphi %s1579_s13, %s1872_s13   ;;  %s1538_s12 = sphi %s1577_s12, %s1871_s12  }
   0x4   : > { %p26_p0 = scmp.ge.s32.totalorder %s25_s17, 3  ;;  %p49_p2 = scmp.eq.s32.totalorder %s1554_s16, 0 }
   0x5   : > { %s41_s19 = sadd.s32 1, %s1542_s13  ;;  %p1118_p5 = scmp.ge.s32.totalorder %s1554_s16, 3 }
   0x6   : > { %s1876_s17 = smov (%p26_p0, %s25_s17), 0  ;;  %p50_p3 = por %p49_p2, %p48_p1 }
   0x7   : > { %s37_s18 = ssub.s32 %s1550_s15, %s1876_s17  ;;  %162 = sbr.rel (%p1118_p5) target bundleno = 49 (0x31), region = 20 }
   0x8   : > { %p39_p4 = scmp.eq.s32.totalorder %s37_s18, 0 }
   0xa   : > { %s1612_s20 = scalar_select %p39_p4, %s1542_s13, %s41_s19  }
   0xc   : > { %165 = sbr.rel (!%p50_p3) target bundleno = 49 (0x31), region = 24  ;;  %s167_s21 = sand.u32 (%p50_p3), 1, %s1542_s13  }
   0xd   : > { %s1352_s22 = smul.u32 (%p50_p3), 12, %s1550_s15 }
   0xe   : > { %s1472_s23 = smul.u32 (%p50_p3), 192, %s167_s21 }
   0xf   : > { %s1620_s26 = scalar_lea.vmem (%p50_p3), %s1867_s0, %s1352_s22 }
  0x10   : > { %v190_v0 = vld [vmem:[%s1620_s26] sm:$0xff] (%p50_p3)  ;;  %v194_v2 = vld [vmem:[%s1620_s26 + $0x48] sm:$0xff] (%p50_p3)  ;;  %s1625_s27 = scalar_lea.vmem (%p50_p3), [#allocation3], %s1472_s23  ;;  %v198_v4 = vld [vmem:[%s1620_s26 + $0x90] sm:$0xff] (%p50_p3) }
  0x11   : > { %v192_v1 = vld [vmem:[%s1620_s26 + $0x24] sm:$0xff]  ;;  %191 = vst [vmem:[%s1625_s27] sm:$0xff] %v190_v0  ;;  %v196_v3 = vld [vmem:[%s1620_s26 + $0x6c] sm:$0xff]  ;;  %v200_v5 = vld [vmem:[%s1620_s26 + $0xb4] sm:$0xff] }
  0x12   : > { %193 = vst [vmem:[%s1625_s27 + $0xc] sm:$0xff] %v192_v1  ;;  %v202_v6 = vld [vmem:[%s1620_s26 + $0xd8] sm:$0xff]  ;;  %v206_v8 = vld [vmem:[%s1620_s26 + $0x120] sm:$0xff]  ;;  %v210_v10 = vld [vmem:[%s1620_s26 + $0x168] sm:$0xff] }
  0x13   : > { %195 = vst [vmem:[%s1625_s27 + $0x18] sm:$0xff] %v194_v2  ;;  %v204_v7 = vld [vmem:[%s1620_s26 + $0xfc] sm:$0xff]  ;;  %v208_v9 = vld [vmem:[%s1620_s26 + $0x144] sm:$0xff]  ;;  %v212_v11 = vld [vmem:[%s1620_s26 + $0x18c] sm:$0xff] }
  0x14   : > { %197 = vst [vmem:[%s1625_s27 + $0x24] sm:$0xff] %v196_v3  ;;  %v214_v12 = vld [vmem:[%s1620_s26 + $0x1b0] sm:$0xff]  ;;  %v218_v14 = vld [vmem:[%s1620_s26 + $0x1f8] sm:$0xff]  ;;  %v1120_v16 = vld [vmem:[%s1620_s26 + $0x8] sm:$0xf] }
  0x15   : > { %199 = vst [vmem:[%s1625_s27 + $0x30] sm:$0xff] %v198_v4  ;;  %v216_v13 = vld [vmem:[%s1620_s26 + $0x1d4] sm:$0xff]  ;;  %v220_v15 = vld [vmem:[%s1620_s26 + $0x21c] sm:$0xff]  ;;  %v1122_v17 = vld [vmem:[%s1620_s26 + $0x2c] sm:$0xf] }
  0x16   : > { %201 = vst [vmem:[%s1625_s27 + $0x3c] sm:$0xff] %v200_v5  ;;  %v1124_v18 = vld [vmem:[%s1620_s26 + $0x50] sm:$0xf]  ;;  %v1126_v19 = vld [vmem:[%s1620_s26 + $0x74] sm:$0xf] }
  0x17   : > { %203 = vst [vmem:[%s1625_s27 + $0x48] sm:$0xff] %v202_v6  ;;  %v1128_v20 = vld [vmem:[%s1620_s26 + $0x98] sm:$0xf]  ;;  %v1130_v21 = vld [vmem:[%s1620_s26 + $0xbc] sm:$0xf] }
  0x18   : > { %205 = vst [vmem:[%s1625_s27 + $0x54] sm:$0xff] %v204_v7  ;;  %v1132_v22 = vld [vmem:[%s1620_s26 + $0xe0] sm:$0xf]  ;;  %v1134_v23 = vld [vmem:[%s1620_s26 + $0x104] sm:$0xf] }
  0x19   : > { %207 = vst [vmem:[%s1625_s27 + $0x60] sm:$0xff] %v206_v8  ;;  %v1136_v24 = vld [vmem:[%s1620_s26 + $0x128] sm:$0xf]  ;;  %v1138_v25 = vld [vmem:[%s1620_s26 + $0x14c] sm:$0xf] }
  0x1a   : > { %209 = vst [vmem:[%s1625_s27 + $0x6c] sm:$0xff] %v208_v9  ;;  %v1140_v26 = vld [vmem:[%s1620_s26 + $0x170] sm:$0xf]  ;;  %v1142_v27 = vld [vmem:[%s1620_s26 + $0x194] sm:$0xf] }
  0x1b   : > { %211 = vst [vmem:[%s1625_s27 + $0x78] sm:$0xff] %v210_v10  ;;  %v1144_v28 = vld [vmem:[%s1620_s26 + $0x1b8] sm:$0xf]  ;;  %v1146_v29 = vld [vmem:[%s1620_s26 + $0x1dc] sm:$0xf] }
  0x1c   : > { %213 = vst [vmem:[%s1625_s27 + $0x84] sm:$0xff] %v212_v11  ;;  %v1148_v30 = vld [vmem:[%s1620_s26 + $0x200] sm:$0xf]  ;;  %v1150_v31 = vld [vmem:[%s1620_s26 + $0x224] sm:$0xf] }
  0x1d   : > { %215 = vst [vmem:[%s1625_s27 + $0x90] sm:$0xff] %v214_v12 }
  0x1e   : > { %217 = vst [vmem:[%s1625_s27 + $0x9c] sm:$0xff] %v216_v13 }
  0x1f   : > { %219 = vst [vmem:[%s1625_s27 + $0xa8] sm:$0xff] %v218_v14 }
  0x20   : > { %221 = vst [vmem:[%s1625_s27 + $0xb4] sm:$0xff] %v220_v15 }
  0x21   : > { %1121 = vst [vmem:[%s1625_s27 + $0x8] sm:$0xf] %v1120_v16 }
  0x22   : > { %1123 = vst [vmem:[%s1625_s27 + $0x14] sm:$0xf] %v1122_v17 }
  0x23   : > { %1125 = vst [vmem:[%s1625_s27 + $0x20] sm:$0xf] %v1124_v18 }
  0x24   : > { %1127 = vst [vmem:[%s1625_s27 + $0x2c] sm:$0xf] %v1126_v19 }
  0x25   : > { %1129 = vst [vmem:[%s1625_s27 + $0x38] sm:$0xf] %v1128_v20 }
  0x26   : > { %1131 = vst [vmem:[%s1625_s27 + $0x44] sm:$0xf] %v1130_v21 }
  0x27   : > { %1133 = vst [vmem:[%s1625_s27 + $0x50] sm:$0xf] %v1132_v22 }
  0x28   : > { %1135 = vst [vmem:[%s1625_s27 + $0x5c] sm:$0xf] %v1134_v23 }
  0x29   : > { %1137 = vst [vmem:[%s1625_s27 + $0x68] sm:$0xf] %v1136_v24 }
  0x2a   : > { %1139 = vst [vmem:[%s1625_s27 + $0x74] sm:$0xf] %v1138_v25 }
  0x2b   : > { %1141 = vst [vmem:[%s1625_s27 + $0x80] sm:$0xf] %v1140_v26 }
  0x2c   : > { %1143 = vst [vmem:[%s1625_s27 + $0x8c] sm:$0xf] %v1142_v27 }
  0x2d   : > { %1145 = vst [vmem:[%s1625_s27 + $0x98] sm:$0xf] %v1144_v28 }
  0x2e   : > { %1147 = vst [vmem:[%s1625_s27 + $0xa4] sm:$0xf] %v1146_v29 }
  0x2f   : > { %1149 = vst [vmem:[%s1625_s27 + $0xb0] sm:$0xf] %v1148_v30 }
  0x30   : > { %1151 = vst [vmem:[%s1625_s27 + $0xbc] sm:$0xf] %v1150_v31 }
  0x31 PF: > { %p1152_p6 = scmp.ge.s32.totalorder %s1554_s16, 1  ;;  %p278_p7 = scmp.lt.s32.totalorder %s1554_s16, 4 }
  0x33   : > { %p279_p8 = pnand %p1152_p6, %p278_p7 }
  0x34   : > { %s285_s28 = sand.u32 (!%p279_p8), 1, %s1538_s12   ;;  %s324_s29 = smul.u32 (!%p279_p8), 48, %s1546_s14 }
  0x35   : > { %282 = sbr.rel (%p279_p8) target bundleno = 355 (0x163), region = 54  ;;  %p1154_p10 = scmp.ne.s32.totalorder (!%p279_p8), %s1546_s14, 0 }
  0x36   : > { %s1473_s30 = smul.u32 (!%p279_p8), 192, %s285_s28  ;;  %p325_p9 = scmp.lt.s32.totalorder (!%p279_p8), %s324_s29, 143 }
  0x38   : > { %s1697_s8 = scalar_lea.vmem (!%p279_p8), [#allocation3], %s1473_s30 }
  0x3a   : > { %s1878_s29 = smov (!%p325_p9, %s324_s29), 143  ;;  %348 = sbr.rel (%p1154_p10) target bundleno = 80 (0x50), region = 62 }
  0x3b   : > { %s1153_s4 = sshll.u32 %s1878_s29, 2 }
  0x3c   : > { %s1695_s7 = scalar_lea.vmem %s1868_s1, %s1153_s4 }
  0x3f   : > { %v1556_v32 = vmov 0.0  }
  0x40   : > { %349 = vst [vmem:[#allocation2 + $0x30] sm:$0xff] %v1556_v32 }
  0x41   : > { %350 = vst [vmem:[#allocation2] sm:$0xff] %v1556_v32 }
  0x42   : > { %351 = vst [vmem:[#allocation2 + $0x58] sm:$0xff] %v1556_v32 }
  0x43   : > { %352 = vst [vmem:[#allocation2 + $0x18] sm:$0xff] %v1556_v32 }
  0x44   : > { %353 = vst [vmem:[#allocation2 + $0x50] sm:$0xff] %v1556_v32 }
  0x45   : > { %354 = vst [vmem:[#allocation2 + $0x68] sm:$0xff] %v1556_v32 }
  0x46   : > { %355 = vst [vmem:[#allocation2 + $0x8] sm:$0xff] %v1556_v32 }
  0x47   : > { %356 = vst [vmem:[#allocation2 + $0x48] sm:$0xff] %v1556_v32 }
  0x48   : > { %357 = vst [vmem:[#allocation2 + $0x40] sm:$0xff] %v1556_v32 }
  0x49   : > { %358 = vst [vmem:[#allocation2 + $0x20] sm:$0xff] %v1556_v32 }
  0x4a   : > { %359 = vst [vmem:[#allocation2 + $0x10] sm:$0xff] %v1556_v32 }
  0x4b   : > { %360 = vst [vmem:[#allocation2 + $0x38] sm:$0xff] %v1556_v32 }
  0x4c   : > { %361 = vst [vmem:[#allocation2 + $0x60] sm:$0xff] %v1556_v32 }
  0x4d   : > { %362 = vst [vmem:[#allocation2 + $0x70] sm:$0xff] %v1556_v32 }
  0x4e   : > { %363 = vst [vmem:[#allocation2 + $0x78] sm:$0xff] %v1556_v32 }
  0x4f   : > { %364 = vst [vmem:[#allocation2 + $0x28] sm:$0xff] %v1556_v32 }
  0x50 PF: > { %v1384_v33 = vld [vmem:[%s1695_s7 + $0x38] sm:$0xff]  ;;  %v1383_v36 = vld [vmem:[%s1695_s7 + $0x30] sm:$0xff]  ;;  %v1382_v39 = vld [vmem:[%s1695_s7 + $0x28] sm:$0xff]  ;;  %p1347_p11 = scmp.ne.s32.totalorder %s1546_s14, 2 }
  0x51   : > { %v1702_v34 = vld [vmem:[%s1695_s7 + $0x78] sm:$0xff]  ;;  %733 = vmatpush.bf16.msra.mxu0 %v1384_v33  ;;  %1448 = vmatpush.bf16.msra.mxu3 %v1384_v33  ;;  %v1711_v37 = vld [vmem:[%s1695_s7 + $0x70] sm:$0xff]  ;;  %v1390_v40 = vld [vmem:[%s1695_s7 + $0x68] sm:$0xff] }
  0x52   : > { %v1705_v35 = vld [vmem:[%s1695_s7 + $0xb8] sm:$0xff]  ;;  %782 = vmatpush.bf16.msra.mxu1 %v1702_v34  ;;  %v1714_v38 = vld [vmem:[%s1695_s7 + $0xb0] sm:$0xff]  ;;  %v1721_v41 = vld [vmem:[%s1695_s7 + $0xa8] sm:$0xff] }
  0x53   : > { %831 = vmatpush.bf16.msra.mxu2 %v1705_v35  ;;  %v1381_v42 = vld [vmem:[%s1695_s7 + $0x20] sm:$0xff]  ;;  %v1380_v45 = vld [vmem:[%s1695_s7 + $0x18] sm:$0xff]  ;;  %v1379_v48 = vld [vmem:[%s1695_s7 + $0x10] sm:$0xff] }
  0x54   : > { %v1389_v43 = vld [vmem:[%s1695_s7 + $0x60] sm:$0xff]  ;;  %v1388_v46 = vld [vmem:[%s1695_s7 + $0x58] sm:$0xff]  ;;  %v1387_v49 = vld [vmem:[%s1695_s7 + $0x50] sm:$0xff] }
  0x55   : > { %734 = vmatpush.bf16.msra.mxu0 %v1383_v36  ;;  %1449 = vmatpush.bf16.msra.mxu3 %v1383_v36  ;;  %v1727_v44 = vld [vmem:[%s1695_s7 + $0xa0] sm:$0xff]  ;;  %v1733_v47 = vld [vmem:[%s1695_s7 + $0x98] sm:$0xff]  ;;  %v1739_v50 = vld [vmem:[%s1695_s7 + $0x90] sm:$0xff] }
  0x56   : > { %783 = vmatpush.bf16.msra.mxu1 %v1711_v37  ;;  %v1378_v51 = vld [vmem:[%s1695_s7 + $0x8] sm:$0xff]  ;;  %v1377_v54 = vld [vmem:[%s1695_s7] sm:$0xff]  ;;  %v1229_v59 = vld [vmem:[%s1697_s8 + $0x90] sm:$0xf] }
  0x57   : > { %832 = vmatpush.bf16.msra.mxu2 %v1714_v38  ;;  %v1386_v52 = vld [vmem:[%s1695_s7 + $0x48] sm:$0xff]  ;;  %v1385_v55 = vld [vmem:[%s1695_s7 + $0x40] sm:$0xff]  ;;  %v1372_v60 = vld [vmem:[%s1697_s8 + $0x98] sm:$0xf0] }
  0x58   : > { %v1745_v53 = vld [vmem:[%s1695_s7 + $0x88] sm:$0xff]  ;;  %v1750_v56 = vld [vmem:[%s1695_s7 + $0x80] sm:$0xff]  ;;  %v1159_v62 = vld [vmem:[%s1697_s8 + $0xc] sm:$0xf0]  ;;  %v1230_v2 = vor.u32 %v1372_v60, %v1229_v59 }
  0x59   : > { %735 = vmatpush.bf16.msra.mxu0 %v1382_v39  ;;  %1450 = vmatpush.bf16.msra.mxu3 %v1382_v39  ;;  %v1157_v57 = vld [vmem:[%s1697_s8] sm:$0xf]  ;;  %v1354_v58 = vld [vmem:[%s1697_s8 + $0x8] sm:$0xf0]  ;;  %v1353_v61 = vld [vmem:[%s1697_s8 + $0x4] sm:$0xf] }
  0x5a   : > { %784 = vmatpush.bf16.msra.mxu1 %v1390_v40  ;;  %v1165_v63 = vld [vmem:[%s1697_s8 + $0x8] sm:$0xf]  ;;  %v1355_v0 = vld [vmem:[%s1697_s8 + $0x10] sm:$0xf0]  ;;  %v1158_v1 = vor.u32 %v1354_v58, %v1157_v57  ;;  %v1162_v3 = vor.u32 %v1353_v61, %v1159_v62  ;;  %v1169_v5 = vld [vmem:[%s1697_s8 + $0x18] sm:$0xf] }
  0x5b   : > { %833 = vmatpush.bf16.msra.mxu2 %v1721_v41  ;;  %v1166_v4 = vor.u32 %v1355_v0, %v1165_v63  ;;  %v1357_v6 = vld [vmem:[%s1697_s8 + $0x20] sm:$0xf0]  ;;  %v1241_v7 = vld [vmem:[%s1697_s8 + $0xa8] sm:$0xf]  ;;  %v1375_v8 = vld [vmem:[%s1697_s8 + $0xb0] sm:$0xf0] }
  0x5c   : > { %v1356_v9 = vld [vmem:[%s1697_s8 + $0x1c] sm:$0xf]  ;;  %v1171_v10 = vld [vmem:[%s1697_s8 + $0x24] sm:$0xf0]  ;;  %v1177_v11 = vld [vmem:[%s1697_s8 + $0x20] sm:$0xf]  ;;  %v1170_v13 = vor.u32 %v1357_v6, %v1169_v5  ;;  %v1242_v14 = vor.u32 %v1375_v8, %v1241_v7 }
  0x5d   : > { %736 = vmatpush.bf16.msra.mxu0 %v1381_v42  ;;  %1451 = vmatpush.bf16.msra.mxu3 %v1381_v42  ;;  %v1358_v12 = vld [vmem:[%s1697_s8 + $0x28] sm:$0xf0]  ;;  %v1174_v15 = vor.u32 %v1356_v9, %v1171_v10  ;;  %v1181_v17 = vld [vmem:[%s1697_s8 + $0x30] sm:$0xf]  ;;  %v1360_v18 = vld [vmem:[%s1697_s8 + $0x38] sm:$0xf0] }
  0x5e   : > { %785 = vmatpush.bf16.msra.mxu1 %v1389_v43  ;;  %v1178_v16 = vor.u32 %v1358_v12, %v1177_v11  ;;  %v1359_v19 = vld [vmem:[%s1697_s8 + $0x34] sm:$0xf]  ;;  %v1231_v21 = vld [vmem:[%s1697_s8 + $0x9c] sm:$0xf0]  ;;  %v1189_v23 = vld [vmem:[%s1697_s8 + $0x38] sm:$0xf]  ;;  %v1182_v25 = vor.u32 %v1360_v18, %v1181_v17 }
  0x5f   : > { %834 = vmatpush.bf16.msra.mxu2 %v1727_v44  ;;  %v1371_v20 = vld [vmem:[%s1697_s8 + $0x94] sm:$0xf]  ;;  %v1183_v22 = vld [vmem:[%s1697_s8 + $0x3c] sm:$0xf0]  ;;  %v1361_v24 = vld [vmem:[%s1697_s8 + $0x40] sm:$0xf0] }
  0x60   : > { %v1234_v26 = vor.u32 %v1371_v20, %v1231_v21  ;;  %v1186_v27 = vor.u32 %v1359_v19, %v1183_v22  ;;  %v1190_v28 = vor.u32 %v1361_v24, %v1189_v23  ;;  %v1193_v29 = vld [vmem:[%s1697_s8 + $0x48] sm:$0xf]  ;;  %v1363_v30 = vld [vmem:[%s1697_s8 + $0x50] sm:$0xf0]  ;;  %v1362_v31 = vld [vmem:[%s1697_s8 + $0x4c] sm:$0xf] }
  0x61   : > { %737 = vmatpush.bf16.msra.mxu0 %v1380_v45  ;;  %1452 = vmatpush.bf16.msra.mxu3 %v1380_v45  ;;  %v1374_v32 = vld [vmem:[%s1697_s8 + $0xac] sm:$0xf]  ;;  %v1243_v33 = vld [vmem:[%s1697_s8 + $0xb4] sm:$0xf0]  ;;  %v1364_v36 = vld [vmem:[%s1697_s8 + $0x58] sm:$0xf0] }
  0x62   : > { %786 = vmatpush.bf16.msra.mxu1 %v1388_v46  ;;  %v1246_v39 = vor.u32 %v1374_v32, %v1243_v33  ;;  %v1366_v42 = vld [vmem:[%s1697_s8 + $0x68] sm:$0xf0]  ;;  %v1373_v45 = vld [vmem:[%s1697_s8 + $0xa0] sm:$0xf0]  ;;  %v1249_v57 = vld [vmem:[%s1697_s8 + $0xb0] sm:$0xf] }
  0x63   : > { %835 = vmatpush.bf16.msra.mxu2 %v1733_v47  ;;  %v1219_v58 = vld [vmem:[%s1697_s8 + $0x84] sm:$0xf0]  ;;  %v1225_v59 = vld [vmem:[%s1697_s8 + $0x80] sm:$0xf]  ;;  %v1370_v60 = vld [vmem:[%s1697_s8 + $0x88] sm:$0xf0] }
  0x64   : > { %v1226_v0 = vor.u32 %v1370_v60, %v1225_v59  ;;  %v365_v5 = vld [vmem:[#allocation2 + $0x30] sm:$0xff]  ;;  %v367_v21 = vld [vmem:[#allocation2 + $0x58] sm:$0xff] }
  0x65   : > { %738 = vmatpush.bf16.msra.mxu0 %v1379_v48  ;;  %1453 = vmatpush.bf16.msra.mxu3 %v1379_v48  ;;  %v1367_v48 = vld [vmem:[%s1697_s8 + $0x70] sm:$0xf0] }
  0x66   : > { %787 = vmatpush.bf16.msra.mxu1 %v1387_v49 }
  0x67   : > { %836 = vmatpush.bf16.msra.mxu2 %v1739_v50 }
  0x69   : > { %739 = vmatpush.bf16.msra.mxu0 %v1378_v51  ;;  %1454 = vmatpush.bf16.msra.mxu3 %v1378_v51 }
  0x6a   : > { %788 = vmatpush.bf16.msra.mxu1 %v1386_v52 }
  0x6b   : > { %837 = vmatpush.bf16.msra.mxu2 %v1745_v53 }
  0x6d   : > { %740 = vmatpush.bf16.msra.mxu0 %v1377_v54  ;;  %1455 = vmatpush.bf16.msra.mxu3 %v1377_v54  ;;  %v1369_v54 = vld [vmem:[%s1697_s8 + $0x80] sm:$0xf0] }
  0x6e   : > { %789 = vmatpush.bf16.msra.mxu1 %v1385_v55 }
  0x6f   : > { %838 = vmatpush.bf16.msra.mxu2 %v1750_v56 }
  0x70   : > { %741 = vmatmul.bf16.vlgmr.msra.gmra.mxu0 %v1158_v1  ;;  %771 = vmatmul.bf16.vlgmr.msra.gmra.mxu3 %v1230_v2 }
  0x71   : > { %1456 = vmatpush.bf16.msrb.mxu3 %v1702_v34  ;;  %790 = vmatmul.bf16.vlgmr.msra.gmra.mxu1 %v1162_v3  ;;  %v1195_v34 = vld [vmem:[%s1697_s8 + $0x54] sm:$0xf0] }
  0x72   : > { %839 = vmatmul.bf16.vlgmr.msra.gmra.mxu2 %v1166_v4 }
  0x75   : > { %1457 = vmatpush.bf16.msrb.mxu3 %v1711_v37  ;;  %v1194_v37 = vor.u32 %v1363_v30, %v1193_v29  ;;  %v368_v29 = vld [vmem:[#allocation2 + $0x18] sm:$0xff] }
  0x79   : > { %1458 = vmatpush.bf16.msrb.mxu3 %v1390_v40 }
  0x7d   : > { %1459 = vmatpush.bf16.msrb.mxu3 %v1389_v43  ;;  %v1365_v43 = vld [vmem:[%s1697_s8 + $0x64] sm:$0xf] }
  0x80   : > { %746 = vmatmul.bf16.gmra.mxu0 %v1170_v13  ;;  %776 = vmatmul.bf16.gmra.mxu3 %v1242_v14  ;;  %v366_v13 = vld [vmem:[#allocation2] sm:$0xff] }
  0x81   : > { %1460 = vmatpush.bf16.msrb.mxu3 %v1388_v46  ;;  %795 = vmatmul.bf16.gmra.mxu1 %v1174_v15  ;;  %v1207_v46 = vld [vmem:[%s1697_s8 + $0x6c] sm:$0xf0] }
  0x82   : > { %844 = vmatmul.bf16.gmra.mxu2 %v1178_v16  ;;  %v1210_v51 = vor.u32 %v1365_v43, %v1207_v46 }
  0x85   : > { %1461 = vmatpush.bf16.msrb.mxu3 %v1387_v49 }
  0x89   : > { %1462 = vmatpush.bf16.msrb.mxu3 %v1386_v52 }
  0x8d   : > { %1463 = vmatpush.bf16.msrb.mxu3 %v1385_v55  ;;  %v1368_v55 = vld [vmem:[%s1697_s8 + $0x7c] sm:$0xf] }
  0x8e   : > { %v1222_v63 = vor.u32 %v1368_v55, %v1219_v58 }
  0x90   : > { %751 = vmatmul.bf16.gmra.mxu0 %v1182_v25  ;;  %820 = vmatmul.bf16.vlgmr.msrb.gmra.mxu3 %v1234_v26 }
  0x91   : > { %1464 = vmatpush.bf16.msra.mxu3 %v1705_v35  ;;  %800 = vmatmul.bf16.gmra.mxu1 %v1186_v27  ;;  %v1201_v35 = vld [vmem:[%s1697_s8 + $0x50] sm:$0xf] }
  0x92   : > { %849 = vmatmul.bf16.gmra.mxu2 %v1190_v28  ;;  %v1202_v40 = vor.u32 %v1364_v36, %v1201_v35 }
  0x95   : > { %1465 = vmatpush.bf16.msra.mxu3 %v1714_v38  ;;  %v1198_v38 = vor.u32 %v1362_v31, %v1195_v34 }
  0x99   : > { %1466 = vmatpush.bf16.msra.mxu3 %v1721_v41  ;;  %v1205_v41 = vld [vmem:[%s1697_s8 + $0x60] sm:$0xf] }
  0x9a   : > { %v1206_v49 = vor.u32 %v1366_v42, %v1205_v41 }
  0x9d   : > { %1467 = vmatpush.bf16.msra.mxu3 %v1727_v44  ;;  %v1237_v44 = vld [vmem:[%s1697_s8 + $0x98] sm:$0xf] }
  0xa0   : > { %756 = vmatmul.bf16.gmra.mxu0 %v1194_v37  ;;  %825 = vmatmul.bf16.gmra.mxu3 %v1246_v39  ;;  %v369_v37 = vld [vmem:[#allocation2 + $0x50] sm:$0xff] }
  0xa1   : > { %1468 = vmatpush.bf16.msra.mxu3 %v1733_v47  ;;  %805 = vmatmul.bf16.gmra.mxu1 %v1198_v38  ;;  %v1213_v47 = vld [vmem:[%s1697_s8 + $0x68] sm:$0xf] }
  0xa2   : > { %854 = vmatmul.bf16.gmra.mxu2 %v1202_v40  ;;  %v1214_v52 = vor.u32 %v1367_v48, %v1213_v47 }
  0xa5   : > { %1469 = vmatpush.bf16.msra.mxu3 %v1739_v50  ;;  %v1238_v50 = vor.u32 %v1373_v45, %v1237_v44  ;;  %v370_v45 = vld [vmem:[#allocation2 + $0x68] sm:$0xff] }
  0xa9   : > { %1470 = vmatpush.bf16.msra.mxu3 %v1745_v53  ;;  %v1217_v53 = vld [vmem:[%s1697_s8 + $0x78] sm:$0xf] }
  0xaa   : > { %v1218_v61 = vor.u32 %v1369_v54, %v1217_v53  ;;  %v371_v53 = vld [vmem:[#allocation2 + $0x8] sm:$0xff] }
  0xad   : > { %1471 = vmatpush.bf16.msra.mxu3 %v1750_v56  ;;  %v1376_v56 = vld [vmem:[%s1697_s8 + $0xb8] sm:$0xf0] }
  0xae   : > { %v1250_v62 = vor.u32 %v1376_v56, %v1249_v57 }
  0xb0   : > { %761 = vmatmul.bf16.gmra.mxu0 %v1206_v49  ;;  %869 = vmatmul.bf16.vlgmr.msra.gmra.mxu3 %v1238_v50 }
  0xb1   : > { %810 = vmatmul.bf16.gmra.mxu1 %v1210_v51 }
  0xb2   : > { %859 = vmatmul.bf16.gmra.mxu2 %v1214_v52 }
  0xc0   : > { %766 = vmatmul.bf16.gmra.mxu0 %v1218_v61  ;;  %874 = vmatmul.bf16.gmra.mxu3 %v1250_v62  ;;  %v372_v61 = vld [vmem:[#allocation2 + $0x48] sm:$0xff] }
  0xc1   : > { %815 = vmatmul.bf16.gmra.mxu1 %v1222_v63 }
  0xc2   : > { %864 = vmatmul.bf16.gmra.mxu2 %v1226_v0 }
  0xed   : > { %v742_v1 = vpop.f32.mrf.mxu0 }
  0xee   : > { %v791_v2 = vpop.f32.mrf.mxu1 }
  0xef   : > { %v792_v3 = vadd.f32 %v791_v2, %v742_v1 }
  0xf3   : > { %v1812_v4 = vpop.f32.mrf.mxu3 }
  0xf5   : > { %v840_v6 = vpop.f32.mrf.mxu2  ;;  %v744_v8 = vpop.f32.mrf.mxu0 }
  0xf6   : > { %v841_v7 = vadd.f32 %v840_v6, %v792_v3  ;;  %v793_v9 = vpop.f32.mrf.mxu1  ;;  %v377_v6 = vld [vmem:[#allocation2 + $0x60] sm:$0xff] }
  0xf7   : > { %v794_v11 = vadd.f32 %v793_v9, %v744_v8  ;;  %v373_v8 = vld [vmem:[#allocation2 + $0x40] sm:$0xff] }
  0xf8   : > { %v880_v10 = vadd.f32 %v841_v7, %v365_v5 }
  0xfa   : > { %896 = vst [vmem:[#allocation2 + $0x30] sm:$0xff] %v880_v10 }
  0xfb   : > { %v1814_v12 = vpop.f32.mrf.mxu3 }
  0xfd   : > { %v842_v14 = vpop.f32.mrf.mxu2  ;;  %v747_v16 = vpop.f32.mrf.mxu0 }
  0xfe   : > { %v843_v15 = vadd.f32 %v842_v14, %v794_v11  ;;  %v796_v17 = vpop.f32.mrf.mxu1 }
  0xff   : > { %v797_v19 = vadd.f32 %v796_v17, %v747_v16 }
 0x100   : > { %v881_v18 = vadd.f32 %v843_v15, %v366_v13 }
 0x102   : > { %897 = vst [vmem:[#allocation2] sm:$0xff] %v881_v18 }
 0x103   : > { %v1816_v20 = vpop.f32.mrf.mxu3 }
 0x105   : > { %v845_v22 = vpop.f32.mrf.mxu2  ;;  %v749_v24 = vpop.f32.mrf.mxu0 }
 0x106   : > { %v846_v23 = vadd.f32 %v845_v22, %v797_v19  ;;  %v798_v25 = vpop.f32.mrf.mxu1  ;;  %v378_v19 = vld [vmem:[#allocation2 + $0x70] sm:$0xff]  ;;  %v374_v22 = vld [vmem:[#allocation2 + $0x20] sm:$0xff] }
 0x107   : > { %v799_v27 = vadd.f32 %v798_v25, %v749_v24 }
 0x108   : > { %v882_v26 = vadd.f32 %v846_v23, %v367_v21 }
 0x10a   : > { %898 = vst [vmem:[#allocation2 + $0x58] sm:$0xff] %v882_v26 }
 0x10b   : > { %v1818_v28 = vpop.f32.mrf.mxu3 }
 0x10d   : > { %v847_v30 = vpop.f32.mrf.mxu2  ;;  %v752_v32 = vpop.f32.mrf.mxu0 }
 0x10e   : > { %v848_v31 = vadd.f32 %v847_v30, %v799_v27  ;;  %v801_v33 = vpop.f32.mrf.mxu1 }
 0x10f   : > { %v802_v35 = vadd.f32 %v801_v33, %v752_v32  ;;  %v379_v32 = vld [vmem:[#allocation2 + $0x78] sm:$0xff] }
 0x110   : > { %v883_v34 = vadd.f32 %v848_v31, %v368_v29 }
 0x112   : > { %899 = vst [vmem:[#allocation2 + $0x18] sm:$0xff] %v883_v34  ;;  %v375_v34 = vld [vmem:[#allocation2 + $0x10] sm:$0xff] }
 0x113   : > { %v821_v36 = vpop.f32.mrf.mxu3 }
 0x114   : > { %v822_v5 = vadd.f32 %v821_v36, %v1812_v4 }
 0x115   : > { %v850_v39 = vpop.f32.mrf.mxu2  ;;  %v754_v40 = vpop.f32.mrf.mxu0 }
 0x116   : > { %v851_v38 = vadd.f32 %v850_v39, %v802_v35  ;;  %v803_v41 = vpop.f32.mrf.mxu1 }
 0x117   : > { %v804_v43 = vadd.f32 %v803_v41, %v754_v40 }
 0x118   : > { %v884_v42 = vadd.f32 %v851_v38, %v369_v37 }
 0x11a   : > { %900 = vst [vmem:[#allocation2 + $0x50] sm:$0xff] %v884_v42 }
 0x11b   : > { %v823_v44 = vpop.f32.mrf.mxu3 }
 0x11c   : > { %v824_v17 = vadd.f32 %v823_v44, %v1814_v12 }
 0x11d   : > { %v852_v46 = vpop.f32.mrf.mxu2  ;;  %v757_v48 = vpop.f32.mrf.mxu0 }
 0x11e   : > { %v853_v47 = vadd.f32 %v852_v46, %v804_v43  ;;  %v806_v49 = vpop.f32.mrf.mxu1  ;;  %v380_v43 = vld [vmem:[#allocation2 + $0x28] sm:$0xff] }
 0x11f   : > { %v807_v51 = vadd.f32 %v806_v49, %v757_v48 }
 0x120   : > { %v885_v50 = vadd.f32 %v853_v47, %v370_v45  ;;  %v376_v45 = vld [vmem:[#allocation2 + $0x38] sm:$0xff] }
 0x122   : > { %901 = vst [vmem:[#allocation2 + $0x68] sm:$0xff] %v885_v50 }
 0x123   : > { %v826_v52 = vpop.f32.mrf.mxu3 }
 0x124   : > { %v827_v31 = vadd.f32 %v826_v52, %v1816_v20 }
 0x125   : > { %v855_v54 = vpop.f32.mrf.mxu2  ;;  %v759_v57 = vpop.f32.mrf.mxu0 }
 0x126   : > { %v856_v55 = vadd.f32 %v855_v54, %v807_v51  ;;  %v808_v56 = vpop.f32.mrf.mxu1 }
 0x127   : > { %v809_v59 = vadd.f32 %v808_v56, %v759_v57 }
 0x128   : > { %v886_v58 = vadd.f32 %v856_v55, %v371_v53 }
 0x12a   : > { %902 = vst [vmem:[#allocation2 + $0x8] sm:$0xff] %v886_v58 }
 0x12b   : > { %v828_v60 = vpop.f32.mrf.mxu3 }
 0x12c   : > { %v829_v41 = vadd.f32 %v828_v60, %v1818_v28 }
 0x12d   : > { %v857_v62 = vpop.f32.mrf.mxu2  ;;  %v762_v0 = vpop.f32.mrf.mxu0 }
 0x12e   : > { %v858_v63 = vadd.f32 %v857_v62, %v809_v59  ;;  %v811_v1 = vpop.f32.mrf.mxu1 }
 0x12f   : > { %v812_v3 = vadd.f32 %v811_v1, %v762_v0 }
 0x130   : > { %v887_v2 = vadd.f32 %v858_v63, %v372_v61 }
 0x132   : > { %903 = vst [vmem:[#allocation2 + $0x48] sm:$0xff] %v887_v2 }
 0x133   : > { %v870_v7 = vpop.f32.mrf.mxu3 }
 0x134   : > { %v871_v10 = vadd.f32 %v870_v7, %v822_v5 }
 0x135   : > { %v860_v9 = vpop.f32.mrf.mxu2  ;;  %v764_v13 = vpop.f32.mrf.mxu0 }
 0x136   : > { %v861_v11 = vadd.f32 %v860_v9, %v812_v3  ;;  %v892_v14 = vadd.f32 %v871_v10, %v377_v6  ;;  %v813_v15 = vpop.f32.mrf.mxu1 }
 0x137   : > { %v814_v18 = vadd.f32 %v813_v15, %v764_v13 }
 0x138   : > { %v888_v16 = vadd.f32 %v861_v11, %v373_v8  ;;  %908 = vst [vmem:[#allocation2 + $0x60] sm:$0xff] %v892_v14 }
 0x13a   : > { %904 = vst [vmem:[#allocation2 + $0x40] sm:$0xff] %v888_v16 }
 0x13b   : > { %v872_v21 = vpop.f32.mrf.mxu3 }
 0x13c   : > { %v873_v4 = vadd.f32 %v872_v21, %v824_v17 }
 0x13d   : > { %v862_v23 = vpop.f32.mrf.mxu2  ;;  %v767_v26 = vpop.f32.mrf.mxu0 }
 0x13e   : > { %v863_v24 = vadd.f32 %v862_v23, %v814_v18  ;;  %v893_v25 = vadd.f32 %v873_v4, %v378_v19  ;;  %v816_v27 = vpop.f32.mrf.mxu1 }
 0x13f   : > { %v817_v30 = vadd.f32 %v816_v27, %v767_v26 }
 0x140   : > { %v889_v29 = vadd.f32 %v863_v24, %v374_v22  ;;  %909 = vst [vmem:[#allocation2 + $0x70] sm:$0xff] %v893_v25 }
 0x142   : > { %905 = vst [vmem:[#allocation2 + $0x20] sm:$0xff] %v889_v29 }
 0x143   : > { %v875_v33 = vpop.f32.mrf.mxu3 }
 0x144   : > { %v876_v35 = vadd.f32 %v875_v33, %v827_v31 }
 0x145   : > { %v865_v12 = vpop.f32.mrf.mxu2  ;;  %v769_v38 = vpop.f32.mrf.mxu0 }
 0x146   : > { %v866_v36 = vadd.f32 %v865_v12, %v817_v30  ;;  %v894_v37 = vadd.f32 %v876_v35, %v379_v32  ;;  %v818_v40 = vpop.f32.mrf.mxu1 }
 0x147   : > { %v819_v42 = vadd.f32 %v818_v40, %v769_v38 }
 0x148   : > { %v890_v39 = vadd.f32 %v866_v36, %v375_v34  ;;  %910 = vst [vmem:[#allocation2 + $0x78] sm:$0xff] %v894_v37 }
 0x14a   : > { %906 = vst [vmem:[#allocation2 + $0x10] sm:$0xff] %v890_v39 }
 0x14b   : > { %v877_v44 = vpop.f32.mrf.mxu3 }
 0x14c   : > { %v878_v20 = vadd.f32 %v877_v44, %v829_v41 }
 0x14d   : > { %v867_v46 = vpop.f32.mrf.mxu2 }
 0x14e   : > { %v868_v47 = vadd.f32 %v867_v46, %v819_v42  ;;  %v895_v48 = vadd.f32 %v878_v20, %v380_v43  ;;  %915 = sbr.rel (%p1347_p11) target bundleno = 355 (0x163), region = 66 }
 0x150   : > { %v891_v49 = vadd.f32 %v868_v47, %v376_v45  ;;  %911 = vst [vmem:[#allocation2 + $0x28] sm:$0xff] %v895_v48 }
 0x152   : > { %907 = vst [vmem:[#allocation2 + $0x38] sm:$0xff] %v891_v49 }
 0x153   : > { %v916_v50 = vld [vmem:[#allocation2 + $0x30] sm:$0xff]  ;;  %v917_v51 = vld [vmem:[#allocation2] sm:$0xff]  ;;  %v918_v52 = vld [vmem:[#allocation2 + $0x58] sm:$0xff] }
 0x154   : > { %v1515_v28 = vld [vmem:[%s1869_s2] ss:$0 sm:$0xff]  ;;  %v919_v53 = vld [vmem:[#allocation2 + $0x18] sm:$0xff]  ;;  %v920_v54 = vld [vmem:[#allocation2 + $0x50] sm:$0xff] }
 0x155   : > { %v921_v55 = vld [vmem:[#allocation2 + $0x68] sm:$0xff]  ;;  %v936_v56 = vadd.f32 %v1515_v28, %v916_v50  ;;  %v937_v58 = vadd.f32 %v1515_v28, %v917_v51  ;;  %v938_v59 = vadd.f32 %v1515_v28, %v918_v52  ;;  %v939_v60 = vadd.f32 %v1515_v28, %v919_v53  ;;  %v924_v2 = vld [vmem:[#allocation2 + $0x40] sm:$0xff]  ;;  %v926_v9 = vld [vmem:[#allocation2 + $0x10] sm:$0xff] }
 0x156   : > { %v922_v57 = vld [vmem:[#allocation2 + $0x8] sm:$0xff]  ;;  %v940_v62 = vadd.f32 %v1515_v28, %v920_v54  ;;  %v941_v63 = vadd.f32 %v1515_v28, %v921_v55  ;;  %v925_v3 = vld [vmem:[#allocation2 + $0x20] sm:$0xff]  ;;  %v929_v17 = vld [vmem:[#allocation2 + $0x70] sm:$0xff]  ;;  %v944_v21 = vadd.f32 %v1515_v28, %v924_v2  ;;  %v946_v26 = vadd.f32 %v1515_v28, %v926_v9 }
 0x157   : > { %v923_v61 = vld [vmem:[#allocation2 + $0x48] sm:$0xff]  ;;  %v942_v0 = vadd.f32 %v1515_v28, %v922_v57  ;;  %v952_v5 = vmax.f32 %v936_v56, 0.0  ;;  %v953_v6 = vmax.f32 %v937_v58, 0.0  ;;  %v954_v7 = vmax.f32 %v938_v59, 0.0  ;;  %v928_v16 = vld [vmem:[#allocation2 + $0x60] sm:$0xff]  ;;  %v930_v23 = vld [vmem:[#allocation2 + $0x78] sm:$0xff] }
 0x158   : > { %v943_v1 = vadd.f32 %v1515_v28, %v923_v61  ;;  %v955_v8 = vmax.f32 %v939_v60, 0.0  ;;  %v956_v11 = vmax.f32 %v940_v62, 0.0  ;;  %v957_v13 = vmax.f32 %v941_v63, 0.0  ;;  %v931_v4 = vld [vmem:[#allocation2 + $0x28] sm:$0xff] }
 0x159   : > { %v927_v10 = vld [vmem:[#allocation2 + $0x38] sm:$0xff]  ;;  %v958_v14 = vmax.f32 %v942_v0, 0.0  ;;  %v1404_v18 = vpack.c.bf16 %v953_v6, %v952_v5  ;;  %v945_v22 = vadd.f32 %v1515_v28, %v925_v3  ;;  %v960_v29 = vmax.f32 %v944_v21, 0.0 }
 0x15a   : > { %v959_v15 = vmax.f32 %v943_v1, 0.0  ;;  %v1409_v19 = vpack.c.bf16 %v955_v8, %v954_v7  ;;  %v1414_v24 = vpack.c.bf16 %v957_v13, %v956_v11  ;;  %v947_v27 = vadd.f32 %v1515_v28, %v927_v10 }
 0x15b   : > { %1405 = vst [vmem:[%s1870_s3] sm:$0xff] %v1404_v18   ;;  %v961_v30 = vmax.f32 %v945_v22, 0.0  ;;  %v948_v31 = vadd.f32 %v1515_v28, %v928_v16  ;;  %v949_v32 = vadd.f32 %v1515_v28, %v929_v17  ;;  %v962_v33 = vmax.f32 %v946_v26, 0.0 }
 0x15c   : > { %v1419_v25 = vpack.c.bf16 %v959_v15, %v958_v14  ;;  %1441 = vst [vmem:[%s1870_s3 + $0x8] sm:$0xff] %v1409_v19   ;;  %v963_v34 = vmax.f32 %v947_v27, 0.0  ;;  %v950_v12 = vadd.f32 %v1515_v28, %v930_v23  ;;  %v951_v35 = vadd.f32 %v1515_v28, %v931_v4 }
 0x15d   : > { %1442 = vst [vmem:[%s1870_s3 + $0x10] sm:$0xff] %v1414_v24   ;;  %v1424_v36 = vpack.c.bf16 %v961_v30, %v960_v29  ;;  %v964_v37 = vmax.f32 %v948_v31, 0.0  ;;  %v965_v39 = vmax.f32 %v949_v32, 0.0 }
 0x15e   : > { %1443 = vst [vmem:[%s1870_s3 + $0x18] sm:$0xff] %v1419_v25   ;;  %v1429_v38 = vpack.c.bf16 %v963_v34, %v962_v33  ;;  %v966_v40 = vmax.f32 %v950_v12, 0.0  ;;  %v967_v41 = vmax.f32 %v951_v35, 0.0 }
 0x15f   : > { %1444 = vst [vmem:[%s1870_s3 + $0x20] sm:$0xff] %v1424_v36   ;;  %v1434_v42 = vpack.c.bf16 %v965_v39, %v964_v37 }
 0x160   : > { %1445 = vst [vmem:[%s1870_s3 + $0x28] sm:$0xff] %v1429_v38   ;;  %v1439_v43 = vpack.c.bf16 %v967_v41, %v966_v40 }
 0x161   : > { %1446 = vst [vmem:[%s1870_s3 + $0x30] sm:$0xff] %v1434_v42  }
 0x162   : > { %1447 = vst [vmem:[%s1870_s3 + $0x38] sm:$0xff] %v1439_v43  }
 0x163 PF: > { %s13_s16 = sadd.s32 1, %s1554_s16   ;;  %s1871_s12 = smov %s1542_s13 }
 0x164   : > { %p10_p12 = scmp.ge.s32.totalorder %s13_s16, 5   ;;  %s1872_s13 = smov %s1612_s20 }
 0x165   : > { %s1873_s14 = smov %s1550_s15  ;;  %s1874_s15 = smov %s1876_s17 }
 0x166   :  { %12 = sbr.rel (!%p10_p12) target bundleno = 3 (0x3), region = 113 }

// kernel: _lambda_.46
= control target key start
LH: loop header
LB: loop body
LE: loop exit
PB: predicated region body
PF: predicated region fallthrough
CT: control target
= control target key end

     0   :  { %s876_s1 = inlined_call_operand.vmem [shape: bf16[128,256], index: 1, kind: input, shape index: {}]   ;;  %s877_s0 = inlined_call_operand.vmem [shape: bf16[128,128], index: 0, kind: input, shape index: {}]   ;;  %s878_s2 = inlined_call_operand.vmem [shape: f32[1,256], index: 2, kind: input, shape index: {}]   ;;  %s879_s3 = inlined_call_operand.vmem [shape: bf16[128,256], index: 3, kind: output, shape index: {}]  }
   0x1   :  { %v603_v0 = vld [vmem:[%s876_s1 + $0x70] sm:$0xf]  ;;  %v632_v1 = vld [vmem:[%s876_s1 + $0x74] sm:$0xf0]  ;;  %v631_v2 = vld [vmem:[%s876_s1 + $0x74] sm:$0xf] }
   0x2   :  { %v604_v3 = vor.u32 %v632_v1, %v603_v0  ;;  %v605_v4 = vld [vmem:[%s876_s1 + $0x78] sm:$0xf0]  ;;  %v595_v5 = vld [vmem:[%s876_s1 + $0x60] sm:$0xf]  ;;  %v630_v6 = vld [vmem:[%s876_s1 + $0x64] sm:$0xf0] }
   0x3   :  { %v608_v7 = vor.u32 %v631_v2, %v605_v4  ;;  %v629_v8 = vld [vmem:[%s876_s1 + $0x64] sm:$0xf]  ;;  %v597_v9 = vld [vmem:[%s876_s1 + $0x68] sm:$0xf0]  ;;  %v596_v10 = vor.u32 %v630_v6, %v595_v5  ;;  %v587_v12 = vld [vmem:[%s876_s1 + $0x50] sm:$0xf] }
   0x4   :  { %242 = vmatpush.bf16.msra.mxu0 %v604_v3  ;;  %633 = vmatpush.bf16.msra.mxu2 %v604_v3  ;;  %v600_v11 = vor.u32 %v629_v8, %v597_v9  ;;  %v628_v13 = vld [vmem:[%s876_s1 + $0x54] sm:$0xf0]  ;;  %v627_v14 = vld [vmem:[%s876_s1 + $0x54] sm:$0xf]  ;;  %v589_v15 = vld [vmem:[%s876_s1 + $0x58] sm:$0xf0] }
   0x5   :  { %291 = vmatpush.bf16.msra.mxu1 %v608_v7  ;;  %641 = vmatpush.bf16.msra.mxu3 %v608_v7  ;;  %v588_v16 = vor.u32 %v628_v13, %v587_v12  ;;  %v592_v17 = vor.u32 %v627_v14, %v589_v15  ;;  %v579_v18 = vld [vmem:[%s876_s1 + $0x40] sm:$0xf]  ;;  %v626_v19 = vld [vmem:[%s876_s1 + $0x44] sm:$0xf0]  ;;  %v625_v20 = vld [vmem:[%s876_s1 + $0x44] sm:$0xf] }
   0x6   :  { %v581_v21 = vld [vmem:[%s876_s1 + $0x48] sm:$0xf0]  ;;  %v580_v22 = vor.u32 %v626_v19, %v579_v18  ;;  %v571_v24 = vld [vmem:[%s876_s1 + $0x30] sm:$0xf]  ;;  %v624_v25 = vld [vmem:[%s876_s1 + $0x34] sm:$0xf0] }
   0x7   :  { %v584_v23 = vor.u32 %v625_v20, %v581_v21  ;;  %v623_v26 = vld [vmem:[%s876_s1 + $0x34] sm:$0xf]  ;;  %v573_v27 = vld [vmem:[%s876_s1 + $0x38] sm:$0xf0]  ;;  %v572_v28 = vor.u32 %v624_v25, %v571_v24  ;;  %v563_v30 = vld [vmem:[%s876_s1 + $0x20] sm:$0xf] }
   0x8   :  { %243 = vmatpush.bf16.msra.mxu0 %v596_v10  ;;  %634 = vmatpush.bf16.msra.mxu2 %v596_v10  ;;  %v576_v29 = vor.u32 %v623_v26, %v573_v27  ;;  %v622_v31 = vld [vmem:[%s876_s1 + $0x24] sm:$0xf0]  ;;  %v621_v32 = vld [vmem:[%s876_s1 + $0x24] sm:$0xf]  ;;  %v565_v33 = vld [vmem:[%s876_s1 + $0x28] sm:$0xf0] }
   0x9   :  { %292 = vmatpush.bf16.msra.mxu1 %v600_v11  ;;  %642 = vmatpush.bf16.msra.mxu3 %v600_v11  ;;  %v564_v34 = vor.u32 %v622_v31, %v563_v30  ;;  %v568_v35 = vor.u32 %v621_v32, %v565_v33  ;;  %v555_v36 = vld [vmem:[%s876_s1 + $0x10] sm:$0xf]  ;;  %v620_v37 = vld [vmem:[%s876_s1 + $0x14] sm:$0xf0]  ;;  %v619_v38 = vld [vmem:[%s876_s1 + $0x14] sm:$0xf] }
   0xa   :  { %v557_v39 = vld [vmem:[%s876_s1 + $0x18] sm:$0xf0]  ;;  %v556_v40 = vor.u32 %v620_v37, %v555_v36  ;;  %v547_v42 = vld [vmem:[%s876_s1] sm:$0xf]  ;;  %v618_v43 = vld [vmem:[%s876_s1 + $0x4] sm:$0xf0] }
   0xb   :  { %v560_v41 = vor.u32 %v619_v38, %v557_v39  ;;  %v617_v44 = vld [vmem:[%s876_s1 + $0x4] sm:$0xf]  ;;  %v549_v45 = vld [vmem:[%s876_s1 + $0x8] sm:$0xf0]  ;;  %v548_v46 = vor.u32 %v618_v43, %v547_v42  ;;  %v611_v52 = vld [vmem:[%s877_s0 + $0x10] sm:$0xff] }
   0xc   :  { %244 = vmatpush.bf16.msra.mxu0 %v588_v16  ;;  %635 = vmatpush.bf16.msra.mxu2 %v588_v16  ;;  %v552_v47 = vor.u32 %v617_v44, %v549_v45  ;;  %v609_v48 = vld [vmem:[%s877_s0] sm:$0xff]  ;;  %v610_v50 = vld [vmem:[%s877_s0 + $0x8] sm:$0xff]  ;;  %v615_v53 = vld [vmem:[%s877_s0 + $0x30] sm:$0xff] }
   0xd   :  { %293 = vmatpush.bf16.msra.mxu1 %v592_v17  ;;  %643 = vmatpush.bf16.msra.mxu3 %v592_v17  ;;  %v613_v49 = vld [vmem:[%s877_s0 + $0x20] sm:$0xff]  ;;  %v614_v51 = vld [vmem:[%s877_s0 + $0x28] sm:$0xff]  ;;  %v612_v54 = vld [vmem:[%s877_s0 + $0x18] sm:$0xff] }
   0xe   :  { %v616_v55 = vld [vmem:[%s877_s0 + $0x38] sm:$0xff]  ;;  %v439_v56 = vld [vmem:[%s878_s2] sm:$0x3] }
   0xf   :  { %v792_v57 = vperm.slane %v439_v56, 0  ;;  %v794_v58 = vperm.slane %v439_v56, 1 }
  0x10   :  { %245 = vmatpush.bf16.msra.mxu0 %v580_v22  ;;  %636 = vmatpush.bf16.msra.mxu2 %v580_v22 }
  0x11   :  { %294 = vmatpush.bf16.msra.mxu1 %v584_v23  ;;  %644 = vmatpush.bf16.msra.mxu3 %v584_v23 }
  0x14   :  { %246 = vmatpush.bf16.msra.mxu0 %v572_v28  ;;  %637 = vmatpush.bf16.msra.mxu2 %v572_v28 }
  0x15   :  { %295 = vmatpush.bf16.msra.mxu1 %v576_v29  ;;  %645 = vmatpush.bf16.msra.mxu3 %v576_v29 }
  0x18   :  { %247 = vmatpush.bf16.msra.mxu0 %v564_v34  ;;  %638 = vmatpush.bf16.msra.mxu2 %v564_v34 }
  0x19   :  { %296 = vmatpush.bf16.msra.mxu1 %v568_v35  ;;  %646 = vmatpush.bf16.msra.mxu3 %v568_v35 }
  0x1c   :  { %248 = vmatpush.bf16.msra.mxu0 %v556_v40  ;;  %639 = vmatpush.bf16.msra.mxu2 %v556_v40 }
  0x1d   :  { %297 = vmatpush.bf16.msra.mxu1 %v560_v41  ;;  %647 = vmatpush.bf16.msra.mxu3 %v560_v41 }
  0x20   :  { %249 = vmatpush.bf16.msra.mxu0 %v548_v46  ;;  %640 = vmatpush.bf16.msra.mxu2 %v548_v46 }
  0x21   :  { %298 = vmatpush.bf16.msra.mxu1 %v552_v47  ;;  %648 = vmatpush.bf16.msra.mxu3 %v552_v47 }
  0x23   :  { %250 = vmatmul.bf16.vlgmr.msra.gmra.mxu0 %v609_v48  ;;  %270 = vmatmul.bf16.vlgmr.msra.gmra.mxu2 %v613_v49 }
  0x24   :  { %299 = vmatmul.bf16.vlgmr.msra.gmra.mxu1 %v609_v48  ;;  %319 = vmatmul.bf16.vlgmr.msra.gmra.mxu3 %v613_v49 }
  0x33   :  { %255 = vmatmul.bf16.gmra.mxu0 %v610_v50  ;;  %275 = vmatmul.bf16.gmra.mxu2 %v614_v51 }
  0x34   :  { %304 = vmatmul.bf16.gmra.mxu1 %v610_v50  ;;  %324 = vmatmul.bf16.gmra.mxu3 %v614_v51 }
  0x43   :  { %260 = vmatmul.bf16.gmra.mxu0 %v611_v52  ;;  %280 = vmatmul.bf16.gmra.mxu2 %v615_v53 }
  0x44   :  { %309 = vmatmul.bf16.gmra.mxu1 %v611_v52  ;;  %329 = vmatmul.bf16.gmra.mxu3 %v615_v53 }
  0x53   :  { %265 = vmatmul.bf16.gmra.mxu0 %v612_v54  ;;  %285 = vmatmul.bf16.gmra.mxu2 %v616_v55 }
  0x54   :  { %314 = vmatmul.bf16.gmra.mxu1 %v612_v54  ;;  %334 = vmatmul.bf16.gmra.mxu3 %v616_v55 }
  0xa0   :  { %v251_v59 = vpop.f32.mrf.mxu0 }
  0xa1   :  { %v445_v60 = vadd.f32 %v792_v57, %v251_v59  ;;  %v300_v61 = vpop.f32.mrf.mxu1 }
  0xa2   :  { %v446_v62 = vadd.f32 %v794_v58, %v300_v61 }
  0xa4   :  { %v477_v63 = vpack.c.bf16 %v446_v62, %v445_v60 }
  0xa6   :  { %493 = vst [vmem:[%s879_s3] sm:$0xff] %v477_v63  ;;  %v271_v0 = vpop.f32.mrf.mxu2 }
  0xa7   :  { %v461_v1 = vadd.f32 %v792_v57, %v271_v0  ;;  %v320_v2 = vpop.f32.mrf.mxu3 }
  0xa8   :  { %v462_v3 = vadd.f32 %v794_v58, %v320_v2  ;;  %v253_v4 = vpop.f32.mrf.mxu0 }
  0xa9   :  { %v447_v5 = vadd.f32 %v792_v57, %v253_v4  ;;  %v302_v6 = vpop.f32.mrf.mxu1 }
  0xaa   :  { %v485_v7 = vpack.c.bf16 %v462_v3, %v461_v1  ;;  %v448_v8 = vadd.f32 %v794_v58, %v302_v6 }
  0xac   :  { %501 = vst [vmem:[%s879_s3 + $0x40] sm:$0xff] %v485_v7  ;;  %v478_v9 = vpack.c.bf16 %v448_v8, %v447_v5 }
  0xae   :  { %494 = vst [vmem:[%s879_s3 + $0x8] sm:$0xff] %v478_v9  ;;  %v273_v10 = vpop.f32.mrf.mxu2 }
  0xaf   :  { %v463_v11 = vadd.f32 %v792_v57, %v273_v10  ;;  %v322_v12 = vpop.f32.mrf.mxu3 }
  0xb0   :  { %v464_v13 = vadd.f32 %v794_v58, %v322_v12  ;;  %v256_v14 = vpop.f32.mrf.mxu0 }
  0xb1   :  { %v449_v15 = vadd.f32 %v792_v57, %v256_v14  ;;  %v305_v16 = vpop.f32.mrf.mxu1 }
  0xb2   :  { %v486_v17 = vpack.c.bf16 %v464_v13, %v463_v11  ;;  %v450_v18 = vadd.f32 %v794_v58, %v305_v16 }
  0xb4   :  { %502 = vst [vmem:[%s879_s3 + $0x48] sm:$0xff] %v486_v17  ;;  %v479_v19 = vpack.c.bf16 %v450_v18, %v449_v15 }
  0xb6   :  { %495 = vst [vmem:[%s879_s3 + $0x10] sm:$0xff] %v479_v19  ;;  %v276_v20 = vpop.f32.mrf.mxu2 }
  0xb7   :  { %v465_v21 = vadd.f32 %v792_v57, %v276_v20  ;;  %v325_v22 = vpop.f32.mrf.mxu3 }
  0xb8   :  { %v466_v23 = vadd.f32 %v794_v58, %v325_v22  ;;  %v258_v24 = vpop.f32.mrf.mxu0 }
  0xb9   :  { %v451_v25 = vadd.f32 %v792_v57, %v258_v24  ;;  %v307_v26 = vpop.f32.mrf.mxu1 }
  0xba   :  { %v487_v27 = vpack.c.bf16 %v466_v23, %v465_v21  ;;  %v452_v28 = vadd.f32 %v794_v58, %v307_v26 }
  0xbc   :  { %503 = vst [vmem:[%s879_s3 + $0x50] sm:$0xff] %v487_v27  ;;  %v480_v29 = vpack.c.bf16 %v452_v28, %v451_v25 }
  0xbe   :  { %496 = vst [vmem:[%s879_s3 + $0x18] sm:$0xff] %v480_v29  ;;  %v278_v30 = vpop.f32.mrf.mxu2 }
  0xbf   :  { %v467_v31 = vadd.f32 %v792_v57, %v278_v30  ;;  %v327_v32 = vpop.f32.mrf.mxu3 }
  0xc0   :  { %v468_v33 = vadd.f32 %v794_v58, %v327_v32  ;;  %v261_v34 = vpop.f32.mrf.mxu0 }
  0xc1   :  { %v453_v35 = vadd.f32 %v792_v57, %v261_v34  ;;  %v310_v36 = vpop.f32.mrf.mxu1 }
  0xc2   :  { %v488_v37 = vpack.c.bf16 %v468_v33, %v467_v31  ;;  %v454_v38 = vadd.f32 %v794_v58, %v310_v36 }
  0xc4   :  { %504 = vst [vmem:[%s879_s3 + $0x58] sm:$0xff] %v488_v37  ;;  %v481_v39 = vpack.c.bf16 %v454_v38, %v453_v35 }
  0xc6   :  { %497 = vst [vmem:[%s879_s3 + $0x20] sm:$0xff] %v481_v39  ;;  %v281_v40 = vpop.f32.mrf.mxu2 }
  0xc7   :  { %v469_v41 = vadd.f32 %v792_v57, %v281_v40  ;;  %v330_v42 = vpop.f32.mrf.mxu3 }
  0xc8   :  { %v470_v43 = vadd.f32 %v794_v58, %v330_v42  ;;  %v263_v44 = vpop.f32.mrf.mxu0 }
  0xc9   :  { %v455_v45 = vadd.f32 %v792_v57, %v263_v44  ;;  %v312_v46 = vpop.f32.mrf.mxu1 }
  0xca   :  { %v489_v47 = vpack.c.bf16 %v470_v43, %v469_v41  ;;  %v456_v48 = vadd.f32 %v794_v58, %v312_v46 }
  0xcc   :  { %505 = vst [vmem:[%s879_s3 + $0x60] sm:$0xff] %v489_v47  ;;  %v482_v49 = vpack.c.bf16 %v456_v48, %v455_v45 }
  0xce   :  { %498 = vst [vmem:[%s879_s3 + $0x28] sm:$0xff] %v482_v49  ;;  %v283_v50 = vpop.f32.mrf.mxu2 }
  0xcf   :  { %v471_v51 = vadd.f32 %v792_v57, %v283_v50  ;;  %v332_v52 = vpop.f32.mrf.mxu3 }
  0xd0   :  { %v472_v53 = vadd.f32 %v794_v58, %v332_v52  ;;  %v266_v54 = vpop.f32.mrf.mxu0 }
  0xd1   :  { %v457_v55 = vadd.f32 %v792_v57, %v266_v54  ;;  %v315_v56 = vpop.f32.mrf.mxu1 }
  0xd2   :  { %v490_v59 = vpack.c.bf16 %v472_v53, %v471_v51  ;;  %v458_v60 = vadd.f32 %v794_v58, %v315_v56 }
  0xd4   :  { %506 = vst [vmem:[%s879_s3 + $0x68] sm:$0xff] %v490_v59  ;;  %v483_v61 = vpack.c.bf16 %v458_v60, %v457_v55 }
  0xd6   :  { %499 = vst [vmem:[%s879_s3 + $0x30] sm:$0xff] %v483_v61  ;;  %v286_v62 = vpop.f32.mrf.mxu2 }
  0xd7   :  { %v473_v63 = vadd.f32 %v792_v57, %v286_v62  ;;  %v335_v0 = vpop.f32.mrf.mxu3 }
  0xd8   :  { %v474_v1 = vadd.f32 %v794_v58, %v335_v0  ;;  %v268_v2 = vpop.f32.mrf.mxu0 }
  0xd9   :  { %v459_v3 = vadd.f32 %v792_v57, %v268_v2  ;;  %v317_v4 = vpop.f32.mrf.mxu1 }
  0xda   :  { %v491_v5 = vpack.c.bf16 %v474_v1, %v473_v63  ;;  %v460_v6 = vadd.f32 %v794_v58, %v317_v4 }
  0xdc   :  { %507 = vst [vmem:[%s879_s3 + $0x70] sm:$0xff] %v491_v5  ;;  %v484_v7 = vpack.c.bf16 %v460_v6, %v459_v3 }
  0xde   :  { %500 = vst [vmem:[%s879_s3 + $0x38] sm:$0xff] %v484_v7  ;;  %v288_v8 = vpop.f32.mrf.mxu2 }
  0xdf   :  { %v475_v9 = vadd.f32 %v792_v57, %v288_v8  ;;  %v337_v10 = vpop.f32.mrf.mxu3 }
  0xe0   :  { %v476_v11 = vadd.f32 %v794_v58, %v337_v10 }
  0xe2   :  { %v492_v12 = vpack.c.bf16 %v476_v11, %v475_v9 }
  0xe4   :  { %508 = vst [vmem:[%s879_s3 + $0x78] sm:$0xff] %v492_v12 }

// kernel: _lambda_.49
= control target key start
LH: loop header
LB: loop body
LE: loop exit
PB: predicated region body
PF: predicated region fallthrough
CT: control target
= control target key end

     0   :  { %s1044_s1 = inlined_call_operand.vmem [shape: bf16[128,256], index: 1, kind: input, shape index: {}]   ;;  %s1045_s0 = inlined_call_operand.vmem [shape: bf16[128,128], index: 0, kind: input, shape index: {}]   ;;  %s1046_s2 = inlined_call_operand.vmem [shape: f32[1,256], index: 2, kind: input, shape index: {}]   ;;  %s1047_s3 = inlined_call_operand.vmem [shape: bf16[128,256], index: 3, kind: input, shape index: {}]   ;;  %s1048_s4 = inlined_call_operand.vmem [shape: bf16[128,256], index: 4, kind: output, shape index: {}]  }
   0x1   :  { %v718_v0 = vld [vmem:[%s1044_s1 + $0x70] sm:$0xf]  ;;  %v747_v1 = vld [vmem:[%s1044_s1 + $0x74] sm:$0xf0]  ;;  %v746_v2 = vld [vmem:[%s1044_s1 + $0x74] sm:$0xf] }
   0x2   :  { %v719_v3 = vor.u32 %v747_v1, %v718_v0  ;;  %v720_v4 = vld [vmem:[%s1044_s1 + $0x78] sm:$0xf0]  ;;  %v710_v5 = vld [vmem:[%s1044_s1 + $0x60] sm:$0xf]  ;;  %v745_v6 = vld [vmem:[%s1044_s1 + $0x64] sm:$0xf0] }
   0x3   :  { %v723_v7 = vor.u32 %v746_v2, %v720_v4  ;;  %v744_v8 = vld [vmem:[%s1044_s1 + $0x64] sm:$0xf]  ;;  %v712_v9 = vld [vmem:[%s1044_s1 + $0x68] sm:$0xf0]  ;;  %v711_v10 = vor.u32 %v745_v6, %v710_v5  ;;  %v702_v12 = vld [vmem:[%s1044_s1 + $0x50] sm:$0xf] }
   0x4   :  { %245 = vmatpush.bf16.msra.mxu0 %v719_v3  ;;  %748 = vmatpush.bf16.msra.mxu2 %v719_v3  ;;  %v715_v11 = vor.u32 %v744_v8, %v712_v9  ;;  %v743_v13 = vld [vmem:[%s1044_s1 + $0x54] sm:$0xf0]  ;;  %v742_v14 = vld [vmem:[%s1044_s1 + $0x54] sm:$0xf]  ;;  %v704_v15 = vld [vmem:[%s1044_s1 + $0x58] sm:$0xf0] }
   0x5   :  { %294 = vmatpush.bf16.msra.mxu1 %v723_v7  ;;  %756 = vmatpush.bf16.msra.mxu3 %v723_v7  ;;  %v703_v16 = vor.u32 %v743_v13, %v702_v12  ;;  %v707_v17 = vor.u32 %v742_v14, %v704_v15  ;;  %v694_v18 = vld [vmem:[%s1044_s1 + $0x40] sm:$0xf]  ;;  %v741_v19 = vld [vmem:[%s1044_s1 + $0x44] sm:$0xf0]  ;;  %v740_v20 = vld [vmem:[%s1044_s1 + $0x44] sm:$0xf] }
   0x6   :  { %v696_v21 = vld [vmem:[%s1044_s1 + $0x48] sm:$0xf0]  ;;  %v695_v22 = vor.u32 %v741_v19, %v694_v18  ;;  %v686_v24 = vld [vmem:[%s1044_s1 + $0x30] sm:$0xf]  ;;  %v739_v25 = vld [vmem:[%s1044_s1 + $0x34] sm:$0xf0] }
   0x7   :  { %v699_v23 = vor.u32 %v740_v20, %v696_v21  ;;  %v738_v26 = vld [vmem:[%s1044_s1 + $0x34] sm:$0xf]  ;;  %v688_v27 = vld [vmem:[%s1044_s1 + $0x38] sm:$0xf0]  ;;  %v687_v28 = vor.u32 %v739_v25, %v686_v24  ;;  %v678_v30 = vld [vmem:[%s1044_s1 + $0x20] sm:$0xf] }
   0x8   :  { %246 = vmatpush.bf16.msra.mxu0 %v711_v10  ;;  %749 = vmatpush.bf16.msra.mxu2 %v711_v10  ;;  %v691_v29 = vor.u32 %v738_v26, %v688_v27  ;;  %v737_v31 = vld [vmem:[%s1044_s1 + $0x24] sm:$0xf0]  ;;  %v736_v32 = vld [vmem:[%s1044_s1 + $0x24] sm:$0xf]  ;;  %v680_v33 = vld [vmem:[%s1044_s1 + $0x28] sm:$0xf0] }
   0x9   :  { %295 = vmatpush.bf16.msra.mxu1 %v715_v11  ;;  %757 = vmatpush.bf16.msra.mxu3 %v715_v11  ;;  %v679_v34 = vor.u32 %v737_v31, %v678_v30  ;;  %v683_v35 = vor.u32 %v736_v32, %v680_v33  ;;  %v670_v36 = vld [vmem:[%s1044_s1 + $0x10] sm:$0xf]  ;;  %v735_v37 = vld [vmem:[%s1044_s1 + $0x14] sm:$0xf0]  ;;  %v734_v38 = vld [vmem:[%s1044_s1 + $0x14] sm:$0xf] }
   0xa   :  { %v672_v39 = vld [vmem:[%s1044_s1 + $0x18] sm:$0xf0]  ;;  %v671_v40 = vor.u32 %v735_v37, %v670_v36  ;;  %v662_v42 = vld [vmem:[%s1044_s1] sm:$0xf]  ;;  %v733_v43 = vld [vmem:[%s1044_s1 + $0x4] sm:$0xf0] }
   0xb   :  { %v675_v41 = vor.u32 %v734_v38, %v672_v39  ;;  %v732_v44 = vld [vmem:[%s1044_s1 + $0x4] sm:$0xf]  ;;  %v664_v45 = vld [vmem:[%s1044_s1 + $0x8] sm:$0xf0]  ;;  %v663_v46 = vor.u32 %v733_v43, %v662_v42  ;;  %v726_v52 = vld [vmem:[%s1045_s0 + $0x10] sm:$0xff] }
   0xc   :  { %247 = vmatpush.bf16.msra.mxu0 %v703_v16  ;;  %750 = vmatpush.bf16.msra.mxu2 %v703_v16  ;;  %v667_v47 = vor.u32 %v732_v44, %v664_v45  ;;  %v724_v48 = vld [vmem:[%s1045_s0] sm:$0xff]  ;;  %v725_v50 = vld [vmem:[%s1045_s0 + $0x8] sm:$0xff]  ;;  %v730_v53 = vld [vmem:[%s1045_s0 + $0x30] sm:$0xff] }
   0xd   :  { %296 = vmatpush.bf16.msra.mxu1 %v707_v17  ;;  %758 = vmatpush.bf16.msra.mxu3 %v707_v17  ;;  %v728_v49 = vld [vmem:[%s1045_s0 + $0x20] sm:$0xff]  ;;  %v729_v51 = vld [vmem:[%s1045_s0 + $0x28] sm:$0xff]  ;;  %v727_v54 = vld [vmem:[%s1045_s0 + $0x18] sm:$0xff] }
   0xe   :  { %v731_v55 = vld [vmem:[%s1045_s0 + $0x38] sm:$0xff]  ;;  %v442_v56 = vld [vmem:[%s1046_s2] sm:$0x3]  ;;  %v481_v5 = vld [vmem:[%s1047_s3 + $0x8] sm:$0xff] }
   0xf   :  { %v480_v57 = vld [vmem:[%s1047_s3] sm:$0xff]  ;;  %v915_v58 = vperm.slane %v442_v56, 0  ;;  %v917_v59 = vperm.slane %v442_v56, 1  ;;  %v498_v13 = vunpack.c.l.bf16 %v481_v5  ;;  %v499_v17 = vunpack.c.h.bf16 %v481_v5 }
  0x10   :  { %248 = vmatpush.bf16.msra.mxu0 %v695_v22  ;;  %751 = vmatpush.bf16.msra.mxu2 %v695_v22  ;;  %v496_v60 = vunpack.c.l.bf16 %v480_v57  ;;  %v497_v62 = vunpack.c.h.bf16 %v480_v57  ;;  %v488_v2 = vld [vmem:[%s1047_s3 + $0x40] sm:$0xff] }
  0x11   :  { %297 = vmatpush.bf16.msra.mxu1 %v699_v23  ;;  %759 = vmatpush.bf16.msra.mxu3 %v699_v23  ;;  %v512_v7 = vunpack.c.l.bf16 %v488_v2  ;;  %v513_v10 = vunpack.c.h.bf16 %v488_v2  ;;  %v489_v23 = vld [vmem:[%s1047_s3 + $0x48] sm:$0xff] }
  0x12   :  { %v514_v30 = vunpack.c.l.bf16 %v489_v23 }
  0x14   :  { %249 = vmatpush.bf16.msra.mxu0 %v687_v28  ;;  %752 = vmatpush.bf16.msra.mxu2 %v687_v28  ;;  %v482_v28 = vld [vmem:[%s1047_s3 + $0x10] sm:$0xff] }
  0x15   :  { %298 = vmatpush.bf16.msra.mxu1 %v691_v29  ;;  %760 = vmatpush.bf16.msra.mxu3 %v691_v29  ;;  %v500_v37 = vunpack.c.l.bf16 %v482_v28 }
  0x18   :  { %250 = vmatpush.bf16.msra.mxu0 %v679_v34  ;;  %753 = vmatpush.bf16.msra.mxu2 %v679_v34  ;;  %v515_v34 = vunpack.c.h.bf16 %v489_v23 }
  0x19   :  { %299 = vmatpush.bf16.msra.mxu1 %v683_v35  ;;  %761 = vmatpush.bf16.msra.mxu3 %v683_v35 }
  0x1c   :  { %251 = vmatpush.bf16.msra.mxu0 %v671_v40  ;;  %754 = vmatpush.bf16.msra.mxu2 %v671_v40 }
  0x1d   :  { %300 = vmatpush.bf16.msra.mxu1 %v675_v41  ;;  %762 = vmatpush.bf16.msra.mxu3 %v675_v41  ;;  %v501_v41 = vunpack.c.h.bf16 %v482_v28 }
  0x20   :  { %252 = vmatpush.bf16.msra.mxu0 %v663_v46  ;;  %755 = vmatpush.bf16.msra.mxu2 %v663_v46 }
  0x21   :  { %301 = vmatpush.bf16.msra.mxu1 %v667_v47  ;;  %763 = vmatpush.bf16.msra.mxu3 %v667_v47  ;;  %v490_v47 = vld [vmem:[%s1047_s3 + $0x50] sm:$0xff] }
  0x23   :  { %253 = vmatmul.bf16.vlgmr.msra.gmra.mxu0 %v724_v48  ;;  %273 = vmatmul.bf16.vlgmr.msra.gmra.mxu2 %v728_v49 }
  0x24   :  { %302 = vmatmul.bf16.vlgmr.msra.gmra.mxu1 %v724_v48  ;;  %322 = vmatmul.bf16.vlgmr.msra.gmra.mxu3 %v728_v49 }
  0x33   :  { %258 = vmatmul.bf16.gmra.mxu0 %v725_v50  ;;  %278 = vmatmul.bf16.gmra.mxu2 %v729_v51 }
  0x34   :  { %307 = vmatmul.bf16.gmra.mxu1 %v725_v50  ;;  %327 = vmatmul.bf16.gmra.mxu3 %v729_v51 }
  0x43   :  { %263 = vmatmul.bf16.gmra.mxu0 %v726_v52  ;;  %283 = vmatmul.bf16.gmra.mxu2 %v730_v53 }
  0x44   :  { %312 = vmatmul.bf16.gmra.mxu1 %v726_v52  ;;  %332 = vmatmul.bf16.gmra.mxu3 %v730_v53  ;;  %v483_v52 = vld [vmem:[%s1047_s3 + $0x18] sm:$0xff] }
  0x53   :  { %268 = vmatmul.bf16.gmra.mxu0 %v727_v54  ;;  %288 = vmatmul.bf16.gmra.mxu2 %v731_v55 }
  0x54   :  { %317 = vmatmul.bf16.gmra.mxu1 %v727_v54  ;;  %337 = vmatmul.bf16.gmra.mxu3 %v731_v55  ;;  %v516_v54 = vunpack.c.l.bf16 %v490_v47 }
  0xa0   :  { %v254_v61 = vpop.f32.mrf.mxu0 }
  0xa1   :  { %v448_v63 = vadd.f32 %v915_v58, %v254_v61  ;;  %v303_v0 = vpop.f32.mrf.mxu1 }
  0xa2   :  { %v449_v1 = vadd.f32 %v917_v59, %v303_v0 }
  0xa3   :  { %v528_v3 = vadd.f32 %v496_v60, %v448_v63  ;;  %v517_v60 = vunpack.c.h.bf16 %v490_v47  ;;  %v502_v63 = vunpack.c.l.bf16 %v483_v52 }
  0xa4   :  { %v529_v4 = vadd.f32 %v497_v62, %v449_v1 }
  0xa5   :  { %v560_v6 = vmax.f32 %v528_v3, 0.0  ;;  %v503_v3 = vunpack.c.h.bf16 %v483_v52 }
  0xa6   :  { %v561_v8 = vmax.f32 %v529_v4, 0.0  ;;  %v274_v9 = vpop.f32.mrf.mxu2 }
  0xa7   :  { %v464_v11 = vadd.f32 %v915_v58, %v274_v9  ;;  %v323_v12 = vpop.f32.mrf.mxu3  ;;  %v491_v9 = vld [vmem:[%s1047_s3 + $0x58] sm:$0xff] }
  0xa8   :  { %v592_v14 = vpack.c.bf16 %v561_v8, %v560_v6  ;;  %v465_v15 = vadd.f32 %v917_v59, %v323_v12  ;;  %v256_v16 = vpop.f32.mrf.mxu0 }
  0xa9   :  { %v544_v18 = vadd.f32 %v512_v7, %v464_v11  ;;  %v450_v19 = vadd.f32 %v915_v58, %v256_v16  ;;  %v305_v20 = vpop.f32.mrf.mxu1  ;;  %v518_v16 = vunpack.c.l.bf16 %v491_v9 }
  0xaa   :  { %608 = vst [vmem:[%s1048_s4] sm:$0xff] %v592_v14  ;;  %v545_v21 = vadd.f32 %v513_v10, %v465_v15  ;;  %v451_v22 = vadd.f32 %v917_v59, %v305_v20  ;;  %v484_v14 = vld [vmem:[%s1047_s3 + $0x20] sm:$0xff]  ;;  %v519_v20 = vunpack.c.h.bf16 %v491_v9 }
  0xab   :  { %v576_v24 = vmax.f32 %v544_v18, 0.0  ;;  %v530_v25 = vadd.f32 %v498_v13, %v450_v19  ;;  %v504_v23 = vunpack.c.l.bf16 %v484_v14 }
  0xac   :  { %v577_v26 = vmax.f32 %v545_v21, 0.0  ;;  %v531_v27 = vadd.f32 %v499_v17, %v451_v22 }
  0xad   :  { %v562_v29 = vmax.f32 %v530_v25, 0.0 }
  0xae   :  { %v600_v31 = vpack.c.bf16 %v577_v26, %v576_v24  ;;  %v563_v32 = vmax.f32 %v531_v27, 0.0  ;;  %v276_v33 = vpop.f32.mrf.mxu2  ;;  %v505_v27 = vunpack.c.h.bf16 %v484_v14 }
  0xaf   :  { %v466_v35 = vadd.f32 %v915_v58, %v276_v33  ;;  %v325_v36 = vpop.f32.mrf.mxu3  ;;  %v492_v33 = vld [vmem:[%s1047_s3 + $0x60] sm:$0xff] }
  0xb0   :  { %616 = vst [vmem:[%s1048_s4 + $0x40] sm:$0xff] %v600_v31  ;;  %v593_v38 = vpack.c.bf16 %v563_v32, %v562_v29  ;;  %v467_v39 = vadd.f32 %v917_v59, %v325_v36  ;;  %v259_v40 = vpop.f32.mrf.mxu0 }
  0xb1   :  { %v546_v42 = vadd.f32 %v514_v30, %v466_v35  ;;  %v452_v43 = vadd.f32 %v915_v58, %v259_v40  ;;  %v308_v44 = vpop.f32.mrf.mxu1  ;;  %v520_v40 = vunpack.c.l.bf16 %v492_v33 }
  0xb2   :  { %609 = vst [vmem:[%s1048_s4 + $0x8] sm:$0xff] %v593_v38  ;;  %v547_v45 = vadd.f32 %v515_v34, %v467_v39  ;;  %v453_v46 = vadd.f32 %v917_v59, %v308_v44  ;;  %v485_v38 = vld [vmem:[%s1047_s3 + $0x28] sm:$0xff]  ;;  %v521_v44 = vunpack.c.h.bf16 %v492_v33 }
  0xb3   :  { %v578_v48 = vmax.f32 %v546_v42, 0.0  ;;  %v532_v49 = vadd.f32 %v500_v37, %v452_v43  ;;  %v506_v47 = vunpack.c.l.bf16 %v485_v38 }
  0xb4   :  { %v579_v50 = vmax.f32 %v547_v45, 0.0  ;;  %v533_v51 = vadd.f32 %v501_v41, %v453_v46 }
  0xb5   :  { %v564_v53 = vmax.f32 %v532_v49, 0.0 }
  0xb6   :  { %v601_v55 = vpack.c.bf16 %v579_v50, %v578_v48  ;;  %v565_v56 = vmax.f32 %v533_v51, 0.0  ;;  %v279_v57 = vpop.f32.mrf.mxu2  ;;  %v507_v51 = vunpack.c.h.bf16 %v485_v38 }
  0xb7   :  { %v468_v61 = vadd.f32 %v915_v58, %v279_v57  ;;  %v328_v62 = vpop.f32.mrf.mxu3  ;;  %v493_v57 = vld [vmem:[%s1047_s3 + $0x68] sm:$0xff] }
  0xb8   :  { %617 = vst [vmem:[%s1048_s4 + $0x48] sm:$0xff] %v601_v55  ;;  %v594_v0 = vpack.c.bf16 %v565_v56, %v564_v53  ;;  %v469_v1 = vadd.f32 %v917_v59, %v328_v62  ;;  %v261_v2 = vpop.f32.mrf.mxu0 }
  0xb9   :  { %v548_v4 = vadd.f32 %v516_v54, %v468_v61  ;;  %v454_v5 = vadd.f32 %v915_v58, %v261_v2  ;;  %v310_v6 = vpop.f32.mrf.mxu1  ;;  %v522_v2 = vunpack.c.l.bf16 %v493_v57 }
  0xba   :  { %610 = vst [vmem:[%s1048_s4 + $0x10] sm:$0xff] %v594_v0  ;;  %v549_v7 = vadd.f32 %v517_v60, %v469_v1  ;;  %v455_v8 = vadd.f32 %v917_v59, %v310_v6  ;;  %v486_v0 = vld [vmem:[%s1047_s3 + $0x30] sm:$0xff]  ;;  %v523_v6 = vunpack.c.h.bf16 %v493_v57 }
  0xbb   :  { %v580_v10 = vmax.f32 %v548_v4, 0.0  ;;  %v534_v11 = vadd.f32 %v502_v63, %v454_v5  ;;  %v508_v9 = vunpack.c.l.bf16 %v486_v0 }
  0xbc   :  { %v581_v12 = vmax.f32 %v549_v7, 0.0  ;;  %v535_v13 = vadd.f32 %v503_v3, %v455_v8 }
  0xbd   :  { %v566_v15 = vmax.f32 %v534_v11, 0.0 }
  0xbe   :  { %v602_v17 = vpack.c.bf16 %v581_v12, %v580_v10  ;;  %v567_v18 = vmax.f32 %v535_v13, 0.0  ;;  %v281_v19 = vpop.f32.mrf.mxu2  ;;  %v509_v13 = vunpack.c.h.bf16 %v486_v0 }
  0xbf   :  { %v470_v21 = vadd.f32 %v915_v58, %v281_v19  ;;  %v330_v22 = vpop.f32.mrf.mxu3  ;;  %v494_v19 = vld [vmem:[%s1047_s3 + $0x70] sm:$0xff] }
  0xc0   :  { %618 = vst [vmem:[%s1048_s4 + $0x50] sm:$0xff] %v602_v17  ;;  %v595_v24 = vpack.c.bf16 %v567_v18, %v566_v15  ;;  %v471_v25 = vadd.f32 %v917_v59, %v330_v22  ;;  %v264_v26 = vpop.f32.mrf.mxu0 }
  0xc1   :  { %v550_v28 = vadd.f32 %v518_v16, %v470_v21  ;;  %v456_v29 = vadd.f32 %v915_v58, %v264_v26  ;;  %v313_v30 = vpop.f32.mrf.mxu1  ;;  %v524_v26 = vunpack.c.l.bf16 %v494_v19 }
  0xc2   :  { %611 = vst [vmem:[%s1048_s4 + $0x18] sm:$0xff] %v595_v24  ;;  %v551_v31 = vadd.f32 %v519_v20, %v471_v25  ;;  %v457_v32 = vadd.f32 %v917_v59, %v313_v30  ;;  %v487_v24 = vld [vmem:[%s1047_s3 + $0x38] sm:$0xff]  ;;  %v525_v30 = vunpack.c.h.bf16 %v494_v19 }
  0xc3   :  { %v582_v34 = vmax.f32 %v550_v28, 0.0  ;;  %v536_v35 = vadd.f32 %v504_v23, %v456_v29  ;;  %v510_v33 = vunpack.c.l.bf16 %v487_v24 }
  0xc4   :  { %v583_v36 = vmax.f32 %v551_v31, 0.0  ;;  %v537_v37 = vadd.f32 %v505_v27, %v457_v32 }
  0xc5   :  { %v568_v39 = vmax.f32 %v536_v35, 0.0 }
  0xc6   :  { %v603_v41 = vpack.c.bf16 %v583_v36, %v582_v34  ;;  %v569_v42 = vmax.f32 %v537_v37, 0.0  ;;  %v284_v43 = vpop.f32.mrf.mxu2  ;;  %v511_v37 = vunpack.c.h.bf16 %v487_v24 }
  0xc7   :  { %v472_v45 = vadd.f32 %v915_v58, %v284_v43  ;;  %v333_v46 = vpop.f32.mrf.mxu3  ;;  %v495_v43 = vld [vmem:[%s1047_s3 + $0x78] sm:$0xff] }
  0xc8   :  { %619 = vst [vmem:[%s1048_s4 + $0x58] sm:$0xff] %v603_v41  ;;  %v596_v48 = vpack.c.bf16 %v569_v42, %v568_v39  ;;  %v473_v49 = vadd.f32 %v917_v59, %v333_v46  ;;  %v266_v50 = vpop.f32.mrf.mxu0 }
  0xc9   :  { %v552_v52 = vadd.f32 %v520_v40, %v472_v45  ;;  %v458_v53 = vadd.f32 %v915_v58, %v266_v50  ;;  %v315_v54 = vpop.f32.mrf.mxu1 }
  0xca   :  { %612 = vst [vmem:[%s1048_s4 + $0x20] sm:$0xff] %v596_v48  ;;  %v553_v55 = vadd.f32 %v521_v44, %v473_v49  ;;  %v459_v56 = vadd.f32 %v917_v59, %v315_v54  ;;  %v526_v49 = vunpack.c.l.bf16 %v495_v43 }
  0xcb   :  { %v584_v60 = vmax.f32 %v552_v52, 0.0  ;;  %v538_v61 = vadd.f32 %v506_v47, %v458_v53  ;;  %v527_v53 = vunpack.c.h.bf16 %v495_v43 }
  0xcc   :  { %v585_v62 = vmax.f32 %v553_v55, 0.0  ;;  %v539_v63 = vadd.f32 %v507_v51, %v459_v56 }
  0xcd   :  { %v570_v1 = vmax.f32 %v538_v61, 0.0 }
  0xce   :  { %v604_v3 = vpack.c.bf16 %v585_v62, %v584_v60  ;;  %v571_v4 = vmax.f32 %v539_v63, 0.0  ;;  %v286_v5 = vpop.f32.mrf.mxu2 }
  0xcf   :  { %v474_v7 = vadd.f32 %v915_v58, %v286_v5  ;;  %v335_v8 = vpop.f32.mrf.mxu3 }
  0xd0   :  { %620 = vst [vmem:[%s1048_s4 + $0x60] sm:$0xff] %v604_v3  ;;  %v597_v10 = vpack.c.bf16 %v571_v4, %v570_v1  ;;  %v475_v11 = vadd.f32 %v917_v59, %v335_v8  ;;  %v269_v12 = vpop.f32.mrf.mxu0 }
  0xd1   :  { %v554_v14 = vadd.f32 %v522_v2, %v474_v7  ;;  %v460_v15 = vadd.f32 %v915_v58, %v269_v12  ;;  %v318_v16 = vpop.f32.mrf.mxu1 }
  0xd2   :  { %613 = vst [vmem:[%s1048_s4 + $0x28] sm:$0xff] %v597_v10  ;;  %v555_v17 = vadd.f32 %v523_v6, %v475_v11  ;;  %v461_v18 = vadd.f32 %v917_v59, %v318_v16 }
  0xd3   :  { %v586_v20 = vmax.f32 %v554_v14, 0.0  ;;  %v540_v21 = vadd.f32 %v508_v9, %v460_v15 }
  0xd4   :  { %v587_v22 = vmax.f32 %v555_v17, 0.0  ;;  %v541_v23 = vadd.f32 %v509_v13, %v461_v18 }
  0xd5   :  { %v572_v25 = vmax.f32 %v540_v21, 0.0 }
  0xd6   :  { %v605_v27 = vpack.c.bf16 %v587_v22, %v586_v20  ;;  %v573_v28 = vmax.f32 %v541_v23, 0.0  ;;  %v289_v29 = vpop.f32.mrf.mxu2 }
  0xd7   :  { %v476_v31 = vadd.f32 %v915_v58, %v289_v29  ;;  %v338_v32 = vpop.f32.mrf.mxu3 }
  0xd8   :  { %621 = vst [vmem:[%s1048_s4 + $0x68] sm:$0xff] %v605_v27  ;;  %v598_v34 = vpack.c.bf16 %v573_v28, %v572_v25  ;;  %v477_v35 = vadd.f32 %v917_v59, %v338_v32  ;;  %v271_v36 = vpop.f32.mrf.mxu0 }
  0xd9   :  { %v556_v38 = vadd.f32 %v524_v26, %v476_v31  ;;  %v462_v39 = vadd.f32 %v915_v58, %v271_v36  ;;  %v320_v40 = vpop.f32.mrf.mxu1 }
  0xda   :  { %614 = vst [vmem:[%s1048_s4 + $0x30] sm:$0xff] %v598_v34  ;;  %v557_v41 = vadd.f32 %v525_v30, %v477_v35  ;;  %v463_v42 = vadd.f32 %v917_v59, %v320_v40 }
  0xdb   :  { %v588_v44 = vmax.f32 %v556_v38, 0.0  ;;  %v542_v45 = vadd.f32 %v510_v33, %v462_v39 }
  0xdc   :  { %v589_v46 = vmax.f32 %v557_v41, 0.0  ;;  %v543_v47 = vadd.f32 %v511_v37, %v463_v42 }
  0xdd   :  { %v574_v48 = vmax.f32 %v542_v45, 0.0 }
  0xde   :  { %v606_v50 = vpack.c.bf16 %v589_v46, %v588_v44  ;;  %v575_v51 = vmax.f32 %v543_v47, 0.0  ;;  %v291_v52 = vpop.f32.mrf.mxu2 }
  0xdf   :  { %v478_v54 = vadd.f32 %v915_v58, %v291_v52  ;;  %v340_v55 = vpop.f32.mrf.mxu3 }
  0xe0   :  { %622 = vst [vmem:[%s1048_s4 + $0x70] sm:$0xff] %v606_v50  ;;  %v599_v56 = vpack.c.bf16 %v575_v51, %v574_v48  ;;  %v479_v57 = vadd.f32 %v917_v59, %v340_v55 }
  0xe1   :  { %v558_v60 = vadd.f32 %v526_v49, %v478_v54 }
  0xe2   :  { %615 = vst [vmem:[%s1048_s4 + $0x38] sm:$0xff] %v599_v56  ;;  %v559_v61 = vadd.f32 %v527_v53, %v479_v57 }
  0xe3   :  { %v590_v62 = vmax.f32 %v558_v60, 0.0 }
  0xe4   :  { %v591_v63 = vmax.f32 %v559_v61, 0.0 }
  0xe6   :  { %v607_v0 = vpack.c.bf16 %v591_v63, %v590_v62 }
  0xe8   :  { %623 = vst [vmem:[%s1048_s4 + $0x78] sm:$0xff] %v607_v0 }

// kernel: _lambda_.50
= control target key start
LH: loop header
LB: loop body
LE: loop exit
PB: predicated region body
PF: predicated region fallthrough
CT: control target
= control target key end

     0   :  { %s928_s1 = inlined_call_operand.vmem [shape: bf16[256,128], index: 1, kind: input, shape index: {}]   ;;  %s929_s0 = inlined_call_operand.vmem [shape: bf16[128,256], index: 0, kind: input, shape index: {}]   ;;  %s930_s2 = inlined_call_operand.vmem [shape: f32[1,128], index: 2, kind: input, shape index: {}]   ;;  %s931_s3 = inlined_call_operand.vmem [shape: bf16[128,128], index: 3, kind: output, shape index: {}]  }
   0x1   :  { %v646_v0 = vld [vmem:[%s928_s1 + $0x38] sm:$0xff]  ;;  %v645_v2 = vld [vmem:[%s928_s1 + $0x30] sm:$0xff]  ;;  %v644_v4 = vld [vmem:[%s928_s1 + $0x28] sm:$0xff] }
   0x2   :  { %v654_v1 = vld [vmem:[%s928_s1 + $0x78] sm:$0xff]  ;;  %274 = vmatpush.bf16.msra.mxu0 %v646_v0  ;;  %702 = vmatpush.bf16.msra.mxu2 %v646_v0  ;;  %v653_v3 = vld [vmem:[%s928_s1 + $0x70] sm:$0xff]  ;;  %v652_v5 = vld [vmem:[%s928_s1 + $0x68] sm:$0xff] }
   0x3   :  { %323 = vmatpush.bf16.msra.mxu1 %v654_v1  ;;  %710 = vmatpush.bf16.msra.mxu3 %v654_v1  ;;  %v643_v6 = vld [vmem:[%s928_s1 + $0x20] sm:$0xff]  ;;  %v642_v8 = vld [vmem:[%s928_s1 + $0x18] sm:$0xff]  ;;  %v641_v10 = vld [vmem:[%s928_s1 + $0x10] sm:$0xff] }
   0x4   :  { %v651_v7 = vld [vmem:[%s928_s1 + $0x60] sm:$0xff]  ;;  %v650_v9 = vld [vmem:[%s928_s1 + $0x58] sm:$0xff]  ;;  %v649_v11 = vld [vmem:[%s928_s1 + $0x50] sm:$0xff] }
   0x5   :  { %v640_v12 = vld [vmem:[%s928_s1 + $0x8] sm:$0xff]  ;;  %v639_v14 = vld [vmem:[%s928_s1] sm:$0xff]  ;;  %v505_v28 = vld [vmem:[%s929_s0 + $0x10] sm:$0xf] }
   0x6   :  { %275 = vmatpush.bf16.msra.mxu0 %v645_v2  ;;  %703 = vmatpush.bf16.msra.mxu2 %v645_v2  ;;  %v648_v13 = vld [vmem:[%s928_s1 + $0x48] sm:$0xff]  ;;  %v647_v15 = vld [vmem:[%s928_s1 + $0x40] sm:$0xff]  ;;  %v626_v29 = vld [vmem:[%s929_s0 + $0x14] sm:$0xf0] }
   0x7   :  { %324 = vmatpush.bf16.msra.mxu1 %v653_v3  ;;  %711 = vmatpush.bf16.msra.mxu3 %v653_v3  ;;  %v497_v16 = vld [vmem:[%s929_s0] sm:$0xf]  ;;  %v624_v17 = vld [vmem:[%s929_s0 + $0x4] sm:$0xf0]  ;;  %v623_v20 = vld [vmem:[%s929_s0 + $0x4] sm:$0xf]  ;;  %v506_v36 = vor.u32 %v626_v29, %v505_v28 }
   0x8   :  { %v529_v18 = vld [vmem:[%s929_s0 + $0x40] sm:$0xf]  ;;  %v632_v19 = vld [vmem:[%s929_s0 + $0x44] sm:$0xf0]  ;;  %v499_v21 = vld [vmem:[%s929_s0 + $0x8] sm:$0xf0]  ;;  %v498_v24 = vor.u32 %v624_v17, %v497_v16 }
   0x9   :  { %v631_v22 = vld [vmem:[%s929_s0 + $0x44] sm:$0xf]  ;;  %v531_v23 = vld [vmem:[%s929_s0 + $0x48] sm:$0xf0]  ;;  %v530_v25 = vor.u32 %v632_v19, %v529_v18  ;;  %v502_v26 = vor.u32 %v623_v20, %v499_v21  ;;  %v537_v30 = vld [vmem:[%s929_s0 + $0x50] sm:$0xf] }
   0xa   :  { %276 = vmatpush.bf16.msra.mxu0 %v644_v4  ;;  %704 = vmatpush.bf16.msra.mxu2 %v644_v4  ;;  %v534_v27 = vor.u32 %v631_v22, %v531_v23  ;;  %v634_v31 = vld [vmem:[%s929_s0 + $0x54] sm:$0xf0]  ;;  %v625_v32 = vld [vmem:[%s929_s0 + $0x14] sm:$0xf]  ;;  %v507_v33 = vld [vmem:[%s929_s0 + $0x18] sm:$0xf0] }
   0xb   :  { %325 = vmatpush.bf16.msra.mxu1 %v652_v5  ;;  %712 = vmatpush.bf16.msra.mxu3 %v652_v5  ;;  %v633_v34 = vld [vmem:[%s929_s0 + $0x54] sm:$0xf]  ;;  %v539_v35 = vld [vmem:[%s929_s0 + $0x58] sm:$0xf0]  ;;  %v538_v37 = vor.u32 %v634_v31, %v537_v30  ;;  %v510_v38 = vor.u32 %v625_v32, %v507_v33  ;;  %v513_v40 = vld [vmem:[%s929_s0 + $0x20] sm:$0xf] }
   0xc   :  { %v542_v39 = vor.u32 %v633_v34, %v539_v35  ;;  %v628_v41 = vld [vmem:[%s929_s0 + $0x24] sm:$0xf0]  ;;  %v545_v42 = vld [vmem:[%s929_s0 + $0x60] sm:$0xf]  ;;  %v627_v44 = vld [vmem:[%s929_s0 + $0x24] sm:$0xf] }
   0xd   :  { %v636_v43 = vld [vmem:[%s929_s0 + $0x64] sm:$0xf0]  ;;  %v515_v45 = vld [vmem:[%s929_s0 + $0x28] sm:$0xf0]  ;;  %v635_v46 = vld [vmem:[%s929_s0 + $0x64] sm:$0xf]  ;;  %v514_v48 = vor.u32 %v628_v41, %v513_v40 }
   0xe   :  { %277 = vmatpush.bf16.msra.mxu0 %v643_v6  ;;  %705 = vmatpush.bf16.msra.mxu2 %v643_v6  ;;  %v547_v47 = vld [vmem:[%s929_s0 + $0x68] sm:$0xf0]  ;;  %v546_v49 = vor.u32 %v636_v43, %v545_v42  ;;  %v518_v50 = vor.u32 %v627_v44, %v515_v45  ;;  %v521_v52 = vld [vmem:[%s929_s0 + $0x30] sm:$0xf]  ;;  %v630_v53 = vld [vmem:[%s929_s0 + $0x34] sm:$0xf0] }
   0xf   :  { %326 = vmatpush.bf16.msra.mxu1 %v651_v7  ;;  %713 = vmatpush.bf16.msra.mxu3 %v651_v7  ;;  %v550_v51 = vor.u32 %v635_v46, %v547_v47  ;;  %v553_v54 = vld [vmem:[%s929_s0 + $0x70] sm:$0xf]  ;;  %v638_v55 = vld [vmem:[%s929_s0 + $0x74] sm:$0xf0]  ;;  %v629_v56 = vld [vmem:[%s929_s0 + $0x34] sm:$0xf]  ;;  %v522_v60 = vor.u32 %v630_v53, %v521_v52 }
  0x10   :  { %v523_v57 = vld [vmem:[%s929_s0 + $0x38] sm:$0xf0]  ;;  %v637_v58 = vld [vmem:[%s929_s0 + $0x74] sm:$0xf]  ;;  %v554_v61 = vor.u32 %v638_v55, %v553_v54  ;;  %v886_v3 = vld [vmem:[%s930_s2] ss:$0 sm:$0xff] }
  0x11   :  { %v555_v59 = vld [vmem:[%s929_s0 + $0x78] sm:$0xf0]  ;;  %v526_v62 = vor.u32 %v629_v56, %v523_v57 }
  0x12   :  { %278 = vmatpush.bf16.msra.mxu0 %v642_v8  ;;  %706 = vmatpush.bf16.msra.mxu2 %v642_v8  ;;  %v558_v63 = vor.u32 %v637_v58, %v555_v59 }
  0x13   :  { %327 = vmatpush.bf16.msra.mxu1 %v650_v9  ;;  %714 = vmatpush.bf16.msra.mxu3 %v650_v9 }
  0x16   :  { %279 = vmatpush.bf16.msra.mxu0 %v641_v10  ;;  %707 = vmatpush.bf16.msra.mxu2 %v641_v10 }
  0x17   :  { %328 = vmatpush.bf16.msra.mxu1 %v649_v11  ;;  %715 = vmatpush.bf16.msra.mxu3 %v649_v11 }
  0x1a   :  { %280 = vmatpush.bf16.msra.mxu0 %v640_v12  ;;  %708 = vmatpush.bf16.msra.mxu2 %v640_v12 }
  0x1b   :  { %329 = vmatpush.bf16.msra.mxu1 %v648_v13  ;;  %716 = vmatpush.bf16.msra.mxu3 %v648_v13 }
  0x1e   :  { %281 = vmatpush.bf16.msra.mxu0 %v639_v14  ;;  %709 = vmatpush.bf16.msra.mxu2 %v639_v14 }
  0x1f   :  { %330 = vmatpush.bf16.msra.mxu1 %v647_v15  ;;  %717 = vmatpush.bf16.msra.mxu3 %v647_v15 }
  0x21   :  { %282 = vmatmul.bf16.vlgmr.msra.gmra.mxu0 %v498_v24  ;;  %302 = vmatmul.bf16.vlgmr.msra.gmra.mxu2 %v530_v25 }
  0x22   :  { %331 = vmatmul.bf16.vlgmr.msra.gmra.mxu1 %v502_v26  ;;  %351 = vmatmul.bf16.vlgmr.msra.gmra.mxu3 %v534_v27 }
  0x31   :  { %287 = vmatmul.bf16.gmra.mxu0 %v506_v36  ;;  %307 = vmatmul.bf16.gmra.mxu2 %v538_v37 }
  0x32   :  { %336 = vmatmul.bf16.gmra.mxu1 %v510_v38  ;;  %356 = vmatmul.bf16.gmra.mxu3 %v542_v39 }
  0x41   :  { %292 = vmatmul.bf16.gmra.mxu0 %v514_v48  ;;  %312 = vmatmul.bf16.gmra.mxu2 %v546_v49 }
  0x42   :  { %341 = vmatmul.bf16.gmra.mxu1 %v518_v50  ;;  %361 = vmatmul.bf16.gmra.mxu3 %v550_v51 }
  0x51   :  { %297 = vmatmul.bf16.gmra.mxu0 %v522_v60  ;;  %317 = vmatmul.bf16.gmra.mxu2 %v554_v61 }
  0x52   :  { %346 = vmatmul.bf16.gmra.mxu1 %v526_v62  ;;  %366 = vmatmul.bf16.gmra.mxu3 %v558_v63 }
  0x9e   :  { %v283_v0 = vpop.f32.mrf.mxu0 }
  0x9f   :  { %v332_v1 = vpop.f32.mrf.mxu1 }
  0xa0   :  { %v333_v2 = vadd.f32 %v332_v1, %v283_v0 }
  0xa2   :  { %v427_v8 = vadd.f32 %v886_v3, %v333_v2 }
  0xa4   :  { %v303_v4 = vpop.f32.mrf.mxu2  ;;  %v443_v12 = vmax.f32 %v427_v8, 0.0 }
  0xa5   :  { %v352_v5 = vpop.f32.mrf.mxu3 }
  0xa6   :  { %v285_v6 = vpop.f32.mrf.mxu0  ;;  %v353_v10 = vadd.f32 %v352_v5, %v303_v4 }
  0xa7   :  { %v334_v7 = vpop.f32.mrf.mxu1 }
  0xa8   :  { %v335_v9 = vadd.f32 %v334_v7, %v285_v6  ;;  %v435_v16 = vadd.f32 %v886_v3, %v353_v10 }
  0xaa   :  { %v428_v11 = vadd.f32 %v886_v3, %v335_v9  ;;  %v451_v22 = vmax.f32 %v435_v16, 0.0 }
  0xac   :  { %v444_v13 = vmax.f32 %v428_v11, 0.0  ;;  %v305_v14 = vpop.f32.mrf.mxu2 }
  0xad   :  { %v354_v15 = vpop.f32.mrf.mxu3 }
  0xae   :  { %v658_v17 = vpack.c.bf16 %v444_v13, %v443_v12  ;;  %v355_v18 = vadd.f32 %v354_v15, %v305_v14  ;;  %v288_v19 = vpop.f32.mrf.mxu0 }
  0xaf   :  { %v337_v20 = vpop.f32.mrf.mxu1 }
  0xb0   :  { %659 = vst [vmem:[%s931_s3] sm:$0xff] %v658_v17   ;;  %v436_v21 = vadd.f32 %v886_v3, %v355_v18  ;;  %v338_v25 = vadd.f32 %v337_v20, %v288_v19 }
  0xb2   :  { %v452_v23 = vmax.f32 %v436_v21, 0.0  ;;  %v429_v30 = vadd.f32 %v886_v3, %v338_v25 }
  0xb4   :  { %v678_v24 = vpack.c.bf16 %v452_v23, %v451_v22  ;;  %v308_v26 = vpop.f32.mrf.mxu2  ;;  %v445_v34 = vmax.f32 %v429_v30, 0.0 }
  0xb5   :  { %v357_v27 = vpop.f32.mrf.mxu3 }
  0xb6   :  { %698 = vst [vmem:[%s931_s3 + $0x20] sm:$0xff] %v678_v24   ;;  %v290_v28 = vpop.f32.mrf.mxu0  ;;  %v358_v32 = vadd.f32 %v357_v27, %v308_v26 }
  0xb7   :  { %v339_v29 = vpop.f32.mrf.mxu1 }
  0xb8   :  { %v340_v31 = vadd.f32 %v339_v29, %v290_v28  ;;  %v437_v38 = vadd.f32 %v886_v3, %v358_v32 }
  0xba   :  { %v430_v33 = vadd.f32 %v886_v3, %v340_v31  ;;  %v453_v44 = vmax.f32 %v437_v38, 0.0 }
  0xbc   :  { %v446_v35 = vmax.f32 %v430_v33, 0.0  ;;  %v310_v36 = vpop.f32.mrf.mxu2 }
  0xbd   :  { %v359_v37 = vpop.f32.mrf.mxu3 }
  0xbe   :  { %v663_v39 = vpack.c.bf16 %v446_v35, %v445_v34  ;;  %v360_v40 = vadd.f32 %v359_v37, %v310_v36  ;;  %v293_v41 = vpop.f32.mrf.mxu0 }
  0xbf   :  { %v342_v42 = vpop.f32.mrf.mxu1 }
  0xc0   :  { %695 = vst [vmem:[%s931_s3 + $0x8] sm:$0xff] %v663_v39   ;;  %v438_v43 = vadd.f32 %v886_v3, %v360_v40  ;;  %v343_v47 = vadd.f32 %v342_v42, %v293_v41 }
  0xc2   :  { %v454_v45 = vmax.f32 %v438_v43, 0.0  ;;  %v431_v52 = vadd.f32 %v886_v3, %v343_v47 }
  0xc4   :  { %v683_v46 = vpack.c.bf16 %v454_v45, %v453_v44  ;;  %v313_v48 = vpop.f32.mrf.mxu2  ;;  %v447_v56 = vmax.f32 %v431_v52, 0.0 }
  0xc5   :  { %v362_v49 = vpop.f32.mrf.mxu3 }
  0xc6   :  { %699 = vst [vmem:[%s931_s3 + $0x28] sm:$0xff] %v683_v46   ;;  %v295_v50 = vpop.f32.mrf.mxu0  ;;  %v363_v54 = vadd.f32 %v362_v49, %v313_v48 }
  0xc7   :  { %v344_v51 = vpop.f32.mrf.mxu1 }
  0xc8   :  { %v345_v53 = vadd.f32 %v344_v51, %v295_v50  ;;  %v439_v60 = vadd.f32 %v886_v3, %v363_v54 }
  0xca   :  { %v432_v55 = vadd.f32 %v886_v3, %v345_v53  ;;  %v455_v2 = vmax.f32 %v439_v60, 0.0 }
  0xcc   :  { %v448_v57 = vmax.f32 %v432_v55, 0.0  ;;  %v315_v58 = vpop.f32.mrf.mxu2 }
  0xcd   :  { %v364_v59 = vpop.f32.mrf.mxu3 }
  0xce   :  { %v668_v61 = vpack.c.bf16 %v448_v57, %v447_v56  ;;  %v365_v62 = vadd.f32 %v364_v59, %v315_v58  ;;  %v298_v63 = vpop.f32.mrf.mxu0 }
  0xcf   :  { %v347_v0 = vpop.f32.mrf.mxu1 }
  0xd0   :  { %696 = vst [vmem:[%s931_s3 + $0x10] sm:$0xff] %v668_v61   ;;  %v440_v1 = vadd.f32 %v886_v3, %v365_v62  ;;  %v348_v6 = vadd.f32 %v347_v0, %v298_v63 }
  0xd2   :  { %v456_v4 = vmax.f32 %v440_v1, 0.0  ;;  %v433_v11 = vadd.f32 %v886_v3, %v348_v6 }
  0xd4   :  { %v688_v5 = vpack.c.bf16 %v456_v4, %v455_v2  ;;  %v318_v7 = vpop.f32.mrf.mxu2  ;;  %v449_v15 = vmax.f32 %v433_v11, 0.0 }
  0xd5   :  { %v367_v8 = vpop.f32.mrf.mxu3 }
  0xd6   :  { %700 = vst [vmem:[%s931_s3 + $0x30] sm:$0xff] %v688_v5   ;;  %v300_v9 = vpop.f32.mrf.mxu0  ;;  %v368_v13 = vadd.f32 %v367_v8, %v318_v7 }
  0xd7   :  { %v349_v10 = vpop.f32.mrf.mxu1 }
  0xd8   :  { %v350_v12 = vadd.f32 %v349_v10, %v300_v9  ;;  %v441_v19 = vadd.f32 %v886_v3, %v368_v13 }
  0xda   :  { %v434_v14 = vadd.f32 %v886_v3, %v350_v12  ;;  %v457_v23 = vmax.f32 %v441_v19, 0.0 }
  0xdc   :  { %v450_v16 = vmax.f32 %v434_v14, 0.0  ;;  %v320_v17 = vpop.f32.mrf.mxu2 }
  0xdd   :  { %v369_v18 = vpop.f32.mrf.mxu3 }
  0xde   :  { %v673_v20 = vpack.c.bf16 %v450_v16, %v449_v15  ;;  %v370_v21 = vadd.f32 %v369_v18, %v320_v17 }
  0xe0   :  { %697 = vst [vmem:[%s931_s3 + $0x18] sm:$0xff] %v673_v20   ;;  %v442_v22 = vadd.f32 %v886_v3, %v370_v21 }
  0xe2   :  { %v458_v24 = vmax.f32 %v442_v22, 0.0 }
  0xe4   :  { %v693_v25 = vpack.c.bf16 %v458_v24, %v457_v23 }
  0xe6   :  { %701 = vst [vmem:[%s931_s3 + $0x38] sm:$0xff] %v693_v25  }

// kernel: _lambda_.58
= control target key start
LH: loop header
LB: loop body
LE: loop exit
PB: predicated region body
PF: predicated region fallthrough
CT: control target
= control target key end

     0   :  { %s1045_s12 = smov 0   ;;  %s1047_s13 = smov 0   ;;  %s1161_s0 = inlined_call_operand.vmem [shape: bf16[32,1152], index: 0, kind: input, shape index: {}]   ;;  %s1162_s1 = inlined_call_operand.vmem [shape: bf16[1152,128], index: 1, kind: input, shape index: {}]   ;;  %s1163_s2 = inlined_call_operand.vmem [shape: f32[1,128], index: 2, kind: input, shape index: {}]   ;;  %s1164_s3 = inlined_call_operand.vmem [shape: bf16[32,128], index: 3, kind: output, shape index: {}]  }
   0x1   :  { %s1049_s14 = smov 0   ;;  %s1051_s15 = smov 0  }
   0x2   :  { %s1053_s16 = smov 0  }
   0x3 LB: > { %s25_s17 = sadd.s32 1, %s1018_s15  ;;  %p48_p1 = scmp.ne.s32.totalorder %s1010_s13, %s1006_s12  ;;  %s1022_s16 = sphi %s1053_s16, %s13_s16   ;;  %s1018_s15 = sphi %s1051_s15, %s1168_s15   ;;  %s1014_s14 = sphi %s1049_s14, %s1167_s14   ;;  %s1010_s13 = sphi %s1047_s13, %s1166_s13   ;;  %s1006_s12 = sphi %s1045_s12, %s1165_s12  }
   0x4   : > { %p26_p0 = scmp.ge.s32.totalorder %s25_s17, 3  ;;  %p49_p2 = scmp.eq.s32.totalorder %s1022_s16, 0 }
   0x5   : > { %s41_s19 = sadd.s32 1, %s1010_s13  ;;  %p752_p5 = scmp.ge.s32.totalorder %s1022_s16, 3 }
   0x6   : > { %s1170_s17 = smov (%p26_p0, %s25_s17), 0  ;;  %p50_p3 = por %p49_p2, %p48_p1 }
   0x7   : > { %s37_s18 = ssub.s32 %s1018_s15, %s1170_s17  ;;  %162 = sbr.rel (%p752_p5) target bundleno = 25 (0x19), region = 20 }
   0x8   : > { %p39_p4 = scmp.eq.s32.totalorder %s37_s18, 0 }
   0xa   : > { %s1080_s20 = scalar_select %p39_p4, %s1010_s13, %s41_s19  }
   0xc   : > { %165 = sbr.rel (!%p50_p3) target bundleno = 25 (0x19), region = 24  ;;  %s167_s21 = sand.u32 (%p50_p3), 1, %s1010_s13  }
   0xd   : > { %s890_s22 = smul.u32 (%p50_p3), 12, %s1018_s15 }
   0xe   : > { %s940_s23 = smul.u32 (%p50_p3), 48, %s167_s21 }
   0xf   : > { %s175_s26 = scalar_lea.vmem (%p50_p3), %s1161_s0, %s890_s22 }
  0x10   : > { %v190_v0 = vld [vmem:[%s175_s26] sm:$0xff] (%p50_p3)  ;;  %v194_v2 = vld [vmem:[%s175_s26 + $0x48] sm:$0xff] (%p50_p3)  ;;  %s169_s27 = scalar_lea.vmem (%p50_p3), [#allocation3], %s940_s23  ;;  %v758_v6 = vld [vmem:[%s175_s26 + $0x50] sm:$0xf] (%p50_p3) }
  0x11   : > { %v192_v1 = vld [vmem:[%s175_s26 + $0x24] sm:$0xff]  ;;  %191 = vst [vmem:[%s169_s27] sm:$0xff] %v190_v0  ;;  %v196_v3 = vld [vmem:[%s175_s26 + $0x6c] sm:$0xff]  ;;  %v760_v7 = vld [vmem:[%s175_s26 + $0x74] sm:$0xf] }
  0x12   : > { %193 = vst [vmem:[%s169_s27 + $0xc] sm:$0xff] %v192_v1  ;;  %v754_v4 = vld [vmem:[%s175_s26 + $0x8] sm:$0xf]  ;;  %v756_v5 = vld [vmem:[%s175_s26 + $0x2c] sm:$0xf] }
  0x13   : > { %195 = vst [vmem:[%s169_s27 + $0x18] sm:$0xff] %v194_v2 }
  0x14   : > { %197 = vst [vmem:[%s169_s27 + $0x24] sm:$0xff] %v196_v3 }
  0x15   : > { %755 = vst [vmem:[%s169_s27 + $0x8] sm:$0xf] %v754_v4 }
  0x16   : > { %757 = vst [vmem:[%s169_s27 + $0x14] sm:$0xf] %v756_v5 }
  0x17   : > { %759 = vst [vmem:[%s169_s27 + $0x20] sm:$0xf] %v758_v6 }
  0x18   : > { %761 = vst [vmem:[%s169_s27 + $0x2c] sm:$0xf] %v760_v7 }
  0x19 PF: > { %p762_p6 = scmp.ge.s32.totalorder %s1022_s16, 1  ;;  %p230_p7 = scmp.lt.s32.totalorder %s1022_s16, 4 }
  0x1b   : > { %p231_p8 = pnand %p762_p6, %p230_p7 }
  0x1c   : > { %s237_s28 = sand.u32 (!%p231_p8), 1, %s1006_s12   ;;  %s276_s29 = smul.u32 (!%p231_p8), 48, %s1014_s14 }
  0x1d   : > { %234 = sbr.rel (%p231_p8) target bundleno = 253 (0xfd), region = 54  ;;  %p764_p10 = scmp.ne.s32.totalorder (!%p231_p8), %s1014_s14, 0 }
  0x1e   : > { %s941_s30 = smul.u32 (!%p231_p8), 48, %s237_s28  ;;  %p277_p9 = scmp.lt.s32.totalorder (!%p231_p8), %s276_s29, 143 }
  0x20   : > { %s1097_s8 = scalar_lea.vmem (!%p231_p8), [#allocation3], %s941_s30 }
  0x22   : > { %s1172_s29 = smov (!%p277_p9, %s276_s29), 143  ;;  %300 = sbr.rel (%p764_p10) target bundleno = 44 (0x2c), region = 62 }
  0x23   : > { %s763_s4 = sshll.u32 %s1172_s29, 2 }
  0x24   : > { %s1095_s7 = scalar_lea.vmem %s1162_s1, %s763_s4 }
  0x27   : > { %v1024_v8 = vmov 0.0  }
  0x28   : > { %301 = vst [vmem:[#allocation2 + $0x10] sm:$0xff] %v1024_v8 }
  0x29   : > { %302 = vst [vmem:[#allocation2] sm:$0xff] %v1024_v8 }
  0x2a   : > { %303 = vst [vmem:[#allocation2 + $0x18] sm:$0xff] %v1024_v8 }
  0x2b   : > { %304 = vst [vmem:[#allocation2 + $0x8] sm:$0xff] %v1024_v8 }
  0x2c PF: > { %v904_v9 = vld [vmem:[%s1095_s7 + $0x38] sm:$0xff]  ;;  %v903_v12 = vld [vmem:[%s1095_s7 + $0x30] sm:$0xff]  ;;  %v902_v15 = vld [vmem:[%s1095_s7 + $0x28] sm:$0xff]  ;;  %p885_p11 = scmp.ne.s32.totalorder %s1014_s14, 2 }
  0x2d   : > { %v912_v10 = vld [vmem:[%s1095_s7 + $0x78] sm:$0xff]  ;;  %541 = vmatpush.bf16.msra.mxu0 %v904_v9  ;;  %v911_v13 = vld [vmem:[%s1095_s7 + $0x70] sm:$0xff]  ;;  %932 = vmatpush.bf16.msra.mxu3 %v904_v9  ;;  %v910_v16 = vld [vmem:[%s1095_s7 + $0x68] sm:$0xff] }
  0x2e   : > { %v920_v11 = vld [vmem:[%s1095_s7 + $0xb8] sm:$0xff]  ;;  %560 = vmatpush.bf16.msra.mxu1 %v912_v10  ;;  %v919_v14 = vld [vmem:[%s1095_s7 + $0xb0] sm:$0xff]  ;;  %v918_v17 = vld [vmem:[%s1095_s7 + $0xa8] sm:$0xff] }
  0x2f   : > { %579 = vmatpush.bf16.msra.mxu2 %v920_v11  ;;  %v901_v18 = vld [vmem:[%s1095_s7 + $0x20] sm:$0xff]  ;;  %v900_v21 = vld [vmem:[%s1095_s7 + $0x18] sm:$0xff]  ;;  %v899_v24 = vld [vmem:[%s1095_s7 + $0x10] sm:$0xff] }
  0x30   : > { %v909_v19 = vld [vmem:[%s1095_s7 + $0x60] sm:$0xff]  ;;  %v908_v22 = vld [vmem:[%s1095_s7 + $0x58] sm:$0xff]  ;;  %v907_v25 = vld [vmem:[%s1095_s7 + $0x50] sm:$0xff] }
  0x31   : > { %542 = vmatpush.bf16.msra.mxu0 %v903_v12  ;;  %933 = vmatpush.bf16.msra.mxu3 %v903_v12  ;;  %v917_v20 = vld [vmem:[%s1095_s7 + $0xa0] sm:$0xff]  ;;  %v916_v23 = vld [vmem:[%s1095_s7 + $0x98] sm:$0xff]  ;;  %v915_v26 = vld [vmem:[%s1095_s7 + $0x90] sm:$0xff] }
  0x32   : > { %561 = vmatpush.bf16.msra.mxu1 %v911_v13  ;;  %v898_v27 = vld [vmem:[%s1095_s7 + $0x8] sm:$0xff]  ;;  %v897_v30 = vld [vmem:[%s1095_s7] sm:$0xff]  ;;  %v305_v54 = vld [vmem:[#allocation2 + $0x10] sm:$0xff] }
  0x33   : > { %580 = vmatpush.bf16.msra.mxu2 %v919_v14  ;;  %v906_v28 = vld [vmem:[%s1095_s7 + $0x48] sm:$0xff]  ;;  %v905_v31 = vld [vmem:[%s1095_s7 + $0x40] sm:$0xff]  ;;  %v307_v4 = vld [vmem:[#allocation2 + $0x18] sm:$0xff] }
  0x34   : > { %v914_v29 = vld [vmem:[%s1095_s7 + $0x88] sm:$0xff]  ;;  %v913_v32 = vld [vmem:[%s1095_s7 + $0x80] sm:$0xff] }
  0x35   : > { %543 = vmatpush.bf16.msra.mxu0 %v902_v15  ;;  %934 = vmatpush.bf16.msra.mxu3 %v902_v15  ;;  %v767_v33 = vld [vmem:[%s1097_s8] sm:$0xf]  ;;  %v892_v34 = vld [vmem:[%s1097_s8 + $0x8] sm:$0xf0]  ;;  %v891_v35 = vld [vmem:[%s1097_s8 + $0x4] sm:$0xf] }
  0x36   : > { %562 = vmatpush.bf16.msra.mxu1 %v910_v16  ;;  %v769_v36 = vld [vmem:[%s1097_s8 + $0xc] sm:$0xf0]  ;;  %v775_v37 = vld [vmem:[%s1097_s8 + $0x8] sm:$0xf]  ;;  %v893_v38 = vld [vmem:[%s1097_s8 + $0x10] sm:$0xf0]  ;;  %v768_v41 = vor.u32 %v892_v34, %v767_v33 }
  0x37   : > { %581 = vmatpush.bf16.msra.mxu2 %v918_v17  ;;  %v779_v39 = vld [vmem:[%s1097_s8 + $0x18] sm:$0xf]  ;;  %v895_v40 = vld [vmem:[%s1097_s8 + $0x20] sm:$0xf0]  ;;  %v772_v42 = vor.u32 %v891_v35, %v769_v36  ;;  %v776_v43 = vor.u32 %v893_v38, %v775_v37  ;;  %v894_v45 = vld [vmem:[%s1097_s8 + $0x1c] sm:$0xf] }
  0x38   : > { %v780_v44 = vor.u32 %v895_v40, %v779_v39  ;;  %v781_v46 = vld [vmem:[%s1097_s8 + $0x24] sm:$0xf0]  ;;  %v787_v47 = vld [vmem:[%s1097_s8 + $0x20] sm:$0xf]  ;;  %v896_v48 = vld [vmem:[%s1097_s8 + $0x28] sm:$0xf0] }
  0x39   : > { %544 = vmatpush.bf16.msra.mxu0 %v901_v18  ;;  %935 = vmatpush.bf16.msra.mxu3 %v901_v18  ;;  %v784_v49 = vor.u32 %v894_v45, %v781_v46  ;;  %v788_v50 = vor.u32 %v896_v48, %v787_v47  ;;  %v306_v61 = vld [vmem:[#allocation2] sm:$0xff]  ;;  %v308_v11 = vld [vmem:[#allocation2 + $0x8] sm:$0xff] }
  0x3a   : > { %563 = vmatpush.bf16.msra.mxu1 %v909_v19 }
  0x3b   : > { %582 = vmatpush.bf16.msra.mxu2 %v917_v20 }
  0x3d   : > { %545 = vmatpush.bf16.msra.mxu0 %v900_v21  ;;  %936 = vmatpush.bf16.msra.mxu3 %v900_v21 }
  0x3e   : > { %564 = vmatpush.bf16.msra.mxu1 %v908_v22 }
  0x3f   : > { %583 = vmatpush.bf16.msra.mxu2 %v916_v23 }
  0x41   : > { %546 = vmatpush.bf16.msra.mxu0 %v899_v24  ;;  %937 = vmatpush.bf16.msra.mxu3 %v899_v24 }
  0x42   : > { %565 = vmatpush.bf16.msra.mxu1 %v907_v25 }
  0x43   : > { %584 = vmatpush.bf16.msra.mxu2 %v915_v26 }
  0x45   : > { %547 = vmatpush.bf16.msra.mxu0 %v898_v27  ;;  %938 = vmatpush.bf16.msra.mxu3 %v898_v27 }
  0x46   : > { %566 = vmatpush.bf16.msra.mxu1 %v906_v28 }
  0x47   : > { %585 = vmatpush.bf16.msra.mxu2 %v914_v29 }
  0x49   : > { %548 = vmatpush.bf16.msra.mxu0 %v897_v30  ;;  %939 = vmatpush.bf16.msra.mxu3 %v897_v30 }
  0x4a   : > { %567 = vmatpush.bf16.msra.mxu1 %v905_v31 }
  0x4b   : > { %586 = vmatpush.bf16.msra.mxu2 %v913_v32 }
  0x4c   : > { %549 = vmatmul.bf16.vlgmr.msra.gmra.mxu0 %v768_v41  ;;  %554 = vmatmul.bf16.vlgmr.msra.gmra.mxu3 %v780_v44 }
  0x4d   : > { %568 = vmatmul.bf16.vlgmr.msra.gmra.mxu1 %v772_v42 }
  0x4e   : > { %587 = vmatmul.bf16.vlgmr.msra.gmra.mxu2 %v776_v43 }
  0x5d   : > { %573 = vmatmul.bf16.gmra.mxu1 %v784_v49 }
  0x5e   : > { %592 = vmatmul.bf16.gmra.mxu2 %v788_v50 }
  0xc9   : > { %v550_v52 = vpop.f32.mrf.mxu0 }
  0xca   : > { %v569_v51 = vpop.f32.mrf.mxu1 }
  0xcb   : > { %v570_v53 = vadd.f32 %v569_v51, %v550_v52 }
  0xcf   : > { %v555_v2 = vpop.f32.mrf.mxu3 }
  0xd1   : > { %v588_v55 = vpop.f32.mrf.mxu2  ;;  %v552_v59 = vpop.f32.mrf.mxu0 }
  0xd2   : > { %v589_v56 = vadd.f32 %v588_v55, %v570_v53  ;;  %v571_v57 = vpop.f32.mrf.mxu1 }
  0xd3   : > { %v572_v60 = vadd.f32 %v571_v57, %v552_v59 }
  0xd4   : > { %v598_v58 = vadd.f32 %v589_v56, %v305_v54 }
  0xd6   : > { %602 = vst [vmem:[#allocation2 + $0x10] sm:$0xff] %v598_v58 }
  0xd7   : > { %v557_v9 = vpop.f32.mrf.mxu3 }
  0xd9   : > { %v590_v62 = vpop.f32.mrf.mxu2 }
  0xda   : > { %v591_v63 = vadd.f32 %v590_v62, %v572_v60  ;;  %v574_v0 = vpop.f32.mrf.mxu1 }
  0xdb   : > { %v575_v3 = vadd.f32 %v574_v0, %v555_v2 }
  0xdc   : > { %v599_v1 = vadd.f32 %v591_v63, %v306_v61 }
  0xde   : > { %603 = vst [vmem:[#allocation2] sm:$0xff] %v599_v1 }
  0xe1   : > { %v593_v5 = vpop.f32.mrf.mxu2 }
  0xe2   : > { %v594_v6 = vadd.f32 %v593_v5, %v575_v3  ;;  %v576_v8 = vpop.f32.mrf.mxu1 }
  0xe3   : > { %v577_v10 = vadd.f32 %v576_v8, %v557_v9 }
  0xe4   : > { %v600_v7 = vadd.f32 %v594_v6, %v307_v4 }
  0xe6   : > { %604 = vst [vmem:[#allocation2 + $0x18] sm:$0xff] %v600_v7 }
  0xe9   : > { %v595_v12 = vpop.f32.mrf.mxu2 }
  0xea   : > { %v596_v13 = vadd.f32 %v595_v12, %v577_v10  ;;  %609 = sbr.rel (%p885_p11) target bundleno = 253 (0xfd), region = 66 }
  0xec   : > { %v601_v14 = vadd.f32 %v596_v13, %v308_v11 }
  0xee   : > { %605 = vst [vmem:[#allocation2 + $0x8] sm:$0xff] %v601_v14 }
  0xef   : > { %v610_v15 = vld [vmem:[#allocation2 + $0x10] sm:$0xff]  ;;  %v611_v16 = vld [vmem:[#allocation2] sm:$0xff]  ;;  %v612_v18 = vld [vmem:[#allocation2 + $0x18] sm:$0xff] }
  0xf0   : > { %v983_v17 = vld [vmem:[%s1163_s2] ss:$0 sm:$0xff] }
  0xf1   : > { %v618_v20 = vadd.f32 %v983_v17, %v610_v15  ;;  %v619_v21 = vadd.f32 %v983_v17, %v611_v16  ;;  %v620_v22 = vadd.f32 %v983_v17, %v612_v18 }
  0xf3   : > { %v622_v24 = vmax.f32 %v618_v20, 0.0  ;;  %v623_v25 = vmax.f32 %v619_v21, 0.0  ;;  %v624_v26 = vmax.f32 %v620_v22, 0.0 }
  0xf5   : > { %v613_v19 = vld [vmem:[#allocation2 + $0x8] sm:$0xff]  ;;  %v924_v28 = vpack.c.bf16 %v623_v25, %v622_v24 }
  0xf6   : > { %v621_v23 = vadd.f32 %v983_v17, %v613_v19 }
  0xf7   : > { %925 = vst [vmem:[%s1164_s3] sm:$0xff] %v924_v28  }
  0xf8   : > { %v625_v27 = vmax.f32 %v621_v23, 0.0 }
  0xfa   : > { %v929_v29 = vpack.c.bf16 %v625_v27, %v624_v26 }
  0xfc   : > { %931 = vst [vmem:[%s1164_s3 + $0x8] sm:$0xff] %v929_v29  }
  0xfd PF: > { %s13_s16 = sadd.s32 1, %s1022_s16   ;;  %s1165_s12 = smov %s1010_s13 }
  0xfe   : > { %p10_p12 = scmp.ge.s32.totalorder %s13_s16, 5   ;;  %s1166_s13 = smov %s1080_s20 }
  0xff   : > { %s1167_s14 = smov %s1018_s15  ;;  %s1168_s15 = smov %s1170_s17 }
 0x100   :  { %12 = sbr.rel (!%p10_p12) target bundleno = 3 (0x3), region = 113 }

// kernel: _lambda_.56
= control target key start
LH: loop header
LB: loop body
LE: loop exit
PB: predicated region body
PF: predicated region fallthrough
CT: control target
= control target key end

     0   :  { %s1237_s12 = smov 0   ;;  %s1239_s13 = smov 0   ;;  %s1485_s0 = inlined_call_operand.vmem [shape: bf16[32,256], index: 0, kind: input, shape index: {}]   ;;  %s1486_s1 = inlined_call_operand.vmem [shape: bf16[256,512], index: 1, kind: input, shape index: {}]   ;;  %s1487_s2 = inlined_call_operand.vmem [shape: f32[1,512], index: 2, kind: input, shape index: {}]   ;;  %s1488_s3 = inlined_call_operand.vmem [shape: bf16[32,512], index: 3, kind: output, shape index: {}]  }
   0x1   :  { %s1241_s14 = smov 0   ;;  %s1243_s15 = smov 0  }
   0x2   :  { %s1245_s16 = smov 0  }
   0x3 LB: > { %s28_s17 = sadd.s32 1, %s1211_s15  ;;  %s938_s18 = sadd.s32 4294967295, %s1215_s16   ;;  %s1215_s16 = sphi %s1245_s16, %s13_s16   ;;  %s1211_s15 = sphi %s1243_s15, %s1493_s15   ;;  %s1207_s14 = sphi %s1241_s14, %s1492_s14   ;;  %s1203_s13 = sphi %s1239_s13, %s1491_s13   ;;  %s1199_s12 = sphi %s1237_s12, %s1490_s12  }
   0x4   : > { %p30_p0 = scmp.ge.s32.totalorder %s28_s17, 2  ;;  %p76_p1 = scmp.ne.s32.totalorder %s1203_s13, %s1199_s12 }
   0x5   : > { %p77_p2 = scmp.eq.s32.totalorder %s1215_s16, 0  ;;  %p134_p4 = scmp.eq.s32.totalorder %s938_s18, 1 }
   0x6   : > { %s1495_s17 = smov (%p30_p0, %s28_s17), 0  ;;  %s69_s20 = sadd.s32 1, %s1203_s13 }
   0x7   : > { %p78_p3 = por %p77_p2, %p76_p1  ;;  %s65_s19 = ssub.s32 %s1211_s15, %s1495_s17 }
   0x8   : > { %p67_p5 = scmp.eq.s32.totalorder %s65_s19, 0  ;;  %p1272_p6 = por %p134_p4, %p76_p1 }
   0x9   : > { %p942_p7 = scmp.ge.s32.totalorder %s1215_s16, 2 }
   0xa   : > { %s1277_s22 = scalar_select %p67_p5, %s1203_s13, %s69_s20  }
   0xb   : > { %171 = sbr.rel (%p942_p7) target bundleno = 52 (0x34), region = 20 }
  0x10   : > { %174 = sbr.rel (!%p78_p3) target bundleno = 52 (0x34), region = 24  ;;  %s176_s23 = sand.u32 (%p78_p3), 1, %s1203_s13  }
  0x11   : > { %s1099_s24 = sshll.u32 (%p78_p3), %s1211_s15, 3  ;;  %s943_s25 = sshll.u32 (%p78_p3), %s176_s23, 8 }
  0x12   : > { %s1285_s28 = scalar_lea.vmem (%p78_p3), %s1486_s1, %s1099_s24  ;;  %s1290_s29 = scalar_lea.vmem (%p78_p3), [#allocation3], %s943_s25 }
  0x13   : > { %v275_v0 = vld [vmem:[%s1285_s28] sm:$0xff] (%p78_p3)  ;;  %v277_v1 = vld [vmem:[%s1285_s28 + $0x10] sm:$0xff] (%p78_p3) }
  0x14   : > { %v279_v2 = vld [vmem:[%s1285_s28 + $0x20] sm:$0xff] (%p78_p3)  ;;  %276 = vst [vmem:[%s1290_s29] sm:$0xff] (%p78_p3), %v275_v0  ;;  %v281_v3 = vld [vmem:[%s1285_s28 + $0x30] sm:$0xff] (%p78_p3) }
  0x15   : > { %278 = vst [vmem:[%s1290_s29 + $0x8] sm:$0xff] %v277_v1  ;;  %v283_v4 = vld [vmem:[%s1285_s28 + $0x40] sm:$0xff]  ;;  %v285_v5 = vld [vmem:[%s1285_s28 + $0x50] sm:$0xff] }
  0x16   : > { %280 = vst [vmem:[%s1290_s29 + $0x10] sm:$0xff] %v279_v2  ;;  %v287_v6 = vld [vmem:[%s1285_s28 + $0x60] sm:$0xff]  ;;  %v289_v7 = vld [vmem:[%s1285_s28 + $0x70] sm:$0xff] }
  0x17   : > { %282 = vst [vmem:[%s1290_s29 + $0x18] sm:$0xff] %v281_v3  ;;  %v291_v8 = vld [vmem:[%s1285_s28 + $0x80] sm:$0xff]  ;;  %v293_v9 = vld [vmem:[%s1285_s28 + $0x90] sm:$0xff] }
  0x18   : > { %284 = vst [vmem:[%s1290_s29 + $0x20] sm:$0xff] %v283_v4  ;;  %v295_v10 = vld [vmem:[%s1285_s28 + $0xa0] sm:$0xff]  ;;  %v297_v11 = vld [vmem:[%s1285_s28 + $0xb0] sm:$0xff] }
  0x19   : > { %286 = vst [vmem:[%s1290_s29 + $0x28] sm:$0xff] %v285_v5  ;;  %v299_v12 = vld [vmem:[%s1285_s28 + $0xc0] sm:$0xff]  ;;  %v301_v13 = vld [vmem:[%s1285_s28 + $0xd0] sm:$0xff] }
  0x1a   : > { %288 = vst [vmem:[%s1290_s29 + $0x30] sm:$0xff] %v287_v6  ;;  %v303_v14 = vld [vmem:[%s1285_s28 + $0xe0] sm:$0xff]  ;;  %v305_v15 = vld [vmem:[%s1285_s28 + $0xf0] sm:$0xff] }
  0x1b   : > { %290 = vst [vmem:[%s1290_s29 + $0x38] sm:$0xff] %v289_v7  ;;  %v307_v16 = vld [vmem:[%s1285_s28 + $0x100] sm:$0xff]  ;;  %v309_v17 = vld [vmem:[%s1285_s28 + $0x110] sm:$0xff] }
  0x1c   : > { %292 = vst [vmem:[%s1290_s29 + $0x40] sm:$0xff] %v291_v8  ;;  %v311_v18 = vld [vmem:[%s1285_s28 + $0x120] sm:$0xff]  ;;  %v313_v19 = vld [vmem:[%s1285_s28 + $0x130] sm:$0xff] }
  0x1d   : > { %294 = vst [vmem:[%s1290_s29 + $0x48] sm:$0xff] %v293_v9  ;;  %v315_v20 = vld [vmem:[%s1285_s28 + $0x140] sm:$0xff]  ;;  %v317_v21 = vld [vmem:[%s1285_s28 + $0x150] sm:$0xff] }
  0x1e   : > { %296 = vst [vmem:[%s1290_s29 + $0x50] sm:$0xff] %v295_v10  ;;  %v319_v22 = vld [vmem:[%s1285_s28 + $0x160] sm:$0xff]  ;;  %v321_v23 = vld [vmem:[%s1285_s28 + $0x170] sm:$0xff] }
  0x1f   : > { %298 = vst [vmem:[%s1290_s29 + $0x58] sm:$0xff] %v297_v11  ;;  %v323_v24 = vld [vmem:[%s1285_s28 + $0x180] sm:$0xff]  ;;  %v325_v25 = vld [vmem:[%s1285_s28 + $0x190] sm:$0xff] }
  0x20   : > { %300 = vst [vmem:[%s1290_s29 + $0x60] sm:$0xff] %v299_v12  ;;  %v327_v26 = vld [vmem:[%s1285_s28 + $0x1a0] sm:$0xff]  ;;  %v329_v27 = vld [vmem:[%s1285_s28 + $0x1b0] sm:$0xff] }
  0x21   : > { %302 = vst [vmem:[%s1290_s29 + $0x68] sm:$0xff] %v301_v13  ;;  %v331_v28 = vld [vmem:[%s1285_s28 + $0x1c0] sm:$0xff]  ;;  %v333_v29 = vld [vmem:[%s1285_s28 + $0x1d0] sm:$0xff] }
  0x22   : > { %304 = vst [vmem:[%s1290_s29 + $0x70] sm:$0xff] %v303_v14  ;;  %v335_v30 = vld [vmem:[%s1285_s28 + $0x1e0] sm:$0xff]  ;;  %v337_v31 = vld [vmem:[%s1285_s28 + $0x1f0] sm:$0xff] }
  0x23   : > { %306 = vst [vmem:[%s1290_s29 + $0x78] sm:$0xff] %v305_v15 }
  0x24   : > { %308 = vst [vmem:[%s1290_s29 + $0x80] sm:$0xff] %v307_v16 }
  0x25   : > { %310 = vst [vmem:[%s1290_s29 + $0x88] sm:$0xff] %v309_v17 }
  0x26   : > { %312 = vst [vmem:[%s1290_s29 + $0x90] sm:$0xff] %v311_v18 }
  0x27   : > { %314 = vst [vmem:[%s1290_s29 + $0x98] sm:$0xff] %v313_v19 }
  0x28   : > { %316 = vst [vmem:[%s1290_s29 + $0xa0] sm:$0xff] %v315_v20 }
  0x29   : > { %318 = vst [vmem:[%s1290_s29 + $0xa8] sm:$0xff] %v317_v21 }
  0x2a   : > { %320 = vst [vmem:[%s1290_s29 + $0xb0] sm:$0xff] %v319_v22 }
  0x2b   : > { %322 = vst [vmem:[%s1290_s29 + $0xb8] sm:$0xff] %v321_v23 }
  0x2c   : > { %324 = vst [vmem:[%s1290_s29 + $0xc0] sm:$0xff] %v323_v24 }
  0x2d   : > { %326 = vst [vmem:[%s1290_s29 + $0xc8] sm:$0xff] %v325_v25 }
  0x2e   : > { %328 = vst [vmem:[%s1290_s29 + $0xd0] sm:$0xff] %v327_v26 }
  0x2f   : > { %330 = vst [vmem:[%s1290_s29 + $0xd8] sm:$0xff] %v329_v27 }
  0x30   : > { %332 = vst [vmem:[%s1290_s29 + $0xe0] sm:$0xff] %v331_v28 }
  0x31   : > { %334 = vst [vmem:[%s1290_s29 + $0xe8] sm:$0xff] %v333_v29 }
  0x32   : > { %336 = vst [vmem:[%s1290_s29 + $0xf0] sm:$0xff] %v335_v30 }
  0x33   : > { %338 = vst [vmem:[%s1290_s29 + $0xf8] sm:$0xff] %v337_v31 }
  0x34 PF: > { %p946_p8 = scmp.ge.s32.totalorder %s1215_s16, 1  ;;  %p351_p9 = scmp.lt.s32.totalorder %s1215_s16, 3 }
  0x36   : > { %p352_p10 = pnand %p946_p8, %p351_p9 }
  0x37   : > { %s358_s30 = sand.u32 (!%p352_p10), 1, %s1199_s12  }
  0x38   : > { %355 = sbr.rel (%p352_p10) target bundleno = 268 (0x10c), region = 66  ;;  %s947_s4 = sshll.u32 (!%p352_p10), %s358_s30, 8 }
  0x39   : > { %s1358_s5 = scalar_lea.vmem (!%p352_p10), [#allocation3], %s947_s4  ;;  %s949_s4 = sshll.u32 (!%p352_p10), %s1207_s14, 1 }
  0x3a   : > { %p409_p11 = scmp.lt.s32.totalorder (!%p352_p10), %s949_s4, 3  ;;  %s948_s8 = sshll.u32 (!%p352_p10), %s358_s30, 5 }
  0x3b   : > { %s1454_s9 = scalar_lea.vmem (!%p352_p10), [#allocation4], %s948_s8 }
  0x3d   : > { %v1024_v32 = vld [vmem:[%s1358_s5 + $0x70] sm:$0xf]  ;;  %v1119_v33 = vld [vmem:[%s1358_s5 + $0x74] sm:$0xf0]  ;;  %v1118_v37 = vld [vmem:[%s1358_s5 + $0x74] sm:$0xf] }
  0x3e   : > { %v1088_v34 = vld [vmem:[%s1358_s5 + $0xf0] sm:$0xf]  ;;  %v1025_v35 = vor.u32 %v1119_v33, %v1024_v32  ;;  %v1135_v36 = vld [vmem:[%s1358_s5 + $0xf4] sm:$0xf0]  ;;  %v1026_v38 = vld [vmem:[%s1358_s5 + $0x78] sm:$0xf0] }
  0x3f   : > { %v1089_v39 = vor.u32 %v1135_v36, %v1088_v34  ;;  %v1029_v40 = vor.u32 %v1118_v37, %v1026_v38  ;;  %v1134_v41 = vld [vmem:[%s1358_s5 + $0xf4] sm:$0xf]  ;;  %v1090_v42 = vld [vmem:[%s1358_s5 + $0xf8] sm:$0xf0]  ;;  %v1016_v43 = vld [vmem:[%s1358_s5 + $0x60] sm:$0xf] }
  0x40   : > { %651 = vmatpush.bf16.msra.mxu0 %v1025_v35  ;;  %v1093_v44 = vor.u32 %v1134_v41, %v1090_v42  ;;  %v1117_v45 = vld [vmem:[%s1358_s5 + $0x64] sm:$0xf0]  ;;  %v1080_v46 = vld [vmem:[%s1358_s5 + $0xe0] sm:$0xf]  ;;  %v1116_v50 = vld [vmem:[%s1358_s5 + $0x64] sm:$0xf] }
  0x41   : > { %v1133_v47 = vld [vmem:[%s1358_s5 + $0xe4] sm:$0xf0]  ;;  %670 = vmatpush.bf16.msra.mxu1 %v1089_v39  ;;  %689 = vmatpush.bf16.msra.mxu2 %v1029_v40  ;;  %v1017_v48 = vor.u32 %v1117_v45, %v1016_v43  ;;  %v1018_v51 = vld [vmem:[%s1358_s5 + $0x68] sm:$0xf0]  ;;  %v1132_v52 = vld [vmem:[%s1358_s5 + $0xe4] sm:$0xf] }
  0x42   : > { %v1081_v49 = vor.u32 %v1133_v47, %v1080_v46  ;;  %708 = vmatpush.bf16.msra.mxu3 %v1093_v44  ;;  %v1021_v53 = vor.u32 %v1116_v50, %v1018_v51  ;;  %v1082_v54 = vld [vmem:[%s1358_s5 + $0xe8] sm:$0xf0]  ;;  %v1008_v55 = vld [vmem:[%s1358_s5 + $0x50] sm:$0xf]  ;;  %v1115_v56 = vld [vmem:[%s1358_s5 + $0x54] sm:$0xf0] }
  0x43   : > { %v1085_v57 = vor.u32 %v1132_v52, %v1082_v54  ;;  %v1072_v58 = vld [vmem:[%s1358_s5 + $0xd0] sm:$0xf]  ;;  %v1131_v59 = vld [vmem:[%s1358_s5 + $0xd4] sm:$0xf0]  ;;  %v1114_v60 = vld [vmem:[%s1358_s5 + $0x54] sm:$0xf]  ;;  %v1009_v61 = vor.u32 %v1115_v56, %v1008_v55 }
  0x44   : > { %652 = vmatpush.bf16.msra.mxu0 %v1017_v48  ;;  %v1010_v62 = vld [vmem:[%s1358_s5 + $0x58] sm:$0xf0]  ;;  %v1130_v63 = vld [vmem:[%s1358_s5 + $0xd4] sm:$0xf]  ;;  %v1073_v1 = vor.u32 %v1131_v59, %v1072_v58  ;;  %v1000_v3 = vld [vmem:[%s1358_s5 + $0x40] sm:$0xf] }
  0x45   : > { %v1074_v0 = vld [vmem:[%s1358_s5 + $0xd8] sm:$0xf0]  ;;  %671 = vmatpush.bf16.msra.mxu1 %v1081_v49  ;;  %690 = vmatpush.bf16.msra.mxu2 %v1021_v53  ;;  %v1013_v2 = vor.u32 %v1114_v60, %v1010_v62  ;;  %v1113_v4 = vld [vmem:[%s1358_s5 + $0x44] sm:$0xf0]  ;;  %v1064_v5 = vld [vmem:[%s1358_s5 + $0xc0] sm:$0xf] }
  0x46   : > { %709 = vmatpush.bf16.msra.mxu3 %v1085_v57  ;;  %v1077_v6 = vor.u32 %v1130_v63, %v1074_v0  ;;  %v1129_v7 = vld [vmem:[%s1358_s5 + $0xc4] sm:$0xf0]  ;;  %v1112_v8 = vld [vmem:[%s1358_s5 + $0x44] sm:$0xf]  ;;  %v1002_v9 = vld [vmem:[%s1358_s5 + $0x48] sm:$0xf0]  ;;  %v1001_v12 = vor.u32 %v1113_v4, %v1000_v3 }
  0x47   : > { %v1128_v10 = vld [vmem:[%s1358_s5 + $0xc4] sm:$0xf]  ;;  %v1066_v11 = vld [vmem:[%s1358_s5 + $0xc8] sm:$0xf0]  ;;  %v1065_v13 = vor.u32 %v1129_v7, %v1064_v5  ;;  %v1005_v14 = vor.u32 %v1112_v8, %v1002_v9  ;;  %v992_v15 = vld [vmem:[%s1358_s5 + $0x30] sm:$0xf] }
  0x48   : > { %653 = vmatpush.bf16.msra.mxu0 %v1009_v61  ;;  %v1111_v16 = vld [vmem:[%s1358_s5 + $0x34] sm:$0xf0]  ;;  %v1056_v17 = vld [vmem:[%s1358_s5 + $0xb0] sm:$0xf]  ;;  %v1069_v18 = vor.u32 %v1128_v10, %v1066_v11  ;;  %v1110_v20 = vld [vmem:[%s1358_s5 + $0x34] sm:$0xf] }
  0x49   : > { %672 = vmatpush.bf16.msra.mxu1 %v1073_v1  ;;  %691 = vmatpush.bf16.msra.mxu2 %v1013_v2  ;;  %v1127_v19 = vld [vmem:[%s1358_s5 + $0xb4] sm:$0xf0]  ;;  %v994_v21 = vld [vmem:[%s1358_s5 + $0x38] sm:$0xf0]  ;;  %v1126_v22 = vld [vmem:[%s1358_s5 + $0xb4] sm:$0xf]  ;;  %v993_v24 = vor.u32 %v1111_v16, %v992_v15 }
  0x4a   : > { %710 = vmatpush.bf16.msra.mxu3 %v1077_v6  ;;  %v1058_v23 = vld [vmem:[%s1358_s5 + $0xb8] sm:$0xf0]  ;;  %v1057_v25 = vor.u32 %v1127_v19, %v1056_v17  ;;  %v997_v26 = vor.u32 %v1110_v20, %v994_v21  ;;  %v984_v27 = vld [vmem:[%s1358_s5 + $0x20] sm:$0xf]  ;;  %v1109_v28 = vld [vmem:[%s1358_s5 + $0x24] sm:$0xf0] }
  0x4b   : > { %v1048_v29 = vld [vmem:[%s1358_s5 + $0xa0] sm:$0xf]  ;;  %v1061_v30 = vor.u32 %v1126_v22, %v1058_v23  ;;  %v1125_v31 = vld [vmem:[%s1358_s5 + $0xa4] sm:$0xf0]  ;;  %v1108_v32 = vld [vmem:[%s1358_s5 + $0x24] sm:$0xf]  ;;  %v985_v36 = vor.u32 %v1109_v28, %v984_v27 }
  0x4c   : > { %654 = vmatpush.bf16.msra.mxu0 %v1001_v12  ;;  %v986_v33 = vld [vmem:[%s1358_s5 + $0x28] sm:$0xf0]  ;;  %v1124_v34 = vld [vmem:[%s1358_s5 + $0xa4] sm:$0xf]  ;;  %v1049_v37 = vor.u32 %v1125_v31, %v1048_v29  ;;  %v976_v39 = vld [vmem:[%s1358_s5 + $0x10] sm:$0xf] }
  0x4d   : > { %673 = vmatpush.bf16.msra.mxu1 %v1065_v13  ;;  %692 = vmatpush.bf16.msra.mxu2 %v1005_v14  ;;  %v1050_v35 = vld [vmem:[%s1358_s5 + $0xa8] sm:$0xf0]  ;;  %v989_v38 = vor.u32 %v1108_v32, %v986_v33  ;;  %v1107_v40 = vld [vmem:[%s1358_s5 + $0x14] sm:$0xf0]  ;;  %v1040_v41 = vld [vmem:[%s1358_s5 + $0x90] sm:$0xf] }
  0x4e   : > { %711 = vmatpush.bf16.msra.mxu3 %v1069_v18  ;;  %v1053_v42 = vor.u32 %v1124_v34, %v1050_v35  ;;  %v1123_v43 = vld [vmem:[%s1358_s5 + $0x94] sm:$0xf0]  ;;  %v1106_v44 = vld [vmem:[%s1358_s5 + $0x14] sm:$0xf]  ;;  %v978_v45 = vld [vmem:[%s1358_s5 + $0x18] sm:$0xf0]  ;;  %v977_v48 = vor.u32 %v1107_v40, %v976_v39 }
  0x4f   : > { %v1122_v46 = vld [vmem:[%s1358_s5 + $0x94] sm:$0xf]  ;;  %v1042_v47 = vld [vmem:[%s1358_s5 + $0x98] sm:$0xf0]  ;;  %v1041_v49 = vor.u32 %v1123_v43, %v1040_v41  ;;  %v981_v50 = vor.u32 %v1106_v44, %v978_v45  ;;  %v968_v51 = vld [vmem:[%s1358_s5] sm:$0xf] }
  0x50   : > { %655 = vmatpush.bf16.msra.mxu0 %v993_v24  ;;  %v1105_v52 = vld [vmem:[%s1358_s5 + $0x4] sm:$0xf0]  ;;  %v1032_v53 = vld [vmem:[%s1358_s5 + $0x80] sm:$0xf]  ;;  %v1045_v54 = vor.u32 %v1122_v46, %v1042_v47  ;;  %v1104_v56 = vld [vmem:[%s1358_s5 + $0x4] sm:$0xf] }
  0x51   : > { %674 = vmatpush.bf16.msra.mxu1 %v1057_v25  ;;  %693 = vmatpush.bf16.msra.mxu2 %v997_v26  ;;  %v1121_v55 = vld [vmem:[%s1358_s5 + $0x84] sm:$0xf0]  ;;  %v970_v57 = vld [vmem:[%s1358_s5 + $0x8] sm:$0xf0]  ;;  %v1120_v58 = vld [vmem:[%s1358_s5 + $0x84] sm:$0xf]  ;;  %v969_v60 = vor.u32 %v1105_v52, %v968_v51 }
  0x52   : > { %712 = vmatpush.bf16.msra.mxu3 %v1061_v30  ;;  %v1034_v59 = vld [vmem:[%s1358_s5 + $0x88] sm:$0xf0]  ;;  %v952_v61 = vld [vmem:[%s1485_s0] sm:$0xf]  ;;  %v1101_v62 = vld [vmem:[%s1485_s0 + $0x4] sm:$0xf0]  ;;  %v1033_v63 = vor.u32 %v1121_v55, %v1032_v53  ;;  %v973_v0 = vor.u32 %v1104_v56, %v970_v57 }
  0x53   : > { %v1100_v1 = vld [vmem:[%s1485_s0 + $0x4] sm:$0xf]  ;;  %v954_v2 = vld [vmem:[%s1485_s0 + $0x8] sm:$0xf0]  ;;  %v1037_v3 = vor.u32 %v1120_v58, %v1034_v59  ;;  %v953_v4 = vor.u32 %v1101_v62, %v952_v61  ;;  %v960_v6 = vld [vmem:[%s1485_s0 + $0x10] sm:$0xf] }
  0x54   : > { %656 = vmatpush.bf16.msra.mxu0 %v985_v36  ;;  %v957_v5 = vor.u32 %v1100_v1, %v954_v2  ;;  %v1103_v7 = vld [vmem:[%s1485_s0 + $0x14] sm:$0xf0]  ;;  %v1102_v8 = vld [vmem:[%s1485_s0 + $0x14] sm:$0xf]  ;;  %v962_v9 = vld [vmem:[%s1485_s0 + $0x18] sm:$0xf0] }
  0x55   : > { %675 = vmatpush.bf16.msra.mxu1 %v1049_v37  ;;  %694 = vmatpush.bf16.msra.mxu2 %v989_v38  ;;  %v961_v10 = vor.u32 %v1103_v7, %v960_v6  ;;  %v965_v11 = vor.u32 %v1102_v8, %v962_v9  ;;  %s1497_s4 = smov (!%p409_p11, %s949_s4), 3  ;;  %s1136_s12 = sshll.u32 (%p1272_p6), %s1207_s14, 3 }
  0x56   : > { %713 = vmatpush.bf16.msra.mxu3 %v1053_v42  ;;  %s411_s7 = scalar_lea.vmem %s1487_s2, %s1497_s4  ;;  %s788_s11 = scalar_lea.vmem (%p1272_p6), %s1488_s3, %s1136_s12 }
  0x57   : > { %v754_v14 = vld [vmem:[%s411_s7] sm:$0x3] }
  0x58   : > { %657 = vmatpush.bf16.msra.mxu0 %v977_v48  ;;  %v756_v16 = vperm.slane %v754_v14, 0  ;;  %v757_v18 = vperm.slane %v754_v14, 1 }
  0x59   : > { %676 = vmatpush.bf16.msra.mxu1 %v1041_v49  ;;  %695 = vmatpush.bf16.msra.mxu2 %v981_v50 }
  0x5a   : > { %714 = vmatpush.bf16.msra.mxu3 %v1045_v54 }
  0x5c   : > { %658 = vmatpush.bf16.msra.mxu0 %v969_v60 }
  0x5d   : > { %677 = vmatpush.bf16.msra.mxu1 %v1033_v63  ;;  %696 = vmatpush.bf16.msra.mxu2 %v973_v0 }
  0x5e   : > { %715 = vmatpush.bf16.msra.mxu3 %v1037_v3 }
  0x5f   : > { %659 = vmatmul.bf16.vlgmr.msra.gmra.mxu0 %v953_v4 }
  0x60   : > { %678 = vmatmul.bf16.vlgmr.msra.gmra.mxu1 %v957_v5  ;;  %697 = vmatmul.bf16.vlgmr.msra.gmra.mxu2 %v953_v4 }
  0x61   : > { %716 = vmatmul.bf16.vlgmr.msra.gmra.mxu3 %v957_v5 }
  0x6f   : > { %664 = vmatmul.bf16.gmra.mxu0 %v961_v10 }
  0x70   : > { %683 = vmatmul.bf16.gmra.mxu1 %v965_v11  ;;  %702 = vmatmul.bf16.gmra.mxu2 %v961_v10 }
  0x71   : > { %721 = vmatmul.bf16.gmra.mxu3 %v965_v11 }
  0xdc   : > { %v660_v12 = vpop.f32.mrf.mxu0 }
  0xdd   : > { %v679_v13 = vpop.f32.mrf.mxu1 }
  0xde   : > { %v680_v15 = vadd.f32 %v679_v13, %v660_v12 }
  0xe0   : > { %v760_v21 = vadd.f32 %v756_v16, %v680_v15 }
  0xe3   : > { %v698_v17 = vpop.f32.mrf.mxu2 }
  0xe4   : > { %v717_v19 = vpop.f32.mrf.mxu3  ;;  %v662_v20 = vpop.f32.mrf.mxu0 }
  0xe5   : > { %v718_v22 = vadd.f32 %v717_v19, %v698_v17  ;;  %v681_v23 = vpop.f32.mrf.mxu1 }
  0xe6   : > { %v682_v26 = vadd.f32 %v681_v23, %v662_v20 }
  0xe7   : > { %v761_v24 = vadd.f32 %v757_v18, %v718_v22 }
  0xe8   : > { %v762_v32 = vadd.f32 %v756_v16, %v682_v26 }
  0xe9   : > { %v768_v25 = vpack.c.bf16 %v761_v24, %v760_v21 }
  0xeb   : > { %772 = vst [vmem:[%s1454_s9] sm:$0xff] %v768_v25  ;;  %v700_v27 = vpop.f32.mrf.mxu2 }
  0xec   : > { %v719_v28 = vpop.f32.mrf.mxu3  ;;  %v665_v30 = vpop.f32.mrf.mxu0 }
  0xed   : > { %v720_v29 = vadd.f32 %v719_v28, %v700_v27  ;;  %v684_v31 = vpop.f32.mrf.mxu1 }
  0xee   : > { %v685_v35 = vadd.f32 %v684_v31, %v665_v30 }
  0xef   : > { %v763_v33 = vadd.f32 %v757_v18, %v720_v29 }
  0xf0   : > { %v764_v38 = vadd.f32 %v756_v16, %v685_v35 }
  0xf1   : > { %v769_v34 = vpack.c.bf16 %v763_v33, %v762_v32 }
  0xf2   : > { %v823_v51 = vld [vmem:[%s1454_s9] sm:$0xff] (%p1272_p6) }
  0xf3   : > { %773 = vst [vmem:[%s1454_s9 + $0x8] sm:$0xff] %v769_v34  ;;  %v703_v36 = vpop.f32.mrf.mxu2 }
  0xf4   : > { %v722_v37 = vpop.f32.mrf.mxu3  ;;  %v667_v41 = vpop.f32.mrf.mxu0  ;;  %824 = vst [vmem:[%s788_s11] sm:$0xff] (%p1272_p6), %v823_v51 }
  0xf5   : > { %v723_v39 = vadd.f32 %v722_v37, %v703_v36  ;;  %v686_v42 = vpop.f32.mrf.mxu1 }
  0xf6   : > { %v687_v44 = vadd.f32 %v686_v42, %v667_v41 }
  0xf7   : > { %v765_v40 = vadd.f32 %v757_v18, %v723_v39 }
  0xf8   : > { %v766_v48 = vadd.f32 %v756_v16, %v687_v44 }
  0xf9   : > { %v770_v43 = vpack.c.bf16 %v765_v40, %v764_v38 }
  0xfa   : > { %v825_v52 = vld [vmem:[%s1454_s9 + $0x8] sm:$0xff] (%p1272_p6) }
  0xfb   : > { %774 = vst [vmem:[%s1454_s9 + $0x10] sm:$0xff] %v770_v43  ;;  %v705_v45 = vpop.f32.mrf.mxu2 }
  0xfc   : > { %v724_v46 = vpop.f32.mrf.mxu3  ;;  %826 = vst [vmem:[%s788_s11 + $0x10] sm:$0xff] (%p1272_p6), %v825_v52 }
  0xfd   : > { %v725_v47 = vadd.f32 %v724_v46, %v705_v45 }
  0xff   : > { %v767_v49 = vadd.f32 %v757_v18, %v725_v47  ;;  %782 = sbr.rel (!%p1272_p6) target bundleno = 268 (0x10c), region = 82 }
 0x101   : > { %v771_v50 = vpack.c.bf16 %v767_v49, %v766_v48 }
 0x102   : > { %v827_v53 = vld [vmem:[%s1454_s9 + $0x10] sm:$0xff] (%p1272_p6) }
 0x103   : > { %775 = vst [vmem:[%s1454_s9 + $0x18] sm:$0xff] %v771_v50 }
 0x104   : > { %828 = vst [vmem:[%s788_s11 + $0x20] sm:$0xff] %v827_v53 }
 0x10a   : > { %v829_v54 = vld [vmem:[%s1454_s9 + $0x18] sm:$0xff] }
 0x10b   : > { %830 = vst [vmem:[%s788_s11 + $0x30] sm:$0xff] %v829_v54 }
 0x10c PF: > { %s13_s16 = sadd.s32 1, %s1215_s16   ;;  %s1490_s12 = smov %s1203_s13 }
 0x10d   : > { %p10_p12 = scmp.ge.s32.totalorder %s13_s16, 4   ;;  %s1491_s13 = smov %s1277_s22 }
 0x10e   : > { %s1492_s14 = smov %s1211_s15  ;;  %s1493_s15 = smov %s1495_s17 }
 0x10f   :  { %12 = sbr.rel (!%p10_p12) target bundleno = 3 (0x3), region = 157 }

// kernel: _lambda_.59
= control target key start
LH: loop header
LB: loop body
LE: loop exit
PB: predicated region body
PF: predicated region fallthrough
CT: control target
= control target key end

     0   :  { %s1107_s15 = smov 0   ;;  %s1109_s16 = smov 0   ;;  %s1278_s0 = inlined_call_operand.vmem [shape: bf16[32,128], index: 0, kind: input, shape index: {}]   ;;  %s1279_s1 = inlined_call_operand.vmem [shape: bf16[128,512], index: 1, kind: input, shape index: {}]   ;;  %s1280_s2 = inlined_call_operand.vmem [shape: f32[1,512], index: 2, kind: input, shape index: {}]   ;;  %s1281_s3 = inlined_call_operand.vmem [shape: bf16[32,512], index: 3, kind: input, shape index: {}]   ;;  %s1282_s4 = inlined_call_operand.vmem [shape: bf16[32,512], index: 4, kind: output, shape index: {}]  }
   0x1   :  { %s1111_s17 = smov 0   ;;  %s1113_s18 = smov 0  }
   0x2   :  { %s1115_s19 = smov 0  }
   0x3 LB: > { %s29_s20 = sadd.s32 1, %s1076_s18  ;;  %s872_s21 = sadd.s32 4294967295, %s1080_s19   ;;  %s1080_s19 = sphi %s1115_s19, %s14_s19   ;;  %s1076_s18 = sphi %s1113_s18, %s1288_s18   ;;  %s1072_s17 = sphi %s1111_s17, %s1287_s17   ;;  %s1068_s16 = sphi %s1109_s16, %s1286_s16   ;;  %s1064_s15 = sphi %s1107_s15, %s1285_s15  }
   0x4   : > { %p31_p0 = scmp.ge.s32.totalorder %s29_s20, 2  ;;  %p77_p1 = scmp.ne.s32.totalorder %s1068_s16, %s1064_s15 }
   0x5   : > { %p78_p2 = scmp.eq.s32.totalorder %s1080_s19, 0  ;;  %p163_p4 = scmp.eq.s32.totalorder %s872_s21, 1 }
   0x6   : > { %s1290_s20 = smov (%p31_p0, %s29_s20), 0  ;;  %s70_s24 = sadd.s32 1, %s1068_s16 }
   0x7   : > { %p1139_p3 = por %p78_p2, %p77_p1  ;;  %s66_s23 = ssub.s32 %s1076_s18, %s1290_s20 }
   0x8   : > { %p68_p5 = scmp.eq.s32.totalorder %s66_s23, 0  ;;  %p1146_p6 = por %p163_p4, %p77_p1 }
   0x9   : > { %p876_p7 = scmp.ge.s32.totalorder %s1080_s19, 2 }
   0xa   : > { %s1151_s26 = scalar_select %p68_p5, %s1068_s16, %s70_s24  }
   0xb   : > { %197 = sbr.rel (%p876_p7) target bundleno = 44 (0x2c), region = 20 }
  0x10   : > { %200 = sbr.rel (!%p1139_p3) target bundleno = 36 (0x24), region = 24  ;;  %s202_s27 = sand.u32 (%p1139_p3), 1, %s1068_s16  }
  0x11   : > { %s965_s28 = sshll.u32 (%p1139_p3), %s1076_s18, 3  ;;  %s877_s29 = sshll.u32 (%p1139_p3), %s202_s27, 7 }
  0x12   : > { %s1161_s6 = scalar_lea.vmem (%p1139_p3), %s1279_s1, %s965_s28  ;;  %s204_s7 = scalar_lea.vmem (%p1139_p3), [#allocation3], %s877_s29 }
  0x13   : > { %v269_v0 = vld [vmem:[%s1161_s6] sm:$0xff] (%p1139_p3)  ;;  %v271_v1 = vld [vmem:[%s1161_s6 + $0x10] sm:$0xff] (%p1139_p3) }
  0x14   : > { %v273_v2 = vld [vmem:[%s1161_s6 + $0x20] sm:$0xff] (%p1139_p3)  ;;  %270 = vst [vmem:[%s204_s7] sm:$0xff] (%p1139_p3), %v269_v0  ;;  %v275_v3 = vld [vmem:[%s1161_s6 + $0x30] sm:$0xff] (%p1139_p3) }
  0x15   : > { %272 = vst [vmem:[%s204_s7 + $0x8] sm:$0xff] %v271_v1  ;;  %v277_v4 = vld [vmem:[%s1161_s6 + $0x40] sm:$0xff]  ;;  %v279_v5 = vld [vmem:[%s1161_s6 + $0x50] sm:$0xff] }
  0x16   : > { %274 = vst [vmem:[%s204_s7 + $0x10] sm:$0xff] %v273_v2  ;;  %v281_v6 = vld [vmem:[%s1161_s6 + $0x60] sm:$0xff]  ;;  %v283_v7 = vld [vmem:[%s1161_s6 + $0x70] sm:$0xff] }
  0x17   : > { %276 = vst [vmem:[%s204_s7 + $0x18] sm:$0xff] %v275_v3  ;;  %v285_v8 = vld [vmem:[%s1161_s6 + $0x80] sm:$0xff]  ;;  %v287_v9 = vld [vmem:[%s1161_s6 + $0x90] sm:$0xff] }
  0x18   : > { %278 = vst [vmem:[%s204_s7 + $0x20] sm:$0xff] %v277_v4  ;;  %v289_v10 = vld [vmem:[%s1161_s6 + $0xa0] sm:$0xff]  ;;  %v291_v11 = vld [vmem:[%s1161_s6 + $0xb0] sm:$0xff] }
  0x19   : > { %280 = vst [vmem:[%s204_s7 + $0x28] sm:$0xff] %v279_v5  ;;  %v293_v12 = vld [vmem:[%s1161_s6 + $0xc0] sm:$0xff]  ;;  %v295_v13 = vld [vmem:[%s1161_s6 + $0xd0] sm:$0xff] }
  0x1a   : > { %282 = vst [vmem:[%s204_s7 + $0x30] sm:$0xff] %v281_v6  ;;  %v297_v14 = vld [vmem:[%s1161_s6 + $0xe0] sm:$0xff]  ;;  %v299_v15 = vld [vmem:[%s1161_s6 + $0xf0] sm:$0xff] }
  0x1b   : > { %284 = vst [vmem:[%s204_s7 + $0x38] sm:$0xff] %v283_v7 }
  0x1c   : > { %286 = vst [vmem:[%s204_s7 + $0x40] sm:$0xff] %v285_v8 }
  0x1d   : > { %288 = vst [vmem:[%s204_s7 + $0x48] sm:$0xff] %v287_v9 }
  0x1e   : > { %290 = vst [vmem:[%s204_s7 + $0x50] sm:$0xff] %v289_v10 }
  0x1f   : > { %292 = vst [vmem:[%s204_s7 + $0x58] sm:$0xff] %v291_v11 }
  0x20   : > { %294 = vst [vmem:[%s204_s7 + $0x60] sm:$0xff] %v293_v12 }
  0x21   : > { %296 = vst [vmem:[%s204_s7 + $0x68] sm:$0xff] %v295_v13 }
  0x22   : > { %298 = vst [vmem:[%s204_s7 + $0x70] sm:$0xff] %v297_v14 }
  0x23   : > { %300 = vst [vmem:[%s204_s7 + $0x78] sm:$0xff] %v299_v15 }
  0x24 PF: > { %314 = sbr.rel (!%p1139_p3) target bundleno = 44 (0x2c), region = 66  ;;  %s316_s8 = sand.u32 (%p1139_p3), 1, %s1068_s16  }
  0x25   : > { %s966_s9 = sshll.u32 (%p1139_p3), %s1076_s18, 3  ;;  %s880_s10 = sshll.u32 (%p1139_p3), %s316_s8, 5 }
  0x26   : > { %s324_s13 = scalar_lea.vmem (%p1139_p3), %s1281_s3, %s966_s9  ;;  %s318_s14 = scalar_lea.vmem (%p1139_p3), [#allocation4], %s880_s10 }
  0x27   : > { %v359_v16 = vld [vmem:[%s324_s13] sm:$0xff] (%p1139_p3)  ;;  %v361_v17 = vld [vmem:[%s324_s13 + $0x10] sm:$0xff] (%p1139_p3) }
  0x28   : > { %v363_v18 = vld [vmem:[%s324_s13 + $0x20] sm:$0xff] (%p1139_p3)  ;;  %360 = vst [vmem:[%s318_s14] sm:$0xff] (%p1139_p3), %v359_v16  ;;  %v365_v19 = vld [vmem:[%s324_s13 + $0x30] sm:$0xff] (%p1139_p3) }
  0x29   : > { %362 = vst [vmem:[%s318_s14 + $0x8] sm:$0xff] %v361_v17 }
  0x2a   : > { %364 = vst [vmem:[%s318_s14 + $0x10] sm:$0xff] %v363_v18 }
  0x2b   : > { %366 = vst [vmem:[%s318_s14 + $0x18] sm:$0xff] %v365_v19 }
  0x2c PF: > { %p883_p8 = scmp.ge.s32.totalorder %s1080_s19, 1  ;;  %p371_p9 = scmp.lt.s32.totalorder %s1080_s19, 3 }
  0x2e   : > { %p372_p10 = pnand %p883_p8, %p371_p9 }
  0x2f   : > { %s378_s21 = sand.u32 (!%p372_p10), 1, %s1064_s15   ;;  %s887_s30 = sshll.u32 (!%p372_p10), %s1072_s17, 1 }
  0x30   : > { %375 = sbr.rel (%p372_p10) target bundleno = 245 (0xf5), region = 104  ;;  %s884_s22 = sshll.u32 (!%p372_p10), %s378_s21, 7 }
  0x31   : > { %s1191_s23 = scalar_lea.vmem (!%p372_p10), [#allocation3], %s884_s22  ;;  %p437_p11 = scmp.lt.s32.totalorder (!%p372_p10), %s887_s30, 3 }
  0x32   : > { %s1234_s5 = sshll.u32 (!%p372_p10), %s378_s21, 5 }
  0x33   : > { %s1240_s9 = scalar_lea.vmem (!%p372_p10), [#allocation4], %s1234_s5  ;;  %s1246_s15 = scalar_lea.vmem (!%p372_p10), [#allocation5], %s1234_s5 }
  0x35   : > { %v954_v20 = vld [vmem:[%s1191_s23 + $0x70] sm:$0xf]  ;;  %v984_v21 = vld [vmem:[%s1191_s23 + $0x74] sm:$0xf0]  ;;  %v983_v22 = vld [vmem:[%s1191_s23 + $0x74] sm:$0xf] }
  0x36   : > { %v955_v23 = vor.u32 %v984_v21, %v954_v20  ;;  %v956_v24 = vld [vmem:[%s1191_s23 + $0x78] sm:$0xf0]  ;;  %v946_v25 = vld [vmem:[%s1191_s23 + $0x60] sm:$0xf]  ;;  %v982_v26 = vld [vmem:[%s1191_s23 + $0x64] sm:$0xf0] }
  0x37   : > { %v959_v27 = vor.u32 %v983_v22, %v956_v24  ;;  %v981_v28 = vld [vmem:[%s1191_s23 + $0x64] sm:$0xf]  ;;  %v948_v29 = vld [vmem:[%s1191_s23 + $0x68] sm:$0xf0]  ;;  %v947_v30 = vor.u32 %v982_v26, %v946_v25  ;;  %v938_v32 = vld [vmem:[%s1191_s23 + $0x50] sm:$0xf] }
  0x38   : > { %577 = vmatpush.bf16.msra.mxu0 %v955_v23  ;;  %986 = vmatpush.bf16.msra.mxu2 %v955_v23  ;;  %v951_v31 = vor.u32 %v981_v28, %v948_v29  ;;  %v980_v33 = vld [vmem:[%s1191_s23 + $0x54] sm:$0xf0]  ;;  %v979_v34 = vld [vmem:[%s1191_s23 + $0x54] sm:$0xf]  ;;  %v940_v35 = vld [vmem:[%s1191_s23 + $0x58] sm:$0xf0] }
  0x39   : > { %596 = vmatpush.bf16.msra.mxu1 %v959_v27  ;;  %994 = vmatpush.bf16.msra.mxu3 %v959_v27  ;;  %v939_v36 = vor.u32 %v980_v33, %v938_v32  ;;  %v943_v37 = vor.u32 %v979_v34, %v940_v35  ;;  %v930_v38 = vld [vmem:[%s1191_s23 + $0x40] sm:$0xf]  ;;  %v978_v39 = vld [vmem:[%s1191_s23 + $0x44] sm:$0xf0]  ;;  %v977_v40 = vld [vmem:[%s1191_s23 + $0x44] sm:$0xf] }
  0x3a   : > { %v932_v41 = vld [vmem:[%s1191_s23 + $0x48] sm:$0xf0]  ;;  %v931_v42 = vor.u32 %v978_v39, %v930_v38  ;;  %v922_v44 = vld [vmem:[%s1191_s23 + $0x30] sm:$0xf]  ;;  %v976_v45 = vld [vmem:[%s1191_s23 + $0x34] sm:$0xf0] }
  0x3b   : > { %v935_v43 = vor.u32 %v977_v40, %v932_v41  ;;  %v975_v46 = vld [vmem:[%s1191_s23 + $0x34] sm:$0xf]  ;;  %v924_v47 = vld [vmem:[%s1191_s23 + $0x38] sm:$0xf0]  ;;  %v923_v48 = vor.u32 %v976_v45, %v922_v44  ;;  %v914_v50 = vld [vmem:[%s1191_s23 + $0x20] sm:$0xf] }
  0x3c   : > { %578 = vmatpush.bf16.msra.mxu0 %v947_v30  ;;  %987 = vmatpush.bf16.msra.mxu2 %v947_v30  ;;  %v927_v49 = vor.u32 %v975_v46, %v924_v47  ;;  %v974_v51 = vld [vmem:[%s1191_s23 + $0x24] sm:$0xf0]  ;;  %v973_v52 = vld [vmem:[%s1191_s23 + $0x24] sm:$0xf]  ;;  %v916_v53 = vld [vmem:[%s1191_s23 + $0x28] sm:$0xf0] }
  0x3d   : > { %597 = vmatpush.bf16.msra.mxu1 %v951_v31  ;;  %995 = vmatpush.bf16.msra.mxu3 %v951_v31  ;;  %v915_v54 = vor.u32 %v974_v51, %v914_v50  ;;  %v919_v55 = vor.u32 %v973_v52, %v916_v53  ;;  %v906_v56 = vld [vmem:[%s1191_s23 + $0x10] sm:$0xf]  ;;  %v972_v57 = vld [vmem:[%s1191_s23 + $0x14] sm:$0xf0]  ;;  %v971_v58 = vld [vmem:[%s1191_s23 + $0x14] sm:$0xf] }
  0x3e   : > { %v908_v59 = vld [vmem:[%s1191_s23 + $0x18] sm:$0xf0]  ;;  %v907_v60 = vor.u32 %v972_v57, %v906_v56  ;;  %v898_v62 = vld [vmem:[%s1191_s23] sm:$0xf]  ;;  %v970_v63 = vld [vmem:[%s1191_s23 + $0x4] sm:$0xf0] }
  0x3f   : > { %v911_v61 = vor.u32 %v971_v58, %v908_v59  ;;  %v969_v0 = vld [vmem:[%s1191_s23 + $0x4] sm:$0xf]  ;;  %v900_v1 = vld [vmem:[%s1191_s23 + $0x8] sm:$0xf0]  ;;  %v899_v2 = vor.u32 %v970_v63, %v898_v62  ;;  %s1292_s30 = smov (!%p437_p11, %s887_s30), 3  ;;  %v658_v16 = vld [vmem:[%s1240_s9 + $0x10] sm:$0xff] }
  0x40   : > { %579 = vmatpush.bf16.msra.mxu0 %v939_v36  ;;  %988 = vmatpush.bf16.msra.mxu2 %v939_v36  ;;  %v903_v3 = vor.u32 %v969_v0, %v900_v1  ;;  %v967_v4 = vld [vmem:[%s1278_s0] sm:$0xff]  ;;  %v968_v5 = vld [vmem:[%s1278_s0 + $0x8] sm:$0xff]  ;;  %s439_s8 = scalar_lea.vmem %s1280_s2, %s1292_s30  ;;  %v664_v21 = vunpack.c.l.bf16 %v658_v16  ;;  %v665_v24 = vunpack.c.h.bf16 %v658_v16  ;;  %s985_s10 = sshll.u32 (%p1146_p6), %s1072_s17, 3 }
  0x41   : > { %598 = vmatpush.bf16.msra.mxu1 %v943_v37  ;;  %996 = vmatpush.bf16.msra.mxu3 %v943_v37  ;;  %v642_v6 = vld [vmem:[%s439_s8] sm:$0x3]  ;;  %v657_v19 = vld [vmem:[%s1240_s9 + $0x8] sm:$0xff]  ;;  %v659_v37 = vld [vmem:[%s1240_s9 + $0x18] sm:$0xff]  ;;  %s704_s13 = scalar_lea.vmem (%p1146_p6), %s1282_s4, %s985_s10 }
  0x42   : > { %v656_v7 = vld [vmem:[%s1240_s9] sm:$0xff]  ;;  %v644_v8 = vperm.slane %v642_v6, 0  ;;  %v645_v9 = vperm.slane %v642_v6, 1  ;;  %v662_v27 = vunpack.c.l.bf16 %v657_v19  ;;  %v663_v31 = vunpack.c.h.bf16 %v657_v19 }
  0x43   : > { %v660_v10 = vunpack.c.l.bf16 %v656_v7  ;;  %v661_v12 = vunpack.c.h.bf16 %v656_v7  ;;  %v667_v47 = vunpack.c.h.bf16 %v659_v37 }
  0x44   : > { %580 = vmatpush.bf16.msra.mxu0 %v931_v42  ;;  %989 = vmatpush.bf16.msra.mxu2 %v931_v42 }
  0x45   : > { %599 = vmatpush.bf16.msra.mxu1 %v935_v43  ;;  %997 = vmatpush.bf16.msra.mxu3 %v935_v43  ;;  %v666_v43 = vunpack.c.l.bf16 %v659_v37 }
  0x48   : > { %581 = vmatpush.bf16.msra.mxu0 %v923_v48  ;;  %990 = vmatpush.bf16.msra.mxu2 %v923_v48 }
  0x49   : > { %600 = vmatpush.bf16.msra.mxu1 %v927_v49  ;;  %998 = vmatpush.bf16.msra.mxu3 %v927_v49 }
  0x4c   : > { %582 = vmatpush.bf16.msra.mxu0 %v915_v54  ;;  %991 = vmatpush.bf16.msra.mxu2 %v915_v54 }
  0x4d   : > { %601 = vmatpush.bf16.msra.mxu1 %v919_v55  ;;  %999 = vmatpush.bf16.msra.mxu3 %v919_v55 }
  0x50   : > { %583 = vmatpush.bf16.msra.mxu0 %v907_v60  ;;  %992 = vmatpush.bf16.msra.mxu2 %v907_v60 }
  0x51   : > { %602 = vmatpush.bf16.msra.mxu1 %v911_v61  ;;  %1000 = vmatpush.bf16.msra.mxu3 %v911_v61 }
  0x54   : > { %584 = vmatpush.bf16.msra.mxu0 %v899_v2  ;;  %993 = vmatpush.bf16.msra.mxu2 %v899_v2 }
  0x55   : > { %603 = vmatpush.bf16.msra.mxu1 %v903_v3  ;;  %1001 = vmatpush.bf16.msra.mxu3 %v903_v3 }
  0x57   : > { %585 = vmatmul.bf16.vlgmr.msra.gmra.mxu0 %v967_v4  ;;  %590 = vmatmul.bf16.vlgmr.msra.gmra.mxu2 %v968_v5 }
  0x58   : > { %604 = vmatmul.bf16.vlgmr.msra.gmra.mxu1 %v967_v4  ;;  %609 = vmatmul.bf16.vlgmr.msra.gmra.mxu3 %v968_v5 }
  0xd4   : > { %v586_v11 = vpop.f32.mrf.mxu0 }
  0xd5   : > { %v648_v13 = vadd.f32 %v644_v8, %v586_v11  ;;  %v605_v14 = vpop.f32.mrf.mxu1 }
  0xd6   : > { %v649_v15 = vadd.f32 %v645_v9, %v605_v14 }
  0xd7   : > { %v668_v17 = vadd.f32 %v660_v10, %v648_v13 }
  0xd8   : > { %v669_v18 = vadd.f32 %v661_v12, %v649_v15 }
  0xd9   : > { %v676_v20 = vmax.f32 %v668_v17, 0.0 }
  0xda   : > { %v677_v22 = vmax.f32 %v669_v18, 0.0  ;;  %v591_v23 = vpop.f32.mrf.mxu2 }
  0xdb   : > { %v652_v25 = vadd.f32 %v644_v8, %v591_v23  ;;  %v610_v26 = vpop.f32.mrf.mxu3 }
  0xdc   : > { %v684_v28 = vpack.c.bf16 %v677_v22, %v676_v20  ;;  %v653_v29 = vadd.f32 %v645_v9, %v610_v26  ;;  %v588_v30 = vpop.f32.mrf.mxu0 }
  0xdd   : > { %v672_v32 = vadd.f32 %v664_v21, %v652_v25  ;;  %v650_v33 = vadd.f32 %v644_v8, %v588_v30  ;;  %v607_v34 = vpop.f32.mrf.mxu1 }
  0xde   : > { %688 = vst [vmem:[%s1246_s15] sm:$0xff] %v684_v28  ;;  %v673_v35 = vadd.f32 %v665_v24, %v653_v29  ;;  %v651_v36 = vadd.f32 %v645_v9, %v607_v34 }
  0xdf   : > { %v680_v38 = vmax.f32 %v672_v32, 0.0  ;;  %v670_v39 = vadd.f32 %v662_v27, %v650_v33 }
  0xe0   : > { %v681_v40 = vmax.f32 %v673_v35, 0.0  ;;  %v671_v41 = vadd.f32 %v663_v31, %v651_v36 }
  0xe1   : > { %v678_v42 = vmax.f32 %v670_v39, 0.0 }
  0xe2   : > { %v686_v44 = vpack.c.bf16 %v681_v40, %v680_v38  ;;  %v679_v45 = vmax.f32 %v671_v41, 0.0  ;;  %v593_v46 = vpop.f32.mrf.mxu2 }
  0xe3   : > { %v654_v48 = vadd.f32 %v644_v8, %v593_v46  ;;  %v612_v49 = vpop.f32.mrf.mxu3 }
  0xe4   : > { %690 = vst [vmem:[%s1246_s15 + $0x10] sm:$0xff] %v686_v44  ;;  %v685_v50 = vpack.c.bf16 %v679_v45, %v678_v42  ;;  %v655_v51 = vadd.f32 %v645_v9, %v612_v49 }
  0xe5   : > { %v674_v52 = vadd.f32 %v666_v43, %v654_v48  ;;  %v739_v57 = vld [vmem:[%s1246_s15] sm:$0xff] (%p1146_p6) }
  0xe6   : > { %689 = vst [vmem:[%s1246_s15 + $0x8] sm:$0xff] %v685_v50  ;;  %v675_v53 = vadd.f32 %v667_v47, %v655_v51 }
  0xe7   : > { %v682_v54 = vmax.f32 %v674_v52, 0.0  ;;  %740 = vst [vmem:[%s704_s13] sm:$0xff] (%p1146_p6), %v739_v57 }
  0xe8   : > { %v683_v55 = vmax.f32 %v675_v53, 0.0  ;;  %698 = sbr.rel (!%p1146_p6) target bundleno = 245 (0xf5), region = 124 }
  0xea   : > { %v687_v56 = vpack.c.bf16 %v683_v55, %v682_v54 }
  0xeb   : > { %v743_v59 = vld [vmem:[%s1246_s15 + $0x10] sm:$0xff] (%p1146_p6) }
  0xec   : > { %691 = vst [vmem:[%s1246_s15 + $0x18] sm:$0xff] %v687_v56 }
  0xed   : > { %v741_v58 = vld [vmem:[%s1246_s15 + $0x8] sm:$0xff]  ;;  %744 = vst [vmem:[%s704_s13 + $0x20] sm:$0xff] %v743_v59 }
  0xee   : > { %742 = vst [vmem:[%s704_s13 + $0x10] sm:$0xff] %v741_v58 }
  0xf3   : > { %v745_v60 = vld [vmem:[%s1246_s15 + $0x18] sm:$0xff] }
  0xf4   : > { %746 = vst [vmem:[%s704_s13 + $0x30] sm:$0xff] %v745_v60 }
  0xf5 PF: > { %s14_s19 = sadd.s32 1, %s1080_s19   ;;  %s1285_s15 = smov %s1068_s16 }
  0xf6   : > { %p11_p12 = scmp.ge.s32.totalorder %s14_s19, 4   ;;  %s1286_s16 = smov %s1151_s26 }
  0xf7   : > { %s1287_s17 = smov %s1076_s18  ;;  %s1288_s18 = smov %s1290_s20 }
  0xf8   :  { %13 = sbr.rel (!%p11_p12) target bundleno = 3 (0x3), region = 207 }

// kernel: _lambda_.60
= control target key start
LH: loop header
LB: loop body
LE: loop exit
PB: predicated region body
PF: predicated region fallthrough
CT: control target
= control target key end

     0   :  { %s830_s1 = inlined_call_operand.vmem [shape: bf16[512,128], index: 1, kind: input, shape index: {}]   ;;  %s831_s0 = inlined_call_operand.vmem [shape: bf16[32,512], index: 0, kind: input, shape index: {}]   ;;  %s832_s2 = inlined_call_operand.vmem [shape: f32[1,128], index: 2, kind: input, shape index: {}]   ;;  %s833_s3 = inlined_call_operand.vmem [shape: bf16[32,128], index: 3, kind: output, shape index: {}]  }
   0x1   :  { %v620_v0 = vld [vmem:[%s830_s1 + $0x38] sm:$0xff]  ;;  %v619_v4 = vld [vmem:[%s830_s1 + $0x30] sm:$0xff]  ;;  %v618_v8 = vld [vmem:[%s830_s1 + $0x28] sm:$0xff] }
   0x2   :  { %v628_v1 = vld [vmem:[%s830_s1 + $0x78] sm:$0xff]  ;;  %330 = vmatpush.bf16.msra.mxu0 %v620_v0  ;;  %v627_v5 = vld [vmem:[%s830_s1 + $0x70] sm:$0xff]  ;;  %v626_v9 = vld [vmem:[%s830_s1 + $0x68] sm:$0xff] }
   0x3   :  { %v636_v2 = vld [vmem:[%s830_s1 + $0xb8] sm:$0xff]  ;;  %349 = vmatpush.bf16.msra.mxu1 %v628_v1  ;;  %v635_v6 = vld [vmem:[%s830_s1 + $0xb0] sm:$0xff]  ;;  %v634_v10 = vld [vmem:[%s830_s1 + $0xa8] sm:$0xff] }
   0x4   :  { %v644_v3 = vld [vmem:[%s830_s1 + $0xf8] sm:$0xff]  ;;  %368 = vmatpush.bf16.msra.mxu2 %v636_v2  ;;  %v643_v7 = vld [vmem:[%s830_s1 + $0xf0] sm:$0xff]  ;;  %v642_v11 = vld [vmem:[%s830_s1 + $0xe8] sm:$0xff] }
   0x5   :  { %387 = vmatpush.bf16.msra.mxu3 %v644_v3  ;;  %v617_v12 = vld [vmem:[%s830_s1 + $0x20] sm:$0xff]  ;;  %v616_v16 = vld [vmem:[%s830_s1 + $0x18] sm:$0xff]  ;;  %v615_v20 = vld [vmem:[%s830_s1 + $0x10] sm:$0xff] }
   0x6   :  { %331 = vmatpush.bf16.msra.mxu0 %v619_v4  ;;  %v625_v13 = vld [vmem:[%s830_s1 + $0x60] sm:$0xff]  ;;  %v624_v17 = vld [vmem:[%s830_s1 + $0x58] sm:$0xff]  ;;  %v623_v21 = vld [vmem:[%s830_s1 + $0x50] sm:$0xff] }
   0x7   :  { %350 = vmatpush.bf16.msra.mxu1 %v627_v5  ;;  %v633_v14 = vld [vmem:[%s830_s1 + $0xa0] sm:$0xff]  ;;  %v632_v18 = vld [vmem:[%s830_s1 + $0x98] sm:$0xff]  ;;  %v631_v22 = vld [vmem:[%s830_s1 + $0x90] sm:$0xff] }
   0x8   :  { %369 = vmatpush.bf16.msra.mxu2 %v635_v6  ;;  %v641_v15 = vld [vmem:[%s830_s1 + $0xe0] sm:$0xff]  ;;  %v640_v19 = vld [vmem:[%s830_s1 + $0xd8] sm:$0xff]  ;;  %v639_v23 = vld [vmem:[%s830_s1 + $0xd0] sm:$0xff] }
   0x9   :  { %388 = vmatpush.bf16.msra.mxu3 %v643_v7  ;;  %v614_v24 = vld [vmem:[%s830_s1 + $0x8] sm:$0xff]  ;;  %v613_v28 = vld [vmem:[%s830_s1] sm:$0xff]  ;;  %v607_v33 = vld [vmem:[%s831_s0 + $0xc] sm:$0xf0] }
   0xa   :  { %332 = vmatpush.bf16.msra.mxu0 %v618_v8  ;;  %v622_v25 = vld [vmem:[%s830_s1 + $0x48] sm:$0xff]  ;;  %v621_v29 = vld [vmem:[%s830_s1 + $0x40] sm:$0xff]  ;;  %v449_v35 = vld [vmem:[%s831_s0 + $0x10] sm:$0xf0] }
   0xb   :  { %351 = vmatpush.bf16.msra.mxu1 %v626_v9  ;;  %v630_v26 = vld [vmem:[%s830_s1 + $0x88] sm:$0xff]  ;;  %v629_v30 = vld [vmem:[%s830_s1 + $0x80] sm:$0xff]  ;;  %v608_v37 = vld [vmem:[%s831_s0 + $0x14] sm:$0xf0] }
   0xc   :  { %370 = vmatpush.bf16.msra.mxu2 %v634_v10  ;;  %v638_v27 = vld [vmem:[%s830_s1 + $0xc8] sm:$0xff]  ;;  %v637_v31 = vld [vmem:[%s830_s1 + $0xc0] sm:$0xff]  ;;  %v457_v39 = vld [vmem:[%s831_s0 + $0x18] sm:$0xf0] }
   0xd   :  { %389 = vmatpush.bf16.msra.mxu3 %v642_v11  ;;  %v447_v32 = vld [vmem:[%s831_s0] sm:$0xf]  ;;  %v605_v34 = vld [vmem:[%s831_s0 + $0x4] sm:$0xf]  ;;  %v455_v36 = vld [vmem:[%s831_s0 + $0x8] sm:$0xf] }
   0xe   :  { %333 = vmatpush.bf16.msra.mxu0 %v617_v12  ;;  %v606_v38 = vld [vmem:[%s831_s0 + $0xc] sm:$0xf]  ;;  %v448_v40 = vor.u32 %v607_v33, %v447_v32  ;;  %v452_v41 = vor.u32 %v605_v34, %v449_v35  ;;  %v456_v42 = vor.u32 %v608_v37, %v455_v36  ;;  %v463_v44 = vld [vmem:[%s831_s0 + $0x20] sm:$0xf]  ;;  %v611_v45 = vld [vmem:[%s831_s0 + $0x2c] sm:$0xf0] }
   0xf   :  { %352 = vmatpush.bf16.msra.mxu1 %v625_v13  ;;  %v460_v43 = vor.u32 %v606_v38, %v457_v39  ;;  %v609_v46 = vld [vmem:[%s831_s0 + $0x24] sm:$0xf]  ;;  %v465_v47 = vld [vmem:[%s831_s0 + $0x30] sm:$0xf0]  ;;  %v471_v48 = vld [vmem:[%s831_s0 + $0x28] sm:$0xf]  ;;  %v464_v52 = vor.u32 %v611_v45, %v463_v44 }
  0x10   :  { %371 = vmatpush.bf16.msra.mxu2 %v633_v14  ;;  %v612_v49 = vld [vmem:[%s831_s0 + $0x34] sm:$0xf0]  ;;  %v610_v50 = vld [vmem:[%s831_s0 + $0x2c] sm:$0xf]  ;;  %v473_v51 = vld [vmem:[%s831_s0 + $0x38] sm:$0xf0]  ;;  %v468_v53 = vor.u32 %v609_v46, %v465_v47 }
  0x11   :  { %390 = vmatpush.bf16.msra.mxu3 %v641_v15  ;;  %v472_v54 = vor.u32 %v612_v49, %v471_v48  ;;  %v476_v55 = vor.u32 %v610_v50, %v473_v51  ;;  %v656_v1 = vld [vmem:[%s832_s2] ss:$0 sm:$0xff] }
  0x12   :  { %334 = vmatpush.bf16.msra.mxu0 %v616_v16 }
  0x13   :  { %353 = vmatpush.bf16.msra.mxu1 %v624_v17 }
  0x14   :  { %372 = vmatpush.bf16.msra.mxu2 %v632_v18 }
  0x15   :  { %391 = vmatpush.bf16.msra.mxu3 %v640_v19 }
  0x16   :  { %335 = vmatpush.bf16.msra.mxu0 %v615_v20 }
  0x17   :  { %354 = vmatpush.bf16.msra.mxu1 %v623_v21 }
  0x18   :  { %373 = vmatpush.bf16.msra.mxu2 %v631_v22 }
  0x19   :  { %392 = vmatpush.bf16.msra.mxu3 %v639_v23 }
  0x1a   :  { %336 = vmatpush.bf16.msra.mxu0 %v614_v24 }
  0x1b   :  { %355 = vmatpush.bf16.msra.mxu1 %v622_v25 }
  0x1c   :  { %374 = vmatpush.bf16.msra.mxu2 %v630_v26 }
  0x1d   :  { %393 = vmatpush.bf16.msra.mxu3 %v638_v27 }
  0x1e   :  { %337 = vmatpush.bf16.msra.mxu0 %v613_v28 }
  0x1f   :  { %356 = vmatpush.bf16.msra.mxu1 %v621_v29 }
  0x20   :  { %375 = vmatpush.bf16.msra.mxu2 %v629_v30 }
  0x21   :  { %394 = vmatpush.bf16.msra.mxu3 %v637_v31  ;;  %338 = vmatmul.bf16.vlgmr.msra.gmra.mxu0 %v448_v40 }
  0x22   :  { %357 = vmatmul.bf16.vlgmr.msra.gmra.mxu1 %v452_v41 }
  0x23   :  { %376 = vmatmul.bf16.vlgmr.msra.gmra.mxu2 %v456_v42 }
  0x24   :  { %395 = vmatmul.bf16.vlgmr.msra.gmra.mxu3 %v460_v43 }
  0x31   :  { %343 = vmatmul.bf16.gmra.mxu0 %v464_v52 }
  0x32   :  { %362 = vmatmul.bf16.gmra.mxu1 %v468_v53 }
  0x33   :  { %381 = vmatmul.bf16.gmra.mxu2 %v472_v54 }
  0x34   :  { %400 = vmatmul.bf16.gmra.mxu3 %v476_v55 }
  0x9e   :  { %v339_v56 = vpop.f32.mrf.mxu0 }
  0x9f   :  { %v358_v57 = vpop.f32.mrf.mxu1 }
  0xa0   :  { %v359_v58 = vadd.f32 %v358_v57, %v339_v56 }
  0xa6   :  { %v377_v59 = vpop.f32.mrf.mxu2  ;;  %v341_v61 = vpop.f32.mrf.mxu0 }
  0xa7   :  { %v396_v60 = vpop.f32.mrf.mxu3  ;;  %v360_v62 = vpop.f32.mrf.mxu1  ;;  %v378_v63 = vadd.f32 %v377_v59, %v359_v58 }
  0xa8   :  { %v361_v2 = vadd.f32 %v360_v62, %v341_v61 }
  0xa9   :  { %v397_v0 = vadd.f32 %v396_v60, %v378_v63 }
  0xab   :  { %v425_v8 = vadd.f32 %v656_v1, %v397_v0 }
  0xad   :  { %v429_v11 = vmax.f32 %v425_v8, 0.0 }
  0xae   :  { %v379_v3 = vpop.f32.mrf.mxu2  ;;  %v344_v6 = vpop.f32.mrf.mxu0 }
  0xaf   :  { %v398_v4 = vpop.f32.mrf.mxu3  ;;  %v380_v5 = vadd.f32 %v379_v3, %v361_v2  ;;  %v363_v7 = vpop.f32.mrf.mxu1 }
  0xb0   :  { %v364_v13 = vadd.f32 %v363_v7, %v344_v6 }
  0xb1   :  { %v399_v9 = vadd.f32 %v398_v4, %v380_v5 }
  0xb3   :  { %v426_v10 = vadd.f32 %v656_v1, %v399_v9 }
  0xb5   :  { %v430_v12 = vmax.f32 %v426_v10, 0.0 }
  0xb6   :  { %v382_v14 = vpop.f32.mrf.mxu2  ;;  %v346_v18 = vpop.f32.mrf.mxu0 }
  0xb7   :  { %v401_v15 = vpop.f32.mrf.mxu3  ;;  %v648_v16 = vpack.c.bf16 %v430_v12, %v429_v11  ;;  %v383_v17 = vadd.f32 %v382_v14, %v364_v13  ;;  %v365_v19 = vpop.f32.mrf.mxu1 }
  0xb8   :  { %v366_v21 = vadd.f32 %v365_v19, %v346_v18 }
  0xb9   :  { %649 = vst [vmem:[%s833_s3] sm:$0xff] %v648_v16   ;;  %v402_v20 = vadd.f32 %v401_v15, %v383_v17 }
  0xbb   :  { %v427_v25 = vadd.f32 %v656_v1, %v402_v20 }
  0xbd   :  { %v431_v28 = vmax.f32 %v427_v25, 0.0 }
  0xbe   :  { %v384_v22 = vpop.f32.mrf.mxu2 }
  0xbf   :  { %v385_v23 = vadd.f32 %v384_v22, %v366_v21  ;;  %v403_v24 = vpop.f32.mrf.mxu3 }
  0xc1   :  { %v404_v26 = vadd.f32 %v403_v24, %v385_v23 }
  0xc3   :  { %v428_v27 = vadd.f32 %v656_v1, %v404_v26 }
  0xc5   :  { %v432_v29 = vmax.f32 %v428_v27, 0.0 }
  0xc7   :  { %v653_v30 = vpack.c.bf16 %v432_v29, %v431_v28 }
  0xc9   :  { %655 = vst [vmem:[%s833_s3 + $0x8] sm:$0xff] %v653_v30  }

// kernel: _lambda_.70
= control target key start
LH: loop header
LB: loop body
LE: loop exit
PB: predicated region body
PF: predicated region fallthrough
CT: control target
= control target key end

     0   :  { %s1534_s1 = inlined_call_operand.vmem [shape: bf16[512,256], index: 1, kind: input, shape index: {}]   ;;  %s1535_s0 = inlined_call_operand.vmem [shape: bf16[32,512], index: 0, kind: input, shape index: {}]   ;;  %s1536_s2 = inlined_call_operand.vmem [shape: f32[1,256], index: 2, kind: input, shape index: {}]   ;;  %s1537_s3 = inlined_call_operand.vmem [shape: bf16[32,256], index: 3, kind: output, shape index: {}]  }
   0x1   :  { %v769_v0 = vld [vmem:[%s1534_s1 + $0x70] sm:$0xf]  ;;  %v990_v1 = vld [vmem:[%s1534_s1 + $0x74] sm:$0xf0]  ;;  %v761_v11 = vld [vmem:[%s1534_s1 + $0x60] sm:$0xf] }
   0x2   :  { %v833_v2 = vld [vmem:[%s1534_s1 + $0xf0] sm:$0xf]  ;;  %v770_v3 = vor.u32 %v990_v1, %v769_v0  ;;  %v1006_v4 = vld [vmem:[%s1534_s1 + $0xf4] sm:$0xf0]  ;;  %v988_v13 = vld [vmem:[%s1534_s1 + $0x64] sm:$0xf0] }
   0x3   :  { %v897_v5 = vld [vmem:[%s1534_s1 + $0x170] sm:$0xf]  ;;  %v1022_v6 = vld [vmem:[%s1534_s1 + $0x174] sm:$0xf0]  ;;  %v834_v7 = vor.u32 %v1006_v4, %v833_v2  ;;  %v825_v14 = vld [vmem:[%s1534_s1 + $0xe0] sm:$0xf]  ;;  %v762_v16 = vor.u32 %v988_v13, %v761_v11 }
   0x4   :  { %v898_v8 = vor.u32 %v1022_v6, %v897_v5  ;;  %v961_v9 = vld [vmem:[%s1534_s1 + $0x1f0] sm:$0xf]  ;;  %v1038_v10 = vld [vmem:[%s1534_s1 + $0x1f4] sm:$0xf0]  ;;  %466 = vmatpush.bf16.msra.mxu0 %v770_v3  ;;  %v1004_v15 = vld [vmem:[%s1534_s1 + $0xe4] sm:$0xf0] }
   0x5   :  { %v962_v12 = vor.u32 %v1038_v10, %v961_v9  ;;  %485 = vmatpush.bf16.msra.mxu1 %v834_v7  ;;  %v826_v17 = vor.u32 %v1004_v15, %v825_v14  ;;  %v889_v18 = vld [vmem:[%s1534_s1 + $0x160] sm:$0xf]  ;;  %v1020_v19 = vld [vmem:[%s1534_s1 + $0x164] sm:$0xf0]  ;;  %v753_v23 = vld [vmem:[%s1534_s1 + $0x50] sm:$0xf] }
   0x6   :  { %504 = vmatpush.bf16.msra.mxu2 %v898_v8  ;;  %v953_v20 = vld [vmem:[%s1534_s1 + $0x1e0] sm:$0xf]  ;;  %v890_v21 = vor.u32 %v1020_v19, %v889_v18  ;;  %v1036_v22 = vld [vmem:[%s1534_s1 + $0x1e4] sm:$0xf0]  ;;  %v986_v24 = vld [vmem:[%s1534_s1 + $0x54] sm:$0xf0] }
   0x7   :  { %523 = vmatpush.bf16.msra.mxu3 %v962_v12  ;;  %v954_v25 = vor.u32 %v1036_v22, %v953_v20  ;;  %v817_v26 = vld [vmem:[%s1534_s1 + $0xd0] sm:$0xf]  ;;  %v1002_v27 = vld [vmem:[%s1534_s1 + $0xd4] sm:$0xf0]  ;;  %v754_v29 = vor.u32 %v986_v24, %v753_v23  ;;  %v745_v35 = vld [vmem:[%s1534_s1 + $0x40] sm:$0xf] }
   0x8   :  { %v881_v28 = vld [vmem:[%s1534_s1 + $0x150] sm:$0xf]  ;;  %467 = vmatpush.bf16.msra.mxu0 %v762_v16  ;;  %v1018_v30 = vld [vmem:[%s1534_s1 + $0x154] sm:$0xf0]  ;;  %v818_v33 = vor.u32 %v1002_v27, %v817_v26  ;;  %v984_v36 = vld [vmem:[%s1534_s1 + $0x44] sm:$0xf0] }
   0x9   :  { %v945_v31 = vld [vmem:[%s1534_s1 + $0x1d0] sm:$0xf]  ;;  %v1034_v32 = vld [vmem:[%s1534_s1 + $0x1d4] sm:$0xf0]  ;;  %486 = vmatpush.bf16.msra.mxu1 %v826_v17  ;;  %v882_v34 = vor.u32 %v1018_v30, %v881_v28  ;;  %v809_v37 = vld [vmem:[%s1534_s1 + $0xc0] sm:$0xf]  ;;  %v746_v44 = vor.u32 %v984_v36, %v745_v35 }
   0xa   :  { %505 = vmatpush.bf16.msra.mxu2 %v890_v21  ;;  %v946_v38 = vor.u32 %v1034_v32, %v945_v31  ;;  %v1000_v39 = vld [vmem:[%s1534_s1 + $0xc4] sm:$0xf0]  ;;  %v873_v40 = vld [vmem:[%s1534_s1 + $0x140] sm:$0xf]  ;;  %v737_v47 = vld [vmem:[%s1534_s1 + $0x30] sm:$0xf] }
   0xb   :  { %524 = vmatpush.bf16.msra.mxu3 %v954_v25  ;;  %v1016_v41 = vld [vmem:[%s1534_s1 + $0x144] sm:$0xf0]  ;;  %v937_v42 = vld [vmem:[%s1534_s1 + $0x1c0] sm:$0xf]  ;;  %v810_v45 = vor.u32 %v1000_v39, %v809_v37  ;;  %v982_v48 = vld [vmem:[%s1534_s1 + $0x34] sm:$0xf0] }
   0xc   :  { %v1032_v43 = vld [vmem:[%s1534_s1 + $0x1c4] sm:$0xf0]  ;;  %468 = vmatpush.bf16.msra.mxu0 %v754_v29  ;;  %v874_v46 = vor.u32 %v1016_v41, %v873_v40  ;;  %v801_v49 = vld [vmem:[%s1534_s1 + $0xb0] sm:$0xf]  ;;  %v998_v51 = vld [vmem:[%s1534_s1 + $0xb4] sm:$0xf0]  ;;  %v738_v56 = vor.u32 %v982_v48, %v737_v47 }
   0xd   :  { %487 = vmatpush.bf16.msra.mxu1 %v818_v33  ;;  %v938_v50 = vor.u32 %v1032_v43, %v937_v42  ;;  %v865_v52 = vld [vmem:[%s1534_s1 + $0x130] sm:$0xf]  ;;  %v1014_v53 = vld [vmem:[%s1534_s1 + $0x134] sm:$0xf0]  ;;  %v802_v57 = vor.u32 %v998_v51, %v801_v49  ;;  %v729_v59 = vld [vmem:[%s1534_s1 + $0x20] sm:$0xf] }
   0xe   :  { %506 = vmatpush.bf16.msra.mxu2 %v882_v34  ;;  %v929_v54 = vld [vmem:[%s1534_s1 + $0x1b0] sm:$0xf]  ;;  %v1030_v55 = vld [vmem:[%s1534_s1 + $0x1b4] sm:$0xf0]  ;;  %v866_v58 = vor.u32 %v1014_v53, %v865_v52  ;;  %v980_v60 = vld [vmem:[%s1534_s1 + $0x24] sm:$0xf0] }
   0xf   :  { %525 = vmatpush.bf16.msra.mxu3 %v946_v38  ;;  %v793_v61 = vld [vmem:[%s1534_s1 + $0xa0] sm:$0xf]  ;;  %v930_v62 = vor.u32 %v1030_v55, %v929_v54  ;;  %v996_v63 = vld [vmem:[%s1534_s1 + $0xa4] sm:$0xf0]  ;;  %v730_v4 = vor.u32 %v980_v60, %v729_v59  ;;  %v721_v7 = vld [vmem:[%s1534_s1 + $0x10] sm:$0xf] }
  0x10   :  { %469 = vmatpush.bf16.msra.mxu0 %v746_v44  ;;  %v857_v0 = vld [vmem:[%s1534_s1 + $0x120] sm:$0xf]  ;;  %v1012_v1 = vld [vmem:[%s1534_s1 + $0x124] sm:$0xf0]  ;;  %v794_v5 = vor.u32 %v996_v63, %v793_v61  ;;  %v978_v8 = vld [vmem:[%s1534_s1 + $0x14] sm:$0xf0] }
  0x11   :  { %488 = vmatpush.bf16.msra.mxu1 %v810_v45  ;;  %v921_v2 = vld [vmem:[%s1534_s1 + $0x1a0] sm:$0xf]  ;;  %v1028_v3 = vld [vmem:[%s1534_s1 + $0x1a4] sm:$0xf0]  ;;  %v858_v6 = vor.u32 %v1012_v1, %v857_v0  ;;  %v785_v9 = vld [vmem:[%s1534_s1 + $0x90] sm:$0xf]  ;;  %v722_v17 = vor.u32 %v978_v8, %v721_v7 }
  0x12   :  { %507 = vmatpush.bf16.msra.mxu2 %v874_v46  ;;  %v922_v10 = vor.u32 %v1028_v3, %v921_v2  ;;  %v994_v11 = vld [vmem:[%s1534_s1 + $0x94] sm:$0xf0]  ;;  %v849_v12 = vld [vmem:[%s1534_s1 + $0x110] sm:$0xf]  ;;  %v713_v16 = vld [vmem:[%s1534_s1] sm:$0xf] }
  0x13   :  { %526 = vmatpush.bf16.msra.mxu3 %v938_v50  ;;  %v1010_v13 = vld [vmem:[%s1534_s1 + $0x114] sm:$0xf0]  ;;  %v913_v14 = vld [vmem:[%s1534_s1 + $0x190] sm:$0xf]  ;;  %v976_v18 = vld [vmem:[%s1534_s1 + $0x4] sm:$0xf0]  ;;  %v786_v21 = vor.u32 %v994_v11, %v785_v9 }
  0x14   :  { %470 = vmatpush.bf16.msra.mxu0 %v738_v56  ;;  %v1026_v15 = vld [vmem:[%s1534_s1 + $0x194] sm:$0xf0]  ;;  %v777_v19 = vld [vmem:[%s1534_s1 + $0x80] sm:$0xf]  ;;  %v992_v20 = vld [vmem:[%s1534_s1 + $0x84] sm:$0xf0]  ;;  %v850_v22 = vor.u32 %v1010_v13, %v849_v12  ;;  %v714_v34 = vor.u32 %v976_v18, %v713_v16 }
  0x15   :  { %489 = vmatpush.bf16.msra.mxu1 %v802_v57  ;;  %v841_v23 = vld [vmem:[%s1534_s1 + $0x100] sm:$0xf]  ;;  %v1008_v24 = vld [vmem:[%s1534_s1 + $0x104] sm:$0xf0]  ;;  %v914_v26 = vor.u32 %v1026_v15, %v913_v14  ;;  %v969_v29 = vld [vmem:[%s1535_s0 + $0xc] sm:$0xf0]  ;;  %v778_v38 = vor.u32 %v992_v20, %v777_v19 }
  0x16   :  { %508 = vmatpush.bf16.msra.mxu2 %v866_v58  ;;  %v905_v25 = vld [vmem:[%s1534_s1 + $0x180] sm:$0xf]  ;;  %v1024_v27 = vld [vmem:[%s1534_s1 + $0x184] sm:$0xf0]  ;;  %v967_v30 = vld [vmem:[%s1535_s0 + $0x4] sm:$0xf]  ;;  %v842_v39 = vor.u32 %v1008_v24, %v841_v23 }
  0x17   :  { %527 = vmatpush.bf16.msra.mxu3 %v930_v62  ;;  %v681_v28 = vld [vmem:[%s1535_s0] sm:$0xf]  ;;  %v683_v31 = vld [vmem:[%s1535_s0 + $0x10] sm:$0xf0]  ;;  %v899_v33 = vld [vmem:[%s1534_s1 + $0x178] sm:$0xf0]  ;;  %v906_v43 = vor.u32 %v1024_v27, %v905_v25 }
  0x18   :  { %471 = vmatpush.bf16.msra.mxu0 %v730_v4  ;;  %v1021_v32 = vld [vmem:[%s1534_s1 + $0x174] sm:$0xf]  ;;  %v689_v35 = vld [vmem:[%s1535_s0 + $0x8] sm:$0xf]  ;;  %v835_v37 = vld [vmem:[%s1534_s1 + $0xf8] sm:$0xf0]  ;;  %v1296_v48 = vor.u32 %v969_v29, %v681_v28  ;;  %v1307_v53 = vor.u32 %v967_v30, %v683_v31 }
  0x19   :  { %490 = vmatpush.bf16.msra.mxu1 %v794_v5  ;;  %v1005_v36 = vld [vmem:[%s1534_s1 + $0xf4] sm:$0xf]  ;;  %v970_v40 = vld [vmem:[%s1535_s0 + $0x14] sm:$0xf0]  ;;  %v968_v41 = vld [vmem:[%s1535_s0 + $0xc] sm:$0xf]  ;;  %v902_v44 = vor.u32 %v1021_v32, %v899_v33 }
  0x1a   :  { %509 = vmatpush.bf16.msra.mxu2 %v858_v6  ;;  %v691_v42 = vld [vmem:[%s1535_s0 + $0x18] sm:$0xf0]  ;;  %v989_v45 = vld [vmem:[%s1534_s1 + $0x74] sm:$0xf]  ;;  %v838_v49 = vor.u32 %v1005_v36, %v835_v37  ;;  %v1019_v51 = vld [vmem:[%s1534_s1 + $0x164] sm:$0xf]  ;;  %v1309_v54 = vor.u32 %v970_v40, %v689_v35 }
  0x1b   :  { %528 = vmatpush.bf16.msra.mxu3 %v922_v10  ;;  %v771_v46 = vld [vmem:[%s1534_s1 + $0x78] sm:$0xf0]  ;;  %v1037_v47 = vld [vmem:[%s1534_s1 + $0x1f4] sm:$0xf]  ;;  %v891_v52 = vld [vmem:[%s1534_s1 + $0x168] sm:$0xf0]  ;;  %v1317_v57 = vor.u32 %v968_v41, %v691_v42 }
  0x1c   :  { %472 = vmatpush.bf16.msra.mxu0 %v722_v17  ;;  %v963_v50 = vld [vmem:[%s1534_s1 + $0x1f8] sm:$0xf0]  ;;  %v1003_v55 = vld [vmem:[%s1534_s1 + $0xe4] sm:$0xf]  ;;  %v827_v56 = vld [vmem:[%s1534_s1 + $0xe8] sm:$0xf0]  ;;  %v774_v58 = vor.u32 %v989_v45, %v771_v46  ;;  %v894_v60 = vor.u32 %v1019_v51, %v891_v52 }
  0x1d   :  { %491 = vmatpush.bf16.msra.mxu1 %v786_v21  ;;  %v966_v59 = vor.u32 %v1037_v47, %v963_v50  ;;  %v987_v61 = vld [vmem:[%s1534_s1 + $0x64] sm:$0xf]  ;;  %v763_v62 = vld [vmem:[%s1534_s1 + $0x68] sm:$0xf0]  ;;  %v830_v0 = vor.u32 %v1003_v55, %v827_v56  ;;  %v1017_v2 = vld [vmem:[%s1534_s1 + $0x154] sm:$0xf] }
  0x1e   :  { %510 = vmatpush.bf16.msra.mxu2 %v850_v22  ;;  %v1035_v63 = vld [vmem:[%s1534_s1 + $0x1e4] sm:$0xf]  ;;  %v955_v1 = vld [vmem:[%s1534_s1 + $0x1e8] sm:$0xf0]  ;;  %v883_v3 = vld [vmem:[%s1534_s1 + $0x158] sm:$0xf0]  ;;  %v766_v6 = vor.u32 %v987_v61, %v763_v62 }
  0x1f   :  { %529 = vmatpush.bf16.msra.mxu3 %v914_v26  ;;  %v1001_v4 = vld [vmem:[%s1534_s1 + $0xd4] sm:$0xf]  ;;  %v819_v5 = vld [vmem:[%s1534_s1 + $0xd8] sm:$0xf0]  ;;  %v958_v7 = vor.u32 %v1035_v63, %v955_v1  ;;  %v886_v8 = vor.u32 %v1017_v2, %v883_v3  ;;  %v1015_v14 = vld [vmem:[%s1534_s1 + $0x144] sm:$0xf] }
  0x20   :  { %473 = vmatpush.bf16.msra.mxu0 %v714_v34  ;;  %v985_v9 = vld [vmem:[%s1534_s1 + $0x54] sm:$0xf]  ;;  %v755_v10 = vld [vmem:[%s1534_s1 + $0x58] sm:$0xf0]  ;;  %v822_v12 = vor.u32 %v1001_v4, %v819_v5  ;;  %v875_v15 = vld [vmem:[%s1534_s1 + $0x148] sm:$0xf0] }
  0x21   :  { %492 = vmatpush.bf16.msra.mxu1 %v778_v38  ;;  %v1033_v11 = vld [vmem:[%s1534_s1 + $0x1d4] sm:$0xf]  ;;  %v947_v13 = vld [vmem:[%s1534_s1 + $0x1d8] sm:$0xf0]  ;;  %v999_v16 = vld [vmem:[%s1534_s1 + $0xc4] sm:$0xf]  ;;  %v758_v18 = vor.u32 %v985_v9, %v755_v10  ;;  %v878_v23 = vor.u32 %v1015_v14, %v875_v15 }
  0x22   :  { %511 = vmatpush.bf16.msra.mxu2 %v842_v39  ;;  %v811_v17 = vld [vmem:[%s1534_s1 + $0xc8] sm:$0xf0]  ;;  %v983_v19 = vld [vmem:[%s1534_s1 + $0x44] sm:$0xf]  ;;  %v950_v22 = vor.u32 %v1033_v11, %v947_v13  ;;  %v697_v25 = vld [vmem:[%s1535_s0 + $0x20] sm:$0xf] }
  0x23   :  { %530 = vmatpush.bf16.msra.mxu3 %v906_v43  ;;  %474 = vmatmul.bf16.vlgmr.msra.gmra.mxu0 %v1296_v48  ;;  %v747_v20 = vld [vmem:[%s1534_s1 + $0x48] sm:$0xf0]  ;;  %v1031_v21 = vld [vmem:[%s1534_s1 + $0x1c4] sm:$0xf]  ;;  %v973_v26 = vld [vmem:[%s1535_s0 + $0x2c] sm:$0xf0]  ;;  %v814_v27 = vor.u32 %v999_v16, %v811_v17 }
  0x24   :  { %493 = vmatmul.bf16.vlgmr.msra.gmra.mxu1 %v1307_v53  ;;  %542 = vmatpush.bf16.msrb.mxu0 %v774_v58  ;;  %v939_v24 = vld [vmem:[%s1534_s1 + $0x1c8] sm:$0xf0]  ;;  %v971_v28 = vld [vmem:[%s1535_s0 + $0x24] sm:$0xf]  ;;  %v699_v29 = vld [vmem:[%s1535_s0 + $0x30] sm:$0xf0]  ;;  %v750_v35 = vor.u32 %v983_v19, %v747_v20 }
  0x25   :  { %561 = vmatpush.bf16.msrb.mxu1 %v838_v49  ;;  %512 = vmatmul.bf16.vlgmr.msra.gmra.mxu2 %v1309_v54  ;;  %v1013_v30 = vld [vmem:[%s1534_s1 + $0x134] sm:$0xf]  ;;  %v867_v31 = vld [vmem:[%s1534_s1 + $0x138] sm:$0xf0]  ;;  %v705_v32 = vld [vmem:[%s1535_s0 + $0x28] sm:$0xf]  ;;  %v942_v39 = vor.u32 %v1031_v21, %v939_v24  ;;  %v1439_v50 = vor.u32 %v971_v28, %v699_v29 }
  0x26   :  { %580 = vmatpush.bf16.msrb.mxu2 %v902_v44  ;;  %531 = vmatmul.bf16.vlgmr.msra.gmra.mxu3 %v1317_v57  ;;  %v997_v33 = vld [vmem:[%s1534_s1 + $0xb4] sm:$0xf]  ;;  %v803_v34 = vld [vmem:[%s1534_s1 + $0xb8] sm:$0xf0]  ;;  %v974_v36 = vld [vmem:[%s1535_s0 + $0x34] sm:$0xf0]  ;;  %v870_v40 = vor.u32 %v1013_v30, %v867_v31  ;;  %v1428_v44 = vor.u32 %v973_v26, %v697_v25 }
  0x27   :  { %599 = vmatpush.bf16.msrb.mxu3 %v966_v59  ;;  %v972_v37 = vld [vmem:[%s1535_s0 + $0x2c] sm:$0xf]  ;;  %v707_v38 = vld [vmem:[%s1535_s0 + $0x38] sm:$0xf0]  ;;  %v981_v41 = vld [vmem:[%s1534_s1 + $0x34] sm:$0xf]  ;;  %v806_v45 = vor.u32 %v997_v33, %v803_v34  ;;  %v1441_v51 = vor.u32 %v974_v36, %v705_v32 }
  0x28   :  { %543 = vmatpush.bf16.msrb.mxu0 %v766_v6  ;;  %v739_v42 = vld [vmem:[%s1534_s1 + $0x38] sm:$0xf0]  ;;  %v1029_v43 = vld [vmem:[%s1534_s1 + $0x1b4] sm:$0xf]  ;;  %v1011_v47 = vld [vmem:[%s1534_s1 + $0x124] sm:$0xf]  ;;  %v710_v56 = vor.u32 %v972_v37, %v707_v38 }
  0x29   :  { %562 = vmatpush.bf16.msrb.mxu1 %v830_v0  ;;  %v931_v46 = vld [vmem:[%s1534_s1 + $0x1b8] sm:$0xf0]  ;;  %v859_v49 = vld [vmem:[%s1534_s1 + $0x128] sm:$0xf0]  ;;  %v995_v52 = vld [vmem:[%s1534_s1 + $0xa4] sm:$0xf]  ;;  %v742_v58 = vor.u32 %v981_v41, %v739_v42 }
  0x2a   :  { %581 = vmatpush.bf16.msrb.mxu2 %v894_v60  ;;  %v795_v55 = vld [vmem:[%s1534_s1 + $0xa8] sm:$0xf0]  ;;  %v934_v59 = vor.u32 %v1029_v43, %v931_v46  ;;  %v862_v60 = vor.u32 %v1011_v47, %v859_v49  ;;  %v979_v61 = vld [vmem:[%s1534_s1 + $0x24] sm:$0xf]  ;;  %v1009_v2 = vld [vmem:[%s1534_s1 + $0x114] sm:$0xf] }
  0x2b   :  { %600 = vmatpush.bf16.msrb.mxu3 %v958_v7  ;;  %v731_v62 = vld [vmem:[%s1534_s1 + $0x28] sm:$0xf0]  ;;  %v1027_v63 = vld [vmem:[%s1534_s1 + $0x1a4] sm:$0xf]  ;;  %v798_v0 = vor.u32 %v995_v52, %v795_v55  ;;  %v851_v3 = vld [vmem:[%s1534_s1 + $0x118] sm:$0xf0] }
  0x2c   :  { %544 = vmatpush.bf16.msrb.mxu0 %v758_v18  ;;  %v923_v1 = vld [vmem:[%s1534_s1 + $0x1a8] sm:$0xf0]  ;;  %v993_v4 = vld [vmem:[%s1534_s1 + $0x94] sm:$0xf]  ;;  %v787_v5 = vld [vmem:[%s1534_s1 + $0x98] sm:$0xf0]  ;;  %v734_v6 = vor.u32 %v979_v61, %v731_v62 }
  0x2d   :  { %563 = vmatpush.bf16.msrb.mxu1 %v822_v12  ;;  %v926_v7 = vor.u32 %v1027_v63, %v923_v1  ;;  %v977_v9 = vld [vmem:[%s1534_s1 + $0x14] sm:$0xf]  ;;  %v723_v10 = vld [vmem:[%s1534_s1 + $0x18] sm:$0xf0]  ;;  %v790_v12 = vor.u32 %v993_v4, %v787_v5  ;;  %v1007_v14 = vld [vmem:[%s1534_s1 + $0x104] sm:$0xf] }
  0x2e   :  { %582 = vmatpush.bf16.msrb.mxu2 %v886_v8  ;;  %v854_v8 = vor.u32 %v1009_v2, %v851_v3  ;;  %v1025_v11 = vld [vmem:[%s1534_s1 + $0x194] sm:$0xf]  ;;  %v915_v13 = vld [vmem:[%s1534_s1 + $0x198] sm:$0xf0]  ;;  %v843_v15 = vld [vmem:[%s1534_s1 + $0x108] sm:$0xf0]  ;;  %v726_v18 = vor.u32 %v977_v9, %v723_v10 }
  0x2f   :  { %601 = vmatpush.bf16.msrb.mxu3 %v950_v22  ;;  %v991_v16 = vld [vmem:[%s1534_s1 + $0x84] sm:$0xf]  ;;  %v779_v17 = vld [vmem:[%s1534_s1 + $0x88] sm:$0xf0]  ;;  %v918_v19 = vor.u32 %v1025_v11, %v915_v13  ;;  %v846_v20 = vor.u32 %v1007_v14, %v843_v15 }
  0x30   :  { %545 = vmatpush.bf16.msrb.mxu0 %v750_v35  ;;  %v975_v21 = vld [vmem:[%s1534_s1 + $0x4] sm:$0xf]  ;;  %v715_v22 = vld [vmem:[%s1534_s1 + $0x8] sm:$0xf0] }
  0x31   :  { %564 = vmatpush.bf16.msrb.mxu1 %v814_v27  ;;  %v1023_v24 = vld [vmem:[%s1534_s1 + $0x184] sm:$0xf]  ;;  %v907_v25 = vld [vmem:[%s1534_s1 + $0x188] sm:$0xf0]  ;;  %v718_v26 = vor.u32 %v975_v21, %v715_v22 }
  0x32   :  { %583 = vmatpush.bf16.msrb.mxu2 %v878_v23  ;;  %v782_v23 = vor.u32 %v991_v16, %v779_v17  ;;  %v910_v27 = vor.u32 %v1023_v24, %v907_v25 }
  0x33   :  { %602 = vmatpush.bf16.msrb.mxu3 %v942_v39  ;;  %479 = vmatmul.bf16.gmra.mxu0 %v1428_v44 }
  0x34   :  { %498 = vmatmul.bf16.gmra.mxu1 %v1439_v50  ;;  %546 = vmatpush.bf16.msrb.mxu0 %v742_v58 }
  0x35   :  { %565 = vmatpush.bf16.msrb.mxu1 %v806_v45  ;;  %517 = vmatmul.bf16.gmra.mxu2 %v1441_v51 }
  0x36   :  { %584 = vmatpush.bf16.msrb.mxu2 %v870_v40  ;;  %536 = vmatmul.bf16.gmra.mxu3 %v710_v56 }
  0x37   :  { %603 = vmatpush.bf16.msrb.mxu3 %v934_v59 }
  0x38   :  { %547 = vmatpush.bf16.msrb.mxu0 %v734_v6 }
  0x39   :  { %566 = vmatpush.bf16.msrb.mxu1 %v798_v0 }
  0x3a   :  { %585 = vmatpush.bf16.msrb.mxu2 %v862_v60 }
  0x3b   :  { %604 = vmatpush.bf16.msrb.mxu3 %v926_v7 }
  0x3c   :  { %548 = vmatpush.bf16.msrb.mxu0 %v726_v18 }
  0x3d   :  { %567 = vmatpush.bf16.msrb.mxu1 %v790_v12 }
  0x3e   :  { %586 = vmatpush.bf16.msrb.mxu2 %v854_v8 }
  0x3f   :  { %605 = vmatpush.bf16.msrb.mxu3 %v918_v19 }
  0x40   :  { %549 = vmatpush.bf16.msrb.mxu0 %v718_v26 }
  0x41   :  { %568 = vmatpush.bf16.msrb.mxu1 %v782_v23 }
  0x42   :  { %587 = vmatpush.bf16.msrb.mxu2 %v846_v20 }
  0x43   :  { %606 = vmatpush.bf16.msrb.mxu3 %v910_v27  ;;  %550 = vmatmul.bf16.vlgmr.msrb.gmra.mxu0 %v1296_v48 }
  0x44   :  { %569 = vmatmul.bf16.vlgmr.msrb.gmra.mxu1 %v1307_v53 }
  0x45   :  { %588 = vmatmul.bf16.vlgmr.msrb.gmra.mxu2 %v1309_v54 }
  0x46   :  { %607 = vmatmul.bf16.vlgmr.msrb.gmra.mxu3 %v1317_v57 }
  0x53   :  { %555 = vmatmul.bf16.gmra.mxu0 %v1428_v44  ;;  %v645_v44 = vld [vmem:[%s1536_s2] sm:$0x3] }
  0x54   :  { %574 = vmatmul.bf16.gmra.mxu1 %v1439_v50  ;;  %v647_v47 = vperm.slane %v645_v44, 0  ;;  %v648_v55 = vperm.slane %v645_v44, 1 }
  0x55   :  { %593 = vmatmul.bf16.gmra.mxu2 %v1441_v51 }
  0x56   :  { %612 = vmatmul.bf16.gmra.mxu3 %v710_v56 }
  0xa0   :  { %v475_v28 = vpop.f32.mrf.mxu0 }
  0xa1   :  { %v494_v29 = vpop.f32.mrf.mxu1 }
  0xa2   :  { %v495_v38 = vadd.f32 %v494_v29, %v475_v28 }
  0xa8   :  { %v513_v30 = vpop.f32.mrf.mxu2  ;;  %v477_v32 = vpop.f32.mrf.mxu0 }
  0xa9   :  { %v532_v31 = vpop.f32.mrf.mxu3  ;;  %v496_v33 = vpop.f32.mrf.mxu1  ;;  %v514_v43 = vadd.f32 %v513_v30, %v495_v38 }
  0xaa   :  { %v497_v51 = vadd.f32 %v496_v33, %v477_v32 }
  0xab   :  { %v533_v46 = vadd.f32 %v532_v31, %v514_v43 }
  0xad   :  { %v651_v59 = vadd.f32 %v647_v47, %v533_v46 }
  0xaf   :  { %v659_v63 = vmax.f32 %v651_v59, 0.0 }
  0xb0   :  { %v515_v48 = vpop.f32.mrf.mxu2  ;;  %v480_v53 = vpop.f32.mrf.mxu0 }
  0xb1   :  { %v534_v34 = vpop.f32.mrf.mxu3  ;;  %v499_v35 = vpop.f32.mrf.mxu1  ;;  %v516_v60 = vadd.f32 %v515_v48, %v497_v51 }
  0xb2   :  { %v500_v1 = vadd.f32 %v499_v35, %v480_v53 }
  0xb3   :  { %v535_v0 = vadd.f32 %v534_v34, %v516_v60 }
  0xb5   :  { %v653_v10 = vadd.f32 %v647_v47, %v535_v0 }
  0xb7   :  { %v661_v15 = vmax.f32 %v653_v10, 0.0 }
  0xb8   :  { %v518_v54 = vpop.f32.mrf.mxu2  ;;  %v482_v57 = vpop.f32.mrf.mxu0 }
  0xb9   :  { %v537_v36 = vpop.f32.mrf.mxu3  ;;  %v501_v37 = vpop.f32.mrf.mxu1  ;;  %v519_v11 = vadd.f32 %v518_v54, %v500_v1 }
  0xba   :  { %v502_v20 = vadd.f32 %v501_v37, %v482_v57 }
  0xbb   :  { %v538_v16 = vadd.f32 %v537_v36, %v519_v11 }
  0xbd   :  { %v655_v23 = vadd.f32 %v647_v47, %v538_v16 }
  0xbf   :  { %v663_v29 = vmax.f32 %v655_v23, 0.0 }
  0xc0   :  { %v520_v39 = vpop.f32.mrf.mxu2  ;;  %v551_v41 = vpop.f32.mrf.mxu0 }
  0xc1   :  { %v539_v40 = vpop.f32.mrf.mxu3  ;;  %v570_v42 = vpop.f32.mrf.mxu1  ;;  %v521_v24 = vadd.f32 %v520_v39, %v502_v20 }
  0xc2   :  { %v571_v45 = vadd.f32 %v570_v42, %v551_v41 }
  0xc3   :  { %v540_v30 = vadd.f32 %v539_v40, %v521_v24 }
  0xc5   :  { %v657_v35 = vadd.f32 %v647_v47, %v540_v30 }
  0xc7   :  { %v665_v57 = vmax.f32 %v657_v35, 0.0 }
  0xc8   :  { %v589_v49 = vpop.f32.mrf.mxu2  ;;  %v553_v56 = vpop.f32.mrf.mxu0 }
  0xc9   :  { %v608_v50 = vpop.f32.mrf.mxu3  ;;  %v590_v52 = vadd.f32 %v589_v49, %v571_v45  ;;  %v572_v58 = vpop.f32.mrf.mxu1 }
  0xca   :  { %v573_v3 = vadd.f32 %v572_v58, %v553_v56 }
  0xcb   :  { %v609_v61 = vadd.f32 %v608_v50, %v590_v52 }
  0xcd   :  { %v652_v62 = vadd.f32 %v648_v55, %v609_v61 }
  0xcf   :  { %v660_v2 = vmax.f32 %v652_v62, 0.0 }
  0xd0   :  { %v591_v4 = vpop.f32.mrf.mxu2  ;;  %v556_v8 = vpop.f32.mrf.mxu0 }
  0xd1   :  { %v610_v5 = vpop.f32.mrf.mxu3  ;;  %v667_v6 = vpack.c.bf16 %v660_v2, %v659_v63  ;;  %v592_v7 = vadd.f32 %v591_v4, %v573_v3  ;;  %v575_v9 = vpop.f32.mrf.mxu1 }
  0xd2   :  { %v576_v14 = vadd.f32 %v575_v9, %v556_v8 }
  0xd3   :  { %671 = vst [vmem:[%s1537_s3] sm:$0xff] %v667_v6  ;;  %v611_v12 = vadd.f32 %v610_v5, %v592_v7 }
  0xd5   :  { %v654_v13 = vadd.f32 %v648_v55, %v611_v12 }
  0xd7   :  { %v662_v17 = vmax.f32 %v654_v13, 0.0 }
  0xd8   :  { %v594_v18 = vpop.f32.mrf.mxu2  ;;  %v558_v26 = vpop.f32.mrf.mxu0 }
  0xd9   :  { %v613_v19 = vpop.f32.mrf.mxu3  ;;  %v668_v21 = vpack.c.bf16 %v662_v17, %v661_v15  ;;  %v595_v22 = vadd.f32 %v594_v18, %v576_v14  ;;  %v577_v27 = vpop.f32.mrf.mxu1 }
  0xda   :  { %v578_v32 = vadd.f32 %v577_v27, %v558_v26 }
  0xdb   :  { %672 = vst [vmem:[%s1537_s3 + $0x8] sm:$0xff] %v668_v21  ;;  %v614_v25 = vadd.f32 %v613_v19, %v595_v22 }
  0xdd   :  { %v656_v28 = vadd.f32 %v648_v55, %v614_v25 }
  0xdf   :  { %v664_v31 = vmax.f32 %v656_v28, 0.0 }
  0xe0   :  { %v596_v33 = vpop.f32.mrf.mxu2 }
  0xe1   :  { %v669_v48 = vpack.c.bf16 %v664_v31, %v663_v29  ;;  %v597_v34 = vadd.f32 %v596_v33, %v578_v32  ;;  %v615_v53 = vpop.f32.mrf.mxu3 }
  0xe3   :  { %673 = vst [vmem:[%s1537_s3 + $0x10] sm:$0xff] %v669_v48  ;;  %v616_v54 = vadd.f32 %v615_v53, %v597_v34 }
  0xe5   :  { %v658_v36 = vadd.f32 %v648_v55, %v616_v54 }
  0xe7   :  { %v666_v37 = vmax.f32 %v658_v36, 0.0 }
  0xe9   :  { %v670_v38 = vpack.c.bf16 %v666_v37, %v665_v57 }
  0xeb   :  { %674 = vst [vmem:[%s1537_s3 + $0x18] sm:$0xff] %v670_v38 }

// kernel: _lambda_.71
= control target key start
LH: loop header
LB: loop body
LE: loop exit
PB: predicated region body
PF: predicated region fallthrough
CT: control target
= control target key end

     0   :  { %s1880_s12 = smov 0   ;;  %s1882_s13 = smov 0   ;;  %s2188_s0 = inlined_call_operand.vmem [shape: bf16[16,2304], index: 0, kind: input, shape index: {}]   ;;  %s2189_s1 = inlined_call_operand.vmem [shape: bf16[2304,256], index: 1, kind: input, shape index: {}]   ;;  %s2190_s2 = inlined_call_operand.vmem [shape: f32[1,256], index: 2, kind: input, shape index: {}]   ;;  %s2191_s3 = inlined_call_operand.vmem [shape: bf16[16,256], index: 3, kind: output, shape index: {}]  }
   0x1   :  { %s1884_s14 = smov 0   ;;  %s1886_s15 = smov 0  }
   0x2   :  { %s1888_s16 = smov 0  }
   0x3 LB: > { %s25_s17 = sadd.s32 1, %s1853_s15  ;;  %p48_p1 = scmp.ne.s32.totalorder %s1845_s13, %s1841_s12  ;;  %s1857_s16 = sphi %s1888_s16, %s13_s16   ;;  %s1853_s15 = sphi %s1886_s15, %s2195_s15   ;;  %s1849_s14 = sphi %s1884_s14, %s2194_s14   ;;  %s1845_s13 = sphi %s1882_s13, %s2193_s13   ;;  %s1841_s12 = sphi %s1880_s12, %s2192_s12  }
   0x4   : > { %p26_p0 = scmp.ge.s32.totalorder %s25_s17, 3  ;;  %p49_p2 = scmp.eq.s32.totalorder %s1857_s16, 0 }
   0x5   : > { %s41_s19 = sadd.s32 1, %s1845_s13  ;;  %p1253_p5 = scmp.ge.s32.totalorder %s1857_s16, 3 }
   0x6   : > { %s2197_s17 = smov (%p26_p0, %s25_s17), 0  ;;  %p50_p3 = por %p49_p2, %p48_p1 }
   0x7   : > { %s37_s18 = ssub.s32 %s1853_s15, %s2197_s17  ;;  %164 = sbr.rel (%p1253_p5) target bundleno = 23 (0x17), region = 20 }
   0x8   : > { %p39_p4 = scmp.eq.s32.totalorder %s37_s18, 0 }
   0xa   : > { %s1915_s20 = scalar_select %p39_p4, %s1845_s13, %s41_s19  }
   0xc   : > { %167 = sbr.rel (!%p50_p3) target bundleno = 23 (0x17), region = 24  ;;  %s169_s21 = sand.u32 (%p50_p3), 1, %s1845_s13  }
   0xd   : > { %s1672_s22 = smul.u32 (%p50_p3), 24, %s1853_s15 }
   0xe   : > { %s1776_s23 = smul.u32 (%p50_p3), 48, %s169_s21 }
   0xf   : > { %s177_s26 = scalar_lea.vmem (%p50_p3), %s2188_s0, %s1672_s22 }
  0x10   : > { %v190_v0 = vld [vmem:[%s177_s26] sm:$0xff] (%p50_p3)  ;;  %v192_v1 = vld [vmem:[%s177_s26 + $0x8] sm:$0xff] (%p50_p3)  ;;  %v194_v2 = vld [vmem:[%s177_s26 + $0x10] sm:$0xff] (%p50_p3)  ;;  %s171_s27 = scalar_lea.vmem (%p50_p3), [#allocation3], %s1776_s23 }
  0x11   : > { %191 = vst [vmem:[%s171_s27] sm:$0xff] %v190_v0  ;;  %v196_v3 = vld [vmem:[%s177_s26 + $0x48] sm:$0xff]  ;;  %v198_v4 = vld [vmem:[%s177_s26 + $0x50] sm:$0xff]  ;;  %v200_v5 = vld [vmem:[%s177_s26 + $0x58] sm:$0xff] }
  0x12   : > { %193 = vst [vmem:[%s171_s27 + $0x8] sm:$0xff] %v192_v1 }
  0x13   : > { %195 = vst [vmem:[%s171_s27 + $0x10] sm:$0xff] %v194_v2 }
  0x14   : > { %197 = vst [vmem:[%s171_s27 + $0x18] sm:$0xff] %v196_v3 }
  0x15   : > { %199 = vst [vmem:[%s171_s27 + $0x20] sm:$0xff] %v198_v4 }
  0x16   : > { %201 = vst [vmem:[%s171_s27 + $0x28] sm:$0xff] %v200_v5 }
  0x17 PF: > { %p1255_p6 = scmp.ge.s32.totalorder %s1857_s16, 1  ;;  %p221_p7 = scmp.lt.s32.totalorder %s1857_s16, 4 }
  0x19   : > { %p222_p8 = pnand %p1255_p6, %p221_p7 }
  0x1a   : > { %s228_s28 = sand.u32 (!%p222_p8), 1, %s1841_s12   ;;  %s272_s29 = smul.u32 (!%p222_p8), 96, %s1849_s14 }
  0x1b   : > { %225 = sbr.rel (%p222_p8) target bundleno = 303 (0x12f), region = 51  ;;  %p1258_p10 = scmp.ne.s32.totalorder (!%p222_p8), %s1849_s14, 0 }
  0x1c   : > { %s1777_s30 = smul.u32 (!%p222_p8), 48, %s228_s28  ;;  %p274_p9 = scmp.lt.s32.totalorder (!%p222_p8), %s272_s29, 287 }
  0x1e   : > { %s1932_s8 = scalar_lea.vmem (!%p222_p8), [#allocation3], %s1777_s30 }
  0x20   : > { %s2199_s29 = smov (!%p274_p9, %s272_s29), 287  ;;  %304 = sbr.rel (%p1258_p10) target bundleno = 42 (0x2a), region = 59 }
  0x21   : > { %s1673_s4 = sshll.u32 %s2199_s29, 3 }
  0x22   : > { %s1930_s7 = scalar_lea.vmem %s2189_s1, %s1673_s4 }
  0x25   : > { %v1859_v6 = vmov 0.0  }
  0x26   : > { %305 = vst [vmem:[#allocation2 + $0x10] sm:$0xff] %v1859_v6 }
  0x27   : > { %306 = vst [vmem:[#allocation2] sm:$0xff] %v1859_v6 }
  0x28   : > { %307 = vst [vmem:[#allocation2 + $0x18] sm:$0xff] %v1859_v6 }
  0x29   : > { %308 = vst [vmem:[#allocation2 + $0x8] sm:$0xff] %v1859_v6 }
  0x2a PF: > { %v1341_v7 = vld [vmem:[%s1930_s7 + $0x70] sm:$0xf]  ;;  %v1695_v8 = vld [vmem:[%s1930_s7 + $0x74] sm:$0xf0]  ;;  %v1333_v18 = vld [vmem:[%s1930_s7 + $0x60] sm:$0xf] }
  0x2b   : > { %v1405_v9 = vld [vmem:[%s1930_s7 + $0xf0] sm:$0xf]  ;;  %v1342_v10 = vor.u32 %v1695_v8, %v1341_v7  ;;  %v1711_v11 = vld [vmem:[%s1930_s7 + $0xf4] sm:$0xf0]  ;;  %v1693_v20 = vld [vmem:[%s1930_s7 + $0x64] sm:$0xf0] }
  0x2c   : > { %v1469_v12 = vld [vmem:[%s1930_s7 + $0x170] sm:$0xf]  ;;  %v1727_v13 = vld [vmem:[%s1930_s7 + $0x174] sm:$0xf0]  ;;  %v1406_v14 = vor.u32 %v1711_v11, %v1405_v9  ;;  %v1397_v21 = vld [vmem:[%s1930_s7 + $0xe0] sm:$0xf]  ;;  %v1334_v23 = vor.u32 %v1693_v20, %v1333_v18 }
  0x2d   : > { %v1470_v15 = vor.u32 %v1727_v13, %v1469_v12  ;;  %v1533_v16 = vld [vmem:[%s1930_s7 + $0x1f0] sm:$0xf]  ;;  %v1743_v17 = vld [vmem:[%s1930_s7 + $0x1f4] sm:$0xf0]  ;;  %925 = vmatpush.bf16.msra.mxu0 %v1342_v10  ;;  %v1709_v22 = vld [vmem:[%s1930_s7 + $0xe4] sm:$0xf0] }
  0x2e   : > { %v1534_v19 = vor.u32 %v1743_v17, %v1533_v16  ;;  %939 = vmatpush.bf16.msra.mxu1 %v1406_v14  ;;  %v1398_v24 = vor.u32 %v1709_v22, %v1397_v21  ;;  %v1461_v25 = vld [vmem:[%s1930_s7 + $0x160] sm:$0xf]  ;;  %v1725_v26 = vld [vmem:[%s1930_s7 + $0x164] sm:$0xf0]  ;;  %v1325_v30 = vld [vmem:[%s1930_s7 + $0x50] sm:$0xf] }
  0x2f   : > { %953 = vmatpush.bf16.msra.mxu2 %v1470_v15  ;;  %v1525_v27 = vld [vmem:[%s1930_s7 + $0x1e0] sm:$0xf]  ;;  %v1462_v28 = vor.u32 %v1725_v26, %v1461_v25  ;;  %v1741_v29 = vld [vmem:[%s1930_s7 + $0x1e4] sm:$0xf0]  ;;  %v1691_v31 = vld [vmem:[%s1930_s7 + $0x54] sm:$0xf0] }
  0x30   : > { %967 = vmatpush.bf16.msra.mxu3 %v1534_v19  ;;  %v1526_v32 = vor.u32 %v1741_v29, %v1525_v27  ;;  %v1389_v33 = vld [vmem:[%s1930_s7 + $0xd0] sm:$0xf]  ;;  %v1707_v34 = vld [vmem:[%s1930_s7 + $0xd4] sm:$0xf0]  ;;  %v1326_v36 = vor.u32 %v1691_v31, %v1325_v30  ;;  %v1317_v42 = vld [vmem:[%s1930_s7 + $0x40] sm:$0xf] }
  0x31   : > { %v1453_v35 = vld [vmem:[%s1930_s7 + $0x150] sm:$0xf]  ;;  %926 = vmatpush.bf16.msra.mxu0 %v1334_v23  ;;  %v1723_v37 = vld [vmem:[%s1930_s7 + $0x154] sm:$0xf0]  ;;  %v1390_v40 = vor.u32 %v1707_v34, %v1389_v33  ;;  %v1689_v43 = vld [vmem:[%s1930_s7 + $0x44] sm:$0xf0] }
  0x32   : > { %v1517_v38 = vld [vmem:[%s1930_s7 + $0x1d0] sm:$0xf]  ;;  %v1739_v39 = vld [vmem:[%s1930_s7 + $0x1d4] sm:$0xf0]  ;;  %940 = vmatpush.bf16.msra.mxu1 %v1398_v24  ;;  %v1454_v41 = vor.u32 %v1723_v37, %v1453_v35  ;;  %v1381_v44 = vld [vmem:[%s1930_s7 + $0xc0] sm:$0xf]  ;;  %v1318_v51 = vor.u32 %v1689_v43, %v1317_v42 }
  0x33   : > { %954 = vmatpush.bf16.msra.mxu2 %v1462_v28  ;;  %v1518_v45 = vor.u32 %v1739_v39, %v1517_v38  ;;  %v1705_v46 = vld [vmem:[%s1930_s7 + $0xc4] sm:$0xf0]  ;;  %v1445_v47 = vld [vmem:[%s1930_s7 + $0x140] sm:$0xf]  ;;  %v1309_v54 = vld [vmem:[%s1930_s7 + $0x30] sm:$0xf] }
  0x34   : > { %968 = vmatpush.bf16.msra.mxu3 %v1526_v32  ;;  %v1721_v48 = vld [vmem:[%s1930_s7 + $0x144] sm:$0xf0]  ;;  %v1509_v49 = vld [vmem:[%s1930_s7 + $0x1c0] sm:$0xf]  ;;  %v1382_v52 = vor.u32 %v1705_v46, %v1381_v44  ;;  %v1687_v55 = vld [vmem:[%s1930_s7 + $0x34] sm:$0xf0] }
  0x35   : > { %v1737_v50 = vld [vmem:[%s1930_s7 + $0x1c4] sm:$0xf0]  ;;  %927 = vmatpush.bf16.msra.mxu0 %v1326_v36  ;;  %v1446_v53 = vor.u32 %v1721_v48, %v1445_v47  ;;  %v1373_v56 = vld [vmem:[%s1930_s7 + $0xb0] sm:$0xf]  ;;  %v1703_v58 = vld [vmem:[%s1930_s7 + $0xb4] sm:$0xf0]  ;;  %v1310_v63 = vor.u32 %v1687_v55, %v1309_v54 }
  0x36   : > { %941 = vmatpush.bf16.msra.mxu1 %v1390_v40  ;;  %v1510_v57 = vor.u32 %v1737_v50, %v1509_v49  ;;  %v1437_v59 = vld [vmem:[%s1930_s7 + $0x130] sm:$0xf]  ;;  %v1719_v60 = vld [vmem:[%s1930_s7 + $0x134] sm:$0xf0]  ;;  %v1374_v0 = vor.u32 %v1703_v58, %v1373_v56  ;;  %v1301_v2 = vld [vmem:[%s1930_s7 + $0x20] sm:$0xf] }
  0x37   : > { %955 = vmatpush.bf16.msra.mxu2 %v1454_v41  ;;  %v1501_v61 = vld [vmem:[%s1930_s7 + $0x1b0] sm:$0xf]  ;;  %v1735_v62 = vld [vmem:[%s1930_s7 + $0x1b4] sm:$0xf0]  ;;  %v1438_v1 = vor.u32 %v1719_v60, %v1437_v59  ;;  %v1685_v3 = vld [vmem:[%s1930_s7 + $0x24] sm:$0xf0] }
  0x38   : > { %969 = vmatpush.bf16.msra.mxu3 %v1518_v45  ;;  %v1365_v4 = vld [vmem:[%s1930_s7 + $0xa0] sm:$0xf]  ;;  %v1502_v5 = vor.u32 %v1735_v62, %v1501_v61  ;;  %v1701_v6 = vld [vmem:[%s1930_s7 + $0xa4] sm:$0xf0]  ;;  %v1302_v11 = vor.u32 %v1685_v3, %v1301_v2  ;;  %v1293_v14 = vld [vmem:[%s1930_s7 + $0x10] sm:$0xf] }
  0x39   : > { %928 = vmatpush.bf16.msra.mxu0 %v1318_v51  ;;  %v1429_v7 = vld [vmem:[%s1930_s7 + $0x120] sm:$0xf]  ;;  %v1717_v8 = vld [vmem:[%s1930_s7 + $0x124] sm:$0xf0]  ;;  %v1366_v12 = vor.u32 %v1701_v6, %v1365_v4  ;;  %v1683_v15 = vld [vmem:[%s1930_s7 + $0x14] sm:$0xf0] }
  0x3a   : > { %942 = vmatpush.bf16.msra.mxu1 %v1382_v52  ;;  %v1493_v9 = vld [vmem:[%s1930_s7 + $0x1a0] sm:$0xf]  ;;  %v1733_v10 = vld [vmem:[%s1930_s7 + $0x1a4] sm:$0xf0]  ;;  %v1430_v13 = vor.u32 %v1717_v8, %v1429_v7  ;;  %v1357_v16 = vld [vmem:[%s1930_s7 + $0x90] sm:$0xf]  ;;  %v1294_v23 = vor.u32 %v1683_v15, %v1293_v14 }
  0x3b   : > { %956 = vmatpush.bf16.msra.mxu2 %v1446_v53  ;;  %v1494_v17 = vor.u32 %v1733_v10, %v1493_v9  ;;  %v1699_v18 = vld [vmem:[%s1930_s7 + $0x94] sm:$0xf0]  ;;  %v1421_v19 = vld [vmem:[%s1930_s7 + $0x110] sm:$0xf]  ;;  %v1285_v24 = vld [vmem:[%s1930_s7] sm:$0xf] }
  0x3c   : > { %970 = vmatpush.bf16.msra.mxu3 %v1510_v57  ;;  %v1715_v20 = vld [vmem:[%s1930_s7 + $0x114] sm:$0xf0]  ;;  %v1485_v21 = vld [vmem:[%s1930_s7 + $0x190] sm:$0xf]  ;;  %v1681_v25 = vld [vmem:[%s1930_s7 + $0x4] sm:$0xf0]  ;;  %v1358_v26 = vor.u32 %v1699_v18, %v1357_v16 }
  0x3d   : > { %929 = vmatpush.bf16.msra.mxu0 %v1310_v63  ;;  %v1731_v22 = vld [vmem:[%s1930_s7 + $0x194] sm:$0xf0]  ;;  %v1422_v27 = vor.u32 %v1715_v20, %v1421_v19  ;;  %v1349_v28 = vld [vmem:[%s1930_s7 + $0x80] sm:$0xf]  ;;  %v1697_v29 = vld [vmem:[%s1930_s7 + $0x84] sm:$0xf0]  ;;  %v1286_v38 = vor.u32 %v1681_v25, %v1285_v24 }
  0x3e   : > { %943 = vmatpush.bf16.msra.mxu1 %v1374_v0  ;;  %v1413_v30 = vld [vmem:[%s1930_s7 + $0x100] sm:$0xf]  ;;  %v1486_v31 = vor.u32 %v1731_v22, %v1485_v21  ;;  %v1713_v32 = vld [vmem:[%s1930_s7 + $0x104] sm:$0xf0]  ;;  %v1597_v35 = vld [vmem:[%s1930_s7 + $0x270] sm:$0xf]  ;;  %v1350_v42 = vor.u32 %v1697_v29, %v1349_v28 }
  0x3f   : > { %957 = vmatpush.bf16.msra.mxu2 %v1438_v1  ;;  %v1477_v33 = vld [vmem:[%s1930_s7 + $0x180] sm:$0xf]  ;;  %v1729_v34 = vld [vmem:[%s1930_s7 + $0x184] sm:$0xf0]  ;;  %v1759_v36 = vld [vmem:[%s1930_s7 + $0x274] sm:$0xf0]  ;;  %v1414_v43 = vor.u32 %v1713_v32, %v1413_v30 }
  0x40   : > { %971 = vmatpush.bf16.msra.mxu3 %v1502_v5  ;;  %v1661_v37 = vld [vmem:[%s1930_s7 + $0x2f0] sm:$0xf]  ;;  %v1775_v39 = vld [vmem:[%s1930_s7 + $0x2f4] sm:$0xf0]  ;;  %v1694_v40 = vld [vmem:[%s1930_s7 + $0x74] sm:$0xf]  ;;  %v1478_v46 = vor.u32 %v1729_v34, %v1477_v33  ;;  %v1598_v47 = vor.u32 %v1759_v36, %v1597_v35 }
  0x41   : > { %930 = vmatpush.bf16.msra.mxu0 %v1302_v11  ;;  %v1343_v41 = vld [vmem:[%s1930_s7 + $0x78] sm:$0xf0]  ;;  %v1710_v44 = vld [vmem:[%s1930_s7 + $0xf4] sm:$0xf]  ;;  %v1589_v48 = vld [vmem:[%s1930_s7 + $0x260] sm:$0xf]  ;;  %v1662_v50 = vor.u32 %v1775_v39, %v1661_v37 }
  0x42   : > { %944 = vmatpush.bf16.msra.mxu1 %v1366_v12  ;;  %v1407_v45 = vld [vmem:[%s1930_s7 + $0xf8] sm:$0xf0]  ;;  %v1757_v49 = vld [vmem:[%s1930_s7 + $0x264] sm:$0xf0]  ;;  %v1346_v51 = vor.u32 %v1694_v40, %v1343_v41  ;;  %v1653_v52 = vld [vmem:[%s1930_s7 + $0x2e0] sm:$0xf] }
  0x43   : > { %958 = vmatpush.bf16.msra.mxu2 %v1430_v13  ;;  %v1773_v53 = vld [vmem:[%s1930_s7 + $0x2e4] sm:$0xf0]  ;;  %v1692_v54 = vld [vmem:[%s1930_s7 + $0x64] sm:$0xf]  ;;  %v1410_v55 = vor.u32 %v1710_v44, %v1407_v45  ;;  %v1335_v56 = vld [vmem:[%s1930_s7 + $0x68] sm:$0xf0]  ;;  %v1590_v62 = vor.u32 %v1757_v49, %v1589_v48 }
  0x44   : > { %972 = vmatpush.bf16.msra.mxu3 %v1494_v17  ;;  %v1708_v57 = vld [vmem:[%s1930_s7 + $0xe4] sm:$0xf]  ;;  %v1399_v58 = vld [vmem:[%s1930_s7 + $0xe8] sm:$0xf0]  ;;  %v1581_v59 = vld [vmem:[%s1930_s7 + $0x250] sm:$0xf]  ;;  %v1654_v3 = vor.u32 %v1773_v53, %v1653_v52  ;;  %v1338_v4 = vor.u32 %v1692_v54, %v1335_v56 }
  0x45   : > { %931 = vmatpush.bf16.msra.mxu0 %v1294_v23  ;;  %v1261_v60 = vld [vmem:[%s1932_s8] sm:$0xf]  ;;  %v1677_v61 = vld [vmem:[%s1932_s8 + $0x14] sm:$0xf0]  ;;  %v1690_v5 = vld [vmem:[%s1930_s7 + $0x54] sm:$0xf]  ;;  %v1402_v8 = vor.u32 %v1708_v57, %v1399_v58 }
  0x46   : > { %945 = vmatpush.bf16.msra.mxu1 %v1358_v26  ;;  %v1755_v63 = vld [vmem:[%s1930_s7 + $0x254] sm:$0xf0]  ;;  %v1645_v0 = vld [vmem:[%s1930_s7 + $0x2d0] sm:$0xf]  ;;  %v2021_v2 = vor.u32 %v1677_v61, %v1261_v60  ;;  %v1327_v6 = vld [vmem:[%s1930_s7 + $0x58] sm:$0xf0] }
  0x47   : > { %959 = vmatpush.bf16.msra.mxu2 %v1422_v27  ;;  %v1771_v1 = vld [vmem:[%s1930_s7 + $0x2d4] sm:$0xf0]  ;;  %v1706_v7 = vld [vmem:[%s1930_s7 + $0xd4] sm:$0xf]  ;;  %v1391_v9 = vld [vmem:[%s1930_s7 + $0xd8] sm:$0xf0]  ;;  %v1582_v16 = vor.u32 %v1755_v63, %v1581_v59  ;;  %v1330_v20 = vor.u32 %v1690_v5, %v1327_v6 }
  0x48   : > { %973 = vmatpush.bf16.msra.mxu3 %v1486_v31  ;;  %v1674_v10 = vld [vmem:[%s1932_s8 + $0x4] sm:$0xf]  ;;  %v1263_v11 = vld [vmem:[%s1932_s8 + $0x18] sm:$0xf0]  ;;  %v1269_v13 = vld [vmem:[%s1932_s8 + $0x8] sm:$0xf]  ;;  %v1646_v19 = vor.u32 %v1771_v1, %v1645_v0  ;;  %v1394_v25 = vor.u32 %v1706_v7, %v1391_v9 }
  0x49   : > { %932 = vmatpush.bf16.msra.mxu0 %v1286_v38  ;;  %v2030_v12 = vor.u32 %v1674_v10, %v1263_v11  ;;  %v1678_v14 = vld [vmem:[%s1932_s8 + $0x1c] sm:$0xf0]  ;;  %v1675_v15 = vld [vmem:[%s1932_s8 + $0xc] sm:$0xf]  ;;  %v1271_v18 = vld [vmem:[%s1932_s8 + $0x20] sm:$0xf0] }
  0x4a   : > { %946 = vmatpush.bf16.msra.mxu1 %v1350_v42  ;;  %v2035_v17 = vor.u32 %v1678_v14, %v1269_v13  ;;  %v1573_v21 = vld [vmem:[%s1930_s7 + $0x240] sm:$0xf]  ;;  %v1753_v22 = vld [vmem:[%s1930_s7 + $0x244] sm:$0xf0]  ;;  %v2041_v24 = vor.u32 %v1675_v15, %v1271_v18  ;;  %v1688_v27 = vld [vmem:[%s1930_s7 + $0x44] sm:$0xf] }
  0x4b   : > { %960 = vmatpush.bf16.msra.mxu2 %v1414_v43  ;;  %v1637_v23 = vld [vmem:[%s1930_s7 + $0x2c0] sm:$0xf]  ;;  %v1769_v26 = vld [vmem:[%s1930_s7 + $0x2c4] sm:$0xf0]  ;;  %v1319_v28 = vld [vmem:[%s1930_s7 + $0x48] sm:$0xf0]  ;;  %v1574_v31 = vor.u32 %v1753_v22, %v1573_v21 }
  0x4c   : > { %974 = vmatpush.bf16.msra.mxu3 %v1478_v46  ;;  %933 = vmatmul.bf16.vlgmr.msra.gmra.mxu0 %v2021_v2  ;;  %v1704_v29 = vld [vmem:[%s1930_s7 + $0xc4] sm:$0xf]  ;;  %v1383_v30 = vld [vmem:[%s1930_s7 + $0xc8] sm:$0xf0]  ;;  %v1638_v32 = vor.u32 %v1769_v26, %v1637_v23  ;;  %v1322_v33 = vor.u32 %v1688_v27, %v1319_v28  ;;  %v1565_v34 = vld [vmem:[%s1930_s7 + $0x230] sm:$0xf] }
  0x4d   : > { %981 = vmatpush.bf16.msrb.mxu0 %v1598_v47  ;;  %947 = vmatmul.bf16.vlgmr.msra.gmra.mxu1 %v2030_v12  ;;  %v1751_v35 = vld [vmem:[%s1930_s7 + $0x234] sm:$0xf0]  ;;  %v1629_v36 = vld [vmem:[%s1930_s7 + $0x2b0] sm:$0xf]  ;;  %v1386_v37 = vor.u32 %v1704_v29, %v1383_v30  ;;  %v1686_v39 = vld [vmem:[%s1930_s7 + $0x34] sm:$0xf] }
  0x4e   : > { %995 = vmatpush.bf16.msrb.mxu1 %v1662_v50  ;;  %961 = vmatmul.bf16.vlgmr.msra.gmra.mxu2 %v2035_v17  ;;  %v1767_v38 = vld [vmem:[%s1930_s7 + $0x2b4] sm:$0xf0]  ;;  %v1311_v40 = vld [vmem:[%s1930_s7 + $0x38] sm:$0xf0]  ;;  %v1702_v41 = vld [vmem:[%s1930_s7 + $0xb4] sm:$0xf]  ;;  %v1566_v43 = vor.u32 %v1751_v35, %v1565_v34 }
  0x4f   : > { %1009 = vmatpush.bf16.msrb.mxu2 %v1346_v51  ;;  %975 = vmatmul.bf16.vlgmr.msra.gmra.mxu3 %v2041_v24  ;;  %v1375_v42 = vld [vmem:[%s1930_s7 + $0xb8] sm:$0xf0]  ;;  %v1630_v44 = vor.u32 %v1767_v38, %v1629_v36  ;;  %v1314_v45 = vor.u32 %v1686_v39, %v1311_v40  ;;  %v1557_v46 = vld [vmem:[%s1930_s7 + $0x220] sm:$0xf]  ;;  %v1749_v47 = vld [vmem:[%s1930_s7 + $0x224] sm:$0xf0] }
  0x50   : > { %1023 = vmatpush.bf16.msrb.mxu3 %v1410_v55  ;;  %v1621_v48 = vld [vmem:[%s1930_s7 + $0x2a0] sm:$0xf]  ;;  %v1378_v49 = vor.u32 %v1702_v41, %v1375_v42  ;;  %v1765_v50 = vld [vmem:[%s1930_s7 + $0x2a4] sm:$0xf0]  ;;  %v1684_v51 = vld [vmem:[%s1930_s7 + $0x24] sm:$0xf]  ;;  %v1558_v55 = vor.u32 %v1749_v47, %v1557_v46 }
  0x51   : > { %982 = vmatpush.bf16.msrb.mxu0 %v1590_v62  ;;  %v1303_v52 = vld [vmem:[%s1930_s7 + $0x28] sm:$0xf0]  ;;  %v1700_v53 = vld [vmem:[%s1930_s7 + $0xa4] sm:$0xf]  ;;  %v1622_v56 = vor.u32 %v1765_v50, %v1621_v48  ;;  %v1549_v58 = vld [vmem:[%s1930_s7 + $0x210] sm:$0xf] }
  0x52   : > { %996 = vmatpush.bf16.msrb.mxu1 %v1654_v3  ;;  %v1367_v54 = vld [vmem:[%s1930_s7 + $0xa8] sm:$0xf0]  ;;  %v1306_v57 = vor.u32 %v1684_v51, %v1303_v52  ;;  %v1747_v59 = vld [vmem:[%s1930_s7 + $0x214] sm:$0xf0]  ;;  %v1613_v60 = vld [vmem:[%s1930_s7 + $0x290] sm:$0xf] }
  0x53   : > { %1010 = vmatpush.bf16.msrb.mxu2 %v1338_v4  ;;  %v1370_v61 = vor.u32 %v1700_v53, %v1367_v54  ;;  %v1763_v62 = vld [vmem:[%s1930_s7 + $0x294] sm:$0xf0]  ;;  %v1682_v63 = vld [vmem:[%s1930_s7 + $0x14] sm:$0xf]  ;;  %v1295_v0 = vld [vmem:[%s1930_s7 + $0x18] sm:$0xf0]  ;;  %v1550_v4 = vor.u32 %v1747_v59, %v1549_v58 }
  0x54   : > { %1024 = vmatpush.bf16.msrb.mxu3 %v1402_v8  ;;  %v1698_v1 = vld [vmem:[%s1930_s7 + $0x94] sm:$0xf]  ;;  %v1359_v3 = vld [vmem:[%s1930_s7 + $0x98] sm:$0xf0]  ;;  %v1541_v5 = vld [vmem:[%s1930_s7 + $0x200] sm:$0xf]  ;;  %v1614_v8 = vor.u32 %v1763_v62, %v1613_v60  ;;  %v1298_v9 = vor.u32 %v1682_v63, %v1295_v0 }
  0x55   : > { %983 = vmatpush.bf16.msrb.mxu0 %v1582_v16  ;;  %v1745_v6 = vld [vmem:[%s1930_s7 + $0x204] sm:$0xf0]  ;;  %v1605_v7 = vld [vmem:[%s1930_s7 + $0x280] sm:$0xf]  ;;  %v1680_v11 = vld [vmem:[%s1930_s7 + $0x4] sm:$0xf]  ;;  %v1362_v14 = vor.u32 %v1698_v1, %v1359_v3 }
  0x56   : > { %997 = vmatpush.bf16.msrb.mxu1 %v1646_v19  ;;  %v1761_v10 = vld [vmem:[%s1930_s7 + $0x284] sm:$0xf0]  ;;  %v1287_v13 = vld [vmem:[%s1930_s7 + $0x8] sm:$0xf0]  ;;  %v1696_v15 = vld [vmem:[%s1930_s7 + $0x84] sm:$0xf]  ;;  %v1542_v22 = vor.u32 %v1745_v6, %v1541_v5 }
  0x57   : > { %1011 = vmatpush.bf16.msrb.mxu2 %v1330_v20  ;;  %v1351_v16 = vld [vmem:[%s1930_s7 + $0x88] sm:$0xf0]  ;;  %v1726_v18 = vld [vmem:[%s1930_s7 + $0x174] sm:$0xf]  ;;  %v1471_v19 = vld [vmem:[%s1930_s7 + $0x178] sm:$0xf0]  ;;  %v1606_v27 = vor.u32 %v1761_v10, %v1605_v7  ;;  %v1290_v28 = vor.u32 %v1680_v11, %v1287_v13 }
  0x58   : > { %1025 = vmatpush.bf16.msrb.mxu3 %v1394_v25  ;;  %v1742_v20 = vld [vmem:[%s1930_s7 + $0x1f4] sm:$0xf]  ;;  %v1535_v21 = vld [vmem:[%s1930_s7 + $0x1f8] sm:$0xf0]  ;;  %v1277_v30 = vld [vmem:[%s1932_s8 + $0x10] sm:$0xf] }
  0x59   : > { %984 = vmatpush.bf16.msrb.mxu0 %v1574_v31  ;;  %v1758_v23 = vld [vmem:[%s1930_s7 + $0x274] sm:$0xf]  ;;  %v1599_v25 = vld [vmem:[%s1930_s7 + $0x278] sm:$0xf0]  ;;  %v1679_v31 = vld [vmem:[%s1932_s8 + $0x24] sm:$0xf0]  ;;  %v1538_v36 = vor.u32 %v1742_v20, %v1535_v21 }
  0x5a   : > { %998 = vmatpush.bf16.msrb.mxu1 %v1638_v32  ;;  %v1774_v26 = vld [vmem:[%s1930_s7 + $0x2f4] sm:$0xf]  ;;  %v1663_v29 = vld [vmem:[%s1930_s7 + $0x2f8] sm:$0xf0]  ;;  %v1354_v32 = vor.u32 %v1696_v15, %v1351_v16  ;;  %v1724_v38 = vld [vmem:[%s1930_s7 + $0x164] sm:$0xf]  ;;  %v2098_v42 = vor.u32 %v1679_v31, %v1277_v30 }
  0x5b   : > { %1012 = vmatpush.bf16.msrb.mxu2 %v1322_v33  ;;  %v1474_v33 = vor.u32 %v1726_v18, %v1471_v19  ;;  %v1676_v34 = vld [vmem:[%s1932_s8 + $0x14] sm:$0xf]  ;;  %v1279_v35 = vld [vmem:[%s1932_s8 + $0x28] sm:$0xf0]  ;;  %v1666_v41 = vor.u32 %v1774_v26, %v1663_v29  ;;  %p1667_p11 = scmp.ne.s32.totalorder %s1849_s14, 2 }
  0x5c   : > { %1026 = vmatpush.bf16.msrb.mxu3 %v1386_v37  ;;  %v1602_v37 = vor.u32 %v1758_v23, %v1599_v25  ;;  %v1463_v39 = vld [vmem:[%s1930_s7 + $0x168] sm:$0xf0]  ;;  %v1740_v40 = vld [vmem:[%s1930_s7 + $0x1e4] sm:$0xf]  ;;  %v2103_v46 = vor.u32 %v1676_v34, %v1279_v35  ;;  %v1722_v52 = vld [vmem:[%s1930_s7 + $0x154] sm:$0xf] }
  0x5d   : > { %985 = vmatpush.bf16.msrb.mxu0 %v1566_v43  ;;  %v1527_v43 = vld [vmem:[%s1930_s7 + $0x1e8] sm:$0xf0]  ;;  %v1772_v47 = vld [vmem:[%s1930_s7 + $0x2e4] sm:$0xf]  ;;  %v1455_v53 = vld [vmem:[%s1930_s7 + $0x158] sm:$0xf0] }
  0x5e   : > { %999 = vmatpush.bf16.msrb.mxu1 %v1630_v44  ;;  %v1756_v44 = vld [vmem:[%s1930_s7 + $0x264] sm:$0xf]  ;;  %v1655_v48 = vld [vmem:[%s1930_s7 + $0x2e8] sm:$0xf0]  ;;  %v1530_v50 = vor.u32 %v1740_v40, %v1527_v43  ;;  %v1738_v54 = vld [vmem:[%s1930_s7 + $0x1d4] sm:$0xf] }
  0x5f   : > { %1013 = vmatpush.bf16.msrb.mxu2 %v1314_v45  ;;  %v1591_v45 = vld [vmem:[%s1930_s7 + $0x268] sm:$0xf0]  ;;  %v1583_v58 = vld [vmem:[%s1930_s7 + $0x258] sm:$0xf0]  ;;  %v1770_v59 = vld [vmem:[%s1930_s7 + $0x2d4] sm:$0xf] }
  0x60   : > { %1027 = vmatpush.bf16.msrb.mxu3 %v1378_v49  ;;  %v1466_v49 = vor.u32 %v1724_v38, %v1463_v39  ;;  %v1594_v51 = vor.u32 %v1756_v44, %v1591_v45  ;;  %v1647_v60 = vld [vmem:[%s1930_s7 + $0x2d8] sm:$0xf0]  ;;  %v1720_v0 = vld [vmem:[%s1930_s7 + $0x144] sm:$0xf]  ;;  %v1447_v1 = vld [vmem:[%s1930_s7 + $0x148] sm:$0xf0] }
  0x61   : > { %986 = vmatpush.bf16.msrb.mxu0 %v1558_v55  ;;  %v1658_v55 = vor.u32 %v1772_v47, %v1655_v48  ;;  %v1736_v3 = vld [vmem:[%s1930_s7 + $0x1c4] sm:$0xf]  ;;  %v1575_v6 = vld [vmem:[%s1930_s7 + $0x248] sm:$0xf0]  ;;  %v1718_v11 = vld [vmem:[%s1930_s7 + $0x134] sm:$0xf] }
  0x62   : > { %1000 = vmatpush.bf16.msrb.mxu1 %v1622_v56  ;;  %v1519_v56 = vld [vmem:[%s1930_s7 + $0x1d8] sm:$0xf0]  ;;  %v1752_v5 = vld [vmem:[%s1930_s7 + $0x244] sm:$0xf]  ;;  %v1639_v7 = vld [vmem:[%s1930_s7 + $0x2c8] sm:$0xf0] }
  0x63   : > { %1014 = vmatpush.bf16.msrb.mxu2 %v1306_v57  ;;  %v1754_v57 = vld [vmem:[%s1930_s7 + $0x254] sm:$0xf]  ;;  %v1522_v62 = vor.u32 %v1738_v54, %v1519_v56  ;;  %v1578_v10 = vor.u32 %v1752_v5, %v1575_v6  ;;  %v1439_v13 = vld [vmem:[%s1930_s7 + $0x138] sm:$0xf0]  ;;  %v1716_v26 = vld [vmem:[%s1930_s7 + $0x124] sm:$0xf] }
  0x64   : > { %1028 = vmatpush.bf16.msrb.mxu3 %v1370_v61  ;;  %v1458_v61 = vor.u32 %v1722_v52, %v1455_v53  ;;  %v1586_v63 = vor.u32 %v1754_v57, %v1583_v58  ;;  %v1503_v16 = vld [vmem:[%s1930_s7 + $0x1b8] sm:$0xf0]  ;;  %v1750_v18 = vld [vmem:[%s1930_s7 + $0x234] sm:$0xf]  ;;  %v1495_v30 = vld [vmem:[%s1930_s7 + $0x1a8] sm:$0xf0] }
  0x65   : > { %987 = vmatpush.bf16.msrb.mxu0 %v1550_v4  ;;  %v1511_v4 = vld [vmem:[%s1930_s7 + $0x1c8] sm:$0xf0]  ;;  %v1567_v19 = vld [vmem:[%s1930_s7 + $0x238] sm:$0xf0]  ;;  %v1766_v20 = vld [vmem:[%s1930_s7 + $0x2b4] sm:$0xf] }
  0x66   : > { %1001 = vmatpush.bf16.msrb.mxu1 %v1614_v8  ;;  %v1450_v8 = vor.u32 %v1720_v0, %v1447_v1  ;;  %v1631_v21 = vld [vmem:[%s1930_s7 + $0x2b8] sm:$0xf0]  ;;  %v1570_v25 = vor.u32 %v1750_v18, %v1567_v19  ;;  %v1748_v31 = vld [vmem:[%s1930_s7 + $0x224] sm:$0xf]  ;;  %v1623_v34 = vld [vmem:[%s1930_s7 + $0x2a8] sm:$0xf0] }
  0x67   : > { %1015 = vmatpush.bf16.msrb.mxu2 %v1298_v9  ;;  %v1514_v9 = vor.u32 %v1736_v3, %v1511_v4  ;;  %v1634_v29 = vor.u32 %v1766_v20, %v1631_v21  ;;  %v1714_v38 = vld [vmem:[%s1930_s7 + $0x114] sm:$0xf]  ;;  %v1423_v39 = vld [vmem:[%s1930_s7 + $0x118] sm:$0xf0]  ;;  %v1712_v52 = vld [vmem:[%s1930_s7 + $0x104] sm:$0xf] }
  0x68   : > { %1029 = vmatpush.bf16.msrb.mxu3 %v1362_v14  ;;  %v1734_v14 = vld [vmem:[%s1930_s7 + $0x1b4] sm:$0xf]  ;;  %v1487_v43 = vld [vmem:[%s1930_s7 + $0x198] sm:$0xf0]  ;;  %v1415_v53 = vld [vmem:[%s1930_s7 + $0x108] sm:$0xf0] }
  0x69   : > { %988 = vmatpush.bf16.msrb.mxu0 %v1542_v22  ;;  %v1442_v22 = vor.u32 %v1718_v11, %v1439_v13  ;;  %v1506_v23 = vor.u32 %v1734_v14, %v1503_v16  ;;  %v1730_v40 = vld [vmem:[%s1930_s7 + $0x194] sm:$0xf]  ;;  %v1551_v45 = vld [vmem:[%s1930_s7 + $0x218] sm:$0xf0]  ;;  %v1728_v54 = vld [vmem:[%s1930_s7 + $0x184] sm:$0xf] }
  0x6a   : > { %1002 = vmatpush.bf16.msrb.mxu1 %v1606_v27  ;;  %v1431_v27 = vld [vmem:[%s1930_s7 + $0x128] sm:$0xf0]  ;;  %v1746_v44 = vld [vmem:[%s1930_s7 + $0x214] sm:$0xf]  ;;  %v1615_v48 = vld [vmem:[%s1930_s7 + $0x298] sm:$0xf0] }
  0x6b   : > { %1016 = vmatpush.bf16.msrb.mxu2 %v1290_v28  ;;  %v1732_v28 = vld [vmem:[%s1930_s7 + $0x1a4] sm:$0xf]  ;;  %v1434_v35 = vor.u32 %v1716_v26, %v1431_v27  ;;  %v1762_v47 = vld [vmem:[%s1930_s7 + $0x294] sm:$0xf]  ;;  %v1479_v56 = vld [vmem:[%s1930_s7 + $0x188] sm:$0xf0] }
  0x6c   : > { %1030 = vmatpush.bf16.msrb.mxu3 %v1354_v32  ;;  %989 = vmatmul.bf16.vlgmr.msrb.gmra.mxu0 %v2098_v42  ;;  %v1559_v32 = vld [vmem:[%s1930_s7 + $0x228] sm:$0xf0]  ;;  %v1744_v57 = vld [vmem:[%s1930_s7 + $0x204] sm:$0xf]  ;;  %v309_v14 = vld [vmem:[#allocation2 + $0x10] sm:$0xff] }
  0x6d   : > { %1037 = vmatpush.bf16.msra.mxu0 %v1474_v33  ;;  %1003 = vmatmul.bf16.vlgmr.msrb.gmra.mxu1 %v2103_v46  ;;  %v1764_v33 = vld [vmem:[%s1930_s7 + $0x2a4] sm:$0xf]  ;;  %v1543_v58 = vld [vmem:[%s1930_s7 + $0x208] sm:$0xf0]  ;;  %v311_v21 = vld [vmem:[#allocation2 + $0x18] sm:$0xff] }
  0x6e   : > { %1051 = vmatpush.bf16.msra.mxu1 %v1538_v36  ;;  %1017 = vmatmul.bf16.vlgmr.msrb.gmra.mxu2 %v2021_v2  ;;  %v1650_v2 = vor.u32 %v1770_v59, %v1647_v60  ;;  %v1498_v36 = vor.u32 %v1732_v28, %v1495_v30  ;;  %v1760_v59 = vld [vmem:[%s1930_s7 + $0x284] sm:$0xf]  ;;  %v1607_v60 = vld [vmem:[%s1930_s7 + $0x288] sm:$0xf0] }
  0x6f   : > { %1065 = vmatpush.bf16.msra.mxu2 %v1602_v37  ;;  %1031 = vmatmul.bf16.vlgmr.msrb.gmra.mxu3 %v2030_v12  ;;  %v1768_v12 = vld [vmem:[%s1930_s7 + $0x2c4] sm:$0xf]  ;;  %v1562_v37 = vor.u32 %v1748_v31, %v1559_v32  ;;  %v1610_v0 = vor.u32 %v1760_v59, %v1607_v60 }
  0x70   : > { %1079 = vmatpush.bf16.msra.mxu3 %v1666_v41  ;;  %v1642_v15 = vor.u32 %v1768_v12, %v1639_v7  ;;  %v1626_v41 = vor.u32 %v1764_v33, %v1623_v34 }
  0x71   : > { %1038 = vmatpush.bf16.msra.mxu0 %v1466_v49  ;;  %v1426_v49 = vor.u32 %v1714_v38, %v1423_v39  ;;  %v310_v39 = vld [vmem:[#allocation2] sm:$0xff] }
  0x72   : > { %1052 = vmatpush.bf16.msra.mxu1 %v1530_v50  ;;  %v1490_v50 = vor.u32 %v1730_v40, %v1487_v43 }
  0x73   : > { %1066 = vmatpush.bf16.msra.mxu2 %v1594_v51  ;;  %v1554_v51 = vor.u32 %v1746_v44, %v1551_v45 }
  0x74   : > { %1080 = vmatpush.bf16.msra.mxu3 %v1658_v55  ;;  %v1618_v55 = vor.u32 %v1762_v47, %v1615_v48 }
  0x75   : > { %1039 = vmatpush.bf16.msra.mxu0 %v1458_v61  ;;  %v1418_v61 = vor.u32 %v1712_v52, %v1415_v53 }
  0x76   : > { %1053 = vmatpush.bf16.msra.mxu1 %v1522_v62  ;;  %v1482_v62 = vor.u32 %v1728_v54, %v1479_v56 }
  0x77   : > { %1067 = vmatpush.bf16.msra.mxu2 %v1586_v63  ;;  %v1546_v63 = vor.u32 %v1744_v57, %v1543_v58 }
  0x78   : > { %1081 = vmatpush.bf16.msra.mxu3 %v1650_v2 }
  0x79   : > { %1040 = vmatpush.bf16.msra.mxu0 %v1450_v8 }
  0x7a   : > { %1054 = vmatpush.bf16.msra.mxu1 %v1514_v9 }
  0x7b   : > { %1068 = vmatpush.bf16.msra.mxu2 %v1578_v10 }
  0x7c   : > { %1082 = vmatpush.bf16.msra.mxu3 %v1642_v15 }
  0x7d   : > { %1041 = vmatpush.bf16.msra.mxu0 %v1442_v22 }
  0x7e   : > { %1055 = vmatpush.bf16.msra.mxu1 %v1506_v23 }
  0x7f   : > { %1069 = vmatpush.bf16.msra.mxu2 %v1570_v25 }
  0x80   : > { %1083 = vmatpush.bf16.msra.mxu3 %v1634_v29 }
  0x81   : > { %1042 = vmatpush.bf16.msra.mxu0 %v1434_v35 }
  0x82   : > { %1056 = vmatpush.bf16.msra.mxu1 %v1498_v36 }
  0x83   : > { %1070 = vmatpush.bf16.msra.mxu2 %v1562_v37 }
  0x84   : > { %1084 = vmatpush.bf16.msra.mxu3 %v1626_v41 }
  0x85   : > { %1043 = vmatpush.bf16.msra.mxu0 %v1426_v49  ;;  %v312_v49 = vld [vmem:[#allocation2 + $0x8] sm:$0xff] }
  0x86   : > { %1057 = vmatpush.bf16.msra.mxu1 %v1490_v50 }
  0x87   : > { %1071 = vmatpush.bf16.msra.mxu2 %v1554_v51 }
  0x88   : > { %1085 = vmatpush.bf16.msra.mxu3 %v1618_v55 }
  0x89   : > { %1044 = vmatpush.bf16.msra.mxu0 %v1418_v61 }
  0x8a   : > { %1058 = vmatpush.bf16.msra.mxu1 %v1482_v62 }
  0x8b   : > { %1072 = vmatpush.bf16.msra.mxu2 %v1546_v63 }
  0x8c   : > { %1086 = vmatpush.bf16.msra.mxu3 %v1610_v0  ;;  %1045 = vmatmul.bf16.vlgmr.msra.gmra.mxu0 %v2035_v17 }
  0x8d   : > { %1059 = vmatmul.bf16.vlgmr.msra.gmra.mxu1 %v2041_v24 }
  0x8e   : > { %1073 = vmatmul.bf16.vlgmr.msra.gmra.mxu2 %v2098_v42 }
  0x8f   : > { %1087 = vmatmul.bf16.vlgmr.msra.gmra.mxu3 %v2103_v46 }
  0xc9   : > { %v934_v1 = vpop.f32.mrf.mxu0 }
  0xca   : > { %v948_v3 = vpop.f32.mrf.mxu1 }
  0xcb   : > { %v949_v2 = vadd.f32 %v948_v3, %v934_v1 }
  0xd1   : > { %v936_v4 = vpop.f32.mrf.mxu0  ;;  %v962_v5 = vpop.f32.mrf.mxu2 }
  0xd2   : > { %v950_v6 = vpop.f32.mrf.mxu1  ;;  %v963_v12 = vadd.f32 %v962_v5, %v949_v2  ;;  %v976_v7 = vpop.f32.mrf.mxu3 }
  0xd3   : > { %v951_v9 = vadd.f32 %v950_v6, %v936_v4 }
  0xd4   : > { %v977_v8 = vadd.f32 %v976_v7, %v963_v12 }
  0xd9   : > { %v964_v11 = vpop.f32.mrf.mxu2 }
  0xda   : > { %v965_v24 = vadd.f32 %v964_v11, %v951_v9  ;;  %v978_v42 = vpop.f32.mrf.mxu3 }
  0xdc   : > { %v979_v46 = vadd.f32 %v978_v42, %v965_v24 }
  0xe9   : > { %v990_v10 = vpop.f32.mrf.mxu0 }
  0xea   : > { %v991_v13 = vadd.f32 %v990_v10, %v977_v8  ;;  %v1004_v17 = vpop.f32.mrf.mxu1 }
  0xec   : > { %v1005_v15 = vadd.f32 %v1004_v17, %v991_v13 }
  0xee   : > { %v1093_v16 = vadd.f32 %v1005_v15, %v309_v14 }
  0xf0   : > { %1097 = vst [vmem:[#allocation2 + $0x10] sm:$0xff] %v1093_v16 }
  0xf1   : > { %v992_v18 = vpop.f32.mrf.mxu0  ;;  %v1018_v25 = vpop.f32.mrf.mxu2 }
  0xf2   : > { %v993_v19 = vadd.f32 %v992_v18, %v979_v46  ;;  %v1006_v20 = vpop.f32.mrf.mxu1  ;;  %v1032_v26 = vpop.f32.mrf.mxu3 }
  0xf3   : > { %v1033_v28 = vadd.f32 %v1032_v26, %v1018_v25 }
  0xf4   : > { %v1007_v22 = vadd.f32 %v1006_v20, %v993_v19 }
  0xf6   : > { %v1095_v23 = vadd.f32 %v1007_v22, %v311_v21 }
  0xf8   : > { %1099 = vst [vmem:[#allocation2 + $0x18] sm:$0xff] %v1095_v23 }
  0xf9   : > { %v1020_v27 = vpop.f32.mrf.mxu2 }
  0xfa   : > { %v1034_v29 = vpop.f32.mrf.mxu3 }
  0xfb   : > { %v1035_v35 = vadd.f32 %v1034_v29, %v1020_v27 }
 0x109   : > { %v1046_v30 = vpop.f32.mrf.mxu0 }
 0x10a   : > { %v1047_v31 = vadd.f32 %v1046_v30, %v1033_v28  ;;  %v1060_v32 = vpop.f32.mrf.mxu1 }
 0x10c   : > { %v1061_v33 = vadd.f32 %v1060_v32, %v1047_v31 }
 0x111   : > { %v1074_v34 = vpop.f32.mrf.mxu2  ;;  %v1048_v38 = vpop.f32.mrf.mxu0 }
 0x112   : > { %v1075_v36 = vadd.f32 %v1074_v34, %v1061_v33  ;;  %v1088_v37 = vpop.f32.mrf.mxu3  ;;  %v1049_v41 = vadd.f32 %v1048_v38, %v1035_v35  ;;  %v1062_v44 = vpop.f32.mrf.mxu1 }
 0x114   : > { %v1089_v40 = vadd.f32 %v1088_v37, %v1075_v36  ;;  %v1063_v45 = vadd.f32 %v1062_v44, %v1049_v41 }
 0x116   : > { %v1094_v43 = vadd.f32 %v1089_v40, %v310_v39 }
 0x118   : > { %1098 = vst [vmem:[#allocation2] sm:$0xff] %v1094_v43 }
 0x119   : > { %v1076_v47 = vpop.f32.mrf.mxu2 }
 0x11a   : > { %v1077_v48 = vadd.f32 %v1076_v47, %v1063_v45  ;;  %v1090_v50 = vpop.f32.mrf.mxu3 }
 0x11c   : > { %v1091_v51 = vadd.f32 %v1090_v50, %v1077_v48  ;;  %1104 = sbr.rel (%p1667_p11) target bundleno = 303 (0x12f), region = 63 }
 0x11e   : > { %v1096_v52 = vadd.f32 %v1091_v51, %v312_v49 }
 0x120   : > { %1100 = vst [vmem:[#allocation2 + $0x8] sm:$0xff] %v1096_v52 }
 0x121   : > { %v1105_v53 = vld [vmem:[#allocation2 + $0x10] sm:$0xff]  ;;  %v1106_v54 = vld [vmem:[#allocation2] sm:$0xff]  ;;  %v1107_v58 = vld [vmem:[#allocation2 + $0x18] sm:$0xff] }
 0x122   : > { %v1109_v55 = vld [vmem:[%s2190_s2] sm:$0x3] }
 0x123   : > { %v1111_v56 = vperm.slane %v1109_v55, 0  ;;  %v1112_v57 = vperm.slane %v1109_v55, 1 }
 0x125   : > { %v1115_v60 = vadd.f32 %v1111_v56, %v1105_v53  ;;  %v1116_v61 = vadd.f32 %v1112_v57, %v1106_v54  ;;  %v1117_v62 = vadd.f32 %v1111_v56, %v1107_v58 }
 0x127   : > { %v1108_v59 = vld [vmem:[#allocation2 + $0x8] sm:$0xff]  ;;  %v1119_v0 = vmax.f32 %v1115_v60, 0.0  ;;  %v1120_v1 = vmax.f32 %v1116_v61, 0.0  ;;  %v1121_v3 = vmax.f32 %v1117_v62, 0.0 }
 0x128   : > { %v1118_v63 = vadd.f32 %v1112_v57, %v1108_v59 }
 0x129   : > { %v1123_v4 = vpack.c.bf16 %v1120_v1, %v1119_v0 }
 0x12a   : > { %v1122_v2 = vmax.f32 %v1118_v63, 0.0 }
 0x12b   : > { %1125 = vst [vmem:[%s2191_s3] sm:$0xff] %v1123_v4 }
 0x12c   : > { %v1124_v5 = vpack.c.bf16 %v1122_v2, %v1121_v3 }
 0x12e   : > { %1126 = vst [vmem:[%s2191_s3 + $0x8] sm:$0xff] %v1124_v5 }
 0x12f PF: > { %s13_s16 = sadd.s32 1, %s1857_s16   ;;  %s2192_s12 = smov %s1845_s13 }
 0x130   : > { %p10_p12 = scmp.ge.s32.totalorder %s13_s16, 5   ;;  %s2193_s13 = smov %s1915_s20 }
 0x131   : > { %s2194_s14 = smov %s1853_s15  ;;  %s2195_s15 = smov %s2197_s17 }
 0x132   :  { %12 = sbr.rel (!%p10_p12) target bundleno = 3 (0x3), region = 104 }

// kernel: _lambda_.69
= control target key start
LH: loop header
LB: loop body
LE: loop exit
PB: predicated region body
PF: predicated region fallthrough
CT: control target
= control target key end

     0   :  { %s1717_s12 = smov 0   ;;  %s1719_s13 = smov 0   ;;  %s2099_s0 = inlined_call_operand.vmem [shape: bf16[16,512], index: 0, kind: input, shape index: {}]   ;;  %s2100_s1 = inlined_call_operand.vmem [shape: bf16[512,1024], index: 1, kind: input, shape index: {}]   ;;  %s2101_s2 = inlined_call_operand.vmem [shape: f32[1,1024], index: 2, kind: input, shape index: {}]   ;;  %s2102_s3 = inlined_call_operand.vmem [shape: bf16[16,1024], index: 3, kind: output, shape index: {}]  }
   0x1   :  { %s1721_s14 = smov 0   ;;  %s1723_s15 = smov 0  }
   0x2   :  { %s1725_s16 = smov 0  }
   0x3 LB: > { %s28_s17 = sadd.s32 1, %s1691_s15  ;;  %s1258_s18 = sadd.s32 4294967295, %s1695_s16   ;;  %s1695_s16 = sphi %s1725_s16, %s13_s16   ;;  %s1691_s15 = sphi %s1723_s15, %s2107_s15   ;;  %s1687_s14 = sphi %s1721_s14, %s2106_s14   ;;  %s1683_s13 = sphi %s1719_s13, %s2105_s13   ;;  %s1679_s12 = sphi %s1717_s12, %s2104_s12  }
   0x4   : > { %p30_p0 = scmp.ge.s32.totalorder %s28_s17, 4  ;;  %p76_p1 = scmp.ne.s32.totalorder %s1683_s13, %s1679_s12 }
   0x5   : > { %p77_p2 = scmp.eq.s32.totalorder %s1695_s16, 0  ;;  %p134_p4 = scmp.eq.s32.totalorder %s1258_s18, 3 }
   0x6   : > { %s2109_s17 = smov (%p30_p0, %s28_s17), 0  ;;  %s69_s20 = sadd.s32 1, %s1683_s13 }
   0x7   : > { %p78_p3 = por %p77_p2, %p76_p1  ;;  %s65_s19 = ssub.s32 %s1691_s15, %s2109_s17 }
   0x8   : > { %p67_p5 = scmp.eq.s32.totalorder %s65_s19, 0  ;;  %p1752_p6 = por %p134_p4, %p76_p1 }
   0x9   : > { %p1262_p7 = scmp.ge.s32.totalorder %s1695_s16, 4 }
   0xa   : > { %s1757_s22 = scalar_select %p67_p5, %s1683_s13, %s69_s20  }
   0xb   : > { %171 = sbr.rel (%p1262_p7) target bundleno = 84 (0x54), region = 20 }
  0x10   : > { %174 = sbr.rel (!%p78_p3) target bundleno = 84 (0x54), region = 24  ;;  %s176_s23 = sand.u32 (%p78_p3), 1, %s1683_s13  }
  0x11   : > { %s1547_s24 = sshll.u32 (%p78_p3), %s1691_s15, 3  ;;  %s1263_s25 = sshll.u32 (%p78_p3), %s176_s23, 9 }
  0x12   : > { %s1765_s28 = scalar_lea.vmem (%p78_p3), %s2100_s1, %s1547_s24  ;;  %s1770_s29 = scalar_lea.vmem (%p78_p3), [#allocation3], %s1263_s25 }
  0x13   : > { %v339_v0 = vld [vmem:[%s1765_s28] sm:$0xff] (%p78_p3) }
  0x14   : > { %v341_v1 = vld [vmem:[%s1765_s28 + $0x20] sm:$0xff] (%p78_p3)  ;;  %340 = vst [vmem:[%s1770_s29] sm:$0xff] (%p78_p3), %v339_v0 }
  0x15   : > { %v343_v2 = vld [vmem:[%s1765_s28 + $0x40] sm:$0xff]  ;;  %342 = vst [vmem:[%s1770_s29 + $0x8] sm:$0xff] %v341_v1 }
  0x16   : > { %v345_v3 = vld [vmem:[%s1765_s28 + $0x60] sm:$0xff]  ;;  %344 = vst [vmem:[%s1770_s29 + $0x10] sm:$0xff] %v343_v2 }
  0x17   : > { %v347_v4 = vld [vmem:[%s1765_s28 + $0x80] sm:$0xff]  ;;  %346 = vst [vmem:[%s1770_s29 + $0x18] sm:$0xff] %v345_v3 }
  0x18   : > { %v349_v5 = vld [vmem:[%s1765_s28 + $0xa0] sm:$0xff]  ;;  %348 = vst [vmem:[%s1770_s29 + $0x20] sm:$0xff] %v347_v4 }
  0x19   : > { %v351_v6 = vld [vmem:[%s1765_s28 + $0xc0] sm:$0xff]  ;;  %350 = vst [vmem:[%s1770_s29 + $0x28] sm:$0xff] %v349_v5 }
  0x1a   : > { %v353_v7 = vld [vmem:[%s1765_s28 + $0xe0] sm:$0xff]  ;;  %352 = vst [vmem:[%s1770_s29 + $0x30] sm:$0xff] %v351_v6 }
  0x1b   : > { %v355_v8 = vld [vmem:[%s1765_s28 + $0x100] sm:$0xff]  ;;  %354 = vst [vmem:[%s1770_s29 + $0x38] sm:$0xff] %v353_v7 }
  0x1c   : > { %v357_v9 = vld [vmem:[%s1765_s28 + $0x120] sm:$0xff]  ;;  %356 = vst [vmem:[%s1770_s29 + $0x40] sm:$0xff] %v355_v8 }
  0x1d   : > { %v359_v10 = vld [vmem:[%s1765_s28 + $0x140] sm:$0xff]  ;;  %358 = vst [vmem:[%s1770_s29 + $0x48] sm:$0xff] %v357_v9 }
  0x1e   : > { %v361_v11 = vld [vmem:[%s1765_s28 + $0x160] sm:$0xff]  ;;  %360 = vst [vmem:[%s1770_s29 + $0x50] sm:$0xff] %v359_v10 }
  0x1f   : > { %v363_v12 = vld [vmem:[%s1765_s28 + $0x180] sm:$0xff]  ;;  %362 = vst [vmem:[%s1770_s29 + $0x58] sm:$0xff] %v361_v11 }
  0x20   : > { %v365_v13 = vld [vmem:[%s1765_s28 + $0x1a0] sm:$0xff]  ;;  %364 = vst [vmem:[%s1770_s29 + $0x60] sm:$0xff] %v363_v12 }
  0x21   : > { %v367_v14 = vld [vmem:[%s1765_s28 + $0x1c0] sm:$0xff]  ;;  %366 = vst [vmem:[%s1770_s29 + $0x68] sm:$0xff] %v365_v13 }
  0x22   : > { %v369_v15 = vld [vmem:[%s1765_s28 + $0x1e0] sm:$0xff]  ;;  %368 = vst [vmem:[%s1770_s29 + $0x70] sm:$0xff] %v367_v14 }
  0x23   : > { %v371_v16 = vld [vmem:[%s1765_s28 + $0x200] sm:$0xff]  ;;  %370 = vst [vmem:[%s1770_s29 + $0x78] sm:$0xff] %v369_v15 }
  0x24   : > { %v373_v17 = vld [vmem:[%s1765_s28 + $0x220] sm:$0xff]  ;;  %372 = vst [vmem:[%s1770_s29 + $0x80] sm:$0xff] %v371_v16 }
  0x25   : > { %v375_v18 = vld [vmem:[%s1765_s28 + $0x240] sm:$0xff]  ;;  %374 = vst [vmem:[%s1770_s29 + $0x88] sm:$0xff] %v373_v17 }
  0x26   : > { %v377_v19 = vld [vmem:[%s1765_s28 + $0x260] sm:$0xff]  ;;  %376 = vst [vmem:[%s1770_s29 + $0x90] sm:$0xff] %v375_v18 }
  0x27   : > { %v379_v20 = vld [vmem:[%s1765_s28 + $0x280] sm:$0xff]  ;;  %378 = vst [vmem:[%s1770_s29 + $0x98] sm:$0xff] %v377_v19 }
  0x28   : > { %v381_v21 = vld [vmem:[%s1765_s28 + $0x2a0] sm:$0xff]  ;;  %380 = vst [vmem:[%s1770_s29 + $0xa0] sm:$0xff] %v379_v20 }
  0x29   : > { %v383_v22 = vld [vmem:[%s1765_s28 + $0x2c0] sm:$0xff]  ;;  %382 = vst [vmem:[%s1770_s29 + $0xa8] sm:$0xff] %v381_v21 }
  0x2a   : > { %v385_v23 = vld [vmem:[%s1765_s28 + $0x2e0] sm:$0xff]  ;;  %384 = vst [vmem:[%s1770_s29 + $0xb0] sm:$0xff] %v383_v22 }
  0x2b   : > { %v387_v24 = vld [vmem:[%s1765_s28 + $0x300] sm:$0xff]  ;;  %386 = vst [vmem:[%s1770_s29 + $0xb8] sm:$0xff] %v385_v23 }
  0x2c   : > { %v389_v25 = vld [vmem:[%s1765_s28 + $0x320] sm:$0xff]  ;;  %388 = vst [vmem:[%s1770_s29 + $0xc0] sm:$0xff] %v387_v24 }
  0x2d   : > { %v391_v26 = vld [vmem:[%s1765_s28 + $0x340] sm:$0xff]  ;;  %390 = vst [vmem:[%s1770_s29 + $0xc8] sm:$0xff] %v389_v25 }
  0x2e   : > { %v393_v27 = vld [vmem:[%s1765_s28 + $0x360] sm:$0xff]  ;;  %392 = vst [vmem:[%s1770_s29 + $0xd0] sm:$0xff] %v391_v26 }
  0x2f   : > { %v395_v28 = vld [vmem:[%s1765_s28 + $0x380] sm:$0xff]  ;;  %394 = vst [vmem:[%s1770_s29 + $0xd8] sm:$0xff] %v393_v27 }
  0x30   : > { %v397_v29 = vld [vmem:[%s1765_s28 + $0x3a0] sm:$0xff]  ;;  %396 = vst [vmem:[%s1770_s29 + $0xe0] sm:$0xff] %v395_v28 }
  0x31   : > { %v399_v30 = vld [vmem:[%s1765_s28 + $0x3c0] sm:$0xff]  ;;  %398 = vst [vmem:[%s1770_s29 + $0xe8] sm:$0xff] %v397_v29 }
  0x32   : > { %v401_v31 = vld [vmem:[%s1765_s28 + $0x3e0] sm:$0xff]  ;;  %400 = vst [vmem:[%s1770_s29 + $0xf0] sm:$0xff] %v399_v30 }
  0x33   : > { %v403_v32 = vld [vmem:[%s1765_s28 + $0x400] sm:$0xff]  ;;  %402 = vst [vmem:[%s1770_s29 + $0xf8] sm:$0xff] %v401_v31 }
  0x34   : > { %v405_v33 = vld [vmem:[%s1765_s28 + $0x420] sm:$0xff]  ;;  %404 = vst [vmem:[%s1770_s29 + $0x100] sm:$0xff] %v403_v32 }
  0x35   : > { %v407_v34 = vld [vmem:[%s1765_s28 + $0x440] sm:$0xff]  ;;  %406 = vst [vmem:[%s1770_s29 + $0x108] sm:$0xff] %v405_v33 }
  0x36   : > { %v409_v35 = vld [vmem:[%s1765_s28 + $0x460] sm:$0xff]  ;;  %408 = vst [vmem:[%s1770_s29 + $0x110] sm:$0xff] %v407_v34 }
  0x37   : > { %v411_v36 = vld [vmem:[%s1765_s28 + $0x480] sm:$0xff]  ;;  %410 = vst [vmem:[%s1770_s29 + $0x118] sm:$0xff] %v409_v35 }
  0x38   : > { %v413_v37 = vld [vmem:[%s1765_s28 + $0x4a0] sm:$0xff]  ;;  %412 = vst [vmem:[%s1770_s29 + $0x120] sm:$0xff] %v411_v36 }
  0x39   : > { %v415_v38 = vld [vmem:[%s1765_s28 + $0x4c0] sm:$0xff]  ;;  %414 = vst [vmem:[%s1770_s29 + $0x128] sm:$0xff] %v413_v37 }
  0x3a   : > { %v417_v39 = vld [vmem:[%s1765_s28 + $0x4e0] sm:$0xff]  ;;  %416 = vst [vmem:[%s1770_s29 + $0x130] sm:$0xff] %v415_v38 }
  0x3b   : > { %v419_v40 = vld [vmem:[%s1765_s28 + $0x500] sm:$0xff]  ;;  %418 = vst [vmem:[%s1770_s29 + $0x138] sm:$0xff] %v417_v39 }
  0x3c   : > { %v421_v41 = vld [vmem:[%s1765_s28 + $0x520] sm:$0xff]  ;;  %420 = vst [vmem:[%s1770_s29 + $0x140] sm:$0xff] %v419_v40 }
  0x3d   : > { %v423_v42 = vld [vmem:[%s1765_s28 + $0x540] sm:$0xff]  ;;  %422 = vst [vmem:[%s1770_s29 + $0x148] sm:$0xff] %v421_v41 }
  0x3e   : > { %v425_v43 = vld [vmem:[%s1765_s28 + $0x560] sm:$0xff]  ;;  %424 = vst [vmem:[%s1770_s29 + $0x150] sm:$0xff] %v423_v42 }
  0x3f   : > { %v427_v44 = vld [vmem:[%s1765_s28 + $0x580] sm:$0xff]  ;;  %426 = vst [vmem:[%s1770_s29 + $0x158] sm:$0xff] %v425_v43 }
  0x40   : > { %v429_v45 = vld [vmem:[%s1765_s28 + $0x5a0] sm:$0xff]  ;;  %428 = vst [vmem:[%s1770_s29 + $0x160] sm:$0xff] %v427_v44 }
  0x41   : > { %v431_v46 = vld [vmem:[%s1765_s28 + $0x5c0] sm:$0xff]  ;;  %430 = vst [vmem:[%s1770_s29 + $0x168] sm:$0xff] %v429_v45 }
  0x42   : > { %v433_v47 = vld [vmem:[%s1765_s28 + $0x5e0] sm:$0xff]  ;;  %432 = vst [vmem:[%s1770_s29 + $0x170] sm:$0xff] %v431_v46 }
  0x43   : > { %v435_v48 = vld [vmem:[%s1765_s28 + $0x600] sm:$0xff]  ;;  %434 = vst [vmem:[%s1770_s29 + $0x178] sm:$0xff] %v433_v47 }
  0x44   : > { %v437_v49 = vld [vmem:[%s1765_s28 + $0x620] sm:$0xff]  ;;  %436 = vst [vmem:[%s1770_s29 + $0x180] sm:$0xff] %v435_v48 }
  0x45   : > { %v439_v50 = vld [vmem:[%s1765_s28 + $0x640] sm:$0xff]  ;;  %438 = vst [vmem:[%s1770_s29 + $0x188] sm:$0xff] %v437_v49 }
  0x46   : > { %v441_v51 = vld [vmem:[%s1765_s28 + $0x660] sm:$0xff]  ;;  %440 = vst [vmem:[%s1770_s29 + $0x190] sm:$0xff] %v439_v50 }
  0x47   : > { %v443_v52 = vld [vmem:[%s1765_s28 + $0x680] sm:$0xff]  ;;  %442 = vst [vmem:[%s1770_s29 + $0x198] sm:$0xff] %v441_v51 }
  0x48   : > { %v445_v53 = vld [vmem:[%s1765_s28 + $0x6a0] sm:$0xff]  ;;  %444 = vst [vmem:[%s1770_s29 + $0x1a0] sm:$0xff] %v443_v52 }
  0x49   : > { %v447_v54 = vld [vmem:[%s1765_s28 + $0x6c0] sm:$0xff]  ;;  %446 = vst [vmem:[%s1770_s29 + $0x1a8] sm:$0xff] %v445_v53 }
  0x4a   : > { %v449_v55 = vld [vmem:[%s1765_s28 + $0x6e0] sm:$0xff]  ;;  %448 = vst [vmem:[%s1770_s29 + $0x1b0] sm:$0xff] %v447_v54 }
  0x4b   : > { %v451_v56 = vld [vmem:[%s1765_s28 + $0x700] sm:$0xff]  ;;  %450 = vst [vmem:[%s1770_s29 + $0x1b8] sm:$0xff] %v449_v55 }
  0x4c   : > { %v453_v57 = vld [vmem:[%s1765_s28 + $0x720] sm:$0xff]  ;;  %452 = vst [vmem:[%s1770_s29 + $0x1c0] sm:$0xff] %v451_v56 }
  0x4d   : > { %v455_v58 = vld [vmem:[%s1765_s28 + $0x740] sm:$0xff]  ;;  %454 = vst [vmem:[%s1770_s29 + $0x1c8] sm:$0xff] %v453_v57 }
  0x4e   : > { %v457_v59 = vld [vmem:[%s1765_s28 + $0x760] sm:$0xff]  ;;  %456 = vst [vmem:[%s1770_s29 + $0x1d0] sm:$0xff] %v455_v58 }
  0x4f   : > { %v459_v60 = vld [vmem:[%s1765_s28 + $0x780] sm:$0xff]  ;;  %458 = vst [vmem:[%s1770_s29 + $0x1d8] sm:$0xff] %v457_v59 }
  0x50   : > { %v461_v61 = vld [vmem:[%s1765_s28 + $0x7a0] sm:$0xff]  ;;  %460 = vst [vmem:[%s1770_s29 + $0x1e0] sm:$0xff] %v459_v60 }
  0x51   : > { %v463_v62 = vld [vmem:[%s1765_s28 + $0x7c0] sm:$0xff]  ;;  %462 = vst [vmem:[%s1770_s29 + $0x1e8] sm:$0xff] %v461_v61 }
  0x52   : > { %v465_v63 = vld [vmem:[%s1765_s28 + $0x7e0] sm:$0xff]  ;;  %464 = vst [vmem:[%s1770_s29 + $0x1f0] sm:$0xff] %v463_v62 }
  0x53   : > { %466 = vst [vmem:[%s1770_s29 + $0x1f8] sm:$0xff] %v465_v63 }
  0x54 PF: > { %p1266_p8 = scmp.ge.s32.totalorder %s1695_s16, 1  ;;  %p479_p9 = scmp.lt.s32.totalorder %s1695_s16, 5 }
  0x56   : > { %p480_p10 = pnand %p1266_p8, %p479_p9 }
  0x57   : > { %s486_s30 = sand.u32 (!%p480_p10), 1, %s1679_s12  }
  0x58   : > { %483 = sbr.rel (%p480_p10) target bundleno = 318 (0x13e), region = 66  ;;  %s1267_s4 = sshll.u32 (!%p480_p10), %s486_s30, 9 }
  0x59   : > { %s1902_s5 = scalar_lea.vmem (!%p480_p10), [#allocation3], %s1267_s4  ;;  %s1269_s4 = sshll.u32 (!%p480_p10), %s1687_s14, 1 }
  0x5a   : > { %p537_p11 = scmp.lt.s32.totalorder (!%p480_p10), %s1269_s4, 7  ;;  %s1268_s8 = sshll.u32 (!%p480_p10), %s486_s30, 4 }
  0x5b   : > { %s521_s9 = scalar_lea.vmem (!%p480_p10), [#allocation4], %s1268_s8 }
  0x5d   : > { %v1344_v0 = vld [vmem:[%s1902_s5 + $0x70] sm:$0xf]  ;;  %v1567_v1 = vld [vmem:[%s1902_s5 + $0x74] sm:$0xf0]  ;;  %v1336_v11 = vld [vmem:[%s1902_s5 + $0x60] sm:$0xf] }
  0x5e   : > { %v1408_v2 = vld [vmem:[%s1902_s5 + $0xf0] sm:$0xf]  ;;  %v1345_v3 = vor.u32 %v1567_v1, %v1344_v0  ;;  %v1583_v4 = vld [vmem:[%s1902_s5 + $0xf4] sm:$0xf0]  ;;  %v1565_v13 = vld [vmem:[%s1902_s5 + $0x64] sm:$0xf0] }
  0x5f   : > { %v1472_v5 = vld [vmem:[%s1902_s5 + $0x170] sm:$0xf]  ;;  %v1599_v6 = vld [vmem:[%s1902_s5 + $0x174] sm:$0xf0]  ;;  %v1409_v7 = vor.u32 %v1583_v4, %v1408_v2  ;;  %v1400_v14 = vld [vmem:[%s1902_s5 + $0xe0] sm:$0xf]  ;;  %v1337_v16 = vor.u32 %v1565_v13, %v1336_v11 }
  0x60   : > { %v1473_v8 = vor.u32 %v1599_v6, %v1472_v5  ;;  %v1536_v9 = vld [vmem:[%s1902_s5 + $0x1f0] sm:$0xf]  ;;  %v1615_v10 = vld [vmem:[%s1902_s5 + $0x1f4] sm:$0xf0]  ;;  %963 = vmatpush.bf16.msra.mxu0 %v1345_v3  ;;  %v1581_v15 = vld [vmem:[%s1902_s5 + $0xe4] sm:$0xf0] }
  0x61   : > { %v1537_v12 = vor.u32 %v1615_v10, %v1536_v9  ;;  %977 = vmatpush.bf16.msra.mxu1 %v1409_v7  ;;  %v1401_v17 = vor.u32 %v1581_v15, %v1400_v14  ;;  %v1464_v18 = vld [vmem:[%s1902_s5 + $0x160] sm:$0xf]  ;;  %v1597_v19 = vld [vmem:[%s1902_s5 + $0x164] sm:$0xf0]  ;;  %v1328_v23 = vld [vmem:[%s1902_s5 + $0x50] sm:$0xf] }
  0x62   : > { %991 = vmatpush.bf16.msra.mxu2 %v1473_v8  ;;  %v1528_v20 = vld [vmem:[%s1902_s5 + $0x1e0] sm:$0xf]  ;;  %v1465_v21 = vor.u32 %v1597_v19, %v1464_v18  ;;  %v1613_v22 = vld [vmem:[%s1902_s5 + $0x1e4] sm:$0xf0]  ;;  %v1563_v24 = vld [vmem:[%s1902_s5 + $0x54] sm:$0xf0] }
  0x63   : > { %1005 = vmatpush.bf16.msra.mxu3 %v1537_v12  ;;  %v1529_v25 = vor.u32 %v1613_v22, %v1528_v20  ;;  %v1392_v26 = vld [vmem:[%s1902_s5 + $0xd0] sm:$0xf]  ;;  %v1579_v27 = vld [vmem:[%s1902_s5 + $0xd4] sm:$0xf0]  ;;  %v1329_v29 = vor.u32 %v1563_v24, %v1328_v23  ;;  %v1320_v35 = vld [vmem:[%s1902_s5 + $0x40] sm:$0xf] }
  0x64   : > { %v1456_v28 = vld [vmem:[%s1902_s5 + $0x150] sm:$0xf]  ;;  %964 = vmatpush.bf16.msra.mxu0 %v1337_v16  ;;  %v1595_v30 = vld [vmem:[%s1902_s5 + $0x154] sm:$0xf0]  ;;  %v1393_v33 = vor.u32 %v1579_v27, %v1392_v26  ;;  %v1561_v36 = vld [vmem:[%s1902_s5 + $0x44] sm:$0xf0] }
  0x65   : > { %v1520_v31 = vld [vmem:[%s1902_s5 + $0x1d0] sm:$0xf]  ;;  %v1611_v32 = vld [vmem:[%s1902_s5 + $0x1d4] sm:$0xf0]  ;;  %978 = vmatpush.bf16.msra.mxu1 %v1401_v17  ;;  %v1457_v34 = vor.u32 %v1595_v30, %v1456_v28  ;;  %v1384_v37 = vld [vmem:[%s1902_s5 + $0xc0] sm:$0xf]  ;;  %v1321_v44 = vor.u32 %v1561_v36, %v1320_v35 }
  0x66   : > { %992 = vmatpush.bf16.msra.mxu2 %v1465_v21  ;;  %v1521_v38 = vor.u32 %v1611_v32, %v1520_v31  ;;  %v1577_v39 = vld [vmem:[%s1902_s5 + $0xc4] sm:$0xf0]  ;;  %v1448_v40 = vld [vmem:[%s1902_s5 + $0x140] sm:$0xf]  ;;  %v1312_v47 = vld [vmem:[%s1902_s5 + $0x30] sm:$0xf] }
  0x67   : > { %1006 = vmatpush.bf16.msra.mxu3 %v1529_v25  ;;  %v1593_v41 = vld [vmem:[%s1902_s5 + $0x144] sm:$0xf0]  ;;  %v1512_v42 = vld [vmem:[%s1902_s5 + $0x1c0] sm:$0xf]  ;;  %v1385_v45 = vor.u32 %v1577_v39, %v1384_v37  ;;  %v1559_v48 = vld [vmem:[%s1902_s5 + $0x34] sm:$0xf0] }
  0x68   : > { %v1609_v43 = vld [vmem:[%s1902_s5 + $0x1c4] sm:$0xf0]  ;;  %965 = vmatpush.bf16.msra.mxu0 %v1329_v29  ;;  %v1449_v46 = vor.u32 %v1593_v41, %v1448_v40  ;;  %v1376_v49 = vld [vmem:[%s1902_s5 + $0xb0] sm:$0xf]  ;;  %v1575_v51 = vld [vmem:[%s1902_s5 + $0xb4] sm:$0xf0]  ;;  %v1313_v56 = vor.u32 %v1559_v48, %v1312_v47 }
  0x69   : > { %979 = vmatpush.bf16.msra.mxu1 %v1393_v33  ;;  %v1513_v50 = vor.u32 %v1609_v43, %v1512_v42  ;;  %v1440_v52 = vld [vmem:[%s1902_s5 + $0x130] sm:$0xf]  ;;  %v1591_v53 = vld [vmem:[%s1902_s5 + $0x134] sm:$0xf0]  ;;  %v1377_v57 = vor.u32 %v1575_v51, %v1376_v49  ;;  %v1304_v59 = vld [vmem:[%s1902_s5 + $0x20] sm:$0xf] }
  0x6a   : > { %993 = vmatpush.bf16.msra.mxu2 %v1457_v34  ;;  %v1504_v54 = vld [vmem:[%s1902_s5 + $0x1b0] sm:$0xf]  ;;  %v1607_v55 = vld [vmem:[%s1902_s5 + $0x1b4] sm:$0xf0]  ;;  %v1441_v58 = vor.u32 %v1591_v53, %v1440_v52  ;;  %v1557_v60 = vld [vmem:[%s1902_s5 + $0x24] sm:$0xf0] }
  0x6b   : > { %1007 = vmatpush.bf16.msra.mxu3 %v1521_v38  ;;  %v1368_v61 = vld [vmem:[%s1902_s5 + $0xa0] sm:$0xf]  ;;  %v1505_v62 = vor.u32 %v1607_v55, %v1504_v54  ;;  %v1573_v63 = vld [vmem:[%s1902_s5 + $0xa4] sm:$0xf0]  ;;  %v1305_v4 = vor.u32 %v1557_v60, %v1304_v59  ;;  %v1296_v7 = vld [vmem:[%s1902_s5 + $0x10] sm:$0xf] }
  0x6c   : > { %966 = vmatpush.bf16.msra.mxu0 %v1321_v44  ;;  %v1432_v0 = vld [vmem:[%s1902_s5 + $0x120] sm:$0xf]  ;;  %v1589_v1 = vld [vmem:[%s1902_s5 + $0x124] sm:$0xf0]  ;;  %v1369_v5 = vor.u32 %v1573_v63, %v1368_v61  ;;  %v1555_v8 = vld [vmem:[%s1902_s5 + $0x14] sm:$0xf0] }
  0x6d   : > { %980 = vmatpush.bf16.msra.mxu1 %v1385_v45  ;;  %v1496_v2 = vld [vmem:[%s1902_s5 + $0x1a0] sm:$0xf]  ;;  %v1605_v3 = vld [vmem:[%s1902_s5 + $0x1a4] sm:$0xf0]  ;;  %v1433_v6 = vor.u32 %v1589_v1, %v1432_v0  ;;  %v1360_v9 = vld [vmem:[%s1902_s5 + $0x90] sm:$0xf]  ;;  %v1297_v17 = vor.u32 %v1555_v8, %v1296_v7 }
  0x6e   : > { %994 = vmatpush.bf16.msra.mxu2 %v1449_v46  ;;  %v1497_v10 = vor.u32 %v1605_v3, %v1496_v2  ;;  %v1571_v11 = vld [vmem:[%s1902_s5 + $0x94] sm:$0xf0]  ;;  %v1424_v12 = vld [vmem:[%s1902_s5 + $0x110] sm:$0xf]  ;;  %v1288_v16 = vld [vmem:[%s1902_s5] sm:$0xf] }
  0x6f   : > { %1008 = vmatpush.bf16.msra.mxu3 %v1513_v50  ;;  %v1587_v13 = vld [vmem:[%s1902_s5 + $0x114] sm:$0xf0]  ;;  %v1488_v14 = vld [vmem:[%s1902_s5 + $0x190] sm:$0xf]  ;;  %v1553_v18 = vld [vmem:[%s1902_s5 + $0x4] sm:$0xf0]  ;;  %v1361_v21 = vor.u32 %v1571_v11, %v1360_v9 }
  0x70   : > { %967 = vmatpush.bf16.msra.mxu0 %v1313_v56  ;;  %v1603_v15 = vld [vmem:[%s1902_s5 + $0x194] sm:$0xf0]  ;;  %v1352_v19 = vld [vmem:[%s1902_s5 + $0x80] sm:$0xf]  ;;  %v1569_v20 = vld [vmem:[%s1902_s5 + $0x84] sm:$0xf0]  ;;  %v1425_v22 = vor.u32 %v1587_v13, %v1424_v12  ;;  %v1289_v33 = vor.u32 %v1553_v18, %v1288_v16 }
  0x71   : > { %981 = vmatpush.bf16.msra.mxu1 %v1377_v57  ;;  %v1416_v23 = vld [vmem:[%s1902_s5 + $0x100] sm:$0xf]  ;;  %v1585_v24 = vld [vmem:[%s1902_s5 + $0x104] sm:$0xf0]  ;;  %v1489_v26 = vor.u32 %v1603_v15, %v1488_v14  ;;  %v1566_v28 = vld [vmem:[%s1902_s5 + $0x74] sm:$0xf]  ;;  %v1353_v37 = vor.u32 %v1569_v20, %v1352_v19 }
  0x72   : > { %995 = vmatpush.bf16.msra.mxu2 %v1441_v58  ;;  %v1480_v25 = vld [vmem:[%s1902_s5 + $0x180] sm:$0xf]  ;;  %v1601_v27 = vld [vmem:[%s1902_s5 + $0x184] sm:$0xf0]  ;;  %v1346_v29 = vld [vmem:[%s1902_s5 + $0x78] sm:$0xf0]  ;;  %v1417_v38 = vor.u32 %v1585_v24, %v1416_v23 }
  0x73   : > { %1009 = vmatpush.bf16.msra.mxu3 %v1505_v62  ;;  %v1582_v30 = vld [vmem:[%s1902_s5 + $0xf4] sm:$0xf]  ;;  %v1410_v31 = vld [vmem:[%s1902_s5 + $0xf8] sm:$0xf0]  ;;  %v1564_v39 = vld [vmem:[%s1902_s5 + $0x64] sm:$0xf]  ;;  %v1481_v43 = vor.u32 %v1601_v27, %v1480_v25  ;;  %v1349_v44 = vor.u32 %v1566_v28, %v1346_v29 }
  0x74   : > { %968 = vmatpush.bf16.msra.mxu0 %v1305_v4  ;;  %v1598_v32 = vld [vmem:[%s1902_s5 + $0x174] sm:$0xf]  ;;  %v1474_v34 = vld [vmem:[%s1902_s5 + $0x178] sm:$0xf0]  ;;  %v1338_v40 = vld [vmem:[%s1902_s5 + $0x68] sm:$0xf0]  ;;  %v1413_v49 = vor.u32 %v1582_v30, %v1410_v31 }
  0x75   : > { %982 = vmatpush.bf16.msra.mxu1 %v1369_v5  ;;  %v1614_v35 = vld [vmem:[%s1902_s5 + $0x1f4] sm:$0xf]  ;;  %v1538_v36 = vld [vmem:[%s1902_s5 + $0x1f8] sm:$0xf0]  ;;  %v1280_v41 = vld [vmem:[%s2099_s0 + $0x8] sm:$0xf]  ;;  %v1477_v50 = vor.u32 %v1598_v32, %v1474_v34  ;;  %v1341_v63 = vor.u32 %v1564_v39, %v1338_v40 }
  0x76   : > { %996 = vmatpush.bf16.msra.mxu2 %v1433_v6  ;;  %v1551_v42 = vld [vmem:[%s2099_s0 + $0x14] sm:$0xf0]  ;;  %v1580_v45 = vld [vmem:[%s1902_s5 + $0xe4] sm:$0xf]  ;;  %v1402_v46 = vld [vmem:[%s1902_s5 + $0xe8] sm:$0xf0]  ;;  %v1541_v54 = vor.u32 %v1614_v35, %v1538_v36 }
  0x77   : > { %1010 = vmatpush.bf16.msra.mxu3 %v1497_v10  ;;  %v1596_v47 = vld [vmem:[%s1902_s5 + $0x164] sm:$0xf]  ;;  %v1466_v48 = vld [vmem:[%s1902_s5 + $0x168] sm:$0xf0]  ;;  %v1282_v52 = vld [vmem:[%s2099_s0 + $0x18] sm:$0xf0]  ;;  %v1997_v55 = vor.u32 %v1551_v42, %v1280_v41  ;;  %v1405_v1 = vor.u32 %v1580_v45, %v1402_v46 }
  0x78   : > { %969 = vmatpush.bf16.msra.mxu0 %v1297_v17  ;;  %v1549_v51 = vld [vmem:[%s2099_s0 + $0xc] sm:$0xf]  ;;  %v1272_v53 = vld [vmem:[%s2099_s0] sm:$0xf]  ;;  %v1550_v56 = vld [vmem:[%s2099_s0 + $0xc] sm:$0xf0]  ;;  %v1469_v2 = vor.u32 %v1596_v47, %v1466_v48 }
  0x79   : > { %983 = vmatpush.bf16.msra.mxu1 %v1361_v21  ;;  %v1548_v57 = vld [vmem:[%s2099_s0 + $0x4] sm:$0xf]  ;;  %v1274_v58 = vld [vmem:[%s2099_s0 + $0x10] sm:$0xf0]  ;;  %v1530_v60 = vld [vmem:[%s1902_s5 + $0x1e8] sm:$0xf0]  ;;  %v2010_v61 = vor.u32 %v1549_v51, %v1282_v52  ;;  %v2012_v62 = vor.u32 %v1550_v56, %v1272_v53 }
  0x7a   : > { %997 = vmatpush.bf16.msra.mxu2 %v1425_v22  ;;  %v1612_v59 = vld [vmem:[%s1902_s5 + $0x1e4] sm:$0xf]  ;;  %v2014_v0 = vor.u32 %v1548_v57, %v1274_v58  ;;  %v1562_v3 = vld [vmem:[%s1902_s5 + $0x54] sm:$0xf]  ;;  %v1330_v4 = vld [vmem:[%s1902_s5 + $0x58] sm:$0xf0] }
  0x7b   : > { %1011 = vmatpush.bf16.msra.mxu3 %v1489_v26  ;;  %v1578_v5 = vld [vmem:[%s1902_s5 + $0xd4] sm:$0xf]  ;;  %v1533_v6 = vor.u32 %v1612_v59, %v1530_v60  ;;  %v1394_v7 = vld [vmem:[%s1902_s5 + $0xd8] sm:$0xf0]  ;;  %v1333_v12 = vor.u32 %v1562_v3, %v1330_v4  ;;  %v1560_v15 = vld [vmem:[%s1902_s5 + $0x44] sm:$0xf] }
  0x7c   : > { %970 = vmatpush.bf16.msra.mxu0 %v1289_v33  ;;  %v1594_v8 = vld [vmem:[%s1902_s5 + $0x154] sm:$0xf]  ;;  %v1458_v9 = vld [vmem:[%s1902_s5 + $0x158] sm:$0xf0]  ;;  %v1397_v13 = vor.u32 %v1578_v5, %v1394_v7  ;;  %v1322_v16 = vld [vmem:[%s1902_s5 + $0x48] sm:$0xf0] }
  0x7d   : > { %984 = vmatpush.bf16.msra.mxu1 %v1353_v37  ;;  %v1610_v10 = vld [vmem:[%s1902_s5 + $0x1d4] sm:$0xf]  ;;  %v1522_v11 = vld [vmem:[%s1902_s5 + $0x1d8] sm:$0xf0]  ;;  %v1461_v14 = vor.u32 %v1594_v8, %v1458_v9  ;;  %v1576_v17 = vld [vmem:[%s1902_s5 + $0xc4] sm:$0xf]  ;;  %v1325_v24 = vor.u32 %v1560_v15, %v1322_v16 }
  0x7e   : > { %998 = vmatpush.bf16.msra.mxu2 %v1417_v38  ;;  %v1525_v18 = vor.u32 %v1610_v10, %v1522_v11  ;;  %v1386_v19 = vld [vmem:[%s1902_s5 + $0xc8] sm:$0xf0]  ;;  %v1592_v20 = vld [vmem:[%s1902_s5 + $0x144] sm:$0xf]  ;;  %v1558_v27 = vld [vmem:[%s1902_s5 + $0x34] sm:$0xf] }
  0x7f   : > { %1012 = vmatpush.bf16.msra.mxu3 %v1481_v43  ;;  %971 = vmatmul.bf16.vlgmr.msra.gmra.mxu0 %v2012_v62  ;;  %v1450_v21 = vld [vmem:[%s1902_s5 + $0x148] sm:$0xf0]  ;;  %v1608_v22 = vld [vmem:[%s1902_s5 + $0x1c4] sm:$0xf]  ;;  %v1389_v25 = vor.u32 %v1576_v17, %v1386_v19  ;;  %v1314_v28 = vld [vmem:[%s1902_s5 + $0x38] sm:$0xf0] }
  0x80   : > { %1019 = vmatpush.bf16.msrb.mxu0 %v1349_v44  ;;  %985 = vmatmul.bf16.vlgmr.msra.gmra.mxu1 %v2014_v0  ;;  %v1514_v23 = vld [vmem:[%s1902_s5 + $0x1c8] sm:$0xf0]  ;;  %v1453_v26 = vor.u32 %v1592_v20, %v1450_v21  ;;  %v1574_v29 = vld [vmem:[%s1902_s5 + $0xb4] sm:$0xf]  ;;  %v1378_v31 = vld [vmem:[%s1902_s5 + $0xb8] sm:$0xf0]  ;;  %v1317_v36 = vor.u32 %v1558_v27, %v1314_v28 }
  0x81   : > { %1033 = vmatpush.bf16.msrb.mxu1 %v1413_v49  ;;  %999 = vmatmul.bf16.vlgmr.msra.gmra.mxu2 %v1997_v55  ;;  %v1517_v30 = vor.u32 %v1608_v22, %v1514_v23  ;;  %v1590_v32 = vld [vmem:[%s1902_s5 + $0x134] sm:$0xf]  ;;  %v1442_v33 = vld [vmem:[%s1902_s5 + $0x138] sm:$0xf0]  ;;  %v1381_v37 = vor.u32 %v1574_v29, %v1378_v31  ;;  %v1556_v39 = vld [vmem:[%s1902_s5 + $0x24] sm:$0xf] }
  0x82   : > { %1047 = vmatpush.bf16.msrb.mxu2 %v1477_v50  ;;  %1013 = vmatmul.bf16.vlgmr.msra.gmra.mxu3 %v2010_v61  ;;  %v1606_v34 = vld [vmem:[%s1902_s5 + $0x1b4] sm:$0xf]  ;;  %v1506_v35 = vld [vmem:[%s1902_s5 + $0x1b8] sm:$0xf0]  ;;  %v1445_v38 = vor.u32 %v1590_v32, %v1442_v33  ;;  %v1306_v40 = vld [vmem:[%s1902_s5 + $0x28] sm:$0xf0] }
  0x83   : > { %1061 = vmatpush.bf16.msrb.mxu3 %v1541_v54  ;;  %v1572_v41 = vld [vmem:[%s1902_s5 + $0xa4] sm:$0xf]  ;;  %v1509_v42 = vor.u32 %v1606_v34, %v1506_v35  ;;  %v1370_v43 = vld [vmem:[%s1902_s5 + $0xa8] sm:$0xf0]  ;;  %v1309_v48 = vor.u32 %v1556_v39, %v1306_v40  ;;  %v1554_v51 = vld [vmem:[%s1902_s5 + $0x14] sm:$0xf] }
  0x84   : > { %1020 = vmatpush.bf16.msrb.mxu0 %v1341_v63  ;;  %v1588_v44 = vld [vmem:[%s1902_s5 + $0x124] sm:$0xf]  ;;  %v1434_v45 = vld [vmem:[%s1902_s5 + $0x128] sm:$0xf0]  ;;  %v1373_v49 = vor.u32 %v1572_v41, %v1370_v43  ;;  %v1298_v52 = vld [vmem:[%s1902_s5 + $0x18] sm:$0xf0] }
  0x85   : > { %1034 = vmatpush.bf16.msrb.mxu1 %v1405_v1  ;;  %v1604_v46 = vld [vmem:[%s1902_s5 + $0x1a4] sm:$0xf]  ;;  %v1498_v47 = vld [vmem:[%s1902_s5 + $0x1a8] sm:$0xf0]  ;;  %v1437_v50 = vor.u32 %v1588_v44, %v1434_v45  ;;  %v1570_v53 = vld [vmem:[%s1902_s5 + $0x94] sm:$0xf]  ;;  %v1301_v63 = vor.u32 %v1554_v51, %v1298_v52 }
  0x86   : > { %1048 = vmatpush.bf16.msrb.mxu2 %v1469_v2  ;;  %v1501_v54 = vor.u32 %v1604_v46, %v1498_v47  ;;  %v1362_v56 = vld [vmem:[%s1902_s5 + $0x98] sm:$0xf0]  ;;  %v1586_v57 = vld [vmem:[%s1902_s5 + $0x114] sm:$0xf]  ;;  %v1552_v3 = vld [vmem:[%s1902_s5 + $0x4] sm:$0xf] }
  0x87   : > { %1062 = vmatpush.bf16.msrb.mxu3 %v1533_v6  ;;  %v1426_v58 = vld [vmem:[%s1902_s5 + $0x118] sm:$0xf0]  ;;  %v1602_v59 = vld [vmem:[%s1902_s5 + $0x194] sm:$0xf]  ;;  %v1365_v1 = vor.u32 %v1570_v53, %v1362_v56  ;;  %v1290_v4 = vld [vmem:[%s1902_s5 + $0x8] sm:$0xf0] }
  0x88   : > { %1021 = vmatpush.bf16.msrb.mxu0 %v1333_v12  ;;  %v1490_v60 = vld [vmem:[%s1902_s5 + $0x198] sm:$0xf0]  ;;  %v1429_v2 = vor.u32 %v1586_v57, %v1426_v58  ;;  %v1568_v5 = vld [vmem:[%s1902_s5 + $0x84] sm:$0xf]  ;;  %v1354_v7 = vld [vmem:[%s1902_s5 + $0x88] sm:$0xf0]  ;;  %v1293_v12 = vor.u32 %v1552_v3, %v1290_v4 }
  0x89   : > { %1035 = vmatpush.bf16.msrb.mxu1 %v1397_v13  ;;  %v1493_v6 = vor.u32 %v1602_v59, %v1490_v60  ;;  %v1584_v8 = vld [vmem:[%s1902_s5 + $0x104] sm:$0xf]  ;;  %v1418_v9 = vld [vmem:[%s1902_s5 + $0x108] sm:$0xf0]  ;;  %v1357_v13 = vor.u32 %v1568_v5, %v1354_v7  ;;  %s2111_s4 = smov (!%p537_p11, %s1269_s4), 7  ;;  %s1616_s12 = sshll.u32 (%p1752_p6), %s1687_s14, 3 }
  0x8a   : > { %1049 = vmatpush.bf16.msrb.mxu2 %v1461_v14  ;;  %v1600_v10 = vld [vmem:[%s1902_s5 + $0x184] sm:$0xf]  ;;  %v1482_v11 = vld [vmem:[%s1902_s5 + $0x188] sm:$0xf0]  ;;  %v1421_v14 = vor.u32 %v1584_v8, %v1418_v9  ;;  %s539_s7 = scalar_lea.vmem %s2101_s2, %s2111_s4  ;;  %s1116_s11 = scalar_lea.vmem (%p1752_p6), %s2102_s3, %s1616_s12 }
  0x8b   : > { %1063 = vmatpush.bf16.msrb.mxu3 %v1525_v18  ;;  %v1485_v15 = vor.u32 %v1600_v10, %v1482_v11 }
  0x8c   : > { %1022 = vmatpush.bf16.msrb.mxu0 %v1325_v24 }
  0x8d   : > { %1036 = vmatpush.bf16.msrb.mxu1 %v1389_v25 }
  0x8e   : > { %1050 = vmatpush.bf16.msrb.mxu2 %v1453_v26 }
  0x8f   : > { %1064 = vmatpush.bf16.msrb.mxu3 %v1517_v30 }
  0x90   : > { %1023 = vmatpush.bf16.msrb.mxu0 %v1317_v36 }
  0x91   : > { %1037 = vmatpush.bf16.msrb.mxu1 %v1381_v37 }
  0x92   : > { %1051 = vmatpush.bf16.msrb.mxu2 %v1445_v38 }
  0x93   : > { %1065 = vmatpush.bf16.msrb.mxu3 %v1509_v42 }
  0x94   : > { %1024 = vmatpush.bf16.msrb.mxu0 %v1309_v48 }
  0x95   : > { %1038 = vmatpush.bf16.msrb.mxu1 %v1373_v49 }
  0x96   : > { %1052 = vmatpush.bf16.msrb.mxu2 %v1437_v50 }
  0x97   : > { %1066 = vmatpush.bf16.msrb.mxu3 %v1501_v54 }
  0x98   : > { %1025 = vmatpush.bf16.msrb.mxu0 %v1301_v63 }
  0x99   : > { %1039 = vmatpush.bf16.msrb.mxu1 %v1365_v1 }
  0x9a   : > { %1053 = vmatpush.bf16.msrb.mxu2 %v1429_v2 }
  0x9b   : > { %1067 = vmatpush.bf16.msrb.mxu3 %v1493_v6 }
  0x9c   : > { %1026 = vmatpush.bf16.msrb.mxu0 %v1293_v12 }
  0x9d   : > { %1040 = vmatpush.bf16.msrb.mxu1 %v1357_v13 }
  0x9e   : > { %1054 = vmatpush.bf16.msrb.mxu2 %v1421_v14 }
  0x9f   : > { %1068 = vmatpush.bf16.msrb.mxu3 %v1485_v15  ;;  %1027 = vmatmul.bf16.vlgmr.msrb.gmra.mxu0 %v2012_v62 }
  0xa0   : > { %1041 = vmatmul.bf16.vlgmr.msrb.gmra.mxu1 %v2014_v0  ;;  %v1090_v0 = vld [vmem:[%s539_s7] sm:$0x3] }
  0xa1   : > { %1055 = vmatmul.bf16.vlgmr.msrb.gmra.mxu2 %v1997_v55  ;;  %v1092_v26 = vperm.slane %v1090_v0, 0  ;;  %v1093_v32 = vperm.slane %v1090_v0, 1 }
  0xa2   : > { %1069 = vmatmul.bf16.vlgmr.msrb.gmra.mxu3 %v2010_v61 }
  0xfc   : > { %v972_v16 = vpop.f32.mrf.mxu0 }
  0xfd   : > { %v986_v17 = vpop.f32.mrf.mxu1 }
  0xfe   : > { %v987_v23 = vadd.f32 %v986_v17, %v972_v16 }
 0x104   : > { %v1000_v18 = vpop.f32.mrf.mxu2  ;;  %v974_v20 = vpop.f32.mrf.mxu0 }
 0x105   : > { %v1014_v19 = vpop.f32.mrf.mxu3  ;;  %v988_v21 = vpop.f32.mrf.mxu1  ;;  %v1001_v61 = vadd.f32 %v1000_v18, %v987_v23 }
 0x106   : > { %v989_v29 = vadd.f32 %v988_v21, %v974_v20 }
 0x107   : > { %v1015_v28 = vadd.f32 %v1014_v19, %v1001_v61 }
 0x109   : > { %v1096_v36 = vadd.f32 %v1092_v26, %v1015_v28 }
 0x10c   : > { %v1002_v22 = vpop.f32.mrf.mxu2 }
 0x10d   : > { %v1016_v24 = vpop.f32.mrf.mxu3  ;;  %v1003_v37 = vadd.f32 %v1002_v22, %v989_v29 }
 0x10f   : > { %v1017_v42 = vadd.f32 %v1016_v24, %v1003_v37 }
 0x111   : > { %v1098_v46 = vadd.f32 %v1092_v26, %v1017_v42 }
 0x11c   : > { %v1028_v55 = vpop.f32.mrf.mxu0 }
 0x11d   : > { %v1042_v62 = vpop.f32.mrf.mxu1 }
 0x11e   : > { %v1043_v25 = vadd.f32 %v1042_v62, %v1028_v55 }
 0x124   : > { %v1056_v27 = vpop.f32.mrf.mxu2  ;;  %v1030_v34 = vpop.f32.mrf.mxu0 }
 0x125   : > { %v1057_v30 = vadd.f32 %v1056_v27, %v1043_v25  ;;  %v1070_v31 = vpop.f32.mrf.mxu3  ;;  %v1044_v35 = vpop.f32.mrf.mxu1 }
 0x126   : > { %v1045_v40 = vadd.f32 %v1044_v35, %v1030_v34 }
 0x127   : > { %v1071_v33 = vadd.f32 %v1070_v31, %v1057_v30 }
 0x129   : > { %v1097_v38 = vadd.f32 %v1093_v32, %v1071_v33 }
 0x12b   : > { %v1100_v39 = vpack.c.bf16 %v1097_v38, %v1096_v36 }
 0x12c   : > { %v1058_v41 = vpop.f32.mrf.mxu2 }
 0x12d   : > { %1102 = vst [vmem:[%s521_s9] sm:$0xff] %v1100_v39  ;;  %v1059_v43 = vadd.f32 %v1058_v41, %v1045_v40  ;;  %v1072_v44 = vpop.f32.mrf.mxu3 }
 0x12f   : > { %v1073_v45 = vadd.f32 %v1072_v44, %v1059_v43 }
 0x131   : > { %v1099_v47 = vadd.f32 %v1093_v32, %v1073_v45  ;;  %1110 = sbr.rel (!%p1752_p6) target bundleno = 318 (0x13e), region = 82 }
 0x133   : > { %v1101_v48 = vpack.c.bf16 %v1099_v47, %v1098_v46 }
 0x134   : > { %v1147_v49 = vld [vmem:[%s521_s9] sm:$0xff] (%p1752_p6) }
 0x135   : > { %1103 = vst [vmem:[%s521_s9 + $0x8] sm:$0xff] %v1101_v48 }
 0x136   : > { %1148 = vst [vmem:[%s1116_s11] sm:$0xff] %v1147_v49 }
 0x13c   : > { %v1149_v50 = vld [vmem:[%s521_s9 + $0x8] sm:$0xff] }
 0x13d   : > { %1150 = vst [vmem:[%s1116_s11 + $0x20] sm:$0xff] %v1149_v50 }
 0x13e PF: > { %s13_s16 = sadd.s32 1, %s1695_s16   ;;  %s2104_s12 = smov %s1683_s13 }
 0x13f   : > { %p10_p12 = scmp.ge.s32.totalorder %s13_s16, 6   ;;  %s2105_s13 = smov %s1757_s22 }
 0x140   : > { %s2106_s14 = smov %s1691_s15  ;;  %s2107_s15 = smov %s2109_s17 }
 0x141   :  { %12 = sbr.rel (!%p10_p12) target bundleno = 3 (0x3), region = 157 }

// kernel: _lambda_.72
= control target key start
LH: loop header
LB: loop body
LE: loop exit
PB: predicated region body
PF: predicated region fallthrough
CT: control target
= control target key end

     0   :  { %s1298_s15 = smov 0   ;;  %s1300_s16 = smov 0   ;;  %s1541_s0 = inlined_call_operand.vmem [shape: bf16[16,256], index: 0, kind: input, shape index: {}]   ;;  %s1542_s1 = inlined_call_operand.vmem [shape: bf16[256,1024], index: 1, kind: input, shape index: {}]   ;;  %s1543_s2 = inlined_call_operand.vmem [shape: f32[1,1024], index: 2, kind: input, shape index: {}]   ;;  %s1544_s3 = inlined_call_operand.vmem [shape: bf16[16,1024], index: 3, kind: input, shape index: {}]   ;;  %s1545_s4 = inlined_call_operand.vmem [shape: bf16[16,1024], index: 4, kind: output, shape index: {}]  }
   0x1   :  { %s1302_s17 = smov 0   ;;  %s1304_s18 = smov 0  }
   0x2   :  { %s1306_s19 = smov 0  }
   0x3 LB: > { %s29_s20 = sadd.s32 1, %s1267_s18  ;;  %s999_s21 = sadd.s32 4294967295, %s1271_s19   ;;  %s1271_s19 = sphi %s1306_s19, %s14_s19   ;;  %s1267_s18 = sphi %s1304_s18, %s1551_s18   ;;  %s1263_s17 = sphi %s1302_s17, %s1550_s17   ;;  %s1259_s16 = sphi %s1300_s16, %s1549_s16   ;;  %s1255_s15 = sphi %s1298_s15, %s1548_s15  }
   0x4   : > { %p31_p0 = scmp.ge.s32.totalorder %s29_s20, 4  ;;  %p77_p1 = scmp.ne.s32.totalorder %s1259_s16, %s1255_s15 }
   0x5   : > { %p78_p2 = scmp.eq.s32.totalorder %s1271_s19, 0  ;;  %p163_p4 = scmp.eq.s32.totalorder %s999_s21, 3 }
   0x6   : > { %s1553_s20 = smov (%p31_p0, %s29_s20), 0  ;;  %s70_s24 = sadd.s32 1, %s1259_s16 }
   0x7   : > { %p1330_p3 = por %p78_p2, %p77_p1  ;;  %s66_s23 = ssub.s32 %s1267_s18, %s1553_s20 }
   0x8   : > { %p68_p5 = scmp.eq.s32.totalorder %s66_s23, 0  ;;  %p1337_p6 = por %p163_p4, %p77_p1 }
   0x9   : > { %p1003_p7 = scmp.ge.s32.totalorder %s1271_s19, 4 }
   0xa   : > { %s1342_s26 = scalar_select %p68_p5, %s1259_s16, %s70_s24  }
   0xb   : > { %200 = sbr.rel (%p1003_p7) target bundleno = 58 (0x3a), region = 20 }
  0x10   : > { %203 = sbr.rel (!%p1330_p3) target bundleno = 52 (0x34), region = 24  ;;  %s205_s27 = sand.u32 (%p1330_p3), 1, %s1259_s16  }
  0x11   : > { %s1156_s28 = sshll.u32 (%p1330_p3), %s1267_s18, 3  ;;  %s1004_s29 = sshll.u32 (%p1330_p3), %s205_s27, 8 }
  0x12   : > { %s1352_s6 = scalar_lea.vmem (%p1330_p3), %s1542_s1, %s1156_s28  ;;  %s1357_s7 = scalar_lea.vmem (%p1330_p3), [#allocation3], %s1004_s29 }
  0x13   : > { %v304_v0 = vld [vmem:[%s1352_s6] sm:$0xff] (%p1330_p3) }
  0x14   : > { %v306_v1 = vld [vmem:[%s1352_s6 + $0x20] sm:$0xff] (%p1330_p3)  ;;  %305 = vst [vmem:[%s1357_s7] sm:$0xff] (%p1330_p3), %v304_v0 }
  0x15   : > { %v308_v2 = vld [vmem:[%s1352_s6 + $0x40] sm:$0xff]  ;;  %307 = vst [vmem:[%s1357_s7 + $0x8] sm:$0xff] %v306_v1 }
  0x16   : > { %v310_v3 = vld [vmem:[%s1352_s6 + $0x60] sm:$0xff]  ;;  %309 = vst [vmem:[%s1357_s7 + $0x10] sm:$0xff] %v308_v2 }
  0x17   : > { %v312_v4 = vld [vmem:[%s1352_s6 + $0x80] sm:$0xff]  ;;  %311 = vst [vmem:[%s1357_s7 + $0x18] sm:$0xff] %v310_v3 }
  0x18   : > { %v314_v5 = vld [vmem:[%s1352_s6 + $0xa0] sm:$0xff]  ;;  %313 = vst [vmem:[%s1357_s7 + $0x20] sm:$0xff] %v312_v4 }
  0x19   : > { %v316_v6 = vld [vmem:[%s1352_s6 + $0xc0] sm:$0xff]  ;;  %315 = vst [vmem:[%s1357_s7 + $0x28] sm:$0xff] %v314_v5 }
  0x1a   : > { %v318_v7 = vld [vmem:[%s1352_s6 + $0xe0] sm:$0xff]  ;;  %317 = vst [vmem:[%s1357_s7 + $0x30] sm:$0xff] %v316_v6 }
  0x1b   : > { %v320_v8 = vld [vmem:[%s1352_s6 + $0x100] sm:$0xff]  ;;  %319 = vst [vmem:[%s1357_s7 + $0x38] sm:$0xff] %v318_v7 }
  0x1c   : > { %v322_v9 = vld [vmem:[%s1352_s6 + $0x120] sm:$0xff]  ;;  %321 = vst [vmem:[%s1357_s7 + $0x40] sm:$0xff] %v320_v8 }
  0x1d   : > { %v324_v10 = vld [vmem:[%s1352_s6 + $0x140] sm:$0xff]  ;;  %323 = vst [vmem:[%s1357_s7 + $0x48] sm:$0xff] %v322_v9 }
  0x1e   : > { %v326_v11 = vld [vmem:[%s1352_s6 + $0x160] sm:$0xff]  ;;  %325 = vst [vmem:[%s1357_s7 + $0x50] sm:$0xff] %v324_v10 }
  0x1f   : > { %v328_v12 = vld [vmem:[%s1352_s6 + $0x180] sm:$0xff]  ;;  %327 = vst [vmem:[%s1357_s7 + $0x58] sm:$0xff] %v326_v11 }
  0x20   : > { %v330_v13 = vld [vmem:[%s1352_s6 + $0x1a0] sm:$0xff]  ;;  %329 = vst [vmem:[%s1357_s7 + $0x60] sm:$0xff] %v328_v12 }
  0x21   : > { %v332_v14 = vld [vmem:[%s1352_s6 + $0x1c0] sm:$0xff]  ;;  %331 = vst [vmem:[%s1357_s7 + $0x68] sm:$0xff] %v330_v13 }
  0x22   : > { %v334_v15 = vld [vmem:[%s1352_s6 + $0x1e0] sm:$0xff]  ;;  %333 = vst [vmem:[%s1357_s7 + $0x70] sm:$0xff] %v332_v14 }
  0x23   : > { %v336_v16 = vld [vmem:[%s1352_s6 + $0x200] sm:$0xff]  ;;  %335 = vst [vmem:[%s1357_s7 + $0x78] sm:$0xff] %v334_v15 }
  0x24   : > { %v338_v17 = vld [vmem:[%s1352_s6 + $0x220] sm:$0xff]  ;;  %337 = vst [vmem:[%s1357_s7 + $0x80] sm:$0xff] %v336_v16 }
  0x25   : > { %v340_v18 = vld [vmem:[%s1352_s6 + $0x240] sm:$0xff]  ;;  %339 = vst [vmem:[%s1357_s7 + $0x88] sm:$0xff] %v338_v17 }
  0x26   : > { %v342_v19 = vld [vmem:[%s1352_s6 + $0x260] sm:$0xff]  ;;  %341 = vst [vmem:[%s1357_s7 + $0x90] sm:$0xff] %v340_v18 }
  0x27   : > { %v344_v20 = vld [vmem:[%s1352_s6 + $0x280] sm:$0xff]  ;;  %343 = vst [vmem:[%s1357_s7 + $0x98] sm:$0xff] %v342_v19 }
  0x28   : > { %v346_v21 = vld [vmem:[%s1352_s6 + $0x2a0] sm:$0xff]  ;;  %345 = vst [vmem:[%s1357_s7 + $0xa0] sm:$0xff] %v344_v20 }
  0x29   : > { %v348_v22 = vld [vmem:[%s1352_s6 + $0x2c0] sm:$0xff]  ;;  %347 = vst [vmem:[%s1357_s7 + $0xa8] sm:$0xff] %v346_v21 }
  0x2a   : > { %v350_v23 = vld [vmem:[%s1352_s6 + $0x2e0] sm:$0xff]  ;;  %349 = vst [vmem:[%s1357_s7 + $0xb0] sm:$0xff] %v348_v22 }
  0x2b   : > { %v352_v24 = vld [vmem:[%s1352_s6 + $0x300] sm:$0xff]  ;;  %351 = vst [vmem:[%s1357_s7 + $0xb8] sm:$0xff] %v350_v23 }
  0x2c   : > { %v354_v25 = vld [vmem:[%s1352_s6 + $0x320] sm:$0xff]  ;;  %353 = vst [vmem:[%s1357_s7 + $0xc0] sm:$0xff] %v352_v24 }
  0x2d   : > { %v356_v26 = vld [vmem:[%s1352_s6 + $0x340] sm:$0xff]  ;;  %355 = vst [vmem:[%s1357_s7 + $0xc8] sm:$0xff] %v354_v25 }
  0x2e   : > { %v358_v27 = vld [vmem:[%s1352_s6 + $0x360] sm:$0xff]  ;;  %357 = vst [vmem:[%s1357_s7 + $0xd0] sm:$0xff] %v356_v26 }
  0x2f   : > { %v360_v28 = vld [vmem:[%s1352_s6 + $0x380] sm:$0xff]  ;;  %359 = vst [vmem:[%s1357_s7 + $0xd8] sm:$0xff] %v358_v27 }
  0x30   : > { %v362_v29 = vld [vmem:[%s1352_s6 + $0x3a0] sm:$0xff]  ;;  %361 = vst [vmem:[%s1357_s7 + $0xe0] sm:$0xff] %v360_v28 }
  0x31   : > { %v364_v30 = vld [vmem:[%s1352_s6 + $0x3c0] sm:$0xff]  ;;  %363 = vst [vmem:[%s1357_s7 + $0xe8] sm:$0xff] %v362_v29 }
  0x32   : > { %v366_v31 = vld [vmem:[%s1352_s6 + $0x3e0] sm:$0xff]  ;;  %365 = vst [vmem:[%s1357_s7 + $0xf0] sm:$0xff] %v364_v30 }
  0x33   : > { %367 = vst [vmem:[%s1357_s7 + $0xf8] sm:$0xff] %v366_v31 }
  0x34 PF: > { %381 = sbr.rel (!%p1330_p3) target bundleno = 58 (0x3a), region = 66  ;;  %s383_s8 = sand.u32 (%p1330_p3), 1, %s1259_s16  }
  0x35   : > { %s1157_s9 = sshll.u32 (%p1330_p3), %s1267_s18, 3  ;;  %s1007_s10 = sshll.u32 (%p1330_p3), %s383_s8, 4 }
  0x36   : > { %s391_s13 = scalar_lea.vmem (%p1330_p3), %s1544_s3, %s1157_s9  ;;  %s385_s14 = scalar_lea.vmem (%p1330_p3), [#allocation4], %s1007_s10 }
  0x37   : > { %v422_v32 = vld [vmem:[%s391_s13] sm:$0xff] (%p1330_p3) }
  0x38   : > { %v424_v33 = vld [vmem:[%s391_s13 + $0x20] sm:$0xff] (%p1330_p3)  ;;  %423 = vst [vmem:[%s385_s14] sm:$0xff] (%p1330_p3), %v422_v32 }
  0x39   : > { %425 = vst [vmem:[%s385_s14 + $0x8] sm:$0xff] %v424_v33 }
  0x3a PF: > { %p1010_p8 = scmp.ge.s32.totalorder %s1271_s19, 1  ;;  %p430_p9 = scmp.lt.s32.totalorder %s1271_s19, 5 }
  0x3c   : > { %p431_p10 = pnand %p1010_p8, %p430_p9 }
  0x3d   : > { %s437_s21 = sand.u32 (!%p431_p10), 1, %s1255_s15   ;;  %s1014_s8 = sshll.u32 (!%p431_p10), %s1263_s17, 1 }
  0x3e   : > { %434 = sbr.rel (%p431_p10) target bundleno = 262 (0x106), region = 104  ;;  %s1011_s22 = sshll.u32 (!%p431_p10), %s437_s21, 8 }
  0x3f   : > { %s1432_s23 = scalar_lea.vmem (!%p431_p10), [#allocation3], %s1011_s22  ;;  %p501_p11 = scmp.lt.s32.totalorder (!%p431_p10), %s1014_s8, 7 }
  0x40   : > { %s1516_s12 = sshll.u32 (!%p431_p10), %s437_s21, 4 }
  0x41   : > { %s446_s13 = scalar_lea.vmem (!%p431_p10), [#allocation4], %s1516_s12  ;;  %s485_s15 = scalar_lea.vmem (!%p431_p10), [#allocation5], %s1516_s12 }
  0x43   : > { %v1081_v34 = vld [vmem:[%s1432_s23 + $0x70] sm:$0xf]  ;;  %v1175_v35 = vld [vmem:[%s1432_s23 + $0x74] sm:$0xf0]  ;;  %v1174_v39 = vld [vmem:[%s1432_s23 + $0x74] sm:$0xf] }
  0x44   : > { %v1145_v36 = vld [vmem:[%s1432_s23 + $0xf0] sm:$0xf]  ;;  %v1082_v37 = vor.u32 %v1175_v35, %v1081_v34  ;;  %v1191_v38 = vld [vmem:[%s1432_s23 + $0xf4] sm:$0xf0]  ;;  %v1083_v40 = vld [vmem:[%s1432_s23 + $0x78] sm:$0xf0] }
  0x45   : > { %v1146_v41 = vor.u32 %v1191_v38, %v1145_v36  ;;  %v1086_v42 = vor.u32 %v1174_v39, %v1083_v40  ;;  %v1190_v43 = vld [vmem:[%s1432_s23 + $0xf4] sm:$0xf]  ;;  %v1147_v44 = vld [vmem:[%s1432_s23 + $0xf8] sm:$0xf0]  ;;  %v1073_v45 = vld [vmem:[%s1432_s23 + $0x60] sm:$0xf] }
  0x46   : > { %725 = vmatpush.bf16.msra.mxu0 %v1082_v37  ;;  %v1150_v46 = vor.u32 %v1190_v43, %v1147_v44  ;;  %v1173_v47 = vld [vmem:[%s1432_s23 + $0x64] sm:$0xf0]  ;;  %v1137_v48 = vld [vmem:[%s1432_s23 + $0xe0] sm:$0xf]  ;;  %v1172_v52 = vld [vmem:[%s1432_s23 + $0x64] sm:$0xf] }
  0x47   : > { %v1189_v49 = vld [vmem:[%s1432_s23 + $0xe4] sm:$0xf0]  ;;  %739 = vmatpush.bf16.msra.mxu1 %v1146_v41  ;;  %753 = vmatpush.bf16.msra.mxu2 %v1086_v42  ;;  %v1074_v50 = vor.u32 %v1173_v47, %v1073_v45  ;;  %v1075_v53 = vld [vmem:[%s1432_s23 + $0x68] sm:$0xf0]  ;;  %v1188_v54 = vld [vmem:[%s1432_s23 + $0xe4] sm:$0xf] }
  0x48   : > { %v1138_v51 = vor.u32 %v1189_v49, %v1137_v48  ;;  %767 = vmatpush.bf16.msra.mxu3 %v1150_v46  ;;  %v1078_v55 = vor.u32 %v1172_v52, %v1075_v53  ;;  %v1139_v56 = vld [vmem:[%s1432_s23 + $0xe8] sm:$0xf0]  ;;  %v1065_v57 = vld [vmem:[%s1432_s23 + $0x50] sm:$0xf]  ;;  %v1171_v58 = vld [vmem:[%s1432_s23 + $0x54] sm:$0xf0] }
  0x49   : > { %v1142_v59 = vor.u32 %v1188_v54, %v1139_v56  ;;  %v1129_v60 = vld [vmem:[%s1432_s23 + $0xd0] sm:$0xf]  ;;  %v1187_v61 = vld [vmem:[%s1432_s23 + $0xd4] sm:$0xf0]  ;;  %v1170_v62 = vld [vmem:[%s1432_s23 + $0x54] sm:$0xf]  ;;  %v1066_v63 = vor.u32 %v1171_v58, %v1065_v57 }
  0x4a   : > { %726 = vmatpush.bf16.msra.mxu0 %v1074_v50  ;;  %v1067_v0 = vld [vmem:[%s1432_s23 + $0x58] sm:$0xf0]  ;;  %v1186_v1 = vld [vmem:[%s1432_s23 + $0xd4] sm:$0xf]  ;;  %v1130_v3 = vor.u32 %v1187_v61, %v1129_v60  ;;  %v1057_v5 = vld [vmem:[%s1432_s23 + $0x40] sm:$0xf] }
  0x4b   : > { %v1131_v2 = vld [vmem:[%s1432_s23 + $0xd8] sm:$0xf0]  ;;  %740 = vmatpush.bf16.msra.mxu1 %v1138_v51  ;;  %754 = vmatpush.bf16.msra.mxu2 %v1078_v55  ;;  %v1070_v4 = vor.u32 %v1170_v62, %v1067_v0  ;;  %v1169_v6 = vld [vmem:[%s1432_s23 + $0x44] sm:$0xf0]  ;;  %v1121_v7 = vld [vmem:[%s1432_s23 + $0xc0] sm:$0xf] }
  0x4c   : > { %768 = vmatpush.bf16.msra.mxu3 %v1142_v59  ;;  %v1134_v8 = vor.u32 %v1186_v1, %v1131_v2  ;;  %v1185_v9 = vld [vmem:[%s1432_s23 + $0xc4] sm:$0xf0]  ;;  %v1168_v10 = vld [vmem:[%s1432_s23 + $0x44] sm:$0xf]  ;;  %v1059_v11 = vld [vmem:[%s1432_s23 + $0x48] sm:$0xf0]  ;;  %v1058_v14 = vor.u32 %v1169_v6, %v1057_v5 }
  0x4d   : > { %v1184_v12 = vld [vmem:[%s1432_s23 + $0xc4] sm:$0xf]  ;;  %v1123_v13 = vld [vmem:[%s1432_s23 + $0xc8] sm:$0xf0]  ;;  %v1122_v15 = vor.u32 %v1185_v9, %v1121_v7  ;;  %v1062_v16 = vor.u32 %v1168_v10, %v1059_v11  ;;  %v1049_v17 = vld [vmem:[%s1432_s23 + $0x30] sm:$0xf] }
  0x4e   : > { %727 = vmatpush.bf16.msra.mxu0 %v1066_v63  ;;  %v1167_v18 = vld [vmem:[%s1432_s23 + $0x34] sm:$0xf0]  ;;  %v1113_v19 = vld [vmem:[%s1432_s23 + $0xb0] sm:$0xf]  ;;  %v1126_v20 = vor.u32 %v1184_v12, %v1123_v13  ;;  %v1166_v22 = vld [vmem:[%s1432_s23 + $0x34] sm:$0xf] }
  0x4f   : > { %741 = vmatpush.bf16.msra.mxu1 %v1130_v3  ;;  %755 = vmatpush.bf16.msra.mxu2 %v1070_v4  ;;  %v1183_v21 = vld [vmem:[%s1432_s23 + $0xb4] sm:$0xf0]  ;;  %v1051_v23 = vld [vmem:[%s1432_s23 + $0x38] sm:$0xf0]  ;;  %v1182_v24 = vld [vmem:[%s1432_s23 + $0xb4] sm:$0xf]  ;;  %v1050_v26 = vor.u32 %v1167_v18, %v1049_v17 }
  0x50   : > { %769 = vmatpush.bf16.msra.mxu3 %v1134_v8  ;;  %v1115_v25 = vld [vmem:[%s1432_s23 + $0xb8] sm:$0xf0]  ;;  %v1114_v27 = vor.u32 %v1183_v21, %v1113_v19  ;;  %v1054_v28 = vor.u32 %v1166_v22, %v1051_v23  ;;  %v1041_v29 = vld [vmem:[%s1432_s23 + $0x20] sm:$0xf]  ;;  %v1165_v30 = vld [vmem:[%s1432_s23 + $0x24] sm:$0xf0] }
  0x51   : > { %v1105_v31 = vld [vmem:[%s1432_s23 + $0xa0] sm:$0xf]  ;;  %v1118_v32 = vor.u32 %v1182_v24, %v1115_v25  ;;  %v1181_v33 = vld [vmem:[%s1432_s23 + $0xa4] sm:$0xf0]  ;;  %v1164_v34 = vld [vmem:[%s1432_s23 + $0x24] sm:$0xf]  ;;  %v1042_v38 = vor.u32 %v1165_v30, %v1041_v29 }
  0x52   : > { %728 = vmatpush.bf16.msra.mxu0 %v1058_v14  ;;  %v1043_v35 = vld [vmem:[%s1432_s23 + $0x28] sm:$0xf0]  ;;  %v1180_v36 = vld [vmem:[%s1432_s23 + $0xa4] sm:$0xf]  ;;  %v1106_v39 = vor.u32 %v1181_v33, %v1105_v31  ;;  %v1033_v41 = vld [vmem:[%s1432_s23 + $0x10] sm:$0xf] }
  0x53   : > { %742 = vmatpush.bf16.msra.mxu1 %v1122_v15  ;;  %756 = vmatpush.bf16.msra.mxu2 %v1062_v16  ;;  %v1107_v37 = vld [vmem:[%s1432_s23 + $0xa8] sm:$0xf0]  ;;  %v1046_v40 = vor.u32 %v1164_v34, %v1043_v35  ;;  %v1163_v42 = vld [vmem:[%s1432_s23 + $0x14] sm:$0xf0]  ;;  %v1097_v43 = vld [vmem:[%s1432_s23 + $0x90] sm:$0xf] }
  0x54   : > { %770 = vmatpush.bf16.msra.mxu3 %v1126_v20  ;;  %v1110_v44 = vor.u32 %v1180_v36, %v1107_v37  ;;  %v1179_v45 = vld [vmem:[%s1432_s23 + $0x94] sm:$0xf0]  ;;  %v1162_v46 = vld [vmem:[%s1432_s23 + $0x14] sm:$0xf]  ;;  %v1035_v47 = vld [vmem:[%s1432_s23 + $0x18] sm:$0xf0]  ;;  %v1034_v50 = vor.u32 %v1163_v42, %v1033_v41 }
  0x55   : > { %v1178_v48 = vld [vmem:[%s1432_s23 + $0x94] sm:$0xf]  ;;  %v1099_v49 = vld [vmem:[%s1432_s23 + $0x98] sm:$0xf0]  ;;  %v1098_v51 = vor.u32 %v1179_v45, %v1097_v43  ;;  %v1038_v52 = vor.u32 %v1162_v46, %v1035_v47  ;;  %v1025_v53 = vld [vmem:[%s1432_s23] sm:$0xf] }
  0x56   : > { %729 = vmatpush.bf16.msra.mxu0 %v1050_v26  ;;  %v1161_v54 = vld [vmem:[%s1432_s23 + $0x4] sm:$0xf0]  ;;  %v1089_v55 = vld [vmem:[%s1432_s23 + $0x80] sm:$0xf]  ;;  %v1102_v56 = vor.u32 %v1178_v48, %v1099_v49  ;;  %v1160_v58 = vld [vmem:[%s1432_s23 + $0x4] sm:$0xf] }
  0x57   : > { %743 = vmatpush.bf16.msra.mxu1 %v1114_v27  ;;  %757 = vmatpush.bf16.msra.mxu2 %v1054_v28  ;;  %v1177_v57 = vld [vmem:[%s1432_s23 + $0x84] sm:$0xf0]  ;;  %v1027_v59 = vld [vmem:[%s1432_s23 + $0x8] sm:$0xf0]  ;;  %v1176_v60 = vld [vmem:[%s1432_s23 + $0x84] sm:$0xf]  ;;  %v1026_v62 = vor.u32 %v1161_v54, %v1025_v53 }
  0x58   : > { %771 = vmatpush.bf16.msra.mxu3 %v1118_v32  ;;  %v1091_v61 = vld [vmem:[%s1432_s23 + $0x88] sm:$0xf0]  ;;  %v1017_v63 = vld [vmem:[%s1541_s0] sm:$0xf]  ;;  %v1159_v0 = vld [vmem:[%s1541_s0 + $0x4] sm:$0xf0]  ;;  %v1090_v1 = vor.u32 %v1177_v57, %v1089_v55  ;;  %v1030_v2 = vor.u32 %v1160_v58, %v1027_v59 }
  0x59   : > { %v1158_v3 = vld [vmem:[%s1541_s0 + $0x4] sm:$0xf]  ;;  %v1019_v4 = vld [vmem:[%s1541_s0 + $0x8] sm:$0xf0]  ;;  %v1094_v5 = vor.u32 %v1176_v60, %v1091_v61  ;;  %v1018_v6 = vor.u32 %v1159_v0, %v1017_v63  ;;  %s1555_s8 = smov (!%p501_p11, %s1014_s8), 7  ;;  %s1192_s14 = sshll.u32 (%p1337_p6), %s1263_s17, 3 }
  0x5a   : > { %730 = vmatpush.bf16.msra.mxu0 %v1042_v38  ;;  %v1022_v7 = vor.u32 %v1158_v3, %v1019_v4  ;;  %s503_s11 = scalar_lea.vmem %s1543_s2, %s1555_s8  ;;  %v806_v13 = vld [vmem:[%s446_s13] sm:$0xff]  ;;  %v807_v26 = vld [vmem:[%s446_s13 + $0x8] sm:$0xff]  ;;  %s836_s23 = scalar_lea.vmem (%p1337_p6), %s1545_s4, %s1192_s14 }
  0x5b   : > { %744 = vmatpush.bf16.msra.mxu1 %v1106_v39  ;;  %758 = vmatpush.bf16.msra.mxu2 %v1046_v40  ;;  %v796_v8 = vld [vmem:[%s503_s11] sm:$0x3]  ;;  %v808_v15 = vunpack.c.l.bf16 %v806_v13  ;;  %v809_v22 = vunpack.c.h.bf16 %v806_v13  ;;  %v810_v31 = vunpack.c.l.bf16 %v807_v26  ;;  %v811_v36 = vunpack.c.h.bf16 %v807_v26 }
  0x5c   : > { %772 = vmatpush.bf16.msra.mxu3 %v1110_v44  ;;  %v798_v11 = vperm.slane %v796_v8, 0  ;;  %v799_v17 = vperm.slane %v796_v8, 1 }
  0x5e   : > { %731 = vmatpush.bf16.msra.mxu0 %v1034_v50 }
  0x5f   : > { %745 = vmatpush.bf16.msra.mxu1 %v1098_v51  ;;  %759 = vmatpush.bf16.msra.mxu2 %v1038_v52 }
  0x60   : > { %773 = vmatpush.bf16.msra.mxu3 %v1102_v56 }
  0x62   : > { %732 = vmatpush.bf16.msra.mxu0 %v1026_v62 }
  0x63   : > { %746 = vmatpush.bf16.msra.mxu1 %v1090_v1  ;;  %760 = vmatpush.bf16.msra.mxu2 %v1030_v2 }
  0x64   : > { %774 = vmatpush.bf16.msra.mxu3 %v1094_v5 }
  0x65   : > { %733 = vmatmul.bf16.vlgmr.msra.gmra.mxu0 %v1018_v6 }
  0x66   : > { %747 = vmatmul.bf16.vlgmr.msra.gmra.mxu1 %v1022_v7  ;;  %761 = vmatmul.bf16.vlgmr.msra.gmra.mxu2 %v1018_v6 }
  0x67   : > { %775 = vmatmul.bf16.vlgmr.msra.gmra.mxu3 %v1022_v7 }
  0xe2   : > { %v734_v9 = vpop.f32.mrf.mxu0 }
  0xe3   : > { %v748_v10 = vpop.f32.mrf.mxu1 }
  0xe4   : > { %v749_v12 = vadd.f32 %v748_v10, %v734_v9 }
  0xe6   : > { %v802_v14 = vadd.f32 %v798_v11, %v749_v12 }
  0xe8   : > { %v812_v20 = vadd.f32 %v808_v15, %v802_v14 }
  0xe9   : > { %v762_v16 = vpop.f32.mrf.mxu2 }
  0xea   : > { %v776_v18 = vpop.f32.mrf.mxu3  ;;  %v736_v19 = vpop.f32.mrf.mxu0  ;;  %v816_v27 = vmax.f32 %v812_v20, 0.0 }
  0xeb   : > { %v777_v21 = vadd.f32 %v776_v18, %v762_v16  ;;  %v750_v23 = vpop.f32.mrf.mxu1 }
  0xec   : > { %v751_v25 = vadd.f32 %v750_v23, %v736_v19 }
  0xed   : > { %v803_v24 = vadd.f32 %v799_v17, %v777_v21 }
  0xee   : > { %v804_v30 = vadd.f32 %v798_v11, %v751_v25 }
  0xef   : > { %v813_v28 = vadd.f32 %v809_v22, %v803_v24 }
  0xf0   : > { %v814_v37 = vadd.f32 %v810_v31, %v804_v30 }
  0xf1   : > { %v817_v29 = vmax.f32 %v813_v28, 0.0  ;;  %v764_v32 = vpop.f32.mrf.mxu2 }
  0xf2   : > { %v778_v33 = vpop.f32.mrf.mxu3  ;;  %v818_v40 = vmax.f32 %v814_v37, 0.0 }
  0xf3   : > { %v820_v34 = vpack.c.bf16 %v817_v29, %v816_v27  ;;  %v779_v35 = vadd.f32 %v778_v33, %v764_v32 }
  0xf5   : > { %822 = vst [vmem:[%s485_s15] sm:$0xff] %v820_v34  ;;  %v805_v38 = vadd.f32 %v799_v17, %v779_v35 }
  0xf7   : > { %v815_v39 = vadd.f32 %v811_v36, %v805_v38 }
  0xf9   : > { %v819_v41 = vmax.f32 %v815_v39, 0.0  ;;  %830 = sbr.rel (!%p1337_p6) target bundleno = 262 (0x106), region = 124 }
  0xfb   : > { %v821_v42 = vpack.c.bf16 %v819_v41, %v818_v40 }
  0xfc   : > { %v867_v43 = vld [vmem:[%s485_s15] sm:$0xff] (%p1337_p6) }
  0xfd   : > { %823 = vst [vmem:[%s485_s15 + $0x8] sm:$0xff] %v821_v42 }
  0xfe   : > { %868 = vst [vmem:[%s836_s23] sm:$0xff] %v867_v43 }
 0x104   : > { %v869_v44 = vld [vmem:[%s485_s15 + $0x8] sm:$0xff] }
 0x105   : > { %870 = vst [vmem:[%s836_s23 + $0x20] sm:$0xff] %v869_v44 }
 0x106 PF: > { %s14_s19 = sadd.s32 1, %s1271_s19   ;;  %s1548_s15 = smov %s1259_s16 }
 0x107   : > { %p11_p12 = scmp.ge.s32.totalorder %s14_s19, 6   ;;  %s1549_s16 = smov %s1342_s26 }
 0x108   : > { %s1550_s17 = smov %s1267_s18  ;;  %s1551_s18 = smov %s1553_s20 }
 0x109   :  { %13 = sbr.rel (!%p11_p12) target bundleno = 3 (0x3), region = 207 }

// kernel: _lambda_.73
= control target key start
LH: loop header
LB: loop body
LE: loop exit
PB: predicated region body
PF: predicated region fallthrough
CT: control target
= control target key end

     0   :  { %s1448_s12 = smov 0   ;;  %s1450_s13 = smov 0   ;;  %s1680_s0 = inlined_call_operand.vmem [shape: bf16[16,1024], index: 0, kind: input, shape index: {}]   ;;  %s1681_s1 = inlined_call_operand.vmem [shape: bf16[1024,256], index: 1, kind: input, shape index: {}]   ;;  %s1682_s2 = inlined_call_operand.vmem [shape: f32[1,256], index: 2, kind: input, shape index: {}]   ;;  %s1683_s3 = inlined_call_operand.vmem [shape: bf16[16,256], index: 3, kind: output, shape index: {}]  }
   0x1   :  { %s1452_s14 = smov 0   ;;  %s1454_s15 = smov 0  }
   0x2   :  { %s1456_s16 = smov 0  }
   0x3 LB: > { %s25_s17 = sadd.s32 1, %s1421_s15  ;;  %p48_p1 = scmp.ne.s32.totalorder %s1413_s13, %s1409_s12  ;;  %s1425_s16 = sphi %s1456_s16, %s13_s16   ;;  %s1421_s15 = sphi %s1454_s15, %s1687_s15   ;;  %s1417_s14 = sphi %s1452_s14, %s1686_s14   ;;  %s1413_s13 = sphi %s1450_s13, %s1685_s13   ;;  %s1409_s12 = sphi %s1448_s12, %s1684_s12  }
   0x4   : > { %p26_p0 = scmp.ge.s32.totalorder %s25_s17, 2  ;;  %p49_p2 = scmp.eq.s32.totalorder %s1425_s16, 0 }
   0x5   : > { %s41_s19 = sadd.s32 1, %s1413_s13  ;;  %p989_p5 = scmp.ge.s32.totalorder %s1425_s16, 2 }
   0x6   : > { %s1689_s17 = smov (%p26_p0, %s25_s17), 0  ;;  %p50_p3 = por %p49_p2, %p48_p1 }
   0x7   : > { %s37_s18 = ssub.s32 %s1421_s15, %s1689_s17  ;;  %164 = sbr.rel (%p989_p5) target bundleno = 20 (0x14), region = 20 }
   0x8   : > { %p39_p4 = scmp.eq.s32.totalorder %s37_s18, 0 }
   0xa   : > { %s1483_s20 = scalar_select %p39_p4, %s1413_s13, %s41_s19  }
   0xc   : > { %167 = sbr.rel (!%p50_p3) target bundleno = 20 (0x14), region = 24  ;;  %s169_s21 = sand.u32 (%p50_p3), 1, %s1413_s13  }
   0xd   : > { %s1276_s22 = sshll.u32 (%p50_p3), %s1421_s15, 4  ;;  %s990_s23 = sshll.u32 (%p50_p3), %s169_s21, 5 }
   0xe   : > { %s177_s26 = scalar_lea.vmem (%p50_p3), %s1680_s0, %s1276_s22  ;;  %s171_s27 = scalar_lea.vmem (%p50_p3), [#allocation3], %s990_s23 }
   0xf   : > { %v190_v0 = vld [vmem:[%s177_s26] sm:$0xff] (%p50_p3)  ;;  %v192_v1 = vld [vmem:[%s177_s26 + $0x8] sm:$0xff] (%p50_p3) }
  0x10   : > { %v194_v2 = vld [vmem:[%s177_s26 + $0x20] sm:$0xff] (%p50_p3)  ;;  %191 = vst [vmem:[%s171_s27] sm:$0xff] (%p50_p3), %v190_v0  ;;  %v196_v3 = vld [vmem:[%s177_s26 + $0x28] sm:$0xff] (%p50_p3) }
  0x11   : > { %193 = vst [vmem:[%s171_s27 + $0x8] sm:$0xff] %v192_v1 }
  0x12   : > { %195 = vst [vmem:[%s171_s27 + $0x10] sm:$0xff] %v194_v2 }
  0x13   : > { %197 = vst [vmem:[%s171_s27 + $0x18] sm:$0xff] %v196_v3 }
  0x14 PF: > { %p993_p6 = scmp.ge.s32.totalorder %s1425_s16, 1  ;;  %p217_p7 = scmp.lt.s32.totalorder %s1425_s16, 3 }
  0x16   : > { %p218_p8 = pnand %p993_p6, %p217_p7 }
  0x17   : > { %s224_s28 = sand.u32 (!%p218_p8), 1, %s1409_s12   ;;  %s995_s29 = sshll.u32 (!%p218_p8), %s1417_s14, 6 }
  0x18   : > { %221 = sbr.rel (%p218_p8) target bundleno = 268 (0x10c), region = 51  ;;  %s994_s30 = sshll.u32 (!%p218_p8), %s224_s28, 5 }
  0x19   : > { %p270_p9 = scmp.lt.s32.totalorder (!%p218_p8), %s995_s29, 127  ;;  %s1500_s8 = scalar_lea.vmem (!%p218_p8), [#allocation3], %s994_s30 }
  0x1a   : > { %p998_p10 = scmp.ne.s32.totalorder (!%p218_p8), %s1417_s14, 0 }
  0x1d   : > { %s1691_s29 = smov (!%p270_p9, %s995_s29), 127  ;;  %300 = sbr.rel (%p998_p10) target bundleno = 39 (0x27), region = 59 }
  0x1e   : > { %s1277_s4 = sshll.u32 %s1691_s29, 3 }
  0x1f   : > { %s1498_s7 = scalar_lea.vmem %s1681_s1, %s1277_s4 }
  0x22   : > { %v1427_v4 = vmov 0.0  }
  0x23   : > { %301 = vst [vmem:[#allocation2 + $0x10] sm:$0xff] %v1427_v4 }
  0x24   : > { %302 = vst [vmem:[#allocation2] sm:$0xff] %v1427_v4 }
  0x25   : > { %303 = vst [vmem:[#allocation2 + $0x18] sm:$0xff] %v1427_v4 }
  0x26   : > { %304 = vst [vmem:[#allocation2 + $0x8] sm:$0xff] %v1427_v4 }
  0x27 PF: > { %v1073_v5 = vld [vmem:[%s1498_s7 + $0x70] sm:$0xf]  ;;  %v1297_v6 = vld [vmem:[%s1498_s7 + $0x74] sm:$0xf0]  ;;  %v1065_v16 = vld [vmem:[%s1498_s7 + $0x60] sm:$0xf] }
  0x28   : > { %v1137_v7 = vld [vmem:[%s1498_s7 + $0xf0] sm:$0xf]  ;;  %v1074_v8 = vor.u32 %v1297_v6, %v1073_v5  ;;  %v1313_v9 = vld [vmem:[%s1498_s7 + $0xf4] sm:$0xf0]  ;;  %v1295_v18 = vld [vmem:[%s1498_s7 + $0x64] sm:$0xf0] }
  0x29   : > { %v1201_v10 = vld [vmem:[%s1498_s7 + $0x170] sm:$0xf]  ;;  %v1329_v11 = vld [vmem:[%s1498_s7 + $0x174] sm:$0xf0]  ;;  %v1138_v12 = vor.u32 %v1313_v9, %v1137_v7  ;;  %v1129_v19 = vld [vmem:[%s1498_s7 + $0xe0] sm:$0xf]  ;;  %v1066_v21 = vor.u32 %v1295_v18, %v1065_v16 }
  0x2a   : > { %v1202_v13 = vor.u32 %v1329_v11, %v1201_v10  ;;  %v1265_v14 = vld [vmem:[%s1498_s7 + $0x1f0] sm:$0xf]  ;;  %v1345_v15 = vld [vmem:[%s1498_s7 + $0x1f4] sm:$0xf0]  ;;  %717 = vmatpush.bf16.msra.mxu0 %v1074_v8  ;;  %v1311_v20 = vld [vmem:[%s1498_s7 + $0xe4] sm:$0xf0] }
  0x2b   : > { %v1266_v17 = vor.u32 %v1345_v15, %v1265_v14  ;;  %731 = vmatpush.bf16.msra.mxu1 %v1138_v12  ;;  %v1130_v22 = vor.u32 %v1311_v20, %v1129_v19  ;;  %v1193_v23 = vld [vmem:[%s1498_s7 + $0x160] sm:$0xf]  ;;  %v1327_v24 = vld [vmem:[%s1498_s7 + $0x164] sm:$0xf0]  ;;  %v1057_v28 = vld [vmem:[%s1498_s7 + $0x50] sm:$0xf] }
  0x2c   : > { %745 = vmatpush.bf16.msra.mxu2 %v1202_v13  ;;  %v1257_v25 = vld [vmem:[%s1498_s7 + $0x1e0] sm:$0xf]  ;;  %v1194_v26 = vor.u32 %v1327_v24, %v1193_v23  ;;  %v1343_v27 = vld [vmem:[%s1498_s7 + $0x1e4] sm:$0xf0]  ;;  %v1293_v29 = vld [vmem:[%s1498_s7 + $0x54] sm:$0xf0] }
  0x2d   : > { %759 = vmatpush.bf16.msra.mxu3 %v1266_v17  ;;  %v1258_v30 = vor.u32 %v1343_v27, %v1257_v25  ;;  %v1121_v31 = vld [vmem:[%s1498_s7 + $0xd0] sm:$0xf]  ;;  %v1309_v32 = vld [vmem:[%s1498_s7 + $0xd4] sm:$0xf0]  ;;  %v1058_v34 = vor.u32 %v1293_v29, %v1057_v28  ;;  %v1049_v40 = vld [vmem:[%s1498_s7 + $0x40] sm:$0xf] }
  0x2e   : > { %v1185_v33 = vld [vmem:[%s1498_s7 + $0x150] sm:$0xf]  ;;  %718 = vmatpush.bf16.msra.mxu0 %v1066_v21  ;;  %v1325_v35 = vld [vmem:[%s1498_s7 + $0x154] sm:$0xf0]  ;;  %v1122_v38 = vor.u32 %v1309_v32, %v1121_v31  ;;  %v1291_v41 = vld [vmem:[%s1498_s7 + $0x44] sm:$0xf0] }
  0x2f   : > { %v1249_v36 = vld [vmem:[%s1498_s7 + $0x1d0] sm:$0xf]  ;;  %v1341_v37 = vld [vmem:[%s1498_s7 + $0x1d4] sm:$0xf0]  ;;  %732 = vmatpush.bf16.msra.mxu1 %v1130_v22  ;;  %v1186_v39 = vor.u32 %v1325_v35, %v1185_v33  ;;  %v1113_v42 = vld [vmem:[%s1498_s7 + $0xc0] sm:$0xf]  ;;  %v1050_v49 = vor.u32 %v1291_v41, %v1049_v40 }
  0x30   : > { %746 = vmatpush.bf16.msra.mxu2 %v1194_v26  ;;  %v1250_v43 = vor.u32 %v1341_v37, %v1249_v36  ;;  %v1307_v44 = vld [vmem:[%s1498_s7 + $0xc4] sm:$0xf0]  ;;  %v1177_v45 = vld [vmem:[%s1498_s7 + $0x140] sm:$0xf]  ;;  %v1041_v52 = vld [vmem:[%s1498_s7 + $0x30] sm:$0xf] }
  0x31   : > { %760 = vmatpush.bf16.msra.mxu3 %v1258_v30  ;;  %v1323_v46 = vld [vmem:[%s1498_s7 + $0x144] sm:$0xf0]  ;;  %v1241_v47 = vld [vmem:[%s1498_s7 + $0x1c0] sm:$0xf]  ;;  %v1114_v50 = vor.u32 %v1307_v44, %v1113_v42  ;;  %v1289_v53 = vld [vmem:[%s1498_s7 + $0x34] sm:$0xf0] }
  0x32   : > { %v1339_v48 = vld [vmem:[%s1498_s7 + $0x1c4] sm:$0xf0]  ;;  %719 = vmatpush.bf16.msra.mxu0 %v1058_v34  ;;  %v1178_v51 = vor.u32 %v1323_v46, %v1177_v45  ;;  %v1105_v54 = vld [vmem:[%s1498_s7 + $0xb0] sm:$0xf]  ;;  %v1305_v56 = vld [vmem:[%s1498_s7 + $0xb4] sm:$0xf0]  ;;  %v1042_v61 = vor.u32 %v1289_v53, %v1041_v52 }
  0x33   : > { %733 = vmatpush.bf16.msra.mxu1 %v1122_v38  ;;  %v1242_v55 = vor.u32 %v1339_v48, %v1241_v47  ;;  %v1169_v57 = vld [vmem:[%s1498_s7 + $0x130] sm:$0xf]  ;;  %v1321_v58 = vld [vmem:[%s1498_s7 + $0x134] sm:$0xf0]  ;;  %v1106_v62 = vor.u32 %v1305_v56, %v1105_v54  ;;  %v1033_v0 = vld [vmem:[%s1498_s7 + $0x20] sm:$0xf] }
  0x34   : > { %747 = vmatpush.bf16.msra.mxu2 %v1186_v39  ;;  %v1233_v59 = vld [vmem:[%s1498_s7 + $0x1b0] sm:$0xf]  ;;  %v1337_v60 = vld [vmem:[%s1498_s7 + $0x1b4] sm:$0xf0]  ;;  %v1170_v63 = vor.u32 %v1321_v58, %v1169_v57  ;;  %v1287_v1 = vld [vmem:[%s1498_s7 + $0x24] sm:$0xf0] }
  0x35   : > { %761 = vmatpush.bf16.msra.mxu3 %v1250_v43  ;;  %v1097_v2 = vld [vmem:[%s1498_s7 + $0xa0] sm:$0xf]  ;;  %v1234_v3 = vor.u32 %v1337_v60, %v1233_v59  ;;  %v1303_v4 = vld [vmem:[%s1498_s7 + $0xa4] sm:$0xf0]  ;;  %v1034_v9 = vor.u32 %v1287_v1, %v1033_v0  ;;  %v1025_v12 = vld [vmem:[%s1498_s7 + $0x10] sm:$0xf] }
  0x36   : > { %720 = vmatpush.bf16.msra.mxu0 %v1050_v49  ;;  %v1161_v5 = vld [vmem:[%s1498_s7 + $0x120] sm:$0xf]  ;;  %v1319_v6 = vld [vmem:[%s1498_s7 + $0x124] sm:$0xf0]  ;;  %v1098_v10 = vor.u32 %v1303_v4, %v1097_v2  ;;  %v1285_v13 = vld [vmem:[%s1498_s7 + $0x14] sm:$0xf0] }
  0x37   : > { %734 = vmatpush.bf16.msra.mxu1 %v1114_v50  ;;  %v1225_v7 = vld [vmem:[%s1498_s7 + $0x1a0] sm:$0xf]  ;;  %v1335_v8 = vld [vmem:[%s1498_s7 + $0x1a4] sm:$0xf0]  ;;  %v1162_v11 = vor.u32 %v1319_v6, %v1161_v5  ;;  %v1089_v14 = vld [vmem:[%s1498_s7 + $0x90] sm:$0xf]  ;;  %v1026_v22 = vor.u32 %v1285_v13, %v1025_v12 }
  0x38   : > { %748 = vmatpush.bf16.msra.mxu2 %v1178_v51  ;;  %v1226_v15 = vor.u32 %v1335_v8, %v1225_v7  ;;  %v1301_v16 = vld [vmem:[%s1498_s7 + $0x94] sm:$0xf0]  ;;  %v1153_v17 = vld [vmem:[%s1498_s7 + $0x110] sm:$0xf]  ;;  %v1017_v21 = vld [vmem:[%s1498_s7] sm:$0xf] }
  0x39   : > { %762 = vmatpush.bf16.msra.mxu3 %v1242_v55  ;;  %v1317_v18 = vld [vmem:[%s1498_s7 + $0x114] sm:$0xf0]  ;;  %v1217_v19 = vld [vmem:[%s1498_s7 + $0x190] sm:$0xf]  ;;  %v1283_v23 = vld [vmem:[%s1498_s7 + $0x4] sm:$0xf0]  ;;  %v1090_v26 = vor.u32 %v1301_v16, %v1089_v14 }
  0x3a   : > { %721 = vmatpush.bf16.msra.mxu0 %v1042_v61  ;;  %v1333_v20 = vld [vmem:[%s1498_s7 + $0x194] sm:$0xf0]  ;;  %v1081_v24 = vld [vmem:[%s1498_s7 + $0x80] sm:$0xf]  ;;  %v1299_v25 = vld [vmem:[%s1498_s7 + $0x84] sm:$0xf0]  ;;  %v1154_v27 = vor.u32 %v1317_v18, %v1153_v17  ;;  %v1018_v38 = vor.u32 %v1283_v23, %v1017_v21 }
  0x3b   : > { %735 = vmatpush.bf16.msra.mxu1 %v1106_v62  ;;  %v1145_v28 = vld [vmem:[%s1498_s7 + $0x100] sm:$0xf]  ;;  %v1315_v29 = vld [vmem:[%s1498_s7 + $0x104] sm:$0xf0]  ;;  %v1218_v31 = vor.u32 %v1333_v20, %v1217_v19  ;;  %v1296_v33 = vld [vmem:[%s1498_s7 + $0x74] sm:$0xf]  ;;  %v1082_v42 = vor.u32 %v1299_v25, %v1081_v24 }
  0x3c   : > { %749 = vmatpush.bf16.msra.mxu2 %v1170_v63  ;;  %v1209_v30 = vld [vmem:[%s1498_s7 + $0x180] sm:$0xf]  ;;  %v1331_v32 = vld [vmem:[%s1498_s7 + $0x184] sm:$0xf0]  ;;  %v1075_v34 = vld [vmem:[%s1498_s7 + $0x78] sm:$0xf0]  ;;  %v1146_v43 = vor.u32 %v1315_v29, %v1145_v28 }
  0x3d   : > { %763 = vmatpush.bf16.msra.mxu3 %v1234_v3  ;;  %v1312_v35 = vld [vmem:[%s1498_s7 + $0xf4] sm:$0xf]  ;;  %v1139_v36 = vld [vmem:[%s1498_s7 + $0xf8] sm:$0xf0]  ;;  %v1294_v44 = vld [vmem:[%s1498_s7 + $0x64] sm:$0xf]  ;;  %v1210_v48 = vor.u32 %v1331_v32, %v1209_v30  ;;  %v1078_v49 = vor.u32 %v1296_v33, %v1075_v34 }
  0x3e   : > { %722 = vmatpush.bf16.msra.mxu0 %v1034_v9  ;;  %v1328_v37 = vld [vmem:[%s1498_s7 + $0x174] sm:$0xf]  ;;  %v1203_v39 = vld [vmem:[%s1498_s7 + $0x178] sm:$0xf0]  ;;  %v1067_v45 = vld [vmem:[%s1498_s7 + $0x68] sm:$0xf0]  ;;  %v1142_v54 = vor.u32 %v1312_v35, %v1139_v36 }
  0x3f   : > { %736 = vmatpush.bf16.msra.mxu1 %v1098_v10  ;;  %v1344_v40 = vld [vmem:[%s1498_s7 + $0x1f4] sm:$0xf]  ;;  %v1267_v41 = vld [vmem:[%s1498_s7 + $0x1f8] sm:$0xf0]  ;;  %v1009_v46 = vld [vmem:[%s1500_s8 + $0x8] sm:$0xf]  ;;  %v1206_v55 = vor.u32 %v1328_v37, %v1203_v39  ;;  %v1070_v4 = vor.u32 %v1294_v44, %v1067_v45 }
  0x40   : > { %750 = vmatpush.bf16.msra.mxu2 %v1162_v11  ;;  %v1281_v47 = vld [vmem:[%s1500_s8 + $0x14] sm:$0xf0]  ;;  %v1310_v50 = vld [vmem:[%s1498_s7 + $0xe4] sm:$0xf]  ;;  %v1131_v51 = vld [vmem:[%s1498_s7 + $0xe8] sm:$0xf0]  ;;  %v1270_v59 = vor.u32 %v1344_v40, %v1267_v41 }
  0x41   : > { %764 = vmatpush.bf16.msra.mxu3 %v1226_v15  ;;  %v1326_v52 = vld [vmem:[%s1498_s7 + $0x164] sm:$0xf]  ;;  %v1195_v53 = vld [vmem:[%s1498_s7 + $0x168] sm:$0xf0]  ;;  %v1011_v57 = vld [vmem:[%s1500_s8 + $0x18] sm:$0xf0]  ;;  %v1586_v60 = vor.u32 %v1281_v47, %v1009_v46  ;;  %v1134_v6 = vor.u32 %v1310_v50, %v1131_v51 }
  0x42   : > { %723 = vmatpush.bf16.msra.mxu0 %v1026_v22  ;;  %v1279_v56 = vld [vmem:[%s1500_s8 + $0xc] sm:$0xf]  ;;  %v1001_v58 = vld [vmem:[%s1500_s8] sm:$0xf]  ;;  %v1280_v61 = vld [vmem:[%s1500_s8 + $0xc] sm:$0xf0]  ;;  %v1198_v7 = vor.u32 %v1326_v52, %v1195_v53 }
  0x43   : > { %737 = vmatpush.bf16.msra.mxu1 %v1090_v26  ;;  %v1278_v62 = vld [vmem:[%s1500_s8 + $0x4] sm:$0xf]  ;;  %v1003_v63 = vld [vmem:[%s1500_s8 + $0x10] sm:$0xf0]  ;;  %v1259_v1 = vld [vmem:[%s1498_s7 + $0x1e8] sm:$0xf0]  ;;  %v1593_v2 = vor.u32 %v1279_v56, %v1011_v57  ;;  %v1595_v3 = vor.u32 %v1280_v61, %v1001_v58 }
  0x44   : > { %751 = vmatpush.bf16.msra.mxu2 %v1154_v27  ;;  %v1342_v0 = vld [vmem:[%s1498_s7 + $0x1e4] sm:$0xf]  ;;  %v1597_v5 = vor.u32 %v1278_v62, %v1003_v63  ;;  %v1292_v8 = vld [vmem:[%s1498_s7 + $0x54] sm:$0xf]  ;;  %v1059_v9 = vld [vmem:[%s1498_s7 + $0x58] sm:$0xf0] }
  0x45   : > { %765 = vmatpush.bf16.msra.mxu3 %v1218_v31  ;;  %v1308_v10 = vld [vmem:[%s1498_s7 + $0xd4] sm:$0xf]  ;;  %v1262_v11 = vor.u32 %v1342_v0, %v1259_v1  ;;  %v1123_v12 = vld [vmem:[%s1498_s7 + $0xd8] sm:$0xf0]  ;;  %v1062_v17 = vor.u32 %v1292_v8, %v1059_v9  ;;  %v1290_v20 = vld [vmem:[%s1498_s7 + $0x44] sm:$0xf] }
  0x46   : > { %724 = vmatpush.bf16.msra.mxu0 %v1018_v38  ;;  %v1324_v13 = vld [vmem:[%s1498_s7 + $0x154] sm:$0xf]  ;;  %v1187_v14 = vld [vmem:[%s1498_s7 + $0x158] sm:$0xf0]  ;;  %v1126_v18 = vor.u32 %v1308_v10, %v1123_v12  ;;  %v1051_v21 = vld [vmem:[%s1498_s7 + $0x48] sm:$0xf0] }
  0x47   : > { %738 = vmatpush.bf16.msra.mxu1 %v1082_v42  ;;  %v1340_v15 = vld [vmem:[%s1498_s7 + $0x1d4] sm:$0xf]  ;;  %v1251_v16 = vld [vmem:[%s1498_s7 + $0x1d8] sm:$0xf0]  ;;  %v1190_v19 = vor.u32 %v1324_v13, %v1187_v14  ;;  %v1306_v22 = vld [vmem:[%s1498_s7 + $0xc4] sm:$0xf]  ;;  %v1054_v29 = vor.u32 %v1290_v20, %v1051_v21 }
  0x48   : > { %752 = vmatpush.bf16.msra.mxu2 %v1146_v43  ;;  %v1254_v23 = vor.u32 %v1340_v15, %v1251_v16  ;;  %v1115_v24 = vld [vmem:[%s1498_s7 + $0xc8] sm:$0xf0]  ;;  %v1322_v25 = vld [vmem:[%s1498_s7 + $0x144] sm:$0xf]  ;;  %v1288_v32 = vld [vmem:[%s1498_s7 + $0x34] sm:$0xf] }
  0x49   : > { %766 = vmatpush.bf16.msra.mxu3 %v1210_v48  ;;  %725 = vmatmul.bf16.vlgmr.msra.gmra.mxu0 %v1595_v3  ;;  %v1179_v26 = vld [vmem:[%s1498_s7 + $0x148] sm:$0xf0]  ;;  %v1338_v27 = vld [vmem:[%s1498_s7 + $0x1c4] sm:$0xf]  ;;  %v1118_v30 = vor.u32 %v1306_v22, %v1115_v24  ;;  %v1043_v33 = vld [vmem:[%s1498_s7 + $0x38] sm:$0xf0] }
  0x4a   : > { %773 = vmatpush.bf16.msrb.mxu0 %v1078_v49  ;;  %739 = vmatmul.bf16.vlgmr.msra.gmra.mxu1 %v1597_v5  ;;  %v1243_v28 = vld [vmem:[%s1498_s7 + $0x1c8] sm:$0xf0]  ;;  %v1182_v31 = vor.u32 %v1322_v25, %v1179_v26  ;;  %v1304_v34 = vld [vmem:[%s1498_s7 + $0xb4] sm:$0xf]  ;;  %v1107_v36 = vld [vmem:[%s1498_s7 + $0xb8] sm:$0xf0]  ;;  %v1046_v41 = vor.u32 %v1288_v32, %v1043_v33 }
  0x4b   : > { %787 = vmatpush.bf16.msrb.mxu1 %v1142_v54  ;;  %753 = vmatmul.bf16.vlgmr.msra.gmra.mxu2 %v1586_v60  ;;  %v1246_v35 = vor.u32 %v1338_v27, %v1243_v28  ;;  %v1320_v37 = vld [vmem:[%s1498_s7 + $0x134] sm:$0xf]  ;;  %v1171_v38 = vld [vmem:[%s1498_s7 + $0x138] sm:$0xf0]  ;;  %v1110_v42 = vor.u32 %v1304_v34, %v1107_v36  ;;  %v1286_v44 = vld [vmem:[%s1498_s7 + $0x24] sm:$0xf] }
  0x4c   : > { %801 = vmatpush.bf16.msrb.mxu2 %v1206_v55  ;;  %767 = vmatmul.bf16.vlgmr.msra.gmra.mxu3 %v1593_v2  ;;  %v1336_v39 = vld [vmem:[%s1498_s7 + $0x1b4] sm:$0xf]  ;;  %v1235_v40 = vld [vmem:[%s1498_s7 + $0x1b8] sm:$0xf0]  ;;  %v1174_v43 = vor.u32 %v1320_v37, %v1171_v38  ;;  %v1035_v45 = vld [vmem:[%s1498_s7 + $0x28] sm:$0xf0] }
  0x4d   : > { %815 = vmatpush.bf16.msrb.mxu3 %v1270_v59  ;;  %v1302_v46 = vld [vmem:[%s1498_s7 + $0xa4] sm:$0xf]  ;;  %v1238_v47 = vor.u32 %v1336_v39, %v1235_v40  ;;  %v1099_v48 = vld [vmem:[%s1498_s7 + $0xa8] sm:$0xf0]  ;;  %v1038_v53 = vor.u32 %v1286_v44, %v1035_v45  ;;  %v1284_v56 = vld [vmem:[%s1498_s7 + $0x14] sm:$0xf] }
  0x4e   : > { %774 = vmatpush.bf16.msrb.mxu0 %v1070_v4  ;;  %v1318_v49 = vld [vmem:[%s1498_s7 + $0x124] sm:$0xf]  ;;  %v1163_v50 = vld [vmem:[%s1498_s7 + $0x128] sm:$0xf0]  ;;  %v1102_v54 = vor.u32 %v1302_v46, %v1099_v48  ;;  %v1027_v57 = vld [vmem:[%s1498_s7 + $0x18] sm:$0xf0] }
  0x4f   : > { %788 = vmatpush.bf16.msrb.mxu1 %v1134_v6  ;;  %v1334_v51 = vld [vmem:[%s1498_s7 + $0x1a4] sm:$0xf]  ;;  %v1227_v52 = vld [vmem:[%s1498_s7 + $0x1a8] sm:$0xf0]  ;;  %v1166_v55 = vor.u32 %v1318_v49, %v1163_v50  ;;  %v1300_v58 = vld [vmem:[%s1498_s7 + $0x94] sm:$0xf]  ;;  %v1030_v4 = vor.u32 %v1284_v56, %v1027_v57 }
  0x50   : > { %802 = vmatpush.bf16.msrb.mxu2 %v1198_v7  ;;  %v1230_v59 = vor.u32 %v1334_v51, %v1227_v52  ;;  %v1091_v61 = vld [vmem:[%s1498_s7 + $0x98] sm:$0xf0]  ;;  %v1316_v62 = vld [vmem:[%s1498_s7 + $0x114] sm:$0xf]  ;;  %v1282_v8 = vld [vmem:[%s1498_s7 + $0x4] sm:$0xf] }
  0x51   : > { %816 = vmatpush.bf16.msrb.mxu3 %v1262_v11  ;;  %v1155_v63 = vld [vmem:[%s1498_s7 + $0x118] sm:$0xf0]  ;;  %v1332_v0 = vld [vmem:[%s1498_s7 + $0x194] sm:$0xf]  ;;  %v1094_v6 = vor.u32 %v1300_v58, %v1091_v61  ;;  %v1019_v9 = vld [vmem:[%s1498_s7 + $0x8] sm:$0xf0] }
  0x52   : > { %775 = vmatpush.bf16.msrb.mxu0 %v1062_v17  ;;  %v1219_v1 = vld [vmem:[%s1498_s7 + $0x198] sm:$0xf0]  ;;  %v1158_v7 = vor.u32 %v1316_v62, %v1155_v63  ;;  %v1298_v10 = vld [vmem:[%s1498_s7 + $0x84] sm:$0xf]  ;;  %v1083_v12 = vld [vmem:[%s1498_s7 + $0x88] sm:$0xf0]  ;;  %v1022_v17 = vor.u32 %v1282_v8, %v1019_v9 }
  0x53   : > { %789 = vmatpush.bf16.msrb.mxu1 %v1126_v18  ;;  %v1222_v11 = vor.u32 %v1332_v0, %v1219_v1  ;;  %v1314_v13 = vld [vmem:[%s1498_s7 + $0x104] sm:$0xf]  ;;  %v1147_v14 = vld [vmem:[%s1498_s7 + $0x108] sm:$0xf0]  ;;  %v1086_v18 = vor.u32 %v1298_v10, %v1083_v12  ;;  %v305_v27 = vld [vmem:[#allocation2 + $0x10] sm:$0xff]  ;;  %p1271_p11 = scmp.ne.s32.totalorder %s1417_s14, 1 }
  0x54   : > { %803 = vmatpush.bf16.msrb.mxu2 %v1190_v19  ;;  %v1330_v15 = vld [vmem:[%s1498_s7 + $0x184] sm:$0xf]  ;;  %v1211_v16 = vld [vmem:[%s1498_s7 + $0x188] sm:$0xf0]  ;;  %v1150_v19 = vor.u32 %v1314_v13, %v1147_v14  ;;  %v307_v34 = vld [vmem:[#allocation2 + $0x18] sm:$0xff] }
  0x55   : > { %817 = vmatpush.bf16.msrb.mxu3 %v1254_v23  ;;  %v1214_v20 = vor.u32 %v1330_v15, %v1211_v16  ;;  %v308_v49 = vld [vmem:[#allocation2 + $0x8] sm:$0xff] }
  0x56   : > { %776 = vmatpush.bf16.msrb.mxu0 %v1054_v29 }
  0x57   : > { %790 = vmatpush.bf16.msrb.mxu1 %v1118_v30 }
  0x58   : > { %804 = vmatpush.bf16.msrb.mxu2 %v1182_v31 }
  0x59   : > { %818 = vmatpush.bf16.msrb.mxu3 %v1246_v35 }
  0x5a   : > { %777 = vmatpush.bf16.msrb.mxu0 %v1046_v41  ;;  %v306_v41 = vld [vmem:[#allocation2] sm:$0xff] }
  0x5b   : > { %791 = vmatpush.bf16.msrb.mxu1 %v1110_v42 }
  0x5c   : > { %805 = vmatpush.bf16.msrb.mxu2 %v1174_v43 }
  0x5d   : > { %819 = vmatpush.bf16.msrb.mxu3 %v1238_v47 }
  0x5e   : > { %778 = vmatpush.bf16.msrb.mxu0 %v1038_v53 }
  0x5f   : > { %792 = vmatpush.bf16.msrb.mxu1 %v1102_v54 }
  0x60   : > { %806 = vmatpush.bf16.msrb.mxu2 %v1166_v55 }
  0x61   : > { %820 = vmatpush.bf16.msrb.mxu3 %v1230_v59 }
  0x62   : > { %779 = vmatpush.bf16.msrb.mxu0 %v1030_v4 }
  0x63   : > { %793 = vmatpush.bf16.msrb.mxu1 %v1094_v6 }
  0x64   : > { %807 = vmatpush.bf16.msrb.mxu2 %v1158_v7 }
  0x65   : > { %821 = vmatpush.bf16.msrb.mxu3 %v1222_v11 }
  0x66   : > { %780 = vmatpush.bf16.msrb.mxu0 %v1022_v17 }
  0x67   : > { %794 = vmatpush.bf16.msrb.mxu1 %v1086_v18 }
  0x68   : > { %808 = vmatpush.bf16.msrb.mxu2 %v1150_v19 }
  0x69   : > { %822 = vmatpush.bf16.msrb.mxu3 %v1214_v20  ;;  %781 = vmatmul.bf16.vlgmr.msrb.gmra.mxu0 %v1595_v3 }
  0x6a   : > { %795 = vmatmul.bf16.vlgmr.msrb.gmra.mxu1 %v1597_v5 }
  0x6b   : > { %809 = vmatmul.bf16.vlgmr.msrb.gmra.mxu2 %v1586_v60 }
  0x6c   : > { %823 = vmatmul.bf16.vlgmr.msrb.gmra.mxu3 %v1593_v2 }
  0xc6   : > { %v726_v21 = vpop.f32.mrf.mxu0 }
  0xc7   : > { %v740_v22 = vpop.f32.mrf.mxu1 }
  0xc8   : > { %v741_v23 = vadd.f32 %v740_v22, %v726_v21 }
  0xce   : > { %v754_v24 = vpop.f32.mrf.mxu2  ;;  %v728_v29 = vpop.f32.mrf.mxu0 }
  0xcf   : > { %v755_v25 = vadd.f32 %v754_v24, %v741_v23  ;;  %v768_v26 = vpop.f32.mrf.mxu3  ;;  %v742_v30 = vpop.f32.mrf.mxu1 }
  0xd0   : > { %v743_v32 = vadd.f32 %v742_v30, %v728_v29 }
  0xd1   : > { %v769_v28 = vadd.f32 %v768_v26, %v755_v25 }
  0xd3   : > { %v829_v31 = vadd.f32 %v769_v28, %v305_v27 }
  0xd5   : > { %833 = vst [vmem:[#allocation2 + $0x10] sm:$0xff] %v829_v31 }
  0xd6   : > { %v756_v3 = vpop.f32.mrf.mxu2 }
  0xd7   : > { %v757_v33 = vadd.f32 %v756_v3, %v743_v32  ;;  %v770_v5 = vpop.f32.mrf.mxu3 }
  0xd9   : > { %v771_v60 = vadd.f32 %v770_v5, %v757_v33 }
  0xdb   : > { %v831_v35 = vadd.f32 %v771_v60, %v307_v34 }
  0xdd   : > { %835 = vst [vmem:[#allocation2 + $0x18] sm:$0xff] %v831_v35 }
  0xe6   : > { %v782_v2 = vpop.f32.mrf.mxu0 }
  0xe7   : > { %v796_v36 = vpop.f32.mrf.mxu1 }
  0xe8   : > { %v797_v37 = vadd.f32 %v796_v36, %v782_v2 }
  0xee   : > { %v810_v38 = vpop.f32.mrf.mxu2  ;;  %v784_v43 = vpop.f32.mrf.mxu0 }
  0xef   : > { %v811_v39 = vadd.f32 %v810_v38, %v797_v37  ;;  %v824_v40 = vpop.f32.mrf.mxu3  ;;  %v798_v44 = vpop.f32.mrf.mxu1 }
  0xf0   : > { %v799_v46 = vadd.f32 %v798_v44, %v784_v43 }
  0xf1   : > { %v825_v42 = vadd.f32 %v824_v40, %v811_v39 }
  0xf3   : > { %v830_v45 = vadd.f32 %v825_v42, %v306_v41 }
  0xf5   : > { %834 = vst [vmem:[#allocation2] sm:$0xff] %v830_v45 }
  0xf6   : > { %v812_v47 = vpop.f32.mrf.mxu2 }
  0xf7   : > { %v813_v48 = vadd.f32 %v812_v47, %v799_v46  ;;  %v826_v50 = vpop.f32.mrf.mxu3 }
  0xf9   : > { %v827_v51 = vadd.f32 %v826_v50, %v813_v48  ;;  %840 = sbr.rel (%p1271_p11) target bundleno = 268 (0x10c), region = 63 }
  0xfb   : > { %v832_v52 = vadd.f32 %v827_v51, %v308_v49 }
  0xfd   : > { %836 = vst [vmem:[#allocation2 + $0x8] sm:$0xff] %v832_v52 }
  0xfe   : > { %v841_v53 = vld [vmem:[#allocation2 + $0x10] sm:$0xff]  ;;  %v842_v54 = vld [vmem:[#allocation2] sm:$0xff]  ;;  %v843_v58 = vld [vmem:[#allocation2 + $0x18] sm:$0xff] }
  0xff   : > { %v845_v55 = vld [vmem:[%s1682_s2] sm:$0x3] }
 0x100   : > { %v847_v56 = vperm.slane %v845_v55, 0  ;;  %v848_v57 = vperm.slane %v845_v55, 1 }
 0x102   : > { %v851_v61 = vadd.f32 %v847_v56, %v841_v53  ;;  %v852_v62 = vadd.f32 %v848_v57, %v842_v54  ;;  %v853_v63 = vadd.f32 %v847_v56, %v843_v58 }
 0x104   : > { %v844_v59 = vld [vmem:[#allocation2 + $0x8] sm:$0xff]  ;;  %v855_v1 = vmax.f32 %v851_v61, 0.0  ;;  %v856_v4 = vmax.f32 %v852_v62, 0.0  ;;  %v857_v6 = vmax.f32 %v853_v63, 0.0 }
 0x105   : > { %v854_v0 = vadd.f32 %v848_v57, %v844_v59 }
 0x106   : > { %v859_v8 = vpack.c.bf16 %v856_v4, %v855_v1 }
 0x107   : > { %v858_v7 = vmax.f32 %v854_v0, 0.0 }
 0x108   : > { %861 = vst [vmem:[%s1683_s3] sm:$0xff] %v859_v8 }
 0x109   : > { %v860_v9 = vpack.c.bf16 %v858_v7, %v857_v6 }
 0x10b   : > { %862 = vst [vmem:[%s1683_s3 + $0x8] sm:$0xff] %v860_v9 }
 0x10c PF: > { %s13_s16 = sadd.s32 1, %s1425_s16   ;;  %s1684_s12 = smov %s1413_s13 }
 0x10d   : > { %p10_p12 = scmp.ge.s32.totalorder %s13_s16, 4   ;;  %s1685_s13 = smov %s1483_s20 }
 0x10e   : > { %s1686_s14 = smov %s1421_s15  ;;  %s1687_s15 = smov %s1689_s17 }
 0x10f   :  { %12 = sbr.rel (!%p10_p12) target bundleno = 3 (0x3), region = 104 }

// kernel: _lambda_.88
= control target key start
LH: loop header
LB: loop body
LE: loop exit
PB: predicated region body
PF: predicated region fallthrough
CT: control target
= control target key end

     0   :  { %s379_s6 = smov 0   ;;  %s381_s7 = smov 0   ;;  %s431_s0 = inlined_call_operand.vmem [shape: bf16[2,4,1024], index: 0, kind: input, shape index: {}]   ;;  %s432_s1 = inlined_call_operand.vmem [shape: f32[2,1024], index: 1, kind: output, shape index: {}]  }
   0x1   :  { %s383_s8 = smov 0  }
   0x2 LB: > { %s303_s9 = sadd.s32 4294967295, %s367_s8   ;;  %s396_s10 = sadd.s32 1, %s367_s8   ;;  %s367_s8 = sphi %s383_s8, %s435_s8   ;;  %s363_s7 = sphi %s381_s7, %s434_s7   ;;  %s359_s6 = sphi %s379_s6, %s433_s6  }
   0x3   : > { %s15_s11 = ssub.s32 %s367_s8, %s396_s10  ;;  %s18_s12 = sadd.s32 1, %s363_s7 }
   0x4   : > { %p16_p0 = scmp.eq.s32.totalorder %s15_s11, 0  ;;  %p25_p1 = scmp.ne.s32.totalorder %s363_s7, %s359_s6 }
   0x5   : > { %p26_p2 = scmp.eq.s32.totalorder %s367_s8, 0  ;;  %p306_p4 = scmp.ge.s32.totalorder %s367_s8, 4 }
   0x6   : > { %s405_s13 = scalar_select %p16_p0, %s363_s7, %s18_s12  }
   0x7   : > { %p27_p3 = por %p26_p2, %p25_p1  ;;  %77 = sbr.rel (%p306_p4) target bundleno = 18 (0x12), region = 16 }
   0xc   : > { %80 = sbr.rel (!%p27_p3) target bundleno = 18 (0x12), region = 20  ;;  %s82_s14 = sand.u32 (%p27_p3), 1, %s363_s7  }
   0xd   : > { %s316_s15 = sshll.u32 (%p27_p3), %s367_s8, 2  ;;  %s307_s16 = sshll.u32 (%p27_p3), %s82_s14, 3 }
   0xe   : > { %s87_s19 = scalar_lea.vmem (%p27_p3), %s431_s0, %s316_s15  ;;  %s84_s20 = scalar_lea.vmem (%p27_p3), [#allocation2], %s307_s16 }
   0xf   : > { %v104_v0 = vld [vmem:[%s87_s19] sm:$0xf] (%p27_p3)  ;;  %v106_v1 = vld [vmem:[%s87_s19 + $0x10] sm:$0xf] (%p27_p3) }
  0x10   : > { %105 = vst [vmem:[%s84_s20] sm:$0xf] (%p27_p3), %v104_v0 }
  0x11   : > { %107 = vst [vmem:[%s84_s20 + $0x4] sm:$0xf] %v106_v1 }
  0x12 PF: > { %p310_p5 = scmp.ge.s32.totalorder %s367_s8, 1  ;;  %p134_p6 = scmp.lt.s32.totalorder %s367_s8, 5 }
  0x14   : > { %p135_p7 = pnand %p310_p5, %p134_p6 }
  0x15   : > { %s141_s21 = sand.u32 (!%p135_p7), 1, %s359_s6   ;;  %s312_s24 = sshll.u32 (!%p135_p7), %s303_s9, 1 }
  0x16   : > { %138 = sbr.rel (%p135_p7) target bundleno = 64 (0x40), region = 61  ;;  %s311_s22 = sshll.u32 (!%p135_p7), %s141_s21, 3 }
  0x17   : > { %s143_s23 = scalar_lea.vmem (!%p135_p7), [#allocation2], %s311_s22  ;;  %p162_p8 = scmp.lt.s32.totalorder (!%p135_p7), %s312_s24, 7 }
  0x1b   : > { %v318_v2 = vld [vmem:[%s143_s23] sm:$0xff]   ;;  %vm184_vm0 = vcmask 1043456   ;;  %s437_s24 = smov (!%p162_p8, %s312_s24), 7  ;;  %vm223_vm1 = vcmask 1041408   ;;  %vm231_vm2 = vcmask 1041409   ;;  %vm233_vm3 = vcmask 1043459  }
  0x1c   : > { %v319_v3 = vunpack.c.l.bf16 %v318_v2  ;;  %v320_v4 = vunpack.c.h.bf16 %v318_v2  ;;  %s313_s25 = sshll.u32 %s437_s24, 1  ;;  %vm235_vm4 = vcmask 1045509   ;;  %vm237_vm5 = vcmask 1047559  }
  0x1d   : > { %s165_s28 = scalar_lea.vmem %s432_s1, %s313_s25 }
  0x1e   : > { %173 = vst [vmem:[#allocation1] ss:$2 sm:$0xff] %v319_v3 }
  0x1f   : > { %177 = vst [vmem:[#allocation1 + $0x10] ss:$2 sm:$0xff] %v320_v4 }
  0x25   : > { %v174_v5 = vld.sshfl [vmem:[#allocation1] sm:$0xff pattern:$0x75316420]  ;;  %v175_v6 = vld.sshfl [vmem:[#allocation1 + $0x8] sm:$0xff pattern:$0x75316420] }
  0x26   : > { %v178_v7 = vld.sshfl [vmem:[#allocation1 + $0x10] sm:$0xff pattern:$0x75316420]  ;;  %v179_v8 = vld.sshfl [vmem:[#allocation1 + $0x18] sm:$0xff pattern:$0x75316420] }
  0x27   : > { %v185_v9 = vsel %vm184_vm0, %v174_v5, 0.0  ;;  %v192_v10 = vsel %vm184_vm0, %v175_v6, 0.0  ;;  %v199_v11 = vsel %vm184_vm0, %v178_v7, 0.0  ;;  %v206_v12 = vsel %vm184_vm0, %v179_v8, 0.0 }
  0x28   : > { %v186_v13 = vrot.slane %v185_v9, 4  ;;  %v193_v14 = vrot.slane %v192_v10, 4  ;;  %v200_v15 = vrot.slane %v199_v11, 4  ;;  %v207_v16 = vrot.slane %v206_v12, 4 }
  0x2a   : > { %v187_v17 = vadd.f32 %v186_v13, %v185_v9  ;;  %v194_v18 = vadd.f32 %v193_v14, %v192_v10  ;;  %v201_v19 = vadd.f32 %v200_v15, %v199_v11  ;;  %v208_v20 = vadd.f32 %v207_v16, %v206_v12 }
  0x2c   : > { %v188_v21 = vrot.slane %v187_v17, 2  ;;  %v195_v22 = vrot.slane %v194_v18, 2  ;;  %v202_v23 = vrot.slane %v201_v19, 2  ;;  %v209_v24 = vrot.slane %v208_v20, 2 }
  0x2e   : > { %v189_v25 = vadd.f32 %v188_v21, %v187_v17  ;;  %v196_v26 = vadd.f32 %v195_v22, %v194_v18  ;;  %v203_v27 = vadd.f32 %v202_v23, %v201_v19  ;;  %v210_v28 = vadd.f32 %v209_v24, %v208_v20 }
  0x30   : > { %v190_v29 = vrot.slane %v189_v25, 1  ;;  %v197_v30 = vrot.slane %v196_v26, 1  ;;  %v204_v31 = vrot.slane %v203_v27, 1  ;;  %v211_v32 = vrot.slane %v210_v28, 1 }
  0x32   : > { %v198_v33 = vadd.f32 %v197_v30, %v196_v26  ;;  %v205_v34 = vadd.f32 %v204_v31, %v203_v27  ;;  %v212_v35 = vadd.f32 %v211_v32, %v210_v28  ;;  %v191_v36 = vadd.f32 %v190_v29, %v189_v25 }
  0x34   : > { %v214_v37 = vmul.f32 0.25, %v198_v33  ;;  %v216_v38 = vmul.f32 0.25, %v212_v35  ;;  %v215_v39 = vmul.f32 0.25, %v205_v34  ;;  %v213_v42 = vmul.f32 0.25, %v191_v36 }
  0x36   : > { %v221_v40 = vrot.slane %v214_v37, 6  ;;  %v222_v41 = vrot.slane %v216_v38, 6 }
  0x38   : > { %v225_v43 = vsel %vm223_vm1, %v215_v39, %v222_v41  ;;  %v224_v45 = vsel %vm223_vm1, %v213_v42, %v221_v40 }
  0x39   : > { %v230_v44 = vrot.slane %v225_v43, 7 }
  0x3b   : > { %v232_v46 = vsel %vm231_vm2, %v230_v44, %v224_v45 }
  0x3c   : > { %v234_v47 = vsel %vm233_vm3, %v230_v44, %v232_v46 }
  0x3d   : > { %v236_v48 = vsel %vm235_vm4, %v230_v44, %v234_v47 }
  0x3e   : > { %v238_v49 = vsel %vm237_vm5, %v230_v44, %v236_v48 }
  0x3f   : > { %240 = vst [vmem:[%s165_s28] sm:$0xf] %v238_v49 }
  0x40 PF: > { %p8_p9 = scmp.ge.s32.totalorder %s396_s10, 6   ;;  %s433_s6 = smov %s363_s7 }
  0x41   : > { %s434_s7 = smov %s405_s13  ;;  %s435_s8 = smov %s396_s10 }
  0x42   :  { %10 = sbr.rel (!%p8_p9) target bundleno = 2 (0x2), region = 101 }

// kernel: _lambda_.89
= control target key start
LH: loop header
LB: loop body
LE: loop exit
PB: predicated region body
PF: predicated region fallthrough
CT: control target
= control target key end

     0   :  { %s1053_s12 = smov 0   ;;  %s1055_s13 = smov 0   ;;  %s1173_s0 = inlined_call_operand.vmem [shape: bf16[16,1024], index: 0, kind: input, shape index: {}]   ;;  %s1174_s1 = inlined_call_operand.vmem [shape: bf16[1024,128], index: 1, kind: input, shape index: {}]   ;;  %s1175_s2 = inlined_call_operand.vmem [shape: f32[1,128], index: 2, kind: input, shape index: {}]   ;;  %s1176_s3 = inlined_call_operand.vmem [shape: f32[16,128], index: 3, kind: output, shape index: {}]  }
   0x1   :  { %s1057_s14 = smov 0   ;;  %s1059_s15 = smov 0  }
   0x2   :  { %s1061_s16 = smov 0  }
   0x3 LB: > { %s25_s17 = sadd.s32 1, %s1026_s15  ;;  %p48_p1 = scmp.ne.s32.totalorder %s1018_s13, %s1014_s12  ;;  %s1030_s16 = sphi %s1061_s16, %s13_s16   ;;  %s1026_s15 = sphi %s1059_s15, %s1180_s15   ;;  %s1022_s14 = sphi %s1057_s14, %s1179_s14   ;;  %s1018_s13 = sphi %s1055_s13, %s1178_s13   ;;  %s1014_s12 = sphi %s1053_s12, %s1177_s12  }
   0x4   : > { %p26_p0 = scmp.ge.s32.totalorder %s25_s17, 2  ;;  %p49_p2 = scmp.eq.s32.totalorder %s1030_s16, 0 }
   0x5   : > { %s41_s19 = sadd.s32 1, %s1018_s13  ;;  %p755_p5 = scmp.ge.s32.totalorder %s1030_s16, 2 }
   0x6   : > { %s1182_s17 = smov (%p26_p0, %s25_s17), 0  ;;  %p50_p3 = por %p49_p2, %p48_p1 }
   0x7   : > { %s37_s18 = ssub.s32 %s1026_s15, %s1182_s17  ;;  %162 = sbr.rel (%p755_p5) target bundleno = 20 (0x14), region = 20 }
   0x8   : > { %p39_p4 = scmp.eq.s32.totalorder %s37_s18, 0 }
   0xa   : > { %s1088_s20 = scalar_select %p39_p4, %s1018_s13, %s41_s19  }
   0xc   : > { %165 = sbr.rel (!%p50_p3) target bundleno = 20 (0x14), region = 24  ;;  %s167_s21 = sand.u32 (%p50_p3), 1, %s1018_s13  }
   0xd   : > { %s913_s22 = sshll.u32 (%p50_p3), %s1026_s15, 4  ;;  %s756_s23 = sshll.u32 (%p50_p3), %s167_s21, 5 }
   0xe   : > { %s175_s26 = scalar_lea.vmem (%p50_p3), %s1173_s0, %s913_s22  ;;  %s169_s27 = scalar_lea.vmem (%p50_p3), [#allocation3], %s756_s23 }
   0xf   : > { %v188_v0 = vld [vmem:[%s175_s26] sm:$0xff] (%p50_p3)  ;;  %v190_v1 = vld [vmem:[%s175_s26 + $0x8] sm:$0xff] (%p50_p3) }
  0x10   : > { %v192_v2 = vld [vmem:[%s175_s26 + $0x20] sm:$0xff] (%p50_p3)  ;;  %189 = vst [vmem:[%s169_s27] sm:$0xff] (%p50_p3), %v188_v0  ;;  %v194_v3 = vld [vmem:[%s175_s26 + $0x28] sm:$0xff] (%p50_p3) }
  0x11   : > { %191 = vst [vmem:[%s169_s27 + $0x8] sm:$0xff] %v190_v1 }
  0x12   : > { %193 = vst [vmem:[%s169_s27 + $0x10] sm:$0xff] %v192_v2 }
  0x13   : > { %195 = vst [vmem:[%s169_s27 + $0x18] sm:$0xff] %v194_v3 }
  0x14 PF: > { %p759_p6 = scmp.ge.s32.totalorder %s1030_s16, 1  ;;  %p212_p7 = scmp.lt.s32.totalorder %s1030_s16, 3 }
  0x16   : > { %p213_p8 = pnand %p759_p6, %p212_p7 }
  0x17   : > { %s219_s28 = sand.u32 (!%p213_p8), 1, %s1014_s12   ;;  %s761_s29 = sshll.u32 (!%p213_p8), %s1022_s14, 6 }
  0x18   : > { %216 = sbr.rel (%p213_p8) target bundleno = 228 (0xe4), region = 51  ;;  %s760_s30 = sshll.u32 (!%p213_p8), %s219_s28, 5 }
  0x19   : > { %p259_p9 = scmp.lt.s32.totalorder (!%p213_p8), %s761_s29, 127  ;;  %s1105_s8 = scalar_lea.vmem (!%p213_p8), [#allocation3], %s760_s30 }
  0x1a   : > { %p763_p10 = scmp.ne.s32.totalorder (!%p213_p8), %s1022_s14, 0 }
  0x1d   : > { %s1184_s29 = smov (!%p259_p9, %s761_s29), 127  ;;  %282 = sbr.rel (%p763_p10) target bundleno = 37 (0x25), region = 59 }
  0x1e   : > { %s762_s4 = sshll.u32 %s1184_s29, 2 }
  0x1f   : > { %s1103_s7 = scalar_lea.vmem %s1174_s1, %s762_s4 }
  0x22   : > { %v1032_v4 = vmov 0.0  }
  0x23   : > { %283 = vst [vmem:[#allocation2] sm:$0xff] %v1032_v4 }
  0x24   : > { %284 = vst [vmem:[#allocation2 + $0x8] sm:$0xff] %v1032_v4 }
  0x25 PF: > { %v925_v5 = vld [vmem:[%s1103_s7 + $0x38] sm:$0xff]  ;;  %v924_v9 = vld [vmem:[%s1103_s7 + $0x30] sm:$0xff]  ;;  %v923_v13 = vld [vmem:[%s1103_s7 + $0x28] sm:$0xff]  ;;  %p908_p11 = scmp.ne.s32.totalorder %s1022_s14, 1 }
  0x26   : > { %v933_v6 = vld [vmem:[%s1103_s7 + $0x78] sm:$0xff]  ;;  %567 = vmatpush.bf16.msra.mxu0 %v925_v5  ;;  %v932_v10 = vld [vmem:[%s1103_s7 + $0x70] sm:$0xff]  ;;  %v931_v14 = vld [vmem:[%s1103_s7 + $0x68] sm:$0xff] }
  0x27   : > { %v941_v7 = vld [vmem:[%s1103_s7 + $0xb8] sm:$0xff]  ;;  %581 = vmatpush.bf16.msra.mxu1 %v933_v6  ;;  %v940_v11 = vld [vmem:[%s1103_s7 + $0xb0] sm:$0xff]  ;;  %v939_v15 = vld [vmem:[%s1103_s7 + $0xa8] sm:$0xff] }
  0x28   : > { %v949_v8 = vld [vmem:[%s1103_s7 + $0xf8] sm:$0xff]  ;;  %595 = vmatpush.bf16.msra.mxu2 %v941_v7  ;;  %v948_v12 = vld [vmem:[%s1103_s7 + $0xf0] sm:$0xff]  ;;  %v947_v16 = vld [vmem:[%s1103_s7 + $0xe8] sm:$0xff] }
  0x29   : > { %609 = vmatpush.bf16.msra.mxu3 %v949_v8  ;;  %v922_v17 = vld [vmem:[%s1103_s7 + $0x20] sm:$0xff]  ;;  %v921_v21 = vld [vmem:[%s1103_s7 + $0x18] sm:$0xff]  ;;  %v920_v25 = vld [vmem:[%s1103_s7 + $0x10] sm:$0xff] }
  0x2a   : > { %568 = vmatpush.bf16.msra.mxu0 %v924_v9  ;;  %v930_v18 = vld [vmem:[%s1103_s7 + $0x60] sm:$0xff]  ;;  %v929_v22 = vld [vmem:[%s1103_s7 + $0x58] sm:$0xff]  ;;  %v928_v26 = vld [vmem:[%s1103_s7 + $0x50] sm:$0xff] }
  0x2b   : > { %582 = vmatpush.bf16.msra.mxu1 %v932_v10  ;;  %v938_v19 = vld [vmem:[%s1103_s7 + $0xa0] sm:$0xff]  ;;  %v937_v23 = vld [vmem:[%s1103_s7 + $0x98] sm:$0xff]  ;;  %v936_v27 = vld [vmem:[%s1103_s7 + $0x90] sm:$0xff] }
  0x2c   : > { %596 = vmatpush.bf16.msra.mxu2 %v940_v11  ;;  %v946_v20 = vld [vmem:[%s1103_s7 + $0xe0] sm:$0xff]  ;;  %v945_v24 = vld [vmem:[%s1103_s7 + $0xd8] sm:$0xff]  ;;  %v944_v28 = vld [vmem:[%s1103_s7 + $0xd0] sm:$0xff] }
  0x2d   : > { %610 = vmatpush.bf16.msra.mxu3 %v948_v12  ;;  %v919_v29 = vld [vmem:[%s1103_s7 + $0x8] sm:$0xff]  ;;  %v918_v33 = vld [vmem:[%s1103_s7] sm:$0xff]  ;;  %v766_v37 = vld [vmem:[%s1105_s8] sm:$0xf] }
  0x2e   : > { %569 = vmatpush.bf16.msra.mxu0 %v923_v13  ;;  %v927_v30 = vld [vmem:[%s1103_s7 + $0x48] sm:$0xff]  ;;  %v926_v34 = vld [vmem:[%s1103_s7 + $0x40] sm:$0xff]  ;;  %v914_v39 = vld [vmem:[%s1105_s8 + $0x4] sm:$0xf] }
  0x2f   : > { %583 = vmatpush.bf16.msra.mxu1 %v931_v14  ;;  %v935_v31 = vld [vmem:[%s1103_s7 + $0x88] sm:$0xff]  ;;  %v934_v35 = vld [vmem:[%s1103_s7 + $0x80] sm:$0xff]  ;;  %v774_v41 = vld [vmem:[%s1105_s8 + $0x8] sm:$0xf] }
  0x30   : > { %597 = vmatpush.bf16.msra.mxu2 %v939_v15  ;;  %v943_v32 = vld [vmem:[%s1103_s7 + $0xc8] sm:$0xff]  ;;  %v942_v36 = vld [vmem:[%s1103_s7 + $0xc0] sm:$0xff]  ;;  %v915_v43 = vld [vmem:[%s1105_s8 + $0xc] sm:$0xf] }
  0x31   : > { %611 = vmatpush.bf16.msra.mxu3 %v947_v16  ;;  %v916_v38 = vld [vmem:[%s1105_s8 + $0xc] sm:$0xf0]  ;;  %v768_v40 = vld [vmem:[%s1105_s8 + $0x10] sm:$0xf0]  ;;  %v917_v42 = vld [vmem:[%s1105_s8 + $0x14] sm:$0xf0] }
  0x32   : > { %570 = vmatpush.bf16.msra.mxu0 %v922_v17  ;;  %v776_v44 = vld [vmem:[%s1105_s8 + $0x18] sm:$0xf0]  ;;  %v767_v45 = vor.u32 %v916_v38, %v766_v37  ;;  %v771_v46 = vor.u32 %v914_v39, %v768_v40  ;;  %v775_v47 = vor.u32 %v917_v42, %v774_v41  ;;  %v285_v55 = vld [vmem:[#allocation2] sm:$0xff] }
  0x33   : > { %584 = vmatpush.bf16.msra.mxu1 %v930_v18  ;;  %v779_v48 = vor.u32 %v915_v43, %v776_v44  ;;  %v286_v63 = vld [vmem:[#allocation2 + $0x8] sm:$0xff] }
  0x34   : > { %598 = vmatpush.bf16.msra.mxu2 %v938_v19 }
  0x35   : > { %612 = vmatpush.bf16.msra.mxu3 %v946_v20 }
  0x36   : > { %571 = vmatpush.bf16.msra.mxu0 %v921_v21 }
  0x37   : > { %585 = vmatpush.bf16.msra.mxu1 %v929_v22 }
  0x38   : > { %599 = vmatpush.bf16.msra.mxu2 %v937_v23 }
  0x39   : > { %613 = vmatpush.bf16.msra.mxu3 %v945_v24 }
  0x3a   : > { %572 = vmatpush.bf16.msra.mxu0 %v920_v25 }
  0x3b   : > { %586 = vmatpush.bf16.msra.mxu1 %v928_v26 }
  0x3c   : > { %600 = vmatpush.bf16.msra.mxu2 %v936_v27 }
  0x3d   : > { %614 = vmatpush.bf16.msra.mxu3 %v944_v28 }
  0x3e   : > { %573 = vmatpush.bf16.msra.mxu0 %v919_v29 }
  0x3f   : > { %587 = vmatpush.bf16.msra.mxu1 %v927_v30 }
  0x40   : > { %601 = vmatpush.bf16.msra.mxu2 %v935_v31 }
  0x41   : > { %615 = vmatpush.bf16.msra.mxu3 %v943_v32 }
  0x42   : > { %574 = vmatpush.bf16.msra.mxu0 %v918_v33 }
  0x43   : > { %588 = vmatpush.bf16.msra.mxu1 %v926_v34 }
  0x44   : > { %602 = vmatpush.bf16.msra.mxu2 %v934_v35 }
  0x45   : > { %616 = vmatpush.bf16.msra.mxu3 %v942_v36  ;;  %575 = vmatmul.bf16.vlgmr.msra.gmra.mxu0 %v767_v45 }
  0x46   : > { %589 = vmatmul.bf16.vlgmr.msra.gmra.mxu1 %v771_v46 }
  0x47   : > { %603 = vmatmul.bf16.vlgmr.msra.gmra.mxu2 %v775_v47 }
  0x48   : > { %617 = vmatmul.bf16.vlgmr.msra.gmra.mxu3 %v779_v48 }
  0xc2   : > { %v576_v49 = vpop.f32.mrf.mxu0 }
  0xc3   : > { %v590_v50 = vpop.f32.mrf.mxu1 }
  0xc4   : > { %v591_v51 = vadd.f32 %v590_v50, %v576_v49 }
  0xca   : > { %v604_v52 = vpop.f32.mrf.mxu2  ;;  %v578_v57 = vpop.f32.mrf.mxu0 }
  0xcb   : > { %v618_v53 = vpop.f32.mrf.mxu3  ;;  %v605_v54 = vadd.f32 %v604_v52, %v591_v51  ;;  %v592_v58 = vpop.f32.mrf.mxu1 }
  0xcc   : > { %v593_v60 = vadd.f32 %v592_v58, %v578_v57 }
  0xcd   : > { %v619_v56 = vadd.f32 %v618_v53, %v605_v54 }
  0xcf   : > { %v623_v59 = vadd.f32 %v619_v56, %v285_v55 }
  0xd1   : > { %625 = vst [vmem:[#allocation2] sm:$0xff] %v623_v59 }
  0xd2   : > { %v606_v61 = vpop.f32.mrf.mxu2 }
  0xd3   : > { %v607_v62 = vadd.f32 %v606_v61, %v593_v60  ;;  %v620_v0 = vpop.f32.mrf.mxu3 }
  0xd5   : > { %v621_v1 = vadd.f32 %v620_v0, %v607_v62  ;;  %630 = sbr.rel (%p908_p11) target bundleno = 228 (0xe4), region = 63 }
  0xd7   : > { %v624_v2 = vadd.f32 %v621_v1, %v286_v63 }
  0xd9   : > { %626 = vst [vmem:[#allocation2 + $0x8] sm:$0xff] %v624_v2 }
  0xda   : > { %v631_v3 = vld [vmem:[#allocation2] sm:$0xff] }
  0xdb   : > { %v991_v4 = vld [vmem:[%s1175_s2] ss:$0 sm:$0xff] }
  0xdc   : > { %v637_v6 = vadd.f32 %v991_v4, %v631_v3 }
  0xde   : > { %639 = vst [vmem:[%s1176_s3] sm:$0xff] %v637_v6 }
  0xe0   : > { %v632_v5 = vld [vmem:[#allocation2 + $0x8] sm:$0xff] }
  0xe1   : > { %v638_v7 = vadd.f32 %v991_v4, %v632_v5 }
  0xe3   : > { %640 = vst [vmem:[%s1176_s3 + $0x8] sm:$0xff] %v638_v7 }
  0xe4 PF: > { %s13_s16 = sadd.s32 1, %s1030_s16   ;;  %s1177_s12 = smov %s1018_s13 }
  0xe5   : > { %p10_p12 = scmp.ge.s32.totalorder %s13_s16, 4   ;;  %s1178_s13 = smov %s1088_s20 }
  0xe6   : > { %s1179_s14 = smov %s1026_s15  ;;  %s1180_s15 = smov %s1182_s17 }
  0xe7   :  { %12 = sbr.rel (!%p10_p12) target bundleno = 3 (0x3), region = 104 }

</bundles_post_ra>
